<compile_context>
chip_gen: v5e
topology: v5e:2x2
jax: 0.10.0
libtpu: 0.0.40
codegen_flags: <defaults>
</compile_context>

<pallas_src>
import jax
import jax.numpy as jnp
from jax.experimental import pallas as pl
from jax.experimental.pallas import tpu as pltpu


# ---------------------------------------------------------------------------
# Module constants (torchaudio.transforms.MelSpectrogram config).
# ---------------------------------------------------------------------------
SAMPLE_RATE = 16000
N_FFT = 512
HOP_SIZE = 128
F_MIN = 30.0
F_MAX = 8000.0
N_MELS = 128

_LOG_CLAMP = 1e-9


def _round_up(x, m):
    return (x + m - 1) // m * m


# ---------------------------------------------------------------------------
# Constant-matrix construction (wrapper-side, matches torchaudio defaults)
# ---------------------------------------------------------------------------
def hann_window(n_fft):
    """torch.hann_window(n_fft, periodic=True)."""
    n = jnp.arange(n_fft, dtype=jnp.float32)
    return 0.5 - 0.5 * jnp.cos(2.0 * jnp.pi * n / n_fft)


def mel_filterbank(n_freqs, f_min, f_max, n_mels, sample_rate):
    """torchaudio.functional.melscale_fbanks (mel_scale='htk', norm=None)."""
    all_freqs = jnp.linspace(0.0, sample_rate / 2.0, n_freqs)

    def hz_to_mel(f):
        return 2595.0 * jnp.log10(1.0 + f / 700.0)

    def mel_to_hz(m):
        return 700.0 * (jnp.power(10.0, m / 2595.0) - 1.0)

    m_pts = jnp.linspace(hz_to_mel(f_min), hz_to_mel(f_max), n_mels + 2)
    f_pts = mel_to_hz(m_pts)
    f_diff = f_pts[1:] - f_pts[:-1]                       # (n_mels+1,)
    slopes = f_pts[None, :] - all_freqs[:, None]          # (n_freqs, n_mels+2)
    down = -slopes[:, :-2] / f_diff[:-1]
    up = slopes[:, 2:] / f_diff[1:]
    return jnp.maximum(0.0, jnp.minimum(down, up)).astype(jnp.float32)


def windowed_dft_matrices(n_fft, window):
    """Real / imaginary windowed-DFT matrices of shape (n_fft, n_fft//2+1)."""
    n_freqs = n_fft // 2 + 1
    n = jnp.arange(n_fft, dtype=jnp.int32)
    k = jnp.arange(n_freqs, dtype=jnp.int32)
    # Exact integer modular reduction before the float multiply keeps the
    # cos/sin arguments in [0, 2*pi) -> full f32 accuracy for large n*k.
    nk = (n[:, None] * k[None, :]) % n_fft
    ang = (2.0 * jnp.pi / n_fft) * nk.astype(jnp.float32)
    w_re = jnp.cos(ang) * window[:, None]
    w_im = -jnp.sin(ang) * window[:, None]
    return w_re, w_im


# ---------------------------------------------------------------------------
# Pallas kernel: one frame-tile of the fused log-mel pipeline
# ---------------------------------------------------------------------------
def _logmel_kernel(frames_ref, wcat_ref, fbcat_ref, out_ref):
    f = frames_ref[...]                                    # (TM, K)
    # [Re | Im] spectrum in one MXU pass (cancellation-sensitive -> HIGHEST).
    spec = jnp.dot(f, wcat_ref[...], preferred_element_type=jnp.float32,
                   precision=jax.lax.Precision.HIGHEST)    # (TM, 2F)
    power = spec * spec                                    # re^2 and im^2 lanes
    # FBcat = [fb; fb] so this sums re^2@fb + im^2@fb in one matmul.
    # All-positive terms + f32 accumulation -> default precision is plenty.
    mel = jnp.dot(power, fbcat_ref[...],
                  preferred_element_type=jnp.float32)      # (TM, N)
    out_ref[...] = jnp.log(jnp.maximum(mel, _LOG_CLAMP))


# ---------------------------------------------------------------------------
# Wrapper-side framing: center=True reflect pad + overlapping frames, drop #0
# ---------------------------------------------------------------------------
def _extract_frames(audio, n_fft, hop):
    B, _ = audio.shape
    pad = n_fft // 2
    x = jnp.pad(audio, ((0, 0), (pad, pad)), mode="reflect")
    L = x.shape[1]
    n_frames = 1 + (L - n_fft) // hop
    n_out = n_frames - 1                                   # module drops frame 0
    if n_fft % hop == 0:
        # Slice/concat of a non-overlapping reshape (no gather):
        # frame m = concat_q x[(m+q)*hop : (m+q+1)*hop],  q = 0..n_fft/hop-1
        q_count = n_fft // hop
        L_pad = _round_up(L, hop)
        x2 = jnp.pad(x, ((0, 0), (0, L_pad - L)))
        a = x2.reshape(B, L_pad // hop, hop)
        frames = jnp.concatenate(
            [a[:, 1 + q:1 + q + n_out, :] for q in range(q_count)], axis=-1)
    else:
        frame_idx = jnp.arange(1, n_frames)
        idx = frame_idx[:, None] * hop + jnp.arange(n_fft)[None, :]
        frames = x[:, idx]
    return frames, n_out                                   # (B, n_out, n_fft)


# ---------------------------------------------------------------------------
# Public wrapper: audio (B, T) -> log-mel (B, T//hop, n_mels)
# ---------------------------------------------------------------------------
def log_mel_spectrogram(audio, *, n_fft=N_FFT, hop=HOP_SIZE,
                        sample_rate=SAMPLE_RATE, f_min=F_MIN, f_max=F_MAX,
                        n_mels=N_MELS, frame_tile=256):
    audio = audio.astype(jnp.float32)
    B = audio.shape[0]
    n_freqs = n_fft // 2 + 1

    # 1. Overlapping, frame-0-dropped windows (the module's `padded_audio` is
    #    dead code: it calls melspectrogram(audio); we mirror the used path).
    frames, n_out = _extract_frames(audio, n_fft, hop)
    M = B * n_out
    frames = frames.reshape(M, n_fft)

    # 2. Fused constant matrices, zero-padded to lane-aligned shapes.
    window = hann_window(n_fft)
    w_re, w_im = windowed_dft_matrices(n_fft, window)       # (n_fft, n_freqs)
    fb = mel_filterbank(n_freqs, f_min, f_max, n_mels, sample_rate)

    K = _round_up(n_fft, 128)
    FW = _round_up(2 * n_freqs, 128)                        # concat Re|Im width
    N = _round_up(n_mels, 128)

    w_cat = jnp.concatenate([w_re, w_im], axis=1)           # (n_fft, 2*n_freqs)
    w_cat = jnp.pad(w_cat, ((0, K - n_fft), (0, FW - 2 * n_freqs)))
    fb_cat = jnp.concatenate([fb, fb], axis=0)              # (2*n_freqs, n_mels)
    fb_cat = jnp.pad(fb_cat, ((0, FW - 2 * n_freqs), (0, N - n_mels)))

    frames = jnp.pad(frames, ((0, 0), (0, K - n_fft)))
    TM = min(frame_tile, _round_up(M, 8))
    M_pad = _round_up(M, TM)
    frames = jnp.pad(frames, ((0, M_pad - M), (0, 0)))

    out = pl.pallas_call(
        _logmel_kernel,
        out_shape=jax.ShapeDtypeStruct((M_pad, N), jnp.float32),
        grid_spec=pltpu.PrefetchScalarGridSpec(
            num_scalar_prefetch=0,
            grid=(M_pad // TM,),
            in_specs=[
                pl.BlockSpec((TM, K), lambda i: (i, 0)),    # frame tile (streamed)
                pl.BlockSpec((K, FW), lambda i: (0, 0)),    # [Wre|Wim]  (resident)
                pl.BlockSpec((FW, N), lambda i: (0, 0)),    # [fb; fb]   (resident)
            ],
            out_specs=pl.BlockSpec((TM, N), lambda i: (i, 0)),
        ),
        compiler_params=pltpu.CompilerParams(
            dimension_semantics=("parallel",)),
    )(frames, w_cat, fb_cat)

    return out[:M, :n_mels].reshape(B, n_out, n_mels)


# ---------------------------------------------------------------------------
# Pure-JAX reference (rfft-based) for correctness check
# ---------------------------------------------------------------------------
def _ref_log_mel(audio, *, n_fft=N_FFT, hop=HOP_SIZE, sample_rate=SAMPLE_RATE,
                 f_min=F_MIN, f_max=F_MAX, n_mels=N_MELS):
    audio = audio.astype(jnp.float32)
    pad = n_fft // 2
    x = jnp.pad(audio, ((0, 0), (pad, pad)), mode="reflect")
    n_frames = 1 + (x.shape[1] - n_fft) // hop
    idx = jnp.arange(n_frames)[:, None] * hop + jnp.arange(n_fft)[None, :]
    frames = x[:, idx] * hann_window(n_fft)[None, None, :]
    spec = jnp.fft.rfft(frames, axis=-1)
    power = jnp.real(spec) ** 2 + jnp.imag(spec) ** 2       # (B, F, n_freqs)
    fb = mel_filterbank(n_fft // 2 + 1, f_min, f_max, n_mels, sample_rate)
    mel = power @ fb                                        # (B, F, n_mels)
    mel = mel[:, 1:, :]                                     # drop frame 0 (+transpose layout)
    return jnp.log(jnp.clip(mel, _LOG_CLAMP))


if __name__ == "__main__":
    key = jax.random.PRNGKey(0)
    BATCH = 2
    T = 16 * HOP_SIZE                        # 2048 samples -> 16 output frames
    audio = jax.random.normal(key, (BATCH, T), jnp.float32)

    out = jax.block_until_ready(log_mel_spectrogram(audio))
    n_out_frames = T // HOP_SIZE
    assert out.shape == (BATCH, n_out_frames, N_MELS), out.shape

    ref = jax.block_until_ready(_ref_log_mel(audio))
    assert ref.shape == out.shape, (ref.shape, out.shape)
    max_err = float(jnp.max(jnp.abs(out - ref)))
    assert jnp.allclose(out, ref, atol=2e-2, rtol=2e-2), (
        f"mismatch vs JAX reference (max abs err {max_err})")

    print("KERNEL_OK")
</pallas_src>

<mosaic_0001>
module attributes {stable_mosaic.version = 11 : i64} {
  func.func @_logmel_kernel(%arg0: i32, %arg1: memref<32x512xf32, #tpu.memory_space<vmem>>, %arg2: memref<512x640xf32, #tpu.memory_space<vmem>>, %arg3: memref<640x128xf32, #tpu.memory_space<vmem>>, %arg4: memref<32x128xf32, #tpu.memory_space<vmem>>) attributes {dimension_semantics = [#tpu.dimension_semantics<parallel>], iteration_bounds = array<i64: 1>, scalar_prefetch = 0 : i64, scratch_operands = 0 : i64, tpu.core_type = #tpu.core_type<tc>, window_params = [{transform_indices = @transform_0, window_bounds = array<i64: 32, 512>}, {pipeline_mode = #tpu.pipeline_mode<synchronous>, transform_indices = @transform_1, window_bounds = array<i64: 512, 640>}, {pipeline_mode = #tpu.pipeline_mode<synchronous>, transform_indices = @transform_2, window_bounds = array<i64: 640, 128>}, {transform_indices = @transform_3, window_bounds = array<i64: 32, 128>}]} {
    %c0 = arith.constant 0 : index
    %c0_0 = arith.constant 0 : index
    %0 = vector.load %arg1[%c0, %c0_0] : memref<32x512xf32, #tpu.memory_space<vmem>>, vector<32x512xf32>
    %c0_1 = arith.constant 0 : index
    %c0_2 = arith.constant 0 : index
    %1 = vector.load %arg2[%c0_1, %c0_2] : memref<512x640xf32, #tpu.memory_space<vmem>>, vector<512x640xf32>
    %cst = arith.constant dense<0.000000e+00> : vector<32x640xf32>
    %2 = tpu.matmul %0, %1, %cst {dimension_numbers = #tpu.dot_dimension_numbers<[1], [0], [0], [1], [0, 0, 1, 1], [], []>, precision = #tpu.contract_precision<fp32>} : vector<32x512xf32>, vector<512x640xf32>, vector<32x640xf32> -> vector<32x640xf32>
    %3 = arith.mulf %2, %2 : vector<32x640xf32>
    %c0_3 = arith.constant 0 : index
    %c0_4 = arith.constant 0 : index
    %4 = vector.load %arg3[%c0_3, %c0_4] : memref<640x128xf32, #tpu.memory_space<vmem>>, vector<640x128xf32>
    %cst_5 = arith.constant dense<0.000000e+00> : vector<32x128xf32>
    %5 = tpu.matmul %3, %4, %cst_5 {dimension_numbers = #tpu.dot_dimension_numbers<[1], [0], [0], [1], [0, 0, 1, 1], [], []>} : vector<32x640xf32>, vector<640x128xf32>, vector<32x128xf32> -> vector<32x128xf32>
    %cst_6 = arith.constant 9.99999971E-10 : f32
    %6 = vector.broadcast %cst_6 : f32 to vector<32x128xf32>
    %7 = arith.maximumf %5, %6 : vector<32x128xf32>
    %8 = math.log %7 : vector<32x128xf32>
    %c0_7 = arith.constant 0 : index
    %c0_8 = arith.constant 0 : index
    %9 = vector.load %arg4[%c0_7, %c0_8] : memref<32x128xf32, #tpu.memory_space<vmem>>, vector<32x128xf32>
    tpu.vector_store %arg4[%c0_7, %c0_8], %8 {strides = array<i32>} : memref<32x128xf32, #tpu.memory_space<vmem>>, vector<32x128xf32>,
    return
  }
  func.func @transform_0(%arg0: i32) -> (i32, i32) {
    %c0_i32 = arith.constant 0 : i32
    %c0_i32_0 = arith.constant 0 : i32
    return %arg0, %c0_i32 : i32, i32
  }
  func.func @transform_1(%arg0: i32) -> (i32, i32) {
    %c0_i32 = arith.constant 0 : i32
    %c0_i32_0 = arith.constant 0 : i32
    %c0_i32_1 = arith.constant 0 : i32
    return %c0_i32, %c0_i32_0 : i32, i32
  }
  func.func @transform_2(%arg0: i32) -> (i32, i32) {
    %c0_i32 = arith.constant 0 : i32
    %c0_i32_0 = arith.constant 0 : i32
    %c0_i32_1 = arith.constant 0 : i32
    return %c0_i32, %c0_i32_0 : i32, i32
  }
  func.func @transform_3(%arg0: i32) -> (i32, i32) {
    %c0_i32 = arith.constant 0 : i32
    %c0_i32_0 = arith.constant 0 : i32
    return %arg0, %c0_i32 : i32, i32
  }
}

</mosaic_0001>

<bundles_post_ra>
// kernel: tpu_custom_call.1
= control target key start
LH: loop header
LB: loop body
LE: loop exit
PB: predicated region body
PF: predicated region fallthrough
CT: control target
= control target key end

     0   :  { %8 = vsyncpa [#allocation3], 0  ;;  %s16386_s0 = inlined_call_operand.hbm [shape: f32[32,512], index: 0, kind: input, shape index: {}]   ;;  %s16387_s1 = inlined_call_operand.hbm [shape: f32[512,640], index: 1, kind: input, shape index: {}]   ;;  %s16388_s2 = inlined_call_operand.hbm [shape: f32[640,128], index: 2, kind: input, shape index: {}]   ;;  %s16389_s3 = inlined_call_operand.hbm [shape: f32[32,128], index: 3, kind: output, shape index: {}]  }
   0x1   :  { %9 = vsyncpa [#allocation6], 0  ;;  %s28_s14 = sshll.u32 %s16387_s1, 4  ;;  %s29_s14 = int_to_ptr.hbm [resolvable:$true] %s28_s14 }
   0x2   :  { %10 = vsyncpa [#allocation4], 0  ;;  %s9527_s15 = smov [#allocation5]   ;;  %s15_s19 = sshll.u32 %s16386_s0, 4  ;;  %s16_s19 = int_to_ptr.hbm [resolvable:$true] %s15_s19 }
   0x3   :  { %s30_s16 = sshll.u32 %s9527_s15, 4  ;;  %s9528_s20 = smov 640   ;;  %s31_s16 = int_to_ptr.vmem [resolvable:$true] %s30_s16 }
   0x4   :  { %s9529_s21 = smov 40   ;;  %s9530_s22 = smov [#allocation2]  }
   0x5   :  { %36 = dma.hbm_to_vmem [thread:$0]  %s29_s14, 40960, %s31_s16, [#allocation6], %s9528_s20, %s9528_s20, %s9529_s21  }
   0x6   :  { %s17_s23 = sshll.u32 %s9530_s22, 4  ;;  %s9531_s24 = smov 512   ;;  %s18_s23 = int_to_ptr.vmem [resolvable:$true] %s17_s23 }
   0x7   :  { %s9532_s25 = smov 32   ;;  %s41_s27 = sshll.u32 %s16388_s2, 4  ;;  %s42_s27 = int_to_ptr.hbm [resolvable:$true] %s41_s27 }
   0x8   :  { %23 = dma.hbm_to_vmem [thread:$0]  %s16_s19, 2048, %s18_s23, [#allocation3], %s9531_s24, %s9531_s24, %s9532_s25  }
   0x9   :  { %s9533_s28 = smov [#allocation7]   ;;  %s9534_s30 = smov 128  }
   0xa   :  { %s43_s29 = sshll.u32 %s9533_s28, 4  ;;  %s9535_s0 = smov 8   ;;  %s44_s29 = int_to_ptr.vmem [resolvable:$true] %s43_s29 }
   0xb   :  { %49 = dma.hbm_to_vmem [thread:$0]  %s42_s27, 10240, %s44_s29, [#allocation6], %s9534_s30, %s9534_s30, %s9535_s0  }
   0xc   :  { %9521 = dma.done.wait [#allocation3], 2048  }
   0xd   :  { %9522 = vsyncadd [#allocation3], 4294965248 }
   0xe   :  { %9523 = dma.done.wait [#allocation6], 51200  }
   0xf   :  { %9524 = vsyncadd [#allocation6], 4294916096  ;;  %v153_v0 = vld [vmem:[#allocation5 + $0x258] sm:$0xff]  ;;  %v148_v1 = vld [vmem:[#allocation5 + $0x230] sm:$0xff]  ;;  %s9536_s2 = smov [#allocation8]   ;;  %s9345_s7 = sshll.u32 %s16389_s3, 4  ;;  %s9346_s7 = int_to_ptr.hbm [resolvable:$true] %s9345_s7 }
  0x10   :  { %v143_v2 = vld [vmem:[#allocation5 + $0x208] sm:$0xff]  ;;  %v9569_v3 = vand.u32 4294901760, %v153_v0  ;;  %v9571_v4 = vand.u32 4294901760, %v148_v1  ;;  %v138_v6 = vld [vmem:[#allocation5 + $0x1e0] sm:$0xff]  ;;  %v133_v7 = vld [vmem:[#allocation5 + $0x1b8] sm:$0xff]  ;;  %s9343_s4 = sshll.u32 %s9536_s2, 4  ;;  %s9344_s4 = int_to_ptr.vmem [resolvable:$true] %s9343_s4 }
  0x11   :  { %v9573_v5 = vand.u32 4294901760, %v143_v2  ;;  %v128_v8 = vld [vmem:[#allocation5 + $0x190] sm:$0xff]  ;;  %v9575_v9 = vand.u32 4294901760, %v138_v6  ;;  %v9577_v10 = vand.u32 4294901760, %v133_v7  ;;  %v123_v12 = vld [vmem:[#allocation5 + $0x168] sm:$0xff]  ;;  %v118_v13 = vld [vmem:[#allocation5 + $0x140] sm:$0xff] }
  0x12   :  { %v9579_v11 = vand.u32 4294901760, %v128_v8  ;;  %399 = vmatpush.msra.mxu0 %v9569_v3  ;;  %646 = vmatpush.msra.mxu3 %v9569_v3  ;;  %v9584_v14 = vsub.f32 %v153_v0, %v9569_v3  ;;  %v9587_v15 = vsub.f32 %v148_v1, %v9571_v4  ;;  %v9592_v17 = vand.u32 4294901760, %v123_v12  ;;  %v113_v18 = vld [vmem:[#allocation5 + $0x118] sm:$0xff]  ;;  %v108_v26 = vld [vmem:[#allocation5 + $0xf0] sm:$0xff]  ;;  %v103_v34 = vld [vmem:[#allocation5 + $0xc8] sm:$0xff] }
  0x13   :  { %v9590_v16 = vsub.f32 %v143_v2, %v9573_v5  ;;  %v9595_v19 = vsub.f32 %v138_v6, %v9575_v9  ;;  %v9598_v20 = vsub.f32 %v133_v7, %v9577_v10  ;;  %v9600_v21 = vand.u32 4294901760, %v118_v13  ;;  %v98_v43 = vld [vmem:[#allocation5 + $0xa0] sm:$0xff]  ;;  %v93_v49 = vld [vmem:[#allocation5 + $0x78] sm:$0xff]  ;;  %v88_v55 = vld [vmem:[#allocation5 + $0x50] sm:$0xff] }
  0x14   :  { %401 = vmatpush.msra.mxu0 %v9571_v4  ;;  %578 = vmatpush.msra.mxu2 %v9584_v14  ;;  %v16402_v22 = vand.u32 4294901760, %v9584_v14  ;;  %v16401_v23 = vand.u32 4294901760, %v9587_v15  ;;  %v9608_v25 = vsub.f32 %v128_v8, %v9579_v11  ;;  %v9613_v28 = vsub.f32 %v123_v12, %v9592_v17  ;;  %v62_v56 = vld [vmem:[#allocation2] sm:$0xff]  ;;  %v233_v60 = vld [vmem:[#allocation5 + $0x4d8] sm:$0xff]  ;;  %v83_v63 = vld [vmem:[#allocation5 + $0x28] sm:$0xff] }
  0x15   :  { %v16400_v24 = vand.u32 4294901760, %v9590_v16  ;;  %648 = vmatpush.msra.mxu3 %v9571_v4  ;;  %v16399_v27 = vand.u32 4294901760, %v9595_v19  ;;  %v9615_v29 = vand.u32 4294901760, %v113_v18  ;;  %v16397_v33 = vand.u32 4294901760, %v9598_v20  ;;  %v228_v7 = vld [vmem:[#allocation5 + $0x4b0] sm:$0xff] }
  0x16   :  { %403 = vmatpush.msra.mxu0 %v9573_v5  ;;  %581 = vmatpush.msra.mxu2 %v9587_v15  ;;  %v466_v30 = vsub.f32 %v9584_v14, %v16402_v22  ;;  %v472_v31 = vsub.f32 %v9587_v15, %v16401_v23  ;;  %v9631_v35 = vsub.f32 %v118_v13, %v9600_v21  ;;  %v9633_v36 = vand.u32 4294901760, %v108_v26  ;;  %v78_v13 = vld [vmem:[#allocation5] sm:$0xff]  ;;  %v203_v22 = vld [vmem:[#allocation5 + $0x3e8] sm:$0xff] }
  0x17   :  { %v478_v32 = vsub.f32 %v9590_v16, %v16400_v24  ;;  %650 = vmatpush.msra.mxu3 %v9573_v5  ;;  %v484_v39 = vsub.f32 %v9595_v19, %v16399_v27  ;;  %v16396_v40 = vand.u32 4294901760, %v9608_v25  ;;  %v9642_v41 = vand.u32 4294901760, %v103_v34  ;;  %v198_v23 = vld [vmem:[#allocation5 + $0x3c0] sm:$0xff] }
  0x18   :  { %405 = vmatpush.msra.mxu0 %v9575_v9  ;;  %584 = vmatpush.msra.mxu2 %v9590_v16  ;;  %v467_v37 = vand.u32 4294901760, %v466_v30  ;;  %v473_v38 = vand.u32 4294901760, %v472_v31  ;;  %v16394_v42 = vand.u32 4294901760, %v9613_v28  ;;  %v490_v45 = vsub.f32 %v9598_v20, %v16397_v33  ;;  %v208_v33 = vld [vmem:[#allocation5 + $0x410] sm:$0xff] }
  0x19   :  { %652 = vmatpush.msra.mxu3 %v9575_v9  ;;  %v479_v44 = vand.u32 4294901760, %v478_v32  ;;  %v9650_v46 = vsub.f32 %v113_v18, %v9615_v29  ;;  %v9655_v47 = vsub.f32 %v108_v26, %v9633_v36  ;;  %v16393_v48 = vand.u32 4294901760, %v9631_v35 }
  0x1a   :  { %407 = vmatpush.msra.mxu0 %v9577_v10  ;;  %468 = vmatpush.msra.mxu1 %v467_v37  ;;  %v485_v50 = vand.u32 4294901760, %v484_v39  ;;  %v496_v51 = vsub.f32 %v9608_v25, %v16396_v40  ;;  %v9662_v52 = vand.u32 4294901760, %v98_v43  ;;  %v502_v53 = vsub.f32 %v9613_v28, %v16394_v42 }
  0x1b   :  { %587 = vmatpush.msra.mxu2 %v9595_v19  ;;  %654 = vmatpush.msra.mxu3 %v9577_v10  ;;  %v9670_v54 = vsub.f32 %v103_v34, %v9642_v41  ;;  %v491_v57 = vand.u32 4294901760, %v490_v45  ;;  %v9673_v58 = vand.u32 4294901760, %v93_v49  ;;  %v16392_v59 = vand.u32 4294901760, %v9650_v46  ;;  %v223_v34 = vld [vmem:[#allocation5 + $0x488] sm:$0xff] }
  0x1c   :  { %409 = vmatpush.msra.mxu0 %v9579_v11  ;;  %474 = vmatpush.msra.mxu1 %v473_v38  ;;  %16707 = vst [vmem:[#allocation12_spill] sm:$0xff] %v9662_v52  ;;  %v508_v61 = vsub.f32 %v9631_v35, %v16393_v48  ;;  %v16391_v62 = vand.u32 4294901760, %v9655_v47  ;;  %v497_v0 = vand.u32 4294901760, %v496_v51  ;;  %v9684_v1 = vsub.f32 %v98_v43, %v9662_v52  ;;  %v66_v51 = vld [vmem:[#allocation2 + $0x20] sm:$0xff] }
  0x1d   :  { %590 = vmatpush.msra.mxu2 %v9598_v20  ;;  %656 = vmatpush.msra.mxu3 %v9579_v11  ;;  %16708 = vst [vmem:[#allocation13_spill] sm:$0xff] %v9673_v58  ;;  %v9686_v2 = vand.u32 4294901760, %v88_v55  ;;  %v9688_v6 = vand.u32 4294901760, %v62_v56  ;;  %v503_v8 = vand.u32 4294901760, %v502_v53  ;;  %v16390_v12 = vand.u32 4294901760, %v9670_v54 }
  0x1e   :  { %411 = vmatpush.msra.mxu0 %v9592_v17  ;;  %480 = vmatpush.msra.mxu1 %v479_v44  ;;  %v9693_v18 = vand.u32 4294901760, %v233_v60  ;;  %v514_v26 = vsub.f32 %v9650_v46, %v16392_v59  ;;  %v9700_v30 = vsub.f32 %v93_v49, %v9673_v58  ;;  %v9702_v31 = vand.u32 4294901760, %v83_v63 }
  0x1f   :  { %593 = vmatpush.msra.mxu2 %v9608_v25  ;;  %658 = vmatpush.msra.mxu3 %v9592_v17  ;;  %16709 = vst [vmem:[#allocation14_spill] sm:$0xff] %v9686_v2  ;;  %v9705_v32 = vsub.f32 %v62_v56, %v9688_v6  ;;  %v509_v37 = vand.u32 4294901760, %v508_v61  ;;  %v520_v38 = vsub.f32 %v9655_v47, %v16391_v62  ;;  %v9712_v39 = vand.u32 4294901760, %v228_v7 }
  0x20   :  { %413 = vmatpush.msra.mxu0 %v9600_v21  ;;  %486 = vmatpush.msra.mxu1 %v485_v50  ;;  %16710 = vst [vmem:[#allocation15_spill] sm:$0xff] %v9688_v6  ;;  %v9716_v43 = vsub.f32 %v88_v55, %v9686_v2  ;;  %v9718_v44 = vand.u32 4294901760, %v78_v13  ;;  %v16395_v45 = vand.u32 4294901760, %v9684_v1  ;;  %v9722_v49 = vsub.f32 %v233_v60, %v9693_v18  ;;  %v218_v50 = vld [vmem:[#allocation5 + $0x460] sm:$0xff] }
  0x21   :  { %596 = vmatpush.msra.mxu2 %v9613_v28  ;;  %660 = vmatpush.msra.mxu3 %v9600_v21  ;;  %16711 = vst [vmem:[#allocation16_spill] sm:$0xff] %v9702_v31  ;;  %v526_v53 = vsub.f32 %v9670_v54, %v16390_v12  ;;  %v9729_v56 = vand.u32 4294901760, %v223_v34  ;;  %v515_v55 = vand.u32 4294901760, %v514_v26  ;;  %v9736_v60 = vand.u32 4294901760, %v9705_v32  ;;  %v213_v26 = vld [vmem:[#allocation5 + $0x438] sm:$0xff] }
  0x22   :  { %415 = vmatpush.msra.mxu0 %v9615_v29  ;;  %492 = vmatpush.msra.mxu1 %v491_v57  ;;  %16712 = vst [vmem:[#allocation17_spill] sm:$0xff] %v9705_v32  ;;  %v9733_v57 = vsub.f32 %v83_v63, %v9702_v31  ;;  %v16398_v61 = vand.u32 4294901760, %v9700_v30  ;;  %v9742_v12 = vsub.f32 %v228_v7, %v9712_v39  ;;  %v9744_v62 = vand.u32 4294901760, %v218_v50 }
  0x23   :  { %599 = vmatpush.msra.mxu2 %v9631_v35  ;;  %662 = vmatpush.msra.mxu3 %v9615_v29  ;;  %16713 = vst [vmem:[#allocation18_spill] sm:$0xff] %v9718_v44  ;;  %v532_v63 = vsub.f32 %v9684_v1, %v16395_v45  ;;  %v9753_v59 = vsub.f32 %v78_v13, %v9718_v44  ;;  %v16404_v7 = vand.u32 4294901760, %v9716_v43  ;;  %v527_v48 = vand.u32 4294901760, %v526_v53 }
  0x24   :  { %417 = vmatpush.msra.mxu0 %v9633_v36  ;;  %498 = vmatpush.msra.mxu1 %v497_v0  ;;  %16714 = vst [vmem:[#allocation19_spill] sm:$0xff] %v9722_v49  ;;  %v521_v0 = vand.u32 4294901760, %v520_v38  ;;  %v16403_v38 = vand.u32 4294901760, %v9722_v49  ;;  %v9760_v42 = vsub.f32 %v223_v34, %v9729_v56  ;;  %v538_v13 = vsub.f32 %v9700_v30, %v16398_v61  ;;  %v70_v34 = vld [vmem:[#allocation2 + $0x40] sm:$0xff] }
  0x25   :  { %602 = vmatpush.msra.mxu2 %v9650_v46  ;;  %664 = vmatpush.msra.mxu3 %v9633_v36  ;;  %16715 = vst [vmem:[#allocation20_spill] sm:$0xff] %v9736_v60  ;;  %v16406_v45 = vand.u32 4294901760, %v9733_v57  ;;  %v9769_v40 = vand.u32 4294901760, %v213_v26  ;;  %v9775_v53 = vsub.f32 %v218_v50, %v9744_v62  ;;  %v533_v61 = vand.u32 4294901760, %v532_v63 }
  0x26   :  { %419 = vmatpush.msra.mxu0 %v9642_v41  ;;  %504 = vmatpush.msra.mxu1 %v503_v8  ;;  %16716 = vst [vmem:[#allocation21_spill] sm:$0xff] %v9742_v12  ;;  %v9746_v8 = vand.u32 4294901760, %v66_v51  ;;  %v900_v27 = vsub.f32 %v9722_v49, %v16403_v38  ;;  %v544_v24 = vsub.f32 %v9716_v43, %v16404_v7  ;;  %v539_v63 = vand.u32 4294901760, %v538_v13 }
  0x27   :  { %605 = vmatpush.msra.mxu2 %v9655_v47  ;;  %666 = vmatpush.msra.mxu3 %v9642_v41  ;;  %16718 = vst [vmem:[#allocation23_spill] sm:$0xff] %v9760_v42  ;;  %v550_v38 = vsub.f32 %v9733_v57, %v16406_v45  ;;  %v9800_v7 = vsub.f32 %v213_v26, %v9769_v40  ;;  %v16721_v50 = vand.u32 4294901760, %v9742_v12  ;;  %v16723_v49 = vand.u32 4294901760, %v9753_v59 }
  0x28   :  { %16717 = vst [vmem:[#allocation22_spill] sm:$0xff] %v9746_v8  ;;  %421 = vmatpush.msra.mxu0 %v9662_v52  ;;  %510 = vmatpush.msra.mxu1 %v509_v37  ;;  %v433_v37 = vsub.f32 %v9705_v32, %v9736_v60  ;;  %v901_v26 = vand.u32 4294901760, %v900_v27  ;;  %v545_v45 = vand.u32 4294901760, %v544_v24  ;;  %v193_v24 = vld [vmem:[#allocation5 + $0x398] sm:$0xff] }
  0x29   :  { %608 = vmatpush.msra.mxu2 %v9670_v54  ;;  %668 = vmatpush.msra.mxu3 %v9662_v52  ;;  %v551_v27 = vand.u32 4294901760, %v550_v38 }
  0x2a   :  { %423 = vmatpush.msra.mxu0 %v9673_v58  ;;  %516 = vmatpush.msra.mxu1 %v515_v55  ;;  %v9778_v55 = vsub.f32 %v66_v51, %v9746_v8  ;;  %v9791_v51 = vand.u32 4294901760, %v208_v33 }
  0x2b   :  { %611 = vmatpush.msra.mxu2 %v9684_v1  ;;  %670 = vmatpush.msra.mxu3 %v9673_v58  ;;  %v9825_v58 = vand.u32 4294901760, %v198_v23 }
  0x2c   :  { %16719 = vst [vmem:[#allocation24_spill] sm:$0xff] %v9778_v55  ;;  %425 = vmatpush.msra.mxu0 %v9686_v2  ;;  %522 = vmatpush.msra.mxu1 %v521_v0  ;;  %v9794_v0 = vand.u32 4294901760, %v433_v37  ;;  %v9809_v13 = vand.u32 4294901760, %v9778_v55 }
  0x2d   :  { %614 = vmatpush.msra.mxu2 %v9700_v30  ;;  %672 = vmatpush.msra.mxu3 %v9686_v2  ;;  %v9811_v2 = vand.u32 4294901760, %v203_v22 }
  0x2e   :  { %427 = vmatpush.msra.mxu0 %v9702_v31  ;;  %528 = vmatpush.msra.mxu1 %v527_v48  ;;  %16720 = vst [vmem:[#allocation25_spill] sm:$0xff] %v9794_v0  ;;  %v906_v48 = vsub.f32 %v9742_v12, %v16721_v50  ;;  %v16724_v50 = vand.u32 4294901760, %v9760_v42  ;;  %v9823_v12 = vsub.f32 %v208_v33, %v9791_v51 }
  0x2f   :  { %617 = vmatpush.msra.mxu2 %v9716_v43  ;;  %674 = vmatpush.msra.mxu3 %v9702_v31  ;;  %16722 = vst [vmem:[#allocation26_spill] sm:$0xff] %v9809_v13  ;;  %v556_v31 = vsub.f32 %v9753_v59, %v16723_v49  ;;  %v9839_v52 = vsub.f32 %v203_v22, %v9811_v2  ;;  %v9843_v49 = vand.u32 4294901760, %v193_v24 }
  0x30   :  { %429 = vmatpush.msra.mxu0 %v9718_v44  ;;  %534 = vmatpush.msra.mxu1 %v533_v61  ;;  %v912_v37 = vsub.f32 %v9760_v42, %v16724_v50  ;;  %v9827_v61 = vand.u32 4294901760, %v70_v34  ;;  %v16726_v50 = vand.u32 4294901760, %v9775_v53  ;;  %v441_v42 = vsub.f32 %v9778_v55, %v9809_v13 }
  0x31   :  { %620 = vmatpush.msra.mxu2 %v9733_v57  ;;  %676 = vmatpush.msra.mxu3 %v9718_v44  ;;  %v907_v44 = vand.u32 4294901760, %v906_v48  ;;  %v557_v38 = vand.u32 4294901760, %v556_v31  ;;  %v16730_v31 = vand.u32 4294901760, %v9800_v7 }
  0x32   :  { %16725 = vst [vmem:[#allocation27_spill] sm:$0xff] %v9827_v61  ;;  %435 = vmatmul.f32.vlgmr.msra.gmra.mxu0 %v9794_v0  ;;  %680 = vmatmul.f32.vlgmr.msra.gmra.mxu3 %v9736_v60  ;;  %v918_v33 = vsub.f32 %v9775_v53, %v16726_v50  ;;  %v16727_v0 = vand.u32 4294901760, %v9584_v14  ;;  %v913_v48 = vand.u32 4294901760, %v912_v37  ;;  %v9848_v60 = vsub.f32 %v198_v23, %v9825_v58 }
  0x33   :  { %540 = vmatpush.msra.mxu1 %v539_v63  ;;  %623 = vmatpush.msra.mxu2 %v9753_v59  ;;  %v188_v63 = vld [vmem:[#allocation5 + $0x370] sm:$0xff]  ;;  %v9851_v22 = vsub.f32 %v70_v34, %v9827_v61  ;;  %v16729_v14 = vand.u32 4294901760, %v9587_v15  ;;  %v9859_v37 = vand.u32 4294901760, %v441_v42  ;;  %v16423_v23 = vand.u32 4294901760, %v9839_v52 }
  0x34   :  { %705 = vmatpush.msrb.mxu0 %v16727_v0  ;;  %902 = vmatpush.msrb.mxu3 %v901_v26  ;;  %v924_v0 = vsub.f32 %v9800_v7, %v16730_v31  ;;  %v183_v26 = vld [vmem:[#allocation5 + $0x348] sm:$0xff]  ;;  %v9862_v50 = vand.u32 4294901760, %v188_v63  ;;  %v16732_v34 = vand.u32 4294901760, %v9590_v16  ;;  %v9868_v15 = vsub.f32 %v193_v24, %v9843_v49  ;;  %v74_v31 = vld [vmem:[#allocation2 + $0x60] sm:$0xff] }
  0x35   :  { %626 = vmatmul.f32.vlgmr.msra.gmra.mxu2 %v9705_v32  ;;  %546 = vmatpush.msra.mxu1 %v545_v45  ;;  %16728 = vst [vmem:[#allocation28_spill] sm:$0xff] %v9851_v22  ;;  %v919_v45 = vand.u32 4294901760, %v918_v33  ;;  %v9875_v33 = vand.u32 4294901760, %v9851_v22  ;;  %v9877_v16 = vand.u32 4294901760, %v183_v26  ;;  %v173_v32 = vld [vmem:[#allocation5 + $0x2f8] sm:$0xff] }
  0x36   :  { %709 = vmatpush.msrb.mxu0 %v16729_v14  ;;  %833 = vmatpush.msrb.mxu2 %v9693_v18  ;;  %16731 = vst [vmem:[#allocation29_spill] sm:$0xff] %v9859_v37  ;;  %v178_v14 = vld [vmem:[#allocation5 + $0x320] sm:$0xff]  ;;  %v925_v24 = vand.u32 4294901760, %v924_v0  ;;  %v16737_v0 = vand.u32 4294901760, %v9598_v20 }
  0x37   :  { %908 = vmatpush.msrb.mxu3 %v907_v44  ;;  %552 = vmatpush.msra.mxu1 %v551_v27  ;;  %v16733_v44 = vand.u32 4294901760, %v9823_v12  ;;  %16734 = vst [vmem:[#allocation30_spill] sm:$0xff] %v9875_v33  ;;  %v9891_v27 = vand.u32 4294901760, %v74_v31 }
  0x38   :  { %713 = vmatpush.msrb.mxu0 %v16732_v34  ;;  %835 = vmatpush.msrb.mxu2 %v9712_v39  ;;  %v16735_v34 = vand.u32 4294901760, %v9595_v19  ;;  %v9908_v19 = vand.u32 4294901760, %v173_v32 }
  0x39   :  { %914 = vmatpush.msrb.mxu3 %v913_v48  ;;  %558 = vmatpush.msra.mxu1 %v557_v38  ;;  %v930_v42 = vsub.f32 %v9823_v12, %v16733_v44  ;;  %v936_v38 = vsub.f32 %v9839_v52, %v16423_v23  ;;  %v9887_v48 = vsub.f32 %v188_v63, %v9862_v50  ;;  %v9889_v44 = vand.u32 4294901760, %v178_v14 }
  0x3a   :  { %717 = vmatpush.msrb.mxu0 %v16735_v34  ;;  %837 = vmatpush.msrb.mxu2 %v9729_v56  ;;  %16736 = vst [vmem:[#allocation31_spill] sm:$0xff] %v9891_v27  ;;  %v16738_v63 = vand.u32 4294901760, %v9848_v60  ;;  %v449_v23 = vsub.f32 %v9851_v22, %v9875_v33 }
  0x3b   :  { %920 = vmatpush.msrb.mxu3 %v919_v45  ;;  %443 = vmatmul.f32.gmra.mxu0 %v9859_v37  ;;  %v931_v45 = vand.u32 4294901760, %v930_v42  ;;  %v9905_v37 = vsub.f32 %v183_v26, %v9877_v16  ;;  %v937_v20 = vand.u32 4294901760, %v936_v38  ;;  %v16431_v42 = vand.u32 4294901760, %v9887_v48 }
  0x3c   :  { %560 = vmatmul.f32.vlgmr.msra.gmra.mxu1 %v9688_v6  ;;  %686 = vmatmul.f32.gmra.mxu3 %v9809_v13  ;;  %v942_v34 = vsub.f32 %v9848_v60, %v16738_v63  ;;  %v9917_v63 = vsub.f32 %v74_v31, %v9891_v27  ;;  %v16740_v26 = vand.u32 4294901760, %v9608_v25  ;;  %v163_v13 = vld [vmem:[#allocation5 + $0x2a8] sm:$0xff]  ;;  %v9926_v38 = vand.u32 4294901760, %v449_v23 }
  0x3d   :  { %784 = vmatpush.msrb.mxu1 %v9569_v3  ;;  %721 = vmatpush.msrb.mxu0 %v16737_v0  ;;  %v168_v3 = vld [vmem:[#allocation5 + $0x2d0] sm:$0xff]  ;;  %v9914_v0 = vsub.f32 %v178_v14, %v9889_v44  ;;  %v16430_v14 = vand.u32 4294901760, %v9905_v37  ;;  %v16743_v25 = vand.u32 4294901760, %v9613_v28  ;;  %v9945_v28 = vand.u32 4294901760, %v163_v13 }
  0x3e   :  { %839 = vmatpush.msrb.mxu2 %v9744_v62  ;;  %926 = vmatpush.msrb.mxu3 %v925_v24  ;;  %16739 = vst [vmem:[#allocation32_spill] sm:$0xff] %v9917_v63  ;;  %v16741_v24 = vand.u32 4294901760, %v9868_v15  ;;  %v9929_v31 = vand.u32 4294901760, %v168_v3 }
  0x3f   :  { %631 = vmatmul.f32.gmra.mxu2 %v9778_v55  ;;  %786 = vmatpush.msrb.mxu1 %v9571_v4  ;;  %v943_v4 = vand.u32 4294901760, %v942_v34  ;;  %16742 = vst [vmem:[#allocation33_spill] sm:$0xff] %v9926_v38  ;;  %v16432_v23 = vand.u32 4294901760, %v9914_v0  ;;  %v16745_v34 = vand.u32 4294901760, %v9631_v35 }
  0x40   :  { %725 = vmatpush.msrb.mxu0 %v16740_v26  ;;  %841 = vmatpush.msrb.mxu2 %v9769_v40  ;;  %v948_v55 = vsub.f32 %v9868_v15, %v16741_v24  ;;  %v9935_v26 = vsub.f32 %v173_v32, %v9908_v19  ;;  %v158_v24 = vld [vmem:[#allocation5 + $0x280] sm:$0xff] }
  0x41   :  { %932 = vmatpush.msrb.mxu3 %v931_v45  ;;  %788 = vmatpush.msrb.mxu1 %v9573_v5  ;;  %v954_v5 = vsub.f32 %v9887_v48, %v16431_v42  ;;  %v9943_v45 = vand.u32 4294901760, %v9917_v63  ;;  %v9971_v42 = vsub.f32 %v163_v13, %v9945_v28 }
  0x42   :  { %729 = vmatpush.msrb.mxu0 %v16743_v25  ;;  %843 = vmatpush.msrb.mxu2 %v9791_v51  ;;  %v949_v32 = vand.u32 4294901760, %v948_v55  ;;  %v9957_v25 = vand.u32 4294901760, %v158_v24  ;;  %v971_v35 = vand.u32 4294901760, %v9935_v26  ;;  %v16746_v55 = vand.u32 4294901760, %v9650_v46 }
  0x43   :  { %938 = vmatpush.msrb.mxu3 %v937_v20  ;;  %790 = vmatpush.msrb.mxu1 %v9575_v9  ;;  %16744 = vst [vmem:[#allocation34_spill] sm:$0xff] %v9943_v45  ;;  %v960_v9 = vsub.f32 %v9905_v37, %v16430_v14  ;;  %v9955_v20 = vsub.f32 %v168_v3, %v9929_v31 }
  0x44   :  { %733 = vmatpush.msrb.mxu0 %v16745_v34  ;;  %845 = vmatpush.msrb.mxu2 %v9811_v2  ;;  %v63_v34 = vld [vmem:[#allocation2 + $0x8] sm:$0xff]  ;;  %v966_v3 = vsub.f32 %v9914_v0, %v16432_v23  ;;  %v457_v14 = vsub.f32 %v9917_v63, %v9943_v45  ;;  %v16748_v23 = vand.u32 4294901760, %v9655_v47  ;;  %v972_v13 = vsub.f32 %v9935_v26, %v971_v35 }
  0x45   :  { %944 = vmatpush.msrb.mxu3 %v943_v4  ;;  %451 = vmatmul.f32.gmra.mxu0 %v9926_v38  ;;  %v955_v4 = vand.u32 4294901760, %v954_v5  ;;  %v977_v46 = vand.u32 4294901760, %v9955_v20  ;;  %v9978_v5 = vsub.f32 %v158_v24, %v9957_v25  ;;  %v983_v24 = vand.u32 4294901760, %v9971_v42 }
  0x46   :  { %564 = vmatmul.f32.gmra.mxu1 %v9746_v8  ;;  %692 = vmatmul.f32.gmra.mxu3 %v9875_v33 }
  0x47   :  { %792 = vmatpush.msrb.mxu1 %v9577_v10  ;;  %737 = vmatpush.msrb.mxu0 %v16746_v55  ;;  %v961_v10 = vand.u32 4294901760, %v960_v9  ;;  %v9980_v55 = vand.u32 4294901760, %v63_v34  ;;  %v16750_v9 = vand.u32 4294901760, %v9670_v54  ;;  %v978_v47 = vsub.f32 %v9955_v20, %v977_v46 }
  0x48   :  { %847 = vmatpush.msrb.mxu2 %v9825_v58  ;;  %950 = vmatpush.msrb.mxu3 %v949_v32  ;;  %v9989_v32 = vand.u32 4294901760, %v457_v14  ;;  %v16752_v14 = vand.u32 4294901760, %v9684_v1  ;;  %v973_v54 = vand.u32 4294901760, %v972_v13  ;;  %v16753_v1 = vand.u32 4294901760, %v9700_v30 }
  0x49   :  { %636 = vmatmul.f32.gmra.mxu2 %v9851_v22  ;;  %794 = vmatpush.msrb.mxu1 %v9579_v11  ;;  %16747 = vst [vmem:[#allocation35_spill] sm:$0xff] %v9980_v55  ;;  %v967_v11 = vand.u32 4294901760, %v966_v3  ;;  %v16756_v30 = vand.u32 4294901760, %v9716_v43 }
  0x4a   :  { %741 = vmatpush.msrb.mxu0 %v16748_v23  ;;  %849 = vmatpush.msrb.mxu2 %v9843_v49  ;;  %16749 = vst [vmem:[#allocation36_spill] sm:$0xff] %v9989_v32  ;;  %v989_v23 = vand.u32 4294901760, %v9978_v5 }
  0x4b   :  { %956 = vmatpush.msrb.mxu3 %v955_v4  ;;  %796 = vmatpush.msrb.mxu1 %v9592_v17  ;;  %v10001_v17 = vsub.f32 %v63_v34, %v9980_v55  ;;  %v67_v4 = vld [vmem:[#allocation2 + $0x28] sm:$0xff]  ;;  %v979_v34 = vand.u32 4294901760, %v978_v47  ;;  %v16757_v47 = vand.u32 4294901760, %v9733_v57 }
  0x4c   :  { %745 = vmatpush.msrb.mxu0 %v16750_v9  ;;  %851 = vmatpush.msrb.mxu2 %v9862_v50  ;;  %v990_v3 = vsub.f32 %v9978_v5, %v989_v23  ;;  %v16762_v57 = vld [vmem:[#allocation13_spill] sm:$0xff] }
  0x4d   :  { %962 = vmatpush.msrb.mxu3 %v961_v10  ;;  %798 = vmatpush.msrb.mxu1 %v9600_v21  ;;  %16751 = vst [vmem:[#allocation37_spill] sm:$0xff] %v10001_v17  ;;  %v984_v21 = vsub.f32 %v9971_v42, %v983_v24  ;;  %v10019_v10 = vand.u32 4294901760, %v10001_v17 }
  0x4e   :  { %749 = vmatpush.msrb.mxu0 %v16752_v14  ;;  %853 = vmatpush.msrb.mxu2 %v9877_v16  ;;  %v16760_v14 = vand.u32 4294901760, %v9753_v59  ;;  %v16764_v59 = vld [vmem:[#allocation19_spill] sm:$0xff] }
  0x4f   :  { %968 = vmatpush.msrb.mxu3 %v967_v11  ;;  %459 = vmatmul.f32.gmra.mxu0 %v9989_v32  ;;  %16754 = vst [vmem:[#allocation38_spill] sm:$0xff] %v10019_v10  ;;  %v985_v13 = vand.u32 4294901760, %v984_v21  ;;  %v991_v11 = vand.u32 4294901760, %v990_v3  ;;  %v867_v9 = vsub.f32 %v10001_v17, %v10019_v10  ;;  %v16768_v3 = vand.u32 4294901760, %v16764_v59  ;;  %v368_v32 = vld [vmem:[#allocation5 + $0x910] sm:$0xff] }
  0x50   :  { %568 = vmatmul.f32.gmra.mxu1 %v9827_v61  ;;  %698 = vmatmul.f32.gmra.mxu3 %v9943_v45 }
  0x51   :  { %800 = vmatpush.msrb.mxu1 %v9615_v29  ;;  %753 = vmatpush.msrb.mxu0 %v16753_v1  ;;  %v10024_v29 = vand.u32 4294901760, %v67_v4 }
  0x52   :  { %855 = vmatpush.msrb.mxu2 %v9889_v44  ;;  %974 = vmatpush.msrb.mxu3 %v973_v54  ;;  %v71_v54 = vld [vmem:[#allocation2 + $0x48] sm:$0xff] }
  0x53   :  { %641 = vmatmul.f32.gmra.mxu2 %v9917_v63  ;;  %802 = vmatpush.msrb.mxu1 %v9633_v36  ;;  %16755 = vst [vmem:[#allocation39_spill] sm:$0xff] %v10024_v29  ;;  %v16758_v36 = vld [vmem:[#allocation12_spill] sm:$0xff]  ;;  %v10037_v43 = vsub.f32 %v67_v4, %v10024_v29  ;;  %v16765_v4 = vld [vmem:[#allocation14_spill] sm:$0xff]  ;;  %v10056_v1 = vand.u32 4294901760, %v71_v54 }
  0x54   :  { %757 = vmatpush.msrb.mxu0 %v16756_v30  ;;  %857 = vmatpush.msrb.mxu2 %v9908_v19 }
  0x55   :  { %980 = vmatpush.msrb.mxu3 %v979_v34  ;;  %804 = vmatpush.msrb.mxu1 %v9642_v41  ;;  %16759 = vst [vmem:[#allocation12_spill] sm:$0xff] %v10037_v43  ;;  %v10043_v41 = vand.u32 4294901760, %v867_v9  ;;  %v10050_v21 = vand.u32 4294901760, %v10037_v43  ;;  %v16767_v34 = vld [vmem:[#allocation21_spill] sm:$0xff] }
  0x56   :  { %761 = vmatpush.msrb.mxu0 %v16757_v47  ;;  %859 = vmatpush.msrb.mxu2 %v9929_v31  ;;  %16766 = vst [vmem:[#allocation19_spill] sm:$0xff] %v10056_v1  ;;  %v16771_v9 = vand.u32 4294901760, %v16767_v34  ;;  %v16772_v47 = vld [vmem:[#allocation18_spill] sm:$0xff] }
  0x57   :  { %986 = vmatpush.msrb.mxu3 %v985_v13  ;;  %806 = vmatpush.msrb.mxu1 %v16758_v36  ;;  %16761 = vst [vmem:[#allocation40_spill] sm:$0xff] %v10043_v41  ;;  %v16769_v13 = vld [vmem:[#allocation16_spill] sm:$0xff]  ;;  %v875_v30 = vsub.f32 %v10037_v43, %v10050_v21  ;;  %v10071_v36 = vsub.f32 %v71_v54, %v10056_v1 }
  0x58   :  { %765 = vmatpush.msrb.mxu0 %v16760_v14  ;;  %861 = vmatpush.msrb.mxu2 %v9945_v28  ;;  %16763 = vst [vmem:[#allocation13_spill] sm:$0xff] %v10050_v21 }
  0x59   :  { %992 = vmatpush.msrb.mxu3 %v991_v11  ;;  %572 = vmatmul.f32.gmra.mxu1 %v9891_v27  ;;  %v16770_v11 = vld [vmem:[#allocation23_spill] sm:$0xff]  ;;  %16773 = vst [vmem:[#allocation14_spill] sm:$0xff] %v10071_v36  ;;  %v10085_v54 = vand.u32 4294901760, %v10071_v36 }
  0x5a   :  { %767 = vmatmul.f32.vlgmr.msrb.gmra.mxu0 %v9688_v6  ;;  %808 = vmatpush.msrb.mxu1 %v16762_v57  ;;  %v16774_v14 = vand.u32 4294901760, %v16770_v11  ;;  %v10078_v57 = vand.u32 4294901760, %v875_v30 }
  0x5b   :  { %994 = vmatmul.f32.vlgmr.msrb.gmra.mxu3 %v9980_v55  ;;  %863 = vmatpush.msrb.mxu2 %v9957_v25  ;;  %16776 = vst [vmem:[#allocation16_spill] sm:$0xff] %v10085_v54 }
  0x5c   :  { %1012 = vmatpush.msra.mxu0 %v16764_v59  ;;  %1218 = vmatpush.msra.mxu3 %v9693_v18  ;;  %16775 = vst [vmem:[#allocation21_spill] sm:$0xff] %v10078_v57  ;;  %v75_v59 = vld [vmem:[#allocation2 + $0x68] sm:$0xff] }
  0x5d   :  { %810 = vmatpush.msrb.mxu1 %v16765_v4  ;;  %869 = vmatmul.f32.vlgmr.msrb.gmra.mxu2 %v10043_v41  ;;  %v16777_v4 = vand.u32 4294901760, %v9775_v53 }
  0x5e   :  { %1015 = vmatpush.msra.mxu0 %v16767_v34  ;;  %1139 = vmatpush.msra.mxu2 %v16768_v3  ;;  %v10092_v34 = vand.u32 4294901760, %v75_v59  ;;  %v16780_v3 = vand.u32 4294901760, %v9823_v12 }
  0x5f   :  { %1220 = vmatpush.msra.mxu3 %v9712_v39  ;;  %812 = vmatpush.msrb.mxu1 %v16769_v13  ;;  %v303_v13 = vld [vmem:[#allocation5 + $0x708] sm:$0xff] }
  0x60   :  { %1018 = vmatpush.msra.mxu0 %v16770_v11  ;;  %1143 = vmatpush.msra.mxu2 %v16771_v9  ;;  %16778 = vst [vmem:[#allocation23_spill] sm:$0xff] %v10092_v34  ;;  %v10168_v11 = vand.u32 4294901760, %v303_v13  ;;  %v283_v9 = vld [vmem:[#allocation5 + $0x668] sm:$0xff] }
  0x61   :  { %1222 = vmatpush.msra.mxu3 %v9729_v56  ;;  %814 = vmatpush.msrb.mxu1 %v16772_v47  ;;  %v278_v47 = vld [vmem:[#allocation5 + $0x640] sm:$0xff] }
  0x62   :  { %1021 = vmatpush.msra.mxu0 %v9775_v53  ;;  %1147 = vmatpush.msra.mxu2 %v16774_v14  ;;  %v883_v53 = vsub.f32 %v10071_v36, %v10085_v54 }
  0x63   :  { %1224 = vmatpush.msra.mxu3 %v9744_v62  ;;  %771 = vmatmul.f32.gmra.mxu0 %v9746_v8 }
  0x64   :  { %816 = vmatmul.f32.vlgmr.msrb.gmra.mxu1 %v9688_v6  ;;  %998 = vmatmul.f32.gmra.mxu3 %v10024_v29  ;;  %v358_v6 = vld [vmem:[#allocation5 + $0x8c0] sm:$0xff] }
  0x65   :  { %1080 = vmatpush.msra.mxu1 %v9693_v18  ;;  %1024 = vmatpush.msra.mxu0 %v9800_v7  ;;  %v16779_v18 = vand.u32 4294901760, %v9800_v7  ;;  %v16782_v7 = vand.u32 4294901760, %v9839_v52 }
  0x66   :  { %1151 = vmatpush.msra.mxu2 %v16777_v4  ;;  %1226 = vmatpush.msra.mxu3 %v9769_v40 }
  0x67   :  { %877 = vmatmul.f32.gmra.mxu2 %v10078_v57  ;;  %1082 = vmatpush.msra.mxu1 %v9712_v39  ;;  %v10107_v39 = vsub.f32 %v75_v59, %v10092_v34  ;;  %v10220_v59 = vand.u32 4294901760, %v283_v9  ;;  %v378_v57 = vld [vmem:[#allocation5 + $0x960] sm:$0xff] }
  0x68   :  { %1027 = vmatpush.msra.mxu0 %v9823_v12  ;;  %1155 = vmatpush.msra.mxu2 %v16779_v18  ;;  %v16786_v12 = vand.u32 4294901760, %v9868_v15 }
  0x69   :  { %1228 = vmatpush.msra.mxu3 %v9791_v51  ;;  %1084 = vmatpush.msra.mxu1 %v9729_v56  ;;  %16781 = vst [vmem:[#allocation18_spill] sm:$0xff] %v10107_v39  ;;  %v10114_v56 = vand.u32 4294901760, %v883_v53 }
  0x6a   :  { %1030 = vmatpush.msra.mxu0 %v9839_v52  ;;  %1159 = vmatpush.msra.mxu2 %v16780_v3  ;;  %v16785_v52 = vand.u32 4294901760, %v9848_v60  ;;  %v10233_v3 = vand.u32 4294901760, %v278_v47 }
  0x6b   :  { %1230 = vmatpush.msra.mxu3 %v9811_v2  ;;  %1086 = vmatpush.msra.mxu1 %v9744_v62  ;;  %16783 = vst [vmem:[#allocation41_spill] sm:$0xff] %v10114_v56  ;;  %v10121_v62 = vand.u32 4294901760, %v10107_v39 }
  0x6c   :  { %1033 = vmatpush.msra.mxu0 %v9848_v60  ;;  %1163 = vmatpush.msra.mxu2 %v16782_v7  ;;  %v16787_v60 = vand.u32 4294901760, %v9887_v48  ;;  %v273_v7 = vld [vmem:[#allocation5 + $0x618] sm:$0xff] }
  0x6d   :  { %1232 = vmatpush.msra.mxu3 %v9825_v58  ;;  %775 = vmatmul.f32.gmra.mxu0 %v9827_v61  ;;  %16784 = vst [vmem:[#allocation42_spill] sm:$0xff] %v10121_v62 }
  0x6e   :  { %820 = vmatmul.f32.gmra.mxu1 %v9746_v8  ;;  %1002 = vmatmul.f32.gmra.mxu3 %v10056_v1 }
  0x6f   :  { %1088 = vmatpush.msra.mxu1 %v9769_v40  ;;  %1036 = vmatpush.msra.mxu0 %v9868_v15  ;;  %v891_v40 = vsub.f32 %v10107_v39, %v10121_v62  ;;  %v313_v15 = vld [vmem:[#allocation5 + $0x758] sm:$0xff] }
  0x70   :  { %1167 = vmatpush.msra.mxu2 %v16785_v52  ;;  %1234 = vmatpush.msra.mxu3 %v9843_v49 }
  0x71   :  { %885 = vmatmul.f32.gmra.mxu2 %v10114_v56  ;;  %1090 = vmatpush.msra.mxu1 %v9791_v51  ;;  %v16788_v51 = vand.u32 4294901760, %v9905_v37 }
  0x72   :  { %1039 = vmatpush.msra.mxu0 %v9887_v48  ;;  %1171 = vmatpush.msra.mxu2 %v16786_v12  ;;  %v308_v48 = vld [vmem:[#allocation5 + $0x730] sm:$0xff]  ;;  %v10243_v12 = vsub.f32 %v283_v9, %v10220_v59 }
  0x73   :  { %1236 = vmatpush.msra.mxu3 %v9862_v50  ;;  %1092 = vmatpush.msra.mxu1 %v9811_v2  ;;  %v10145_v2 = vand.u32 4294901760, %v891_v40  ;;  %v10158_v30 = vand.u32 4294901760, %v308_v48 }
  0x74   :  { %1042 = vmatpush.msra.mxu0 %v9905_v37  ;;  %1175 = vmatpush.msra.mxu2 %v16787_v60  ;;  %v16790_v37 = vand.u32 4294901760, %v9914_v0  ;;  %v268_v60 = vld [vmem:[#allocation5 + $0x5f0] sm:$0xff]  ;;  %v16435_v9 = vand.u32 4294901760, %v10243_v12 }
  0x75   :  { %1238 = vmatpush.msra.mxu3 %v9877_v16  ;;  %1094 = vmatpush.msra.mxu1 %v9825_v58  ;;  %16789 = vst [vmem:[#allocation43_spill] sm:$0xff] %v10145_v2  ;;  %v10151_v58 = vand.u32 4294901760, %v313_v15 }
  0x76   :  { %1045 = vmatpush.msra.mxu0 %v9914_v0  ;;  %1179 = vmatpush.msra.mxu2 %v16788_v51 }
  0x77   :  { %1240 = vmatpush.msra.mxu3 %v9889_v44  ;;  %779 = vmatmul.f32.gmra.mxu0 %v9891_v27  ;;  %v10166_v0 = vsub.f32 %v313_v15, %v10151_v58  ;;  %v10249_v15 = vand.u32 4294901760, %v273_v7 }
  0x78   :  { %824 = vmatmul.f32.gmra.mxu1 %v9827_v61  ;;  %1006 = vmatmul.f32.gmra.mxu3 %v10092_v34  ;;  %v373_v61 = vld [vmem:[#allocation5 + $0x938] sm:$0xff] }
  0x79   :  { %1096 = vmatpush.msra.mxu1 %v9843_v49  ;;  %1048 = vmatpush.msra.mxu0 %v9935_v26  ;;  %v298_v49 = vld [vmem:[#allocation5 + $0x6e0] sm:$0xff] }
  0x7a   :  { %1183 = vmatpush.msra.mxu2 %v16790_v37  ;;  %1242 = vmatpush.msra.mxu3 %v9908_v19  ;;  %v10178_v26 = vand.u32 4294901760, %v298_v49 }
  0x7b   :  { %893 = vmatmul.f32.gmra.mxu2 %v10145_v2  ;;  %1098 = vmatpush.msra.mxu1 %v9862_v50  ;;  %v10176_v50 = vsub.f32 %v308_v48, %v10158_v30  ;;  %v10252_v48 = vsub.f32 %v278_v47, %v10233_v3 }
  0x7c   :  { %1051 = vmatpush.msra.mxu0 %v9955_v20  ;;  %1187 = vmatpush.msra.mxu2 %v971_v35  ;;  %v10186_v20 = vsub.f32 %v303_v13, %v10168_v11  ;;  %v288_v35 = vld [vmem:[#allocation5 + $0x690] sm:$0xff]  ;;  %v10257_v13 = vand.u32 4294901760, %v268_v60 }
  0x7d   :  { %1244 = vmatpush.msra.mxu3 %v9929_v31  ;;  %1100 = vmatpush.msra.mxu1 %v9877_v16  ;;  %v293_v16 = vld [vmem:[#allocation5 + $0x6b8] sm:$0xff] }
  0x7e   :  { %1054 = vmatpush.msra.mxu0 %v9971_v42  ;;  %1191 = vmatpush.msra.mxu2 %v977_v46  ;;  %v10194_v42 = vand.u32 4294901760, %v293_v16  ;;  %v10197_v46 = vsub.f32 %v298_v49, %v10178_v26  ;;  %v263_v49 = vld [vmem:[#allocation5 + $0x5c8] sm:$0xff] }
  0x7f   :  { %1246 = vmatpush.msra.mxu3 %v9945_v28  ;;  %1102 = vmatpush.msra.mxu1 %v9889_v44  ;;  %v16439_v44 = vand.u32 4294901760, %v10166_v0 }
  0x80   :  { %1057 = vmatpush.msra.mxu0 %v9978_v5  ;;  %1195 = vmatpush.msra.mxu2 %v983_v24  ;;  %v16438_v24 = vand.u32 4294901760, %v10176_v50  ;;  %v10207_v5 = vand.u32 4294901760, %v288_v35  ;;  %v10218_v14 = vsub.f32 %v293_v16, %v10194_v42  ;;  %v16436_v4 = vand.u32 4294901760, %v10197_v46 }
  0x81   :  { %1248 = vmatpush.msra.mxu3 %v9957_v25  ;;  %828 = vmatmul.f32.gmra.mxu1 %v9891_v27 }
  0x82   :  { %1060 = vmatmul.f32.vlgmr.msra.gmra.mxu0 %v10001_v17  ;;  %1104 = vmatpush.msra.mxu1 %v9908_v19  ;;  %v1334_v19 = vsub.f32 %v10166_v0, %v16439_v44  ;;  %v10231_v53 = vsub.f32 %v288_v35, %v10207_v5  ;;  %v1352_v52 = vsub.f32 %v10197_v46, %v16436_v4  ;;  %v16434_v40 = vand.u32 4294901760, %v10218_v14  ;;  %v248_v4 = vld [vmem:[#allocation5 + $0x550] sm:$0xff] }
  0x83   :  { %1250 = vmatmul.f32.vlgmr.msra.gmra.mxu3 %v9980_v55  ;;  %1199 = vmatpush.msra.mxu2 %v989_v23  ;;  %v16437_v23 = vand.u32 4294901760, %v10186_v20 }
  0x84   :  { %1267 = vmatpush.msrb.mxu0 %v10151_v58  ;;  %1514 = vmatpush.msrb.mxu3 %v10151_v58  ;;  %v16433_v37 = vand.u32 4294901760, %v10231_v53  ;;  %v1353_v16 = vand.u32 4294901760, %v1352_v52  ;;  %v1358_v35 = vsub.f32 %v10218_v14, %v16434_v40  ;;  %v64_v40 = vld [vmem:[#allocation2 + $0x10] sm:$0xff] }
  0x85   :  { %1106 = vmatpush.msra.mxu1 %v9929_v31  ;;  %1201 = vmatmul.f32.vlgmr.msra.gmra.mxu2 %v9980_v55  ;;  %v1340_v31 = vsub.f32 %v10176_v50, %v16438_v24  ;;  %v1346_v18 = vsub.f32 %v10186_v20, %v16437_v23  ;;  %v393_v23 = vld [vmem:[#allocation5 + $0x9d8] sm:$0xff] }
  0x86   :  { %1269 = vmatpush.msrb.mxu0 %v10158_v30  ;;  %1446 = vmatpush.msrb.mxu2 %v10166_v0  ;;  %v1364_v47 = vsub.f32 %v10231_v53, %v16433_v37  ;;  %v1359_v52 = vand.u32 4294901760, %v1358_v35  ;;  %v253_v37 = vld [vmem:[#allocation5 + $0x578] sm:$0xff] }
  0x87   :  { %1516 = vmatpush.msrb.mxu3 %v10158_v30  ;;  %1108 = vmatpush.msra.mxu1 %v9945_v28  ;;  %v1335_v28 = vand.u32 4294901760, %v1334_v19  ;;  %v1347_v51 = vand.u32 4294901760, %v1346_v18  ;;  %v258_v19 = vld [vmem:[#allocation5 + $0x5a0] sm:$0xff]  ;;  %v16440_v18 = vand.u32 4294901760, %v10252_v48  ;;  %v10300_v24 = vand.u32 4294901760, %v253_v37 }
  0x88   :  { %1271 = vmatpush.msrb.mxu0 %v10168_v11  ;;  %1449 = vmatpush.msrb.mxu2 %v10176_v50 }
  0x89   :  { %1518 = vmatpush.msrb.mxu3 %v10168_v11  ;;  %1110 = vmatpush.msra.mxu1 %v9957_v25  ;;  %v1341_v25 = vand.u32 4294901760, %v1340_v31  ;;  %v10271_v31 = vsub.f32 %v273_v7, %v10249_v15  ;;  %v1370_v7 = vsub.f32 %v10243_v12, %v16435_v9  ;;  %16792 = vst [vmem:[#allocation45_spill] sm:$0xff] %v10300_v24  ;;  %v388_v9 = vld [vmem:[#allocation5 + $0x9b0] sm:$0xff] }
  0x8a   :  { %1273 = vmatpush.msrb.mxu0 %v10178_v26  ;;  %1452 = vmatpush.msrb.mxu2 %v10186_v20  ;;  %v10326_v56 = vsub.f32 %v253_v37, %v10300_v24 }
  0x8b   :  { %1520 = vmatpush.msrb.mxu3 %v10178_v26  ;;  %1065 = vmatmul.f32.gmra.mxu0 %v10037_v43  ;;  %v16795_v44 = vand.u32 4294901760, %v10271_v31  ;;  %v383_v43 = vld [vmem:[#allocation5 + $0x988] sm:$0xff] }
  0x8c   :  { %1114 = vmatmul.f32.vlgmr.msra.gmra.mxu1 %v10019_v10  ;;  %1254 = vmatmul.f32.gmra.mxu3 %v10024_v29  ;;  %v10313_v10 = vand.u32 4294901760, %v393_v23 }
  0x8d   :  { %1336 = vmatpush.msrb.mxu1 %v1335_v28  ;;  %1275 = vmatpush.msrb.mxu0 %v10194_v42  ;;  %v10273_v28 = vand.u32 4294901760, %v263_v49 }
  0x8e   :  { %1455 = vmatpush.msrb.mxu2 %v10197_v46  ;;  %1522 = vmatpush.msrb.mxu3 %v10194_v42  ;;  %v10343_v37 = vsub.f32 %v393_v23, %v10313_v10 }
  0x8f   :  { %1205 = vmatmul.f32.gmra.mxu2 %v10024_v29  ;;  %1342 = vmatpush.msrb.mxu1 %v1341_v25  ;;  %v10279_v25 = vsub.f32 %v268_v60, %v10257_v13  ;;  %v1365_v60 = vand.u32 4294901760, %v1364_v47  ;;  %v10295_v35 = vsub.f32 %v263_v49, %v10273_v28  ;;  %v10303_v47 = vand.u32 4294901760, %v64_v40  ;;  %v68_v29 = vld [vmem:[#allocation2 + $0x30] sm:$0xff] }
  0x90   :  { %1277 = vmatpush.msrb.mxu0 %v10207_v5  ;;  %1458 = vmatpush.msrb.mxu2 %v10218_v14  ;;  %16799 = vst [vmem:[#allocation50_spill] sm:$0xff] %v10343_v37  ;;  %v10372_v45 = vand.u32 4294901760, %v68_v29 }
  0x91   :  { %1524 = vmatpush.msrb.mxu3 %v10207_v5  ;;  %1348 = vmatpush.msrb.mxu1 %v1347_v51  ;;  %v10285_v51 = vand.u32 4294901760, %v258_v19  ;;  %16793 = vst [vmem:[#allocation46_spill] sm:$0xff] %v10303_v47  ;;  %v16796_v17 = vand.u32 4294901760, %v10279_v25 }
  0x92   :  { %1279 = vmatpush.msrb.mxu0 %v10220_v59  ;;  %1461 = vmatpush.msrb.mxu2 %v10231_v53  ;;  %16805 = vst [vmem:[#allocation54_spill] sm:$0xff] %v10372_v45  ;;  %v10401_v33 = vsub.f32 %v68_v29, %v10372_v45 }
  0x93   :  { %1526 = vmatpush.msrb.mxu3 %v10220_v59  ;;  %1354 = vmatpush.msrb.mxu1 %v1353_v16  ;;  %16791 = vst [vmem:[#allocation44_spill] sm:$0xff] %v10285_v51  ;;  %v1376_v16 = vsub.f32 %v10252_v48, %v16440_v18  ;;  %v1371_v18 = vand.u32 4294901760, %v1370_v7  ;;  %v10307_v49 = vsub.f32 %v258_v19, %v10285_v51  ;;  %v16800_v19 = vand.u32 4294901760, %v10295_v35 }
  0x94   :  { %1281 = vmatpush.msrb.mxu0 %v10233_v3  ;;  %1464 = vmatpush.msrb.mxu2 %v10243_v12  ;;  %v1382_v7 = vsub.f32 %v10271_v31, %v16795_v44  ;;  %v1388_v2 = vsub.f32 %v10279_v25, %v16796_v17  ;;  %16808 = vst [vmem:[#allocation56_spill] sm:$0xff] %v10401_v33 }
  0x95   :  { %1528 = vmatpush.msrb.mxu3 %v10233_v3  ;;  %1070 = vmatmul.f32.gmra.mxu0 %v10071_v36  ;;  %v243_v36 = vld [vmem:[#allocation5 + $0x528] sm:$0xff]  ;;  %v1394_v41 = vsub.f32 %v10295_v35, %v16800_v19 }
  0x96   :  { %1120 = vmatmul.f32.gmra.mxu1 %v10050_v21  ;;  %1258 = vmatmul.f32.gmra.mxu3 %v10056_v1  ;;  %v10311_v21 = vand.u32 4294901760, %v248_v4  ;;  %v10334_v44 = vand.u32 4294901760, %v243_v36  ;;  %v1389_v23 = vand.u32 4294901760, %v1388_v2  ;;  %v10370_v2 = vand.u32 4294901760, %v378_v57 }
  0x97   :  { %1360 = vmatpush.msrb.mxu1 %v1359_v52  ;;  %1283 = vmatpush.msrb.mxu0 %v10249_v15  ;;  %v1377_v52 = vand.u32 4294901760, %v1376_v16  ;;  %v10329_v16 = vsub.f32 %v64_v40, %v10303_v47  ;;  %v10345_v40 = vand.u32 4294901760, %v383_v43 }
  0x98   :  { %1467 = vmatpush.msrb.mxu2 %v10252_v48  ;;  %1530 = vmatpush.msrb.mxu3 %v10249_v15  ;;  %16794 = vst [vmem:[#allocation47_spill] sm:$0xff] %v10311_v21  ;;  %v10340_v17 = vsub.f32 %v248_v4, %v10311_v21  ;;  %v10368_v19 = vsub.f32 %v243_v36, %v10334_v44  ;;  %v1395_v36 = vand.u32 4294901760, %v1394_v41 }
  0x99   :  { %1209 = vmatmul.f32.gmra.mxu2 %v10056_v1  ;;  %1366 = vmatpush.msrb.mxu1 %v1365_v60  ;;  %v238_v60 = vld [vmem:[#allocation5 + $0x500] sm:$0xff]  ;;  %16797 = vst [vmem:[#allocation48_spill] sm:$0xff] %v10329_v16  ;;  %v10331_v1 = vand.u32 4294901760, %v388_v9  ;;  %v10356_v4 = vand.u32 4294901760, %v10329_v16  ;;  %v10398_v22 = vsub.f32 %v378_v57, %v10370_v2  ;;  %v10414_v57 = vand.u32 4294901760, %v368_v32 }
  0x9a   :  { %1285 = vmatpush.msrb.mxu0 %v10257_v13  ;;  %1470 = vmatpush.msrb.mxu2 %v10271_v31  ;;  %16798 = vst [vmem:[#allocation49_spill] sm:$0xff] %v10334_v44  ;;  %v10351_v55 = vand.u32 4294901760, %v238_v60  ;;  %v16813_v29 = vand.u32 4294901760, %v10368_v19 }
  0x9b   :  { %1532 = vmatpush.msrb.mxu3 %v10257_v13  ;;  %1372 = vmatpush.msrb.mxu1 %v1371_v18  ;;  %v1383_v18 = vand.u32 4294901760, %v1382_v7  ;;  %16802 = vst [vmem:[#allocation52_spill] sm:$0xff] %v10356_v4  ;;  %v10360_v63 = vsub.f32 %v388_v9, %v10331_v1  ;;  %v16807_v9 = vand.u32 4294901760, %v10326_v56 }
  0x9c   :  { %1287 = vmatpush.msrb.mxu0 %v10273_v28  ;;  %1473 = vmatpush.msrb.mxu2 %v10279_v25  ;;  %16801 = vst [vmem:[#allocation51_spill] sm:$0xff] %v10351_v55 }
  0x9d   :  { %1534 = vmatpush.msrb.mxu3 %v10273_v28  ;;  %1378 = vmatpush.msrb.mxu1 %v1377_v52  ;;  %16803 = vst [vmem:[#allocation53_spill] sm:$0xff] %v10360_v63  ;;  %v16804_v52 = vand.u32 4294901760, %v10307_v49  ;;  %v1406_v27 = vsub.f32 %v10326_v56, %v16807_v9  ;;  %v16809_v9 = vand.u32 4294901760, %v10343_v37  ;;  %v16812_v38 = vand.u32 4294901760, %v10360_v63 }
  0x9e   :  { %1289 = vmatpush.msrb.mxu0 %v10285_v51  ;;  %1476 = vmatpush.msrb.mxu2 %v10295_v35 }
  0x9f   :  { %1536 = vmatpush.msrb.mxu3 %v10285_v51  ;;  %1075 = vmatmul.f32.gmra.mxu0 %v10107_v39  ;;  %v1400_v7 = vsub.f32 %v10307_v49, %v16804_v52  ;;  %v10379_v39 = vsub.f32 %v383_v43, %v10345_v40  ;;  %v10383_v52 = vsub.f32 %v238_v60, %v10351_v55  ;;  %v363_v60 = vld [vmem:[#allocation5 + $0x8e8] sm:$0xff] }
  0xa0   :  { %1126 = vmatmul.f32.gmra.mxu1 %v10085_v54  ;;  %1262 = vmatmul.f32.gmra.mxu3 %v10092_v34  ;;  %v1301_v54 = vsub.f32 %v10329_v16, %v10356_v4  ;;  %v1768_v43 = vsub.f32 %v10343_v37, %v16809_v9  ;;  %v1407_v9 = vand.u32 4294901760, %v1406_v27  ;;  %v10432_v27 = vand.u32 4294901760, %v10401_v33 }
  0xa1   :  { %16806 = vst [vmem:[#allocation55_spill] sm:$0xff] %v10379_v39  ;;  %1384 = vmatpush.msrb.mxu1 %v1383_v18  ;;  %1291 = vmatpush.msrb.mxu0 %v10300_v24  ;;  %v10393_v18 = vand.u32 4294901760, %v373_v61  ;;  %v1401_v41 = vand.u32 4294901760, %v1400_v7  ;;  %v10434_v37 = vand.u32 4294901760, %v363_v60 }
  0xa2   :  { %1479 = vmatpush.msrb.mxu2 %v10307_v49  ;;  %1538 = vmatpush.msrb.mxu3 %v10300_v24  ;;  %v10418_v8 = vand.u32 4294901760, %v1301_v54  ;;  %16814 = vst [vmem:[#allocation58_spill] sm:$0xff] %v10432_v27  ;;  %v10449_v24 = vand.u32 4294901760, %v358_v6 }
  0xa3   :  { %1213 = vmatmul.f32.gmra.mxu2 %v10092_v34  ;;  %1390 = vmatpush.msrb.mxu1 %v1389_v23  ;;  %v16810_v34 = vand.u32 4294901760, %v10340_v17  ;;  %v10424_v7 = vsub.f32 %v373_v61, %v10393_v18  ;;  %v1769_v61 = vand.u32 4294901760, %v1768_v43  ;;  %v353_v43 = vld [vmem:[#allocation5 + $0x898] sm:$0xff] }
  0xa4   :  { %1293 = vmatpush.msrb.mxu0 %v10311_v21  ;;  %1482 = vmatpush.msrb.mxu2 %v10326_v56  ;;  %16811 = vst [vmem:[#allocation57_spill] sm:$0xff] %v10418_v8 }
  0xa5   :  { %v1412_v23 = vsub.f32 %v10340_v17, %v16810_v34  ;;  %1540 = vmatpush.msrb.mxu3 %v10311_v21  ;;  %1396 = vmatpush.msrb.mxu1 %v1395_v36  ;;  %v1774_v34 = vsub.f32 %v10360_v63, %v16812_v38  ;;  %v72_v36 = vld [vmem:[#allocation2 + $0x50] sm:$0xff]  ;;  %v1418_v21 = vsub.f32 %v10368_v19, %v16813_v29  ;;  %v16816_v29 = vand.u32 4294901760, %v10383_v52 }
  0xa6   :  { %1295 = vmatpush.msrb.mxu0 %v10334_v44  ;;  %1485 = vmatpush.msrb.mxu2 %v10340_v17  ;;  %v10447_v63 = vsub.f32 %v368_v32, %v10414_v57  ;;  %v10451_v51 = vand.u32 4294901760, %v72_v36 }
  0xa7   :  { %1542 = vmatpush.msrb.mxu3 %v10334_v44  ;;  %1402 = vmatpush.msrb.mxu1 %v1401_v41  ;;  %v1413_v38 = vand.u32 4294901760, %v1412_v23  ;;  %v16815_v44 = vand.u32 4294901760, %v10379_v39  ;;  %v1424_v54 = vsub.f32 %v10383_v52, %v16816_v29  ;;  %v16818_v29 = vand.u32 4294901760, %v10398_v22 }
  0xa8   :  { %1297 = vmatpush.msrb.mxu0 %v10351_v55  ;;  %1488 = vmatpush.msrb.mxu2 %v10368_v19  ;;  %16817 = vst [vmem:[#allocation59_spill] sm:$0xff] %v10451_v51  ;;  %v10467_v23 = vand.u32 4294901760, %v353_v43 }
  0xa9   :  { %v1780_v41 = vsub.f32 %v10379_v39, %v16815_v44  ;;  %1544 = vmatpush.msrb.mxu3 %v10351_v55  ;;  %1132 = vmatmul.f32.gmra.mxu1 %v10121_v62  ;;  %v1775_v44 = vand.u32 4294901760, %v1774_v34  ;;  %v1419_v62 = vand.u32 4294901760, %v1418_v21  ;;  %v1786_v32 = vsub.f32 %v10398_v22, %v16818_v29 }
  0xaa   :  { %1303 = vmatmul.f32.vlgmr.msrb.gmra.mxu0 %v10418_v8  ;;  %1408 = vmatpush.msrb.mxu1 %v1407_v9  ;;  %v1309_v55 = vsub.f32 %v10401_v33, %v10432_v27  ;;  %v10463_v39 = vsub.f32 %v363_v60, %v10434_v37  ;;  %v16819_v9 = vand.u32 4294901760, %v10166_v0  ;;  %v1425_v21 = vand.u32 4294901760, %v1424_v54 }
  0xab   :  { %1548 = vmatmul.f32.vlgmr.msrb.gmra.mxu3 %v10356_v4  ;;  %1491 = vmatpush.msrb.mxu2 %v10383_v52  ;;  %v1781_v34 = vand.u32 4294901760, %v1780_v41  ;;  %v348_v4 = vld [vmem:[#allocation5 + $0x870] sm:$0xff]  ;;  %v10472_v8 = vsub.f32 %v358_v6, %v10449_v24  ;;  %v10475_v60 = vsub.f32 %v72_v36, %v10451_v51  ;;  %v16821_v0 = vand.u32 4294901760, %v10176_v50  ;;  %v343_v41 = vld [vmem:[#allocation5 + $0x848] sm:$0xff] }
  0xac   :  { %1573 = vmatpush.msra.mxu0 %v16819_v9  ;;  %1770 = vmatpush.msra.mxu3 %v1769_v61  ;;  %v16822_v61 = vand.u32 4294901760, %v10424_v7  ;;  %v1787_v54 = vand.u32 4294901760, %v1786_v32  ;;  %v10483_v9 = vand.u32 4294901760, %v1309_v55  ;;  %v10486_v29 = vand.u32 4294901760, %v348_v4 }
  0xad   :  { %1414 = vmatpush.msrb.mxu1 %v1413_v38  ;;  %1494 = vmatmul.f32.vlgmr.msrb.gmra.mxu2 %v10329_v16  ;;  %16820 = vst [vmem:[#allocation60_spill] sm:$0xff] %v10475_v60  ;;  %v16825_v50 = vand.u32 4294901760, %v10186_v20  ;;  %v16826_v55 = vand.u32 4294901760, %v10447_v63  ;;  %v10501_v6 = vand.u32 4294901760, %v10475_v60  ;;  %v10503_v20 = vand.u32 4294901760, %v343_v41  ;;  %v333_v16 = vld [vmem:[#allocation5 + $0x7f8] sm:$0xff] }
  0xae   :  { %1577 = vmatpush.msra.mxu0 %v16821_v0  ;;  %1701 = vmatpush.msra.mxu2 %v10313_v10  ;;  %v1792_v38 = vsub.f32 %v10424_v7, %v16822_v61  ;;  %16823 = vst [vmem:[#allocation61_spill] sm:$0xff] %v10483_v9  ;;  %v10494_v0 = vsub.f32 %v353_v43, %v10467_v23  ;;  %v338_v61 = vld [vmem:[#allocation5 + $0x820] sm:$0xff] }
  0xaf   :  { %1776 = vmatpush.msra.mxu3 %v1775_v44  ;;  %1420 = vmatpush.msrb.mxu1 %v1419_v62  ;;  %v10488_v36 = vpop.f32.mrf.mxu0  ;;  %v76_v44 = vld [vmem:[#allocation2 + $0x70] sm:$0xff]  ;;  %v1798_v62 = vsub.f32 %v10447_v63, %v16826_v55  ;;  %16827 = vst [vmem:[#allocation63_spill] sm:$0xff] %v10501_v6  ;;  %v10513_v55 = vsub.f32 %v348_v4, %v10486_v29  ;;  %v10515_v32 = vand.u32 4294901760, %v338_v61  ;;  %v16832_v4 = vand.u32 4294901760, %v10472_v8 }
  0xb0   :  { %16824 = vst [vmem:[#allocation62_spill] sm:$0xff] %v10488_v36  ;;  %1581 = vmatpush.msra.mxu0 %v16825_v50  ;;  %1703 = vmatpush.msra.mxu2 %v10331_v1  ;;  %v16828_v50 = vand.u32 4294901760, %v10197_v46  ;;  %v1793_v43 = vand.u32 4294901760, %v1792_v38  ;;  %v10517_v36 = vand.u32 4294901760, %v76_v44  ;;  %v16831_v38 = vand.u32 4294901760, %v10218_v14 }
  0xb1   :  { %1782 = vmatpush.msra.mxu3 %v1781_v34  ;;  %1426 = vmatpush.msrb.mxu1 %v1425_v21  ;;  %v16829_v34 = vand.u32 4294901760, %v10463_v39  ;;  %v10534_v46 = vand.u32 4294901760, %v333_v16 }
  0xb2   :  { %1585 = vmatpush.msra.mxu0 %v16828_v50  ;;  %1705 = vmatpush.msra.mxu2 %v10345_v40  ;;  %16830 = vst [vmem:[#allocation64_spill] sm:$0xff] %v10517_v36  ;;  %v1810_v50 = vsub.f32 %v10472_v8, %v16832_v4  ;;  %v10543_v4 = vsub.f32 %v76_v44, %v10517_v36 }
  0xb3   :  { %1788 = vmatpush.msra.mxu3 %v1787_v54  ;;  %1311 = vmatmul.f32.gmra.mxu0 %v10483_v9  ;;  %v1804_v21 = vsub.f32 %v10463_v39, %v16829_v34  ;;  %v1799_v54 = vand.u32 4294901760, %v1798_v62  ;;  %v1317_v34 = vsub.f32 %v10475_v60, %v10501_v6  ;;  %v10531_v9 = vsub.f32 %v343_v41, %v10503_v20 }
  0xb4   :  { %1428 = vmatmul.f32.vlgmr.msrb.gmra.mxu1 %v10303_v47  ;;  %1554 = vmatmul.f32.gmra.mxu3 %v10432_v27  ;;  %16833 = vst [vmem:[#allocation65_spill] sm:$0xff] %v10543_v4  ;;  %v16834_v41 = vand.u32 4294901760, %v10231_v53  ;;  %v323_v27 = vld [vmem:[#allocation5 + $0x7a8] sm:$0xff] }
  0xb5   :  { %1652 = vmatpush.msra.mxu1 %v10151_v58  ;;  %1589 = vmatpush.msra.mxu0 %v16831_v38  ;;  %v328_v58 = vld [vmem:[#allocation5 + $0x7d0] sm:$0xff]  ;;  %v1805_v14 = vand.u32 4294901760, %v1804_v21  ;;  %v10540_v38 = vsub.f32 %v338_v61, %v10515_v32  ;;  %v10552_v21 = vand.u32 4294901760, %v1317_v34  ;;  %v16841_v34 = vand.u32 4294901760, %v10513_v55 }
  0xb6   :  { %1707 = vmatpush.msra.mxu2 %v10370_v2  ;;  %1794 = vmatpush.msra.mxu3 %v1793_v43  ;;  %v16835_v43 = vand.u32 4294901760, %v10494_v0  ;;  %v10555_v44 = vand.u32 4294901760, %v328_v58 }
  0xb7   :  { %1499 = vmatmul.f32.gmra.mxu2 %v10401_v33  ;;  %1654 = vmatpush.msra.mxu1 %v10158_v30  ;;  %v1811_v30 = vand.u32 4294901760, %v1810_v50  ;;  %16836 = vst [vmem:[#allocation66_spill] sm:$0xff] %v10552_v21 }
  0xb8   :  { %1593 = vmatpush.msra.mxu0 %v16834_v41  ;;  %1709 = vmatpush.msra.mxu2 %v10393_v18  ;;  %v1816_v33 = vsub.f32 %v10494_v0, %v16835_v43  ;;  %v10557_v62 = vpop.f32.mrf.mxu0  ;;  %v16839_v41 = vand.u32 4294901760, %v10243_v12  ;;  %v10567_v50 = vpop.f32.mrf.mxu2  ;;  %v1822_v43 = vsub.f32 %v10513_v55, %v16841_v34  ;;  %v10575_v12 = vand.u32 4294901760, %v10543_v4 }
  0xb9   :  { %1800 = vmatpush.msra.mxu3 %v1799_v54  ;;  %1656 = vmatpush.msra.mxu1 %v10168_v11  ;;  %16837 = vst [vmem:[#allocation67_spill] sm:$0xff] %v10557_v62  ;;  %v10559_v53 = vpop.f32.mrf.mxu1  ;;  %v10565_v54 = vsub.f32 %v333_v16, %v10534_v46  ;;  %v318_v11 = vld [vmem:[#allocation5 + $0x780] sm:$0xff]  ;;  %v16843_v16 = vand.u32 4294901760, %v10252_v48  ;;  %v10589_v61 = vsub.f32 %v328_v58, %v10555_v44  ;;  %v65_v48 = vld [vmem:[#allocation2 + $0x18] sm:$0xff] }
  0xba   :  { %16838 = vst [vmem:[#allocation68_spill] sm:$0xff] %v10559_v53  ;;  %1597 = vmatpush.msra.mxu0 %v16839_v41  ;;  %1711 = vmatpush.msra.mxu2 %v10414_v57  ;;  %v10577_v41 = vand.u32 4294901760, %v323_v27  ;;  %v10591_v62 = vand.u32 4294901760, %v318_v11 }
  0xbb   :  { %16840 = vst [vmem:[#allocation69_spill] sm:$0xff] %v10567_v50  ;;  %1806 = vmatpush.msra.mxu3 %v1805_v14  ;;  %1658 = vmatpush.msra.mxu1 %v10178_v26  ;;  %v1817_v50 = vand.u32 4294901760, %v1816_v33  ;;  %v10582_v14 = vpop.f32.mrf.mxu3  ;;  %v16845_v26 = vand.u32 4294901760, %v10531_v9  ;;  %v16516_v33 = vand.u32 4294901760, %v10565_v54 }
  0xbc   :  { %16842 = vst [vmem:[#allocation70_spill] sm:$0xff] %v10575_v12  ;;  %1601 = vmatpush.msra.mxu0 %v16843_v16  ;;  %1713 = vmatpush.msra.mxu2 %v10434_v37  ;;  %v1823_v16 = vand.u32 4294901760, %v1822_v43  ;;  %v10605_v53 = vsub.f32 %v323_v27, %v10577_v41  ;;  %v10612_v43 = vsub.f32 %v318_v11, %v10591_v62 }
  0xbd   :  { %16844 = vst [vmem:[#allocation71_spill] sm:$0xff] %v10582_v14  ;;  %1812 = vmatpush.msra.mxu3 %v1811_v30  ;;  %1319 = vmatmul.f32.gmra.mxu0 %v10552_v21  ;;  %v1828_v34 = vsub.f32 %v10531_v9, %v16845_v26  ;;  %v16846_v30 = vand.u32 4294901760, %v10271_v31  ;;  %v16847_v26 = vand.u32 4294901760, %v10540_v38  ;;  %v1325_v14 = vsub.f32 %v10543_v4, %v10575_v12 }
  0xbe   :  { %1432 = vmatmul.f32.gmra.mxu1 %v10372_v45  ;;  %1560 = vmatmul.f32.gmra.mxu3 %v10501_v6  ;;  %v1840_v27 = vsub.f32 %v10565_v54, %v16516_v33  ;;  %v16518_v11 = vand.u32 4294901760, %v10605_v53  ;;  %v16857_v33 = vand.u32 4294901760, %v10307_v49  ;;  %v16859_v49 = vand.u32 4294901760, %v10326_v56 }
  0xbf   :  { %1660 = vmatpush.msra.mxu1 %v10194_v42  ;;  %1605 = vmatpush.msra.mxu0 %v16846_v30  ;;  %v1834_v58 = vsub.f32 %v10540_v38, %v16847_v26  ;;  %v1829_v42 = vand.u32 4294901760, %v1828_v34  ;;  %v10614_v30 = vand.u32 4294901760, %v65_v48  ;;  %v16849_v26 = vand.u32 4294901760, %v10279_v25 }
  0xc0   :  { %1715 = vmatpush.msra.mxu2 %v10449_v24  ;;  %1818 = vmatpush.msra.mxu3 %v1817_v50  ;;  %v10623_v50 = vand.u32 4294901760, %v1325_v14  ;;  %v16853_v25 = vand.u32 4294901760, %v10295_v35  ;;  %v1841_v35 = vand.u32 4294901760, %v1840_v27  ;;  %v16862_v56 = vand.u32 4294901760, %v10340_v17 }
  0xc1   :  { %1504 = vmatmul.f32.gmra.mxu2 %v10475_v60  ;;  %1662 = vmatpush.msra.mxu1 %v10207_v5  ;;  %16848 = vst [vmem:[#allocation72_spill] sm:$0xff] %v10614_v30  ;;  %v1835_v5 = vand.u32 4294901760, %v1834_v58  ;;  %v10641_v58 = vsub.f32 %v65_v48, %v10614_v30  ;;  %v69_v48 = vld [vmem:[#allocation2 + $0x38] sm:$0xff] }
  0xc2   :  { %1609 = vmatpush.msra.mxu0 %v16849_v26  ;;  %1717 = vmatpush.msra.mxu2 %v10467_v23  ;;  %16850 = vst [vmem:[#allocation73_spill] sm:$0xff] %v10623_v50  ;;  %v10626_v34 = vpop.f32.mrf.mxu0  ;;  %v10633_v26 = vpop.f32.mrf.mxu2 }
  0xc3   :  { %1824 = vmatpush.msra.mxu3 %v1823_v16  ;;  %1664 = vmatpush.msra.mxu1 %v10220_v59  ;;  %16851 = vst [vmem:[#allocation74_spill] sm:$0xff] %v10626_v34  ;;  %v10628_v31 = vpop.f32.mrf.mxu1  ;;  %v16855_v59 = vand.u32 4294901760, %v10589_v61  ;;  %v16517_v16 = vand.u32 4294901760, %v10612_v43  ;;  %v10661_v27 = vand.u32 4294901760, %v10641_v58  ;;  %v234_v34 = vld [vmem:[#allocation5 + $0x4e0] sm:$0xff] }
  0xc4   :  { %16852 = vst [vmem:[#allocation75_spill] sm:$0xff] %v10628_v31  ;;  %1613 = vmatpush.msra.mxu0 %v16853_v25  ;;  %1719 = vmatpush.msra.mxu2 %v10486_v29  ;;  %v10646_v25 = vpop.f32.mrf.mxu3  ;;  %v11009_v31 = vand.u32 4294901760, %v234_v34 }
  0xc5   :  { %16854 = vst [vmem:[#allocation76_spill] sm:$0xff] %v10633_v26  ;;  %1830 = vmatpush.msra.mxu3 %v1829_v42  ;;  %1666 = vmatpush.msra.mxu1 %v10233_v3  ;;  %v1846_v14 = vsub.f32 %v10589_v61, %v16855_v59  ;;  %v1852_v3 = vsub.f32 %v10605_v53, %v16518_v11 }
  0xc6   :  { %16856 = vst [vmem:[#allocation77_spill] sm:$0xff] %v10641_v58  ;;  %1617 = vmatpush.msra.mxu0 %v16857_v33  ;;  %1721 = vmatpush.msra.mxu2 %v10503_v20  ;;  %v1858_v42 = vsub.f32 %v10612_v43, %v16517_v16 }
  0xc7   :  { %16858 = vst [vmem:[#allocation78_spill] sm:$0xff] %v10646_v25  ;;  %1836 = vmatpush.msra.mxu3 %v1835_v5  ;;  %1327 = vmatmul.f32.gmra.mxu0 %v10623_v50  ;;  %v1847_v33 = vand.u32 4294901760, %v1846_v14  ;;  %v1853_v5 = vand.u32 4294901760, %v1852_v3  ;;  %v1735_v14 = vsub.f32 %v10641_v58, %v10661_v27  ;;  %v16867_v3 = vld [vmem:[#allocation44_spill] sm:$0xff] }
  0xc8   :  { %1436 = vmatmul.f32.gmra.mxu1 %v10451_v51  ;;  %1566 = vmatmul.f32.gmra.mxu3 %v10575_v12  ;;  %16860 = vst [vmem:[#allocation79_spill] sm:$0xff] %v10661_v27  ;;  %v1859_v59 = vand.u32 4294901760, %v1858_v42 }
  0xc9   :  { %1668 = vmatpush.msra.mxu1 %v10249_v15  ;;  %1621 = vmatpush.msra.mxu0 %v16859_v49  ;;  %v10666_v15 = vand.u32 4294901760, %v69_v48 }
  0xca   :  { %1723 = vmatpush.msra.mxu2 %v10515_v32  ;;  %1842 = vmatpush.msra.mxu3 %v1841_v35 }
  0xcb   :  { %1509 = vmatmul.f32.gmra.mxu2 %v10543_v4  ;;  %1670 = vmatpush.msra.mxu1 %v10257_v13  ;;  %16861 = vst [vmem:[#allocation80_spill] sm:$0xff] %v10666_v15  ;;  %v16865_v13 = vand.u32 4294901760, %v10368_v19  ;;  %v10693_v19 = vand.u32 4294901760, %v1735_v14 }
  0xcc   :  { %1625 = vmatpush.msra.mxu0 %v16862_v56  ;;  %1725 = vmatpush.msra.mxu2 %v10534_v46  ;;  %v10674_v35 = vpop.f32.mrf.mxu0  ;;  %v10681_v17 = vpop.f32.mrf.mxu2  ;;  %v73_v56 = vld [vmem:[#allocation2 + $0x58] sm:$0xff] }
  0xcd   :  { %1848 = vmatpush.msra.mxu3 %v1847_v33  ;;  %1672 = vmatpush.msra.mxu1 %v10273_v28  ;;  %16863 = vst [vmem:[#allocation81_spill] sm:$0xff] %v10674_v35  ;;  %v10676_v49 = vpop.f32.mrf.mxu1  ;;  %v10685_v28 = vsub.f32 %v69_v48, %v10666_v15  ;;  %v16869_v33 = vand.u32 4294901760, %v10383_v52  ;;  %v10690_v42 = vpop.f32.mrf.mxu3  ;;  %v16874_v48 = vld [vmem:[#allocation50_spill] sm:$0xff]  ;;  %v10706_v14 = vand.u32 4294901760, %v73_v56 }
  0xce   :  { %16864 = vst [vmem:[#allocation82_spill] sm:$0xff] %v10676_v49  ;;  %1629 = vmatpush.msra.mxu0 %v16865_v13  ;;  %1727 = vmatpush.msra.mxu2 %v10555_v44  ;;  %v16877_v13 = vld [vmem:[#allocation53_spill] sm:$0xff]  ;;  %v89_v49 = vld [vmem:[#allocation5 + $0x58] sm:$0xff] }
  0xcf   :  { %16866 = vst [vmem:[#allocation83_spill] sm:$0xff] %v10681_v17  ;;  %1854 = vmatpush.msra.mxu3 %v1853_v5  ;;  %1674 = vmatpush.msra.mxu1 %v16867_v3  ;;  %v16872_v5 = vld [vmem:[#allocation45_spill] sm:$0xff]  ;;  %v10700_v52 = vand.u32 4294901760, %v10685_v28  ;;  %v16878_v3 = vand.u32 4294901760, %v16874_v48 }
  0xd0   :  { %16868 = vst [vmem:[#allocation44_spill] sm:$0xff] %v10685_v28  ;;  %1633 = vmatpush.msra.mxu0 %v16869_v33  ;;  %1729 = vmatpush.msra.mxu2 %v10577_v41  ;;  %v16879_v33 = vld [vmem:[#allocation49_spill] sm:$0xff] }
  0xd1   :  { %16870 = vst [vmem:[#allocation84_spill] sm:$0xff] %v10690_v42  ;;  %1860 = vmatpush.msra.mxu3 %v1859_v59  ;;  %1440 = vmatmul.f32.gmra.mxu1 %v10517_v36  ;;  %v16875_v59 = vld [vmem:[#allocation47_spill] sm:$0xff]  ;;  %v16883_v42 = vand.u32 4294901760, %v16877_v13 }
  0xd2   :  { %16871 = vst [vmem:[#allocation85_spill] sm:$0xff] %v10693_v19  ;;  %1635 = vmatmul.f32.vlgmr.msra.gmra.mxu0 %v10303_v47  ;;  %1676 = vmatpush.msra.mxu1 %v16872_v5  ;;  %v1743_v5 = vsub.f32 %v10685_v28, %v10700_v52 }
  0xd3   :  { %1862 = vmatmul.f32.vlgmr.msra.gmra.mxu3 %v10614_v30  ;;  %1731 = vmatpush.msra.mxu2 %v10591_v62  ;;  %16873 = vst [vmem:[#allocation45_spill] sm:$0xff] %v10700_v52 }
  0xd4   :  { %1880 = vmatpush.msrb.mxu0 %v16874_v48  ;;  %2086 = vmatpush.msrb.mxu3 %v10313_v10  ;;  %16876 = vst [vmem:[#allocation50_spill] sm:$0xff] %v10706_v14  ;;  %v16885_v48 = vld [vmem:[#allocation51_spill] sm:$0xff] }
  0xd5   :  { %1678 = vmatpush.msra.mxu1 %v16875_v59  ;;  %1737 = vmatmul.f32.vlgmr.msra.gmra.mxu2 %v10693_v19  ;;  %v16882_v59 = vld [vmem:[#allocation55_spill] sm:$0xff] }
  0xd6   :  { %1883 = vmatpush.msrb.mxu0 %v16877_v13  ;;  %2007 = vmatpush.msrb.mxu2 %v16878_v3  ;;  %v10715_v16 = vpop.f32.mrf.mxu1  ;;  %v10722_v25 = vpop.f32.mrf.mxu2  ;;  %v10727_v3 = vsub.f32 %v73_v56, %v10706_v14  ;;  %v77_v13 = vld [vmem:[#allocation2 + $0x78] sm:$0xff] }
  0xd7   :  { %2088 = vmatpush.msrb.mxu3 %v10331_v1  ;;  %1680 = vmatpush.msra.mxu1 %v16879_v33  ;;  %16880 = vst [vmem:[#allocation47_spill] sm:$0xff] %v10715_v16  ;;  %v10717_v11 = vpop.f32.mrf.mxu0  ;;  %v16887_v33 = vand.u32 4294901760, %v16882_v59 }
  0xd8   :  { %16881 = vst [vmem:[#allocation53_spill] sm:$0xff] %v10717_v11  ;;  %1886 = vmatpush.msrb.mxu0 %v16882_v59  ;;  %2011 = vmatpush.msrb.mxu2 %v16883_v42  ;;  %v10732_v11 = vpop.f32.mrf.mxu3  ;;  %v10736_v42 = vand.u32 4294901760, %v1743_v5  ;;  %v10743_v56 = vand.u32 4294901760, %v10727_v3  ;;  %v16891_v59 = vand.u32 4294901760, %v10398_v22  ;;  %v10750_v5 = vand.u32 4294901760, %v77_v13 }
  0xd9   :  { %16884 = vst [vmem:[#allocation49_spill] sm:$0xff] %v10722_v25  ;;  %2090 = vmatpush.msrb.mxu3 %v10345_v40  ;;  %1682 = vmatpush.msra.mxu1 %v16885_v48 }
  0xda   :  { %16886 = vst [vmem:[#allocation55_spill] sm:$0xff] %v10727_v3  ;;  %1889 = vmatpush.msrb.mxu0 %v10398_v22  ;;  %2015 = vmatpush.msrb.mxu2 %v16887_v33  ;;  %v1751_v22 = vsub.f32 %v10727_v3, %v10743_v56 }
  0xdb   :  { %16888 = vst [vmem:[#allocation51_spill] sm:$0xff] %v10732_v11  ;;  %2092 = vmatpush.msrb.mxu3 %v10370_v2  ;;  %1639 = vmatmul.f32.gmra.mxu0 %v10372_v45  ;;  %v104_v11 = vld [vmem:[#allocation5 + $0xd0] sm:$0xff] }
  0xdc   :  { %16889 = vst [vmem:[#allocation86_spill] sm:$0xff] %v10736_v42  ;;  %1684 = vmatmul.f32.vlgmr.msra.gmra.mxu1 %v10303_v47  ;;  %1866 = vmatmul.f32.gmra.mxu3 %v10666_v15 }
  0xdd   :  { %1948 = vmatpush.msrb.mxu1 %v10313_v10  ;;  %1892 = vmatpush.msrb.mxu0 %v10424_v7  ;;  %16890 = vst [vmem:[#allocation87_spill] sm:$0xff] %v10743_v56  ;;  %v16893_v10 = vand.u32 4294901760, %v10424_v7  ;;  %v16899_v7 = vand.u32 4294901760, %v10463_v39 }
  0xde   :  { %2019 = vmatpush.msrb.mxu2 %v16891_v59  ;;  %2094 = vmatpush.msrb.mxu3 %v10393_v18  ;;  %16892 = vst [vmem:[#allocation88_spill] sm:$0xff] %v10750_v5 }
  0xdf   :  { %1745 = vmatmul.f32.gmra.mxu2 %v10736_v42  ;;  %1950 = vmatpush.msrb.mxu1 %v10331_v1  ;;  %v16896_v1 = vand.u32 4294901760, %v10447_v63 }
  0xe0   :  { %1895 = vmatpush.msrb.mxu0 %v10447_v63  ;;  %2023 = vmatpush.msrb.mxu2 %v16893_v10  ;;  %v10759_v48 = vpop.f32.mrf.mxu0  ;;  %v10766_v59 = vpop.f32.mrf.mxu2  ;;  %v10780_v63 = vand.u32 4294901760, %v1751_v22 }
  0xe1   :  { %2096 = vmatpush.msrb.mxu3 %v10414_v57  ;;  %1952 = vmatpush.msrb.mxu1 %v10345_v40  ;;  %16894 = vst [vmem:[#allocation89_spill] sm:$0xff] %v10759_v48  ;;  %v10761_v33 = vpop.f32.mrf.mxu1  ;;  %v10771_v40 = vsub.f32 %v77_v13, %v10750_v5  ;;  %v10776_v10 = vpop.f32.mrf.mxu3  ;;  %v16904_v13 = vand.u32 4294901760, %v10494_v0 }
  0xe2   :  { %16895 = vst [vmem:[#allocation90_spill] sm:$0xff] %v10761_v33  ;;  %1898 = vmatpush.msrb.mxu0 %v10463_v39  ;;  %2027 = vmatpush.msrb.mxu2 %v16896_v1  ;;  %v16903_v39 = vand.u32 4294901760, %v10472_v8 }
  0xe3   :  { %16897 = vst [vmem:[#allocation91_spill] sm:$0xff] %v10766_v59  ;;  %2098 = vmatpush.msrb.mxu3 %v10434_v37  ;;  %1954 = vmatpush.msrb.mxu1 %v10370_v2  ;;  %v10787_v2 = vand.u32 4294901760, %v10771_v40 }
  0xe4   :  { %16898 = vst [vmem:[#allocation92_spill] sm:$0xff] %v10771_v40  ;;  %1901 = vmatpush.msrb.mxu0 %v10472_v8  ;;  %2031 = vmatpush.msrb.mxu2 %v16899_v7 }
  0xe5   :  { %16900 = vst [vmem:[#allocation93_spill] sm:$0xff] %v10776_v10  ;;  %2100 = vmatpush.msrb.mxu3 %v10449_v24  ;;  %1643 = vmatmul.f32.gmra.mxu0 %v10451_v51  ;;  %v134_v10 = vld [vmem:[#allocation5 + $0x1c0] sm:$0xff] }
  0xe6   :  { %16901 = vst [vmem:[#allocation94_spill] sm:$0xff] %v10780_v63  ;;  %1688 = vmatmul.f32.gmra.mxu1 %v10372_v45  ;;  %1870 = vmatmul.f32.gmra.mxu3 %v10706_v14 }
  0xe7   :  { %1956 = vmatpush.msrb.mxu1 %v10393_v18  ;;  %1904 = vmatpush.msrb.mxu0 %v10494_v0  ;;  %16902 = vst [vmem:[#allocation95_spill] sm:$0xff] %v10787_v2  ;;  %v1759_v18 = vsub.f32 %v10771_v40, %v10787_v2  ;;  %v154_v0 = vld [vmem:[#allocation5 + $0x260] sm:$0xff] }
  0xe8   :  { %2035 = vmatpush.msrb.mxu2 %v16903_v39  ;;  %2102 = vmatpush.msrb.mxu3 %v10467_v23  ;;  %v149_v39 = vld [vmem:[#allocation5 + $0x238] sm:$0xff] }
  0xe9   :  { %1753 = vmatmul.f32.gmra.mxu2 %v10780_v63  ;;  %1958 = vmatpush.msrb.mxu1 %v10414_v57  ;;  %v16907_v57 = vand.u32 4294901760, %v10513_v55  ;;  %v10815_v7 = vpop.f32.mrf.mxu3 }
  0xea   :  { %1907 = vmatpush.msrb.mxu0 %v10513_v55  ;;  %2039 = vmatpush.msrb.mxu2 %v16904_v13  ;;  %v10801_v8 = vpop.f32.mrf.mxu0  ;;  %v10808_v1 = vpop.f32.mrf.mxu2  ;;  %16910 = vst [vmem:[#allocation99_spill] sm:$0xff] %v10815_v7  ;;  %v10819_v55 = vand.u32 4294901760, %v1759_v18  ;;  %v144_v13 = vld [vmem:[#allocation5 + $0x210] sm:$0xff]  ;;  %v10832_v18 = vand.u32 4294901760, %v149_v39  ;;  %v16916_v7 = vand.u32 4294901760, %v10589_v61 }
  0xeb   :  { %2104 = vmatpush.msrb.mxu3 %v10486_v29  ;;  %1960 = vmatpush.msrb.mxu1 %v10434_v37  ;;  %16905 = vst [vmem:[#allocation96_spill] sm:$0xff] %v10801_v8  ;;  %v10803_v22 = vpop.f32.mrf.mxu1  ;;  %v16909_v37 = vand.u32 4294901760, %v10531_v9  ;;  %v109_v8 = vld [vmem:[#allocation5 + $0xf8] sm:$0xff] }
  0xec   :  { %16906 = vst [vmem:[#allocation97_spill] sm:$0xff] %v10803_v22  ;;  %1910 = vmatpush.msrb.mxu0 %v10531_v9  ;;  %2043 = vmatpush.msrb.mxu2 %v16907_v57  ;;  %v16912_v9 = vand.u32 4294901760, %v10540_v38  ;;  %v139_v57 = vld [vmem:[#allocation5 + $0x1e8] sm:$0xff] }
  0xed   :  { %16908 = vst [vmem:[#allocation98_spill] sm:$0xff] %v10808_v1  ;;  %2106 = vmatpush.msrb.mxu3 %v10503_v20  ;;  %1962 = vmatpush.msrb.mxu1 %v10449_v24  ;;  %v10825_v24 = vand.u32 4294901760, %v154_v0 }
  0xee   :  { %1913 = vmatpush.msrb.mxu0 %v10540_v38  ;;  %2047 = vmatpush.msrb.mxu2 %v16909_v37  ;;  %16911 = vst [vmem:[#allocation100_spill] sm:$0xff] %v10819_v55  ;;  %v10842_v37 = vand.u32 4294901760, %v144_v13 }
  0xef   :  { %2108 = vmatpush.msrb.mxu3 %v10515_v32  ;;  %1647 = vmatmul.f32.gmra.mxu0 %v10517_v36  ;;  %v10840_v38 = vsub.f32 %v154_v0, %v10825_v24  ;;  %v10858_v0 = vand.u32 4294901760, %v139_v57 }
  0xf0   :  { %1692 = vmatmul.f32.gmra.mxu1 %v10451_v51  ;;  %1874 = vmatmul.f32.gmra.mxu3 %v10750_v5  ;;  %v199_v51 = vld [vmem:[#allocation5 + $0x3c8] sm:$0xff] }
  0xf1   :  { %1964 = vmatpush.msrb.mxu1 %v10467_v23  ;;  %1916 = vmatpush.msrb.mxu0 %v10565_v54  ;;  %v16913_v23 = vand.u32 4294901760, %v10565_v54  ;;  %v11143_v45 = vand.u32 4294901760, %v199_v51 }
  0xf2   :  { %2051 = vmatpush.msrb.mxu2 %v16912_v9  ;;  %2110 = vmatpush.msrb.mxu3 %v10534_v46 }
  0xf3   :  { %1761 = vmatmul.f32.gmra.mxu2 %v10819_v55  ;;  %1966 = vmatpush.msrb.mxu1 %v10486_v29 }
  0xf4   :  { %1919 = vmatpush.msrb.mxu0 %v10589_v61  ;;  %2055 = vmatpush.msrb.mxu2 %v16913_v23  ;;  %v10844_v9 = vpop.f32.mrf.mxu0  ;;  %v10851_v54 = vpop.f32.mrf.mxu2  ;;  %v16918_v23 = vand.u32 4294901760, %v10605_v53  ;;  %v10868_v61 = vsub.f32 %v144_v13, %v10842_v37  ;;  %v119_v13 = vld [vmem:[#allocation5 + $0x148] sm:$0xff] }
  0xf5   :  { %2112 = vmatpush.msrb.mxu3 %v10555_v44  ;;  %1968 = vmatpush.msrb.mxu1 %v10503_v20  ;;  %16914 = vst [vmem:[#allocation101_spill] sm:$0xff] %v10844_v9  ;;  %v10846_v29 = vpop.f32.mrf.mxu1  ;;  %v10856_v20 = vsub.f32 %v149_v39, %v10832_v18  ;;  %v10876_v39 = vand.u32 4294901760, %v134_v10 }
  0xf6   :  { %16915 = vst [vmem:[#allocation102_spill] sm:$0xff] %v10846_v29  ;;  %1922 = vmatpush.msrb.mxu0 %v10605_v53  ;;  %2059 = vmatpush.msrb.mxu2 %v16916_v7  ;;  %v10863_v29 = vpop.f32.mrf.mxu3  ;;  %v129_v7 = vld [vmem:[#allocation5 + $0x198] sm:$0xff]  ;;  %v16920_v53 = vand.u32 4294901760, %v10612_v43 }
  0xf7   :  { %16917 = vst [vmem:[#allocation103_spill] sm:$0xff] %v10851_v54  ;;  %2114 = vmatpush.msrb.mxu3 %v10577_v41  ;;  %1970 = vmatpush.msrb.mxu1 %v10515_v32  ;;  %v124_v32 = vld [vmem:[#allocation5 + $0x170] sm:$0xff]  ;;  %v10900_v54 = vsub.f32 %v134_v10, %v10876_v39 }
  0xf8   :  { %1925 = vmatpush.msrb.mxu0 %v10612_v43  ;;  %2063 = vmatpush.msrb.mxu2 %v16918_v23  ;;  %16919 = vst [vmem:[#allocation104_spill] sm:$0xff] %v10863_v29  ;;  %v10879_v23 = vsub.f32 %v139_v57, %v10858_v0 }
  0xf9   :  { %2116 = vmatpush.msrb.mxu3 %v10591_v62  ;;  %1696 = vmatmul.f32.gmra.mxu1 %v10517_v36 }
  0xfa   :  { %1928 = vmatmul.f32.vlgmr.msrb.gmra.mxu0 %v10641_v58  ;;  %1972 = vmatpush.msrb.mxu1 %v10534_v46  ;;  %v16921_v46 = vand.u32 4294901760, %v10840_v38  ;;  %v79_v58 = vld [vmem:[#allocation5 + $0x8] sm:$0xff] }
  0xfb   :  { %2118 = vmatmul.f32.vlgmr.msrb.gmra.mxu3 %v10614_v30  ;;  %2067 = vmatpush.msrb.mxu2 %v16920_v53  ;;  %v10889_v53 = vand.u32 4294901760, %v129_v7  ;;  %v11048_v42 = vand.u32 4294901760, %v79_v58 }
  0xfc   :  { %2135 = vmatpush.msra.mxu0 %v10825_v24  ;;  %2382 = vmatpush.msra.mxu3 %v10825_v24  ;;  %v2202_v43 = vsub.f32 %v10840_v38, %v16921_v46  ;;  %v10902_v46 = vand.u32 4294901760, %v124_v32 }
  0xfd   :  { %1974 = vmatpush.msrb.mxu1 %v10555_v44  ;;  %2069 = vmatmul.f32.vlgmr.msrb.gmra.mxu2 %v10614_v30  ;;  %v16922_v44 = vand.u32 4294901760, %v10856_v20  ;;  %v10919_v57 = vsub.f32 %v129_v7, %v10889_v53  ;;  %16943 = vst [vmem:[#allocation116_spill] sm:$0xff] %v11048_v42 }
  0xfe   :  { %2137 = vmatpush.msra.mxu0 %v10832_v18  ;;  %2314 = vmatpush.msra.mxu2 %v10840_v38  ;;  %v10905_v9 = vpop.f32.mrf.mxu1  ;;  %v2203_v10 = vand.u32 4294901760, %v2202_v43  ;;  %v16928_v43 = vand.u32 4294901760, %v10879_v23  ;;  %v10933_v7 = vsub.f32 %v124_v32, %v10902_v46  ;;  %v10947_v32 = vand.u32 4294901760, %v109_v8 }
  0xff   :  { %2384 = vmatpush.msra.mxu3 %v10832_v18  ;;  %1976 = vmatpush.msrb.mxu1 %v10577_v41  ;;  %v2208_v29 = vsub.f32 %v10856_v20, %v16922_v44  ;;  %16923 = vst [vmem:[#allocation105_spill] sm:$0xff] %v10905_v9  ;;  %v10907_v1 = vpop.f32.mrf.mxu0  ;;  %v10911_v41 = vpop.f32.mrf.mxu2  ;;  %v16926_v44 = vand.u32 4294901760, %v10868_v61  ;;  %v10921_v9 = vand.u32 4294901760, %v119_v13  ;;  %v16930_v48 = vand.u32 4294901760, %v10919_v57 }
 0x100   :  { %16924 = vst [vmem:[#allocation106_spill] sm:$0xff] %v10907_v1  ;;  %2139 = vmatpush.msra.mxu0 %v10842_v37  ;;  %2317 = vmatpush.msra.mxu2 %v10856_v20  ;;  %v114_v1 = vld [vmem:[#allocation5 + $0x120] sm:$0xff] }
 0x101   :  { %16925 = vst [vmem:[#allocation107_spill] sm:$0xff] %v10911_v41  ;;  %2386 = vmatpush.msra.mxu3 %v10842_v37  ;;  %1978 = vmatpush.msrb.mxu1 %v10591_v62  ;;  %v2214_v59 = vsub.f32 %v10868_v61, %v16926_v44  ;;  %v10925_v41 = vpop.f32.mrf.mxu3  ;;  %v2209_v62 = vand.u32 4294901760, %v2208_v29  ;;  %v2220_v44 = vsub.f32 %v10879_v23, %v16928_v43  ;;  %v10939_v22 = vand.u32 4294901760, %v114_v1  ;;  %v99_v43 = vld [vmem:[#allocation5 + $0xa8] sm:$0xff] }
 0x102   :  { %2141 = vmatpush.msra.mxu0 %v10858_v0  ;;  %2320 = vmatpush.msra.mxu2 %v10868_v61  ;;  %16927 = vst [vmem:[#allocation108_spill] sm:$0xff] %v10925_v41  ;;  %v10942_v29 = vsub.f32 %v119_v13, %v10921_v9  ;;  %v2232_v25 = vsub.f32 %v10919_v57, %v16930_v48 }
 0x103   :  { %2388 = vmatpush.msra.mxu3 %v10858_v0  ;;  %1933 = vmatmul.f32.gmra.mxu0 %v10685_v28  ;;  %v2215_v41 = vand.u32 4294901760, %v2214_v59  ;;  %v16929_v59 = vand.u32 4294901760, %v10900_v54 }
 0x104   :  { %1982 = vmatmul.f32.vlgmr.msrb.gmra.mxu1 %v10661_v27  ;;  %2122 = vmatmul.f32.gmra.mxu3 %v10666_v15 }
 0x105   :  { %2204 = vmatpush.msra.mxu1 %v2203_v10  ;;  %2143 = vmatpush.msra.mxu0 %v10876_v39  ;;  %v2221_v10 = vand.u32 4294901760, %v2220_v44  ;;  %v2226_v33 = vsub.f32 %v10900_v54, %v16929_v59  ;;  %v10963_v44 = vand.u32 4294901760, %v104_v11 }
 0x106   :  { %2323 = vmatpush.msra.mxu2 %v10879_v23  ;;  %2390 = vmatpush.msra.mxu3 %v10876_v39 }
 0x107   :  { %2073 = vmatmul.f32.gmra.mxu2 %v10666_v15  ;;  %2210 = vmatpush.msra.mxu1 %v2209_v62  ;;  %v10961_v62 = vsub.f32 %v114_v1, %v10939_v22  ;;  %v2227_v48 = vand.u32 4294901760, %v2226_v33  ;;  %v16934_v1 = vand.u32 4294901760, %v10933_v7  ;;  %v16936_v33 = vand.u32 4294901760, %v10942_v29 }
 0x108   :  { %2145 = vmatpush.msra.mxu0 %v10889_v53  ;;  %2326 = vmatpush.msra.mxu2 %v10900_v54  ;;  %v10966_v13 = vpop.f32.mrf.mxu0  ;;  %v10975_v16 = vpop.f32.mrf.mxu2 }
 0x109   :  { %2392 = vmatpush.msra.mxu3 %v10889_v53  ;;  %2216 = vmatpush.msra.mxu1 %v2215_v41  ;;  %16931 = vst [vmem:[#allocation109_spill] sm:$0xff] %v10966_v13  ;;  %v10968_v17 = vpop.f32.mrf.mxu1  ;;  %v10973_v41 = vsub.f32 %v109_v8, %v10947_v32  ;;  %v2238_v59 = vsub.f32 %v10933_v7, %v16934_v1  ;;  %v10981_v13 = vand.u32 4294901760, %v99_v43  ;;  %v10985_v35 = vpop.f32.mrf.mxu3  ;;  %v2233_v8 = vand.u32 4294901760, %v2232_v25 }
 0x10a   :  { %16932 = vst [vmem:[#allocation110_spill] sm:$0xff] %v10968_v17  ;;  %2147 = vmatpush.msra.mxu0 %v10902_v46  ;;  %2329 = vmatpush.msra.mxu2 %v10919_v57  ;;  %v94_v17 = vld [vmem:[#allocation5 + $0x80] sm:$0xff]  ;;  %v10993_v1 = vsub.f32 %v104_v11, %v10963_v44  ;;  %v11007_v11 = vand.u32 4294901760, %v89_v49  ;;  %v16937_v26 = vand.u32 4294901760, %v10961_v62 }
 0x10b   :  { %16933 = vst [vmem:[#allocation111_spill] sm:$0xff] %v10975_v16  ;;  %2394 = vmatpush.msra.mxu3 %v10902_v46  ;;  %2222 = vmatpush.msra.mxu1 %v2221_v10  ;;  %v2244_v10 = vsub.f32 %v10942_v29, %v16936_v33  ;;  %v2239_v25 = vand.u32 4294901760, %v2238_v59  ;;  %v11003_v33 = vsub.f32 %v99_v43, %v10981_v13  ;;  %v84_v16 = vld [vmem:[#allocation5 + $0x30] sm:$0xff] }
 0x10c   :  { %2149 = vmatpush.msra.mxu0 %v10921_v9  ;;  %2332 = vmatpush.msra.mxu2 %v10933_v7  ;;  %16935 = vst [vmem:[#allocation112_spill] sm:$0xff] %v10985_v35  ;;  %v10998_v35 = vand.u32 4294901760, %v94_v17  ;;  %v2250_v59 = vsub.f32 %v10961_v62, %v16937_v26 }
 0x10d   :  { %2396 = vmatpush.msra.mxu3 %v10921_v9  ;;  %1938 = vmatmul.f32.gmra.mxu0 %v10727_v3  ;;  %v16938_v3 = vand.u32 4294901760, %v10973_v41 }
 0x10e   :  { %1988 = vmatmul.f32.gmra.mxu1 %v10700_v52  ;;  %2126 = vmatmul.f32.gmra.mxu3 %v10706_v14  ;;  %v229_v52 = vld [vmem:[#allocation5 + $0x4b8] sm:$0xff]  ;;  %v11022_v28 = vsub.f32 %v94_v17, %v10998_v35  ;;  %v11037_v17 = vsub.f32 %v89_v49, %v11007_v11  ;;  %v2251_v26 = vand.u32 4294901760, %v2250_v59 }
 0x10f   :  { %2228 = vmatpush.msra.mxu1 %v2227_v48  ;;  %2151 = vmatpush.msra.mxu0 %v10939_v22  ;;  %v2245_v48 = vand.u32 4294901760, %v2244_v10  ;;  %v2256_v27 = vsub.f32 %v10973_v41, %v16938_v3  ;;  %v11025_v10 = vand.u32 4294901760, %v84_v16  ;;  %v11028_v43 = vand.u32 4294901760, %v229_v52 }
 0x110   :  { %2335 = vmatpush.msra.mxu2 %v10942_v29  ;;  %2398 = vmatpush.msra.mxu3 %v10939_v22  ;;  %v11040_v3 = vsub.f32 %v234_v34, %v11009_v31  ;;  %v16949_v4 = vand.u32 4294901760, %v11037_v17 }
 0x111   :  { %2077 = vmatmul.f32.gmra.mxu2 %v10706_v14  ;;  %2234 = vmatpush.msra.mxu1 %v2233_v8  ;;  %v224_v8 = vld [vmem:[#allocation5 + $0x490] sm:$0xff]  ;;  %v2257_v34 = vand.u32 4294901760, %v2256_v27  ;;  %v11063_v59 = vsub.f32 %v84_v16, %v11025_v10  ;;  %v11066_v19 = vsub.f32 %v229_v52, %v11028_v43  ;;  %v214_v27 = vld [vmem:[#allocation5 + $0x440] sm:$0xff]  ;;  %v11076_v16 = vsub.f32 %v79_v58, %v11048_v42 }
 0x112   :  { %2153 = vmatpush.msra.mxu0 %v10947_v32  ;;  %2338 = vmatpush.msra.mxu2 %v10961_v62  ;;  %v11030_v55 = vpop.f32.mrf.mxu0  ;;  %v11042_v14 = vpop.f32.mrf.mxu2  ;;  %v11050_v15 = vand.u32 4294901760, %v224_v8 }
 0x113   :  { %2400 = vmatpush.msra.mxu3 %v10947_v32  ;;  %2240 = vmatpush.msra.mxu1 %v2239_v25  ;;  %16939 = vst [vmem:[#allocation113_spill] sm:$0xff] %v11030_v55  ;;  %v11032_v63 = vpop.f32.mrf.mxu1  ;;  %v219_v25 = vld [vmem:[#allocation5 + $0x468] sm:$0xff]  ;;  %v16942_v55 = vand.u32 4294901760, %v10993_v1 }
 0x114   :  { %16940 = vst [vmem:[#allocation114_spill] sm:$0xff] %v11032_v63  ;;  %2155 = vmatpush.msra.mxu0 %v10963_v44  ;;  %2341 = vmatpush.msra.mxu2 %v10973_v41  ;;  %v11068_v30 = vand.u32 4294901760, %v219_v25  ;;  %v11079_v52 = vsub.f32 %v224_v8, %v11050_v15 }
 0x115   :  { %16941 = vst [vmem:[#allocation115_spill] sm:$0xff] %v11042_v14  ;;  %2402 = vmatpush.msra.mxu3 %v10963_v44  ;;  %2246 = vmatpush.msra.mxu1 %v2245_v48  ;;  %v2262_v63 = vsub.f32 %v10993_v1, %v16942_v55  ;;  %v11055_v14 = vpop.f32.mrf.mxu3  ;;  %v16945_v48 = vand.u32 4294901760, %v11003_v33 }
 0x116   :  { %2157 = vmatpush.msra.mxu0 %v10981_v13  ;;  %2344 = vmatpush.msra.mxu2 %v10993_v1  ;;  %16944 = vst [vmem:[#allocation117_spill] sm:$0xff] %v11055_v14  ;;  %v11092_v14 = vsub.f32 %v219_v25, %v11068_v30  ;;  %v16953_v25 = vand.u32 4294901760, %v11066_v19 }
 0x117   :  { %2404 = vmatpush.msra.mxu3 %v10981_v13  ;;  %1943 = vmatmul.f32.gmra.mxu0 %v10771_v40  ;;  %v2268_v55 = vsub.f32 %v11003_v33, %v16945_v48  ;;  %v2263_v48 = vand.u32 4294901760, %v2262_v63  ;;  %16946 = vst [vmem:[#allocation118_spill] sm:$0xff] %v11079_v52  ;;  %v11086_v40 = vand.u32 4294901760, %v214_v27 }
 0x118   :  { %1994 = vmatmul.f32.gmra.mxu1 %v10743_v56  ;;  %2130 = vmatmul.f32.gmra.mxu3 %v10750_v5  ;;  %v16947_v56 = vand.u32 4294901760, %v11022_v28  ;;  %v2642_v8 = vsub.f32 %v11066_v19, %v16953_v25  ;;  %v16957_v25 = vand.u32 4294901760, %v11076_v16  ;;  %v16960_v47 = vand.u32 4294901760, %v11092_v14 }
 0x119   :  { %2252 = vmatpush.msra.mxu1 %v2251_v26  ;;  %2159 = vmatpush.msra.mxu0 %v10998_v35  ;;  %v209_v26 = vld [vmem:[#allocation5 + $0x418] sm:$0xff]  ;;  %v2269_v63 = vand.u32 4294901760, %v2268_v55  ;;  %v204_v55 = vld [vmem:[#allocation5 + $0x3f0] sm:$0xff] }
 0x11a   :  { %2347 = vmatpush.msra.mxu2 %v11003_v33  ;;  %2406 = vmatpush.msra.mxu3 %v10998_v35  ;;  %v2274_v49 = vsub.f32 %v11022_v28, %v16947_v56  ;;  %v16948_v56 = vand.u32 4294901760, %v11040_v3  ;;  %v11105_v58 = vand.u32 4294901760, %v209_v26  ;;  %v2292_v50 = vsub.f32 %v11076_v16, %v16957_v25 }
 0x11b   :  { %2081 = vmatmul.f32.gmra.mxu2 %v10750_v5  ;;  %2258 = vmatpush.msra.mxu1 %v2257_v34  ;;  %v2280_v34 = vsub.f32 %v11037_v17, %v16949_v4  ;;  %v11114_v4 = vsub.f32 %v214_v27, %v11086_v40  ;;  %v2654_v25 = vsub.f32 %v11092_v14, %v16960_v47  ;;  %v16963_v47 = vand.u32 4294901760, %v10856_v20 }
 0x11c   :  { %2161 = vmatpush.msra.mxu0 %v11007_v11  ;;  %2350 = vmatpush.msra.mxu2 %v11022_v28  ;;  %v2636_v36 = vsub.f32 %v11040_v3, %v16948_v56  ;;  %v11107_v5 = vpop.f32.mrf.mxu0  ;;  %v2275_v56 = vand.u32 4294901760, %v2274_v49  ;;  %v11126_v49 = vand.u32 4294901760, %v204_v55  ;;  %v11141_v6 = vsub.f32 %v209_v26, %v11105_v58 }
 0x11d   :  { %2408 = vmatpush.msra.mxu3 %v11007_v11  ;;  %2264 = vmatpush.msra.mxu1 %v2263_v48  ;;  %16950 = vst [vmem:[#allocation119_spill] sm:$0xff] %v11107_v5  ;;  %v11109_v12 = vpop.f32.mrf.mxu1  ;;  %v11116_v48 = vpop.f32.mrf.mxu2  ;;  %v16954_v5 = vand.u32 4294901760, %v11063_v59  ;;  %v16967_v20 = vand.u32 4294901760, %v10868_v61  ;;  %v16969_v61 = vand.u32 4294901760, %v10879_v23  ;;  %v16973_v23 = vld [vmem:[#allocation15_spill] sm:$0xff] }
 0x11e   :  { %16951 = vst [vmem:[#allocation120_spill] sm:$0xff] %v11109_v12  ;;  %2163 = vmatpush.msra.mxu0 %v11025_v10  ;;  %2353 = vmatpush.msra.mxu2 %v11037_v17  ;;  %v2637_v27 = vand.u32 4294901760, %v2636_v36  ;;  %v11130_v60 = vpop.f32.mrf.mxu3  ;;  %v194_v36 = vld [vmem:[#allocation5 + $0x3a0] sm:$0xff]  ;;  %v11153_v26 = vsub.f32 %v204_v55, %v11126_v49  ;;  %v184_v55 = vld [vmem:[#allocation5 + $0x350] sm:$0xff] }
 0x11f   :  { %16952 = vst [vmem:[#allocation121_spill] sm:$0xff] %v11116_v48  ;;  %2410 = vmatpush.msra.mxu3 %v11025_v10  ;;  %2270 = vmatpush.msra.mxu1 %v2269_v63  ;;  %v2286_v12 = vsub.f32 %v11063_v59, %v16954_v5  ;;  %v2281_v48 = vand.u32 4294901760, %v2280_v34  ;;  %v16956_v63 = vand.u32 4294901760, %v11079_v52  ;;  %v16958_v34 = vld [vmem:[#allocation25_spill] sm:$0xff] }
 0x120   :  { %2165 = vmatpush.msra.mxu0 %v11048_v42  ;;  %2356 = vmatpush.msra.mxu2 %v11063_v59  ;;  %16955 = vst [vmem:[#allocation122_spill] sm:$0xff] %v11130_v60  ;;  %v189_v60 = vld [vmem:[#allocation5 + $0x378] sm:$0xff] }
 0x121   :  { %2412 = vmatpush.msra.mxu3 %v11048_v42  ;;  %2000 = vmatmul.f32.gmra.mxu1 %v10787_v2  ;;  %v2648_v5 = vsub.f32 %v11079_v52, %v16956_v63  ;;  %v16959_v2 = vld [vmem:[#allocation20_spill] sm:$0xff]  ;;  %v2643_v63 = vand.u32 4294901760, %v2642_v8  ;;  %v2287_v21 = vand.u32 4294901760, %v2286_v12  ;;  %v16961_v42 = vand.u32 4294901760, %v10840_v38 }
 0x122   :  { %2171 = vmatmul.f32.vlgmr.msra.gmra.mxu0 %v16958_v34  ;;  %2276 = vmatpush.msra.mxu1 %v2275_v56  ;;  %v11157_v56 = vand.u32 4294901760, %v194_v36  ;;  %v2293_v8 = vand.u32 4294901760, %v2292_v50  ;;  %v16574_v12 = vand.u32 4294901760, %v11141_v6  ;;  %v11162_v52 = vsub.f32 %v199_v51, %v11143_v45 }
 0x123   :  { %2416 = vmatmul.f32.vlgmr.msra.gmra.mxu3 %v16959_v2  ;;  %2359 = vmatpush.msra.mxu2 %v11076_v16  ;;  %v16962_v2 = vld [vmem:[#allocation17_spill] sm:$0xff]  ;;  %v2649_v34 = vand.u32 4294901760, %v2648_v5  ;;  %v11189_v50 = vand.u32 4294901760, %v184_v55 }
 0x124   :  { %2441 = vmatpush.msrb.mxu0 %v16961_v42  ;;  %2638 = vmatpush.msrb.mxu3 %v2637_v27  ;;  %v16964_v42 = vand.u32 4294901760, %v11114_v4  ;;  %v11171_v27 = vand.u32 4294901760, %v189_v60 }
 0x125   :  { %2282 = vmatpush.msra.mxu1 %v2281_v48  ;;  %2362 = vmatmul.f32.vlgmr.msra.gmra.mxu2 %v16962_v2  ;;  %v2655_v48 = vand.u32 4294901760, %v2654_v25 }
 0x126   :  { %2445 = vmatpush.msrb.mxu0 %v16963_v47  ;;  %2569 = vmatpush.msrb.mxu2 %v11009_v31  ;;  %v2660_v38 = vsub.f32 %v11114_v4, %v16964_v42  ;;  %v11173_v5 = vpop.f32.mrf.mxu1  ;;  %v11181_v47 = vsub.f32 %v194_v36, %v11157_v56  ;;  %v179_v42 = vld [vmem:[#allocation5 + $0x328] sm:$0xff] }
 0x127   :  { %2644 = vmatpush.msrb.mxu3 %v2643_v63  ;;  %2288 = vmatpush.msra.mxu1 %v2287_v21  ;;  %16965 = vst [vmem:[#allocation123_spill] sm:$0xff] %v11173_v5  ;;  %v11175_v51 = vpop.f32.mrf.mxu0  ;;  %v11183_v63 = vpop.f32.mrf.mxu2  ;;  %v2666_v21 = vsub.f32 %v11141_v6, %v16574_v12  ;;  %v11201_v12 = vsub.f32 %v189_v60, %v11171_v27  ;;  %v11203_v25 = vand.u32 4294901760, %v179_v42 }
 0x128   :  { %16966 = vst [vmem:[#allocation124_spill] sm:$0xff] %v11175_v51  ;;  %2449 = vmatpush.msrb.mxu0 %v16967_v20  ;;  %2571 = vmatpush.msrb.mxu2 %v11028_v43  ;;  %v2661_v36 = vand.u32 4294901760, %v2660_v38  ;;  %v11194_v20 = vpop.f32.mrf.mxu3  ;;  %v174_v51 = vld [vmem:[#allocation5 + $0x300] sm:$0xff]  ;;  %v11215_v5 = vsub.f32 %v184_v55, %v11189_v50  ;;  %v16979_v55 = vand.u32 4294901760, %v11181_v47 }
 0x129   :  { %16968 = vst [vmem:[#allocation125_spill] sm:$0xff] %v11183_v63  ;;  %2650 = vmatpush.msrb.mxu3 %v2649_v34  ;;  %2294 = vmatpush.msra.mxu1 %v2293_v8  ;;  %v16971_v63 = vld [vmem:[#allocation29_spill] sm:$0xff]  ;;  %v16972_v34 = vand.u32 4294901760, %v11153_v26  ;;  %v16977_v38 = vld [vmem:[#allocation24_spill] sm:$0xff] }
 0x12a   :  { %2453 = vmatpush.msrb.mxu0 %v16969_v61  ;;  %2573 = vmatpush.msrb.mxu2 %v11050_v15  ;;  %16970 = vst [vmem:[#allocation126_spill] sm:$0xff] %v11194_v20  ;;  %v16974_v61 = vld [vmem:[#allocation26_spill] sm:$0xff]  ;;  %v2667_v20 = vand.u32 4294901760, %v2666_v21  ;;  %v11224_v21 = vsub.f32 %v179_v42, %v11203_v25 }
 0x12b   :  { %2656 = vmatpush.msrb.mxu3 %v2655_v48  ;;  %2179 = vmatmul.f32.gmra.mxu0 %v16971_v63  ;;  %v2672_v8 = vsub.f32 %v11153_v26, %v16972_v34  ;;  %v16975_v48 = vand.u32 4294901760, %v10900_v54  ;;  %v16976_v34 = vand.u32 4294901760, %v11162_v52  ;;  %v11218_v63 = vand.u32 4294901760, %v174_v51 }
 0x12c   :  { %2296 = vmatmul.f32.vlgmr.msra.gmra.mxu1 %v16973_v23  ;;  %2422 = vmatmul.f32.gmra.mxu3 %v16974_v61  ;;  %v169_v61 = vld [vmem:[#allocation5 + $0x2d8] sm:$0xff] }
 0x12d   :  { %2520 = vmatpush.msrb.mxu1 %v10825_v24  ;;  %2457 = vmatpush.msrb.mxu0 %v16975_v48  ;;  %v2678_v60 = vsub.f32 %v11162_v52, %v16976_v34  ;;  %v2673_v24 = vand.u32 4294901760, %v2672_v8  ;;  %v16978_v48 = vand.u32 4294901760, %v10919_v57  ;;  %v164_v34 = vld [vmem:[#allocation5 + $0x2b0] sm:$0xff]  ;;  %v11234_v54 = vand.u32 4294901760, %v169_v61 }
 0x12e   :  { %2575 = vmatpush.msrb.mxu2 %v11068_v30  ;;  %2662 = vmatpush.msrb.mxu3 %v2661_v36  ;;  %v2684_v36 = vsub.f32 %v11181_v47, %v16979_v55  ;;  %v16982_v57 = vand.u32 4294901760, %v10933_v7  ;;  %v16985_v7 = vand.u32 4294901760, %v10942_v29  ;;  %v16990_v29 = vld [vmem:[#allocation30_spill] sm:$0xff] }
 0x12f   :  { %2367 = vmatmul.f32.gmra.mxu2 %v16977_v38  ;;  %2522 = vmatpush.msrb.mxu1 %v10832_v18  ;;  %v2679_v18 = vand.u32 4294901760, %v2678_v60 }
 0x130   :  { %2461 = vmatpush.msrb.mxu0 %v16978_v48  ;;  %2577 = vmatpush.msrb.mxu2 %v11086_v40  ;;  %v11236_v42 = vpop.f32.mrf.mxu0  ;;  %v11244_v48 = vsub.f32 %v174_v51, %v11218_v63  ;;  %v11246_v55 = vpop.f32.mrf.mxu2  ;;  %v2685_v51 = vand.u32 4294901760, %v2684_v36 }
 0x131   :  { %2668 = vmatpush.msrb.mxu3 %v2667_v20  ;;  %2524 = vmatpush.msrb.mxu1 %v10842_v37  ;;  %16980 = vst [vmem:[#allocation127_spill] sm:$0xff] %v11236_v42  ;;  %v11238_v38 = vpop.f32.mrf.mxu1  ;;  %v159_v20 = vld [vmem:[#allocation5 + $0x288] sm:$0xff]  ;;  %v16984_v37 = vand.u32 4294901760, %v11201_v12  ;;  %v11253_v42 = vand.u32 4294901760, %v164_v34 }
 0x132   :  { %16981 = vst [vmem:[#allocation128_spill] sm:$0xff] %v11238_v38  ;;  %2465 = vmatpush.msrb.mxu0 %v16982_v57  ;;  %2579 = vmatpush.msrb.mxu2 %v11105_v58  ;;  %v11258_v57 = vpop.f32.mrf.mxu3  ;;  %v11267_v8 = vand.u32 4294901760, %v159_v20  ;;  %v16989_v38 = vld [vmem:[#allocation22_spill] sm:$0xff] }
 0x133   :  { %16983 = vst [vmem:[#allocation129_spill] sm:$0xff] %v11246_v55  ;;  %2674 = vmatpush.msrb.mxu3 %v2673_v24  ;;  %2526 = vmatpush.msrb.mxu1 %v10858_v0  ;;  %v2690_v60 = vsub.f32 %v11201_v12, %v16984_v37  ;;  %v16987_v24 = vld [vmem:[#allocation33_spill] sm:$0xff]  ;;  %v16988_v0 = vand.u32 4294901760, %v11215_v5  ;;  %v11265_v37 = vsub.f32 %v169_v61, %v11234_v54 }
 0x134   :  { %2469 = vmatpush.msrb.mxu0 %v16985_v7  ;;  %2581 = vmatpush.msrb.mxu2 %v11126_v49  ;;  %16986 = vst [vmem:[#allocation130_spill] sm:$0xff] %v11258_v57  ;;  %v16992_v57 = vand.u32 4294901760, %v11224_v21  ;;  %v11279_v61 = vsub.f32 %v164_v34, %v11253_v42  ;;  %v16995_v34 = vand.u32 4294901760, %v11244_v48 }
 0x135   :  { %2680 = vmatpush.msrb.mxu3 %v2679_v18  ;;  %2187 = vmatmul.f32.gmra.mxu0 %v16987_v24  ;;  %v2696_v55 = vsub.f32 %v11215_v5, %v16988_v0  ;;  %v16991_v18 = vand.u32 4294901760, %v10961_v62  ;;  %v2691_v7 = vand.u32 4294901760, %v2690_v60  ;;  %v16993_v24 = vld [vmem:[#allocation28_spill] sm:$0xff]  ;;  %v11286_v62 = vsub.f32 %v159_v20, %v11267_v8 }
 0x136   :  { %2300 = vmatmul.f32.gmra.mxu1 %v16989_v38  ;;  %2428 = vmatmul.f32.gmra.mxu3 %v16990_v29  ;;  %v2702_v0 = vsub.f32 %v11224_v21, %v16992_v57  ;;  %v16994_v60 = vand.u32 4294901760, %v10973_v41  ;;  %v2708_v57 = vsub.f32 %v11244_v48, %v16995_v34  ;;  %v16998_v20 = vand.u32 4294901760, %v10993_v1  ;;  %v17002_v34 = vld [vmem:[#allocation36_spill] sm:$0xff] }
 0x137   :  { %2528 = vmatpush.msrb.mxu1 %v10876_v39  ;;  %2473 = vmatpush.msrb.mxu0 %v16991_v18  ;;  %v2697_v36 = vand.u32 4294901760, %v2696_v55  ;;  %v16576_v39 = vand.u32 4294901760, %v11265_v37 }
 0x138   :  { %2583 = vmatpush.msrb.mxu2 %v11143_v45  ;;  %2686 = vmatpush.msrb.mxu3 %v2685_v51  ;;  %v2703_v51 = vand.u32 4294901760, %v2702_v0  ;;  %v17000_v0 = vand.u32 4294901760, %v11003_v33  ;;  %v2709_v1 = vand.u32 4294901760, %v2708_v57  ;;  %v17005_v33 = vand.u32 4294901760, %v11022_v28 }
 0x139   :  { %2372 = vmatmul.f32.gmra.mxu2 %v16993_v24  ;;  %2530 = vmatpush.msrb.mxu1 %v10889_v53  ;;  %v16575_v53 = vand.u32 4294901760, %v11279_v61 }
 0x13a   :  { %2477 = vmatpush.msrb.mxu0 %v16994_v60  ;;  %2585 = vmatpush.msrb.mxu2 %v11157_v56  ;;  %v11296_v55 = vpop.f32.mrf.mxu0  ;;  %v11303_v41 = vpop.f32.mrf.mxu2 }
 0x13b   :  { %2692 = vmatpush.msrb.mxu3 %v2691_v7  ;;  %2532 = vmatpush.msrb.mxu1 %v10902_v46  ;;  %16996 = vst [vmem:[#allocation131_spill] sm:$0xff] %v11296_v55  ;;  %v11298_v18 = vpop.f32.mrf.mxu1  ;;  %v2714_v46 = vsub.f32 %v11265_v37, %v16576_v39  ;;  %v2725_v7 = vand.u32 4294901760, %v11286_v62  ;;  %v11313_v60 = vpop.f32.mrf.mxu3  ;;  %v17007_v39 = vand.u32 4294901760, %v11037_v17  ;;  %v17012_v17 = vand.u32 4294901760, %v11076_v16 }
 0x13c   :  { %16997 = vst [vmem:[#allocation132_spill] sm:$0xff] %v11298_v18  ;;  %2481 = vmatpush.msrb.mxu0 %v16998_v20  ;;  %2587 = vmatpush.msrb.mxu2 %v11171_v27  ;;  %v17004_v20 = vld [vmem:[#allocation34_spill] sm:$0xff]  ;;  %v17017_v16 = vand.u32 4294901760, %v11040_v3 }
 0x13d   :  { %16999 = vst [vmem:[#allocation133_spill] sm:$0xff] %v11303_v41  ;;  %2698 = vmatpush.msrb.mxu3 %v2697_v36  ;;  %2534 = vmatpush.msrb.mxu1 %v10921_v9  ;;  %v2720_v9 = vsub.f32 %v11279_v61, %v16575_v53  ;;  %v17003_v36 = vld [vmem:[#allocation27_spill] sm:$0xff]  ;;  %v2726_v57 = vsub.f32 %v11286_v62, %v2725_v7 }
 0x13e   :  { %2485 = vmatpush.msrb.mxu0 %v17000_v0  ;;  %2589 = vmatpush.msrb.mxu2 %v11189_v50  ;;  %17001 = vst [vmem:[#allocation134_spill] sm:$0xff] %v11313_v60  ;;  %v2715_v0 = vand.u32 4294901760, %v2714_v46  ;;  %v249_v60 = vld [vmem:[#allocation5 + $0x558] sm:$0xff] }
 0x13f   :  { %2704 = vmatpush.msrb.mxu3 %v2703_v51  ;;  %2195 = vmatmul.f32.gmra.mxu0 %v17002_v34  ;;  %v17006_v51 = vld [vmem:[#allocation32_spill] sm:$0xff]  ;;  %v2721_v53 = vand.u32 4294901760, %v2720_v9  ;;  %v2727_v28 = vand.u32 4294901760, %v2726_v57  ;;  %v17020_v9 = vld [vmem:[#allocation118_spill] sm:$0xff]  ;;  %v17027_v57 = vand.u32 4294901760, %v11092_v14  ;;  %v389_v41 = vld [vmem:[#allocation5 + $0x9b8] sm:$0xff] }
 0x140   :  { %2304 = vmatmul.f32.gmra.mxu1 %v17003_v36  ;;  %2434 = vmatmul.f32.gmra.mxu3 %v17004_v20  ;;  %v359_v20 = vld [vmem:[#allocation5 + $0x8c8] sm:$0xff] }
 0x141   :  { %2536 = vmatpush.msrb.mxu1 %v10939_v22  ;;  %2489 = vmatpush.msrb.mxu0 %v17005_v33  ;;  %v17021_v33 = vand.u32 4294901760, %v11066_v19 }
 0x142   :  { %2591 = vmatpush.msrb.mxu2 %v11203_v25  ;;  %2710 = vmatpush.msrb.mxu3 %v2709_v1  ;;  %v17010_v1 = vand.u32 4294901760, %v11063_v59  ;;  %v17015_v59 = vld [vmem:[#allocation35_spill] sm:$0xff] }
 0x143   :  { %2377 = vmatmul.f32.gmra.mxu2 %v17006_v51  ;;  %2538 = vmatpush.msrb.mxu1 %v10947_v32 }
 0x144   :  { %2493 = vmatpush.msrb.mxu0 %v17007_v39  ;;  %2593 = vmatpush.msrb.mxu2 %v11218_v63  ;;  %v11334_v22 = vpop.f32.mrf.mxu0  ;;  %v11341_v32 = vpop.f32.mrf.mxu2  ;;  %v17014_v39 = vld [vmem:[#allocation31_spill] sm:$0xff] }
 0x145   :  { %2716 = vmatpush.msrb.mxu3 %v2715_v0  ;;  %2540 = vmatpush.msrb.mxu1 %v10963_v44  ;;  %17008 = vst [vmem:[#allocation135_spill] sm:$0xff] %v11334_v22  ;;  %v11336_v46 = vpop.f32.mrf.mxu1  ;;  %v11347_v44 = vpop.f32.mrf.mxu3  ;;  %v17023_v0 = vld [vmem:[#allocation116_spill] sm:$0xff] }
 0x146   :  { %17009 = vst [vmem:[#allocation136_spill] sm:$0xff] %v11336_v46  ;;  %2497 = vmatpush.msrb.mxu0 %v17010_v1  ;;  %2595 = vmatpush.msrb.mxu2 %v11234_v54  ;;  %v17029_v1 = vand.u32 4294901760, %v11114_v4 }
 0x147   :  { %17011 = vst [vmem:[#allocation137_spill] sm:$0xff] %v11341_v32  ;;  %2722 = vmatpush.msrb.mxu3 %v2721_v53  ;;  %2542 = vmatpush.msrb.mxu1 %v10981_v13  ;;  %v17016_v13 = vld [vmem:[#allocation40_spill] sm:$0xff]  ;;  %v244_v32 = vld [vmem:[#allocation5 + $0x530] sm:$0xff] }
 0x148   :  { %2501 = vmatpush.msrb.mxu0 %v17012_v17  ;;  %2597 = vmatpush.msrb.mxu2 %v11253_v42  ;;  %17013 = vst [vmem:[#allocation138_spill] sm:$0xff] %v11347_v44 }
 0x149   :  { %2728 = vmatpush.msrb.mxu3 %v2727_v28  ;;  %2308 = vmatmul.f32.gmra.mxu1 %v17014_v39  ;;  %v17028_v28 = vld [vmem:[#allocation21_spill] sm:$0xff] }
 0x14a   :  { %2503 = vmatmul.f32.vlgmr.msrb.gmra.mxu0 %v16973_v23  ;;  %2544 = vmatpush.msrb.mxu1 %v10998_v35 }
 0x14b   :  { %2730 = vmatmul.f32.vlgmr.msrb.gmra.mxu3 %v17015_v59  ;;  %2599 = vmatpush.msrb.mxu2 %v11267_v8 }
 0x14c   :  { %2748 = vmatpush.msra.mxu0 %v11040_v3  ;;  %2954 = vmatpush.msra.mxu3 %v11009_v31  ;;  %v17024_v3 = vand.u32 4294901760, %v17020_v9 }
 0x14d   :  { %2546 = vmatpush.msrb.mxu1 %v11007_v11  ;;  %2605 = vmatmul.f32.vlgmr.msrb.gmra.mxu2 %v17016_v13 }
 0x14e   :  { %2751 = vmatpush.msra.mxu0 %v11066_v19  ;;  %2875 = vmatpush.msra.mxu2 %v17017_v16  ;;  %v11363_v35 = vpop.f32.mrf.mxu1  ;;  %v11370_v11 = vpop.f32.mrf.mxu2  ;;  %v17026_v19 = vld [vmem:[#allocation39_spill] sm:$0xff] }
 0x14f   :  { %2956 = vmatpush.msra.mxu3 %v11028_v43  ;;  %2548 = vmatpush.msrb.mxu1 %v11025_v10  ;;  %17018 = vst [vmem:[#allocation139_spill] sm:$0xff] %v11363_v35  ;;  %v11365_v53 = vpop.f32.mrf.mxu0  ;;  %v11377_v10 = vpop.f32.mrf.mxu3 }
 0x150   :  { %17019 = vst [vmem:[#allocation140_spill] sm:$0xff] %v11365_v53  ;;  %2754 = vmatpush.msra.mxu0 %v17020_v9  ;;  %2879 = vmatpush.msra.mxu2 %v17021_v33  ;;  %v17074_v53 = vld [vmem:[#allocation13_spill] sm:$0xff] }
 0x151   :  { %17022 = vst [vmem:[#allocation118_spill] sm:$0xff] %v11370_v11  ;;  %2958 = vmatpush.msra.mxu3 %v11050_v15  ;;  %2550 = vmatpush.msrb.mxu1 %v17023_v0  ;;  %v309_v0 = vld [vmem:[#allocation5 + $0x738] sm:$0xff]  ;;  %v17064_v11 = vld [vmem:[#allocation38_spill] sm:$0xff] }
 0x152   :  { %2757 = vmatpush.msra.mxu0 %v11092_v14  ;;  %2883 = vmatpush.msra.mxu2 %v17024_v3  ;;  %17025 = vst [vmem:[#allocation116_spill] sm:$0xff] %v11377_v10  ;;  %v17032_v14 = vand.u32 4294901760, %v11141_v6  ;;  %v304_v3 = vld [vmem:[#allocation5 + $0x710] sm:$0xff] }
 0x153   :  { %2960 = vmatpush.msra.mxu3 %v11068_v30  ;;  %2507 = vmatmul.f32.gmra.mxu0 %v16989_v38 }
 0x154   :  { %2552 = vmatmul.f32.vlgmr.msrb.gmra.mxu1 %v16973_v23  ;;  %2734 = vmatmul.f32.gmra.mxu3 %v17026_v19 }
 0x155   :  { %2816 = vmatpush.msra.mxu1 %v11009_v31  ;;  %2760 = vmatpush.msra.mxu0 %v11114_v4  ;;  %v17038_v4 = vld [vmem:[#allocation41_spill] sm:$0xff] }
 0x156   :  { %2887 = vmatpush.msra.mxu2 %v17027_v57  ;;  %2962 = vmatpush.msra.mxu3 %v11086_v40  ;;  %v17048_v57 = vld [vmem:[#allocation43_spill] sm:$0xff] }
 0x157   :  { %2613 = vmatmul.f32.gmra.mxu2 %v17028_v28  ;;  %2818 = vmatpush.msra.mxu1 %v11028_v43  ;;  %v17034_v43 = vand.u32 4294901760, %v11153_v26 }
 0x158   :  { %2763 = vmatpush.msra.mxu0 %v11141_v6  ;;  %2891 = vmatpush.msra.mxu2 %v17029_v1  ;;  %v11395_v31 = vpop.f32.mrf.mxu0  ;;  %v11402_v16 = vpop.f32.mrf.mxu2  ;;  %v17036_v6 = vld [vmem:[#allocation19_spill] sm:$0xff]  ;;  %v11456_v1 = vand.u32 4294901760, %v309_v0 }
 0x159   :  { %2964 = vmatpush.msra.mxu3 %v11105_v58  ;;  %2820 = vmatpush.msra.mxu1 %v11050_v15  ;;  %17030 = vst [vmem:[#allocation141_spill] sm:$0xff] %v11395_v31  ;;  %v11397_v17 = vpop.f32.mrf.mxu1  ;;  %v11409_v15 = vpop.f32.mrf.mxu3 }
 0x15a   :  { %17031 = vst [vmem:[#allocation142_spill] sm:$0xff] %v11397_v17  ;;  %2766 = vmatpush.msra.mxu0 %v11153_v26  ;;  %2895 = vmatpush.msra.mxu2 %v17032_v14  ;;  %v17039_v26 = vand.u32 4294901760, %v11181_v47  ;;  %v299_v14 = vld [vmem:[#allocation5 + $0x6e8] sm:$0xff]  ;;  %v394_v17 = vld [vmem:[#allocation5 + $0x9e0] sm:$0xff] }
 0x15b   :  { %17033 = vst [vmem:[#allocation143_spill] sm:$0xff] %v11402_v16  ;;  %2966 = vmatpush.msra.mxu3 %v11126_v49  ;;  %2822 = vmatpush.msra.mxu1 %v11068_v30  ;;  %v17037_v30 = vand.u32 4294901760, %v11162_v52  ;;  %v11633_v22 = vand.u32 4294901760, %v394_v17 }
 0x15c   :  { %2769 = vmatpush.msra.mxu0 %v11162_v52  ;;  %2899 = vmatpush.msra.mxu2 %v17034_v43  ;;  %17035 = vst [vmem:[#allocation144_spill] sm:$0xff] %v11409_v15  ;;  %v17042_v52 = vand.u32 4294901760, %v11201_v12  ;;  %v11466_v43 = vand.u32 4294901760, %v304_v3 }
 0x15d   :  { %2968 = vmatpush.msra.mxu3 %v11143_v45  ;;  %2511 = vmatmul.f32.gmra.mxu0 %v17003_v36 }
 0x15e   :  { %2556 = vmatmul.f32.gmra.mxu1 %v16989_v38  ;;  %2738 = vmatmul.f32.gmra.mxu3 %v17036_v6  ;;  %v11767_v38 = vand.u32 4294901760, %v359_v20 }
 0x15f   :  { %2824 = vmatpush.msra.mxu1 %v11086_v40  ;;  %2772 = vmatpush.msra.mxu0 %v11181_v47 }
 0x160   :  { %2903 = vmatpush.msra.mxu2 %v17037_v30  ;;  %2970 = vmatpush.msra.mxu3 %v11157_v56 }
 0x161   :  { %2621 = vmatmul.f32.gmra.mxu2 %v17038_v4  ;;  %2826 = vmatpush.msra.mxu1 %v11105_v58  ;;  %v17044_v58 = vand.u32 4294901760, %v11215_v5  ;;  %v11441_v47 = vpop.f32.mrf.mxu3 }
 0x162   :  { %2775 = vmatpush.msra.mxu0 %v11201_v12  ;;  %2907 = vmatpush.msra.mxu2 %v17039_v26  ;;  %v11427_v40 = vpop.f32.mrf.mxu0  ;;  %v11434_v33 = vpop.f32.mrf.mxu2  ;;  %17045 = vst [vmem:[#allocation148_spill] sm:$0xff] %v11441_v47  ;;  %v17046_v12 = vld [vmem:[#allocation23_spill] sm:$0xff]  ;;  %v17052_v26 = vand.u32 4294901760, %v11265_v37 }
 0x163   :  { %2972 = vmatpush.msra.mxu3 %v11171_v27  ;;  %2828 = vmatpush.msra.mxu1 %v11126_v49  ;;  %17040 = vst [vmem:[#allocation145_spill] sm:$0xff] %v11427_v40  ;;  %v11429_v9 = vpop.f32.mrf.mxu1  ;;  %v314_v49 = vld [vmem:[#allocation5 + $0x760] sm:$0xff]  ;;  %v269_v40 = vld [vmem:[#allocation5 + $0x5f8] sm:$0xff] }
 0x164   :  { %17041 = vst [vmem:[#allocation146_spill] sm:$0xff] %v11429_v9  ;;  %2778 = vmatpush.msra.mxu0 %v11215_v5  ;;  %2911 = vmatpush.msra.mxu2 %v17042_v52  ;;  %v17047_v5 = vand.u32 4294901760, %v11224_v21  ;;  %v11482_v52 = vand.u32 4294901760, %v299_v14 }
 0x165   :  { %17043 = vst [vmem:[#allocation147_spill] sm:$0xff] %v11434_v33  ;;  %2974 = vmatpush.msra.mxu3 %v11189_v50  ;;  %2830 = vmatpush.msra.mxu1 %v11143_v45  ;;  %v11449_v45 = vand.u32 4294901760, %v314_v49  ;;  %v264_v33 = vld [vmem:[#allocation5 + $0x5d0] sm:$0xff] }
 0x166   :  { %2781 = vmatpush.msra.mxu0 %v11224_v21  ;;  %2915 = vmatpush.msra.mxu2 %v17044_v58  ;;  %v17054_v58 = vand.u32 4294901760, %v11279_v61 }
 0x167   :  { %2976 = vmatpush.msra.mxu3 %v11203_v25  ;;  %2515 = vmatmul.f32.gmra.mxu0 %v17014_v39  ;;  %v11464_v21 = vsub.f32 %v314_v49, %v11449_v45  ;;  %v294_v49 = vld [vmem:[#allocation5 + $0x6c0] sm:$0xff] }
 0x168   :  { %2560 = vmatmul.f32.gmra.mxu1 %v17003_v36  ;;  %2742 = vmatmul.f32.gmra.mxu3 %v17046_v12 }
 0x169   :  { %2832 = vmatpush.msra.mxu1 %v11157_v56  ;;  %2784 = vmatpush.msra.mxu0 %v11244_v48  ;;  %v17049_v56 = vand.u32 4294901760, %v11244_v48 }
 0x16a   :  { %2919 = vmatpush.msra.mxu2 %v17047_v5  ;;  %2978 = vmatpush.msra.mxu3 %v11218_v63  ;;  %v11487_v5 = vpop.f32.mrf.mxu3 }
 0x16b   :  { %2629 = vmatmul.f32.gmra.mxu2 %v17048_v57  ;;  %2834 = vmatpush.msra.mxu1 %v11171_v27  ;;  %17055 = vst [vmem:[#allocation152_spill] sm:$0xff] %v11487_v5 }
 0x16c   :  { %2787 = vmatpush.msra.mxu0 %v11265_v37  ;;  %2923 = vmatpush.msra.mxu2 %v17049_v56  ;;  %v11468_v30 = vpop.f32.mrf.mxu0  ;;  %v11475_v48 = vpop.f32.mrf.mxu2  ;;  %v11492_v37 = vsub.f32 %v304_v3, %v11466_v43  ;;  %v289_v56 = vld [vmem:[#allocation5 + $0x698] sm:$0xff] }
 0x16d   :  { %2980 = vmatpush.msra.mxu3 %v11234_v54  ;;  %2836 = vmatpush.msra.mxu1 %v11189_v50  ;;  %17050 = vst [vmem:[#allocation149_spill] sm:$0xff] %v11468_v30  ;;  %v11470_v27 = vpop.f32.mrf.mxu1  ;;  %v11480_v50 = vsub.f32 %v309_v0, %v11456_v1  ;;  %v17056_v0 = vld [vmem:[#allocation37_spill] sm:$0xff] }
 0x16e   :  { %17051 = vst [vmem:[#allocation150_spill] sm:$0xff] %v11470_v27  ;;  %2790 = vmatpush.msra.mxu0 %v11279_v61  ;;  %2927 = vmatpush.msra.mxu2 %v17052_v26  ;;  %v11500_v61 = vand.u32 4294901760, %v294_v49  ;;  %v11503_v26 = vsub.f32 %v299_v14, %v11482_v52  ;;  %v279_v14 = vld [vmem:[#allocation5 + $0x648] sm:$0xff]  ;;  %v274_v27 = vld [vmem:[#allocation5 + $0x620] sm:$0xff] }
 0x16f   :  { %17053 = vst [vmem:[#allocation151_spill] sm:$0xff] %v11475_v48  ;;  %2982 = vmatpush.msra.mxu3 %v11253_v42  ;;  %2838 = vmatpush.msra.mxu1 %v11203_v25  ;;  %v16577_v25 = vand.u32 4294901760, %v11464_v21  ;;  %v16578_v3 = vand.u32 4294901760, %v11480_v50 }
 0x170   :  { %2793 = vmatpush.msra.mxu0 %v11286_v62  ;;  %2931 = vmatpush.msra.mxu2 %v17054_v58  ;;  %v284_v58 = vld [vmem:[#allocation5 + $0x670] sm:$0xff]  ;;  %v11513_v62 = vand.u32 4294901760, %v289_v56  ;;  %v11524_v5 = vsub.f32 %v294_v49, %v11500_v61  ;;  %v17063_v10 = vand.u32 4294901760, %v11503_v26 }
 0x171   :  { %2984 = vmatpush.msra.mxu3 %v11267_v8  ;;  %2564 = vmatmul.f32.gmra.mxu1 %v17014_v39 }
 0x172   :  { %2796 = vmatmul.f32.vlgmr.msra.gmra.mxu0 %v17056_v0  ;;  %2840 = vmatpush.msra.mxu1 %v11218_v63  ;;  %v3070_v63 = vsub.f32 %v11464_v21, %v16577_v25  ;;  %v11526_v25 = vand.u32 4294901760, %v284_v58 }
 0x173   :  { %2986 = vmatmul.f32.vlgmr.msra.gmra.mxu3 %v17015_v59  ;;  %2935 = vmatpush.msra.mxu2 %v2725_v7  ;;  %v11543_v7 = vsub.f32 %v289_v56, %v11513_v62 }
 0x174   :  { %3003 = vmatpush.msrb.mxu0 %v11449_v45  ;;  %3250 = vmatpush.msrb.mxu3 %v11449_v45  ;;  %v3071_v49 = vand.u32 4294901760, %v3070_v63  ;;  %v11557_v56 = vsub.f32 %v284_v58, %v11526_v25  ;;  %v11571_v58 = vand.u32 4294901760, %v269_v40 }
 0x175   :  { %2842 = vmatpush.msra.mxu1 %v11234_v54  ;;  %2937 = vmatmul.f32.vlgmr.msra.gmra.mxu2 %v17015_v59  ;;  %v3076_v54 = vsub.f32 %v11480_v50, %v16578_v3  ;;  %v17060_v3 = vand.u32 4294901760, %v11492_v37  ;;  %v17066_v44 = vand.u32 4294901760, %v11543_v7 }
 0x176   :  { %3005 = vmatpush.msrb.mxu0 %v11456_v1  ;;  %3182 = vmatpush.msrb.mxu2 %v11464_v21  ;;  %v11529_v48 = vpop.f32.mrf.mxu1 }
 0x177   :  { %3252 = vmatpush.msrb.mxu3 %v11456_v1  ;;  %2844 = vmatpush.msra.mxu1 %v11253_v42  ;;  %17057 = vst [vmem:[#allocation153_spill] sm:$0xff] %v11529_v48  ;;  %v11531_v47 = vpop.f32.mrf.mxu0  ;;  %v11535_v42 = vpop.f32.mrf.mxu2  ;;  %v3082_v30 = vsub.f32 %v11492_v37, %v17060_v3  ;;  %v11545_v48 = vand.u32 4294901760, %v279_v14  ;;  %v3077_v63 = vand.u32 4294901760, %v3076_v54  ;;  %v3088_v3 = vsub.f32 %v11503_v26, %v17063_v10  ;;  %v259_v10 = vld [vmem:[#allocation5 + $0x5a8] sm:$0xff] }
 0x178   :  { %17058 = vst [vmem:[#allocation154_spill] sm:$0xff] %v11531_v47  ;;  %3007 = vmatpush.msrb.mxu0 %v11466_v43  ;;  %3185 = vmatpush.msrb.mxu2 %v11480_v50  ;;  %v11563_v47 = vand.u32 4294901760, %v274_v27  ;;  %v3100_v15 = vsub.f32 %v11543_v7, %v17066_v44 }
 0x179   :  { %17059 = vst [vmem:[#allocation155_spill] sm:$0xff] %v11535_v42  ;;  %3254 = vmatpush.msrb.mxu3 %v11466_v43  ;;  %2846 = vmatpush.msra.mxu1 %v11267_v8  ;;  %v11549_v42 = vpop.f32.mrf.mxu3  ;;  %v17062_v8 = vld [vmem:[#allocation12_spill] sm:$0xff]  ;;  %v11566_v54 = vsub.f32 %v279_v14, %v11545_v48 }
 0x17a   :  { %3009 = vmatpush.msrb.mxu0 %v11482_v52  ;;  %3188 = vmatpush.msrb.mxu2 %v11492_v37  ;;  %17061 = vst [vmem:[#allocation156_spill] sm:$0xff] %v11549_v42  ;;  %v3083_v42 = vand.u32 4294901760, %v3082_v30  ;;  %v17065_v30 = vand.u32 4294901760, %v11524_v5 }
 0x17b   :  { %3256 = vmatpush.msrb.mxu3 %v11482_v52  ;;  %2801 = vmatmul.f32.gmra.mxu0 %v17062_v8 }
 0x17c   :  { %2850 = vmatmul.f32.vlgmr.msra.gmra.mxu1 %v17064_v11  ;;  %2990 = vmatmul.f32.gmra.mxu3 %v17026_v19  ;;  %v3094_v9 = vsub.f32 %v11524_v5, %v17065_v30 }
 0x17d   :  { %3072 = vmatpush.msrb.mxu1 %v3071_v49  ;;  %3011 = vmatpush.msrb.mxu0 %v11500_v61  ;;  %v3089_v49 = vand.u32 4294901760, %v3088_v3  ;;  %v11587_v3 = vand.u32 4294901760, %v264_v33 }
 0x17e   :  { %3191 = vmatpush.msrb.mxu2 %v11503_v26  ;;  %3258 = vmatpush.msrb.mxu3 %v11500_v61  ;;  %v3095_v44 = vand.u32 4294901760, %v3094_v9  ;;  %v17073_v9 = vand.u32 4294901760, %v11566_v54 }
 0x17f   :  { %2941 = vmatmul.f32.gmra.mxu2 %v17026_v19  ;;  %3078 = vmatpush.msrb.mxu1 %v3077_v63  ;;  %v11585_v63 = vsub.f32 %v274_v27, %v11563_v47  ;;  %v17070_v27 = vand.u32 4294901760, %v11557_v56 }
 0x180   :  { %3013 = vmatpush.msrb.mxu0 %v11513_v62  ;;  %3194 = vmatpush.msrb.mxu2 %v11524_v5  ;;  %v11590_v14 = vpop.f32.mrf.mxu0  ;;  %v11599_v31 = vpop.f32.mrf.mxu2 }
 0x181   :  { %3260 = vmatpush.msrb.mxu3 %v11513_v62  ;;  %3084 = vmatpush.msrb.mxu1 %v3083_v42  ;;  %17067 = vst [vmem:[#allocation157_spill] sm:$0xff] %v11590_v14  ;;  %v11592_v35 = vpop.f32.mrf.mxu1  ;;  %v11597_v42 = vsub.f32 %v269_v40, %v11571_v58  ;;  %v3106_v30 = vsub.f32 %v11557_v56, %v17070_v27  ;;  %v11605_v14 = vand.u32 4294901760, %v259_v10  ;;  %v11609_v16 = vpop.f32.mrf.mxu3  ;;  %v17072_v40 = vld [vmem:[#allocation14_spill] sm:$0xff]  ;;  %v17075_v46 = vand.u32 4294901760, %v11585_v63 }
 0x182   :  { %17068 = vst [vmem:[#allocation158_spill] sm:$0xff] %v11592_v35  ;;  %3015 = vmatpush.msrb.mxu0 %v11526_v25  ;;  %3197 = vmatpush.msrb.mxu2 %v11543_v7  ;;  %v254_v35 = vld [vmem:[#allocation5 + $0x580] sm:$0xff]  ;;  %v11617_v27 = vsub.f32 %v264_v33, %v11587_v3  ;;  %v11631_v33 = vand.u32 4294901760, %v249_v60 }
 0x183   :  { %17069 = vst [vmem:[#allocation159_spill] sm:$0xff] %v11599_v31  ;;  %3262 = vmatpush.msrb.mxu3 %v11526_v25  ;;  %3090 = vmatpush.msrb.mxu1 %v3089_v49  ;;  %v3101_v31 = vand.u32 4294901760, %v3100_v15  ;;  %v3112_v49 = vsub.f32 %v11566_v54, %v17073_v9  ;;  %v3107_v15 = vand.u32 4294901760, %v3106_v30  ;;  %v11627_v9 = vsub.f32 %v259_v10, %v11605_v14 }
 0x184   :  { %3017 = vmatpush.msrb.mxu0 %v11545_v48  ;;  %3200 = vmatpush.msrb.mxu2 %v11557_v56  ;;  %17071 = vst [vmem:[#allocation160_spill] sm:$0xff] %v11609_v16  ;;  %v11622_v16 = vand.u32 4294901760, %v254_v35  ;;  %v3118_v30 = vsub.f32 %v11585_v63, %v17075_v46  ;;  %v17076_v55 = vand.u32 4294901760, %v11597_v42  ;;  %v11652_v10 = vand.u32 4294901760, %v389_v41 }
 0x185   :  { %3264 = vmatpush.msrb.mxu3 %v11545_v48  ;;  %2806 = vmatmul.f32.gmra.mxu0 %v17072_v40  ;;  %v239_v40 = vld [vmem:[#allocation5 + $0x508] sm:$0xff] }
 0x186   :  { %2856 = vmatmul.f32.gmra.mxu1 %v17074_v53  ;;  %2994 = vmatmul.f32.gmra.mxu3 %v17036_v6  ;;  %v3124_v18 = vsub.f32 %v11597_v42, %v17076_v55  ;;  %v11646_v53 = vsub.f32 %v254_v35, %v11622_v16  ;;  %v11661_v55 = vsub.f32 %v249_v60, %v11631_v33  ;;  %v3119_v46 = vand.u32 4294901760, %v3118_v30 }
 0x187   :  { %3096 = vmatpush.msrb.mxu1 %v3095_v44  ;;  %3019 = vmatpush.msrb.mxu0 %v11563_v47  ;;  %v3113_v44 = vand.u32 4294901760, %v3112_v49  ;;  %v11649_v49 = vand.u32 4294901760, %v244_v32  ;;  %v11664_v35 = vsub.f32 %v394_v17, %v11633_v22  ;;  %v11672_v57 = vand.u32 4294901760, %v239_v40  ;;  %v17085_v17 = vld [vmem:[#allocation16_spill] sm:$0xff] }
 0x188   :  { %3203 = vmatpush.msrb.mxu2 %v11566_v54  ;;  %3266 = vmatpush.msrb.mxu3 %v11563_v47  ;;  %v3125_v60 = vand.u32 4294901760, %v3124_v18  ;;  %v17084_v30 = vand.u32 4294901760, %v11627_v9  ;;  %v11690_v28 = vsub.f32 %v389_v41, %v11652_v10  ;;  %v374_v18 = vld [vmem:[#allocation5 + $0x940] sm:$0xff]  ;;  %v17089_v39 = vand.u32 4294901760, %v11661_v55 }
 0x189   :  { %2945 = vmatmul.f32.gmra.mxu2 %v17036_v6  ;;  %3102 = vmatpush.msrb.mxu1 %v3101_v31  ;;  %v384_v31 = vld [vmem:[#allocation5 + $0x990] sm:$0xff]  ;;  %17081 = vst [vmem:[#allocation164_spill] sm:$0xff] %v11672_v57  ;;  %v11687_v6 = vsub.f32 %v244_v32, %v11649_v49  ;;  %v11700_v32 = vsub.f32 %v239_v40, %v11672_v57  ;;  %v11710_v13 = vand.u32 4294901760, %v374_v18 }
 0x18a   :  { %3021 = vmatpush.msrb.mxu0 %v11571_v58  ;;  %3206 = vmatpush.msrb.mxu2 %v11585_v63  ;;  %v11654_v11 = vpop.f32.mrf.mxu0  ;;  %v11666_v0 = vpop.f32.mrf.mxu2  ;;  %v11674_v4 = vand.u32 4294901760, %v384_v31 }
 0x18b   :  { %3268 = vmatpush.msrb.mxu3 %v11571_v58  ;;  %3108 = vmatpush.msrb.mxu1 %v3107_v15  ;;  %17077 = vst [vmem:[#allocation161_spill] sm:$0xff] %v11654_v11  ;;  %v11656_v8 = vpop.f32.mrf.mxu1  ;;  %v379_v15 = vld [vmem:[#allocation5 + $0x968] sm:$0xff]  ;;  %v17080_v11 = vand.u32 4294901760, %v11617_v27  ;;  %v17098_v36 = vand.u32 4294901760, %v11700_v32 }
 0x18c   :  { %17078 = vst [vmem:[#allocation162_spill] sm:$0xff] %v11656_v8  ;;  %3023 = vmatpush.msrb.mxu0 %v11587_v3  ;;  %3209 = vmatpush.msrb.mxu2 %v11597_v42  ;;  %v11692_v19 = vand.u32 4294901760, %v379_v15  ;;  %v11703_v41 = vsub.f32 %v384_v31, %v11674_v4 }
 0x18d   :  { %17079 = vst [vmem:[#allocation163_spill] sm:$0xff] %v11666_v0  ;;  %3270 = vmatpush.msrb.mxu3 %v11587_v3  ;;  %3114 = vmatpush.msrb.mxu1 %v3113_v44  ;;  %v3130_v8 = vsub.f32 %v11617_v27, %v17080_v11  ;;  %v11679_v0 = vpop.f32.mrf.mxu3  ;;  %v17083_v44 = vld [vmem:[#allocation18_spill] sm:$0xff]  ;;  %v3136_v11 = vsub.f32 %v11627_v9, %v17084_v30 }
 0x18e   :  { %3025 = vmatpush.msrb.mxu0 %v11605_v14  ;;  %3212 = vmatpush.msrb.mxu2 %v11617_v27  ;;  %17082 = vst [vmem:[#allocation165_spill] sm:$0xff] %v11679_v0  ;;  %v3160_v24 = vsub.f32 %v11700_v32, %v17098_v36 }
 0x18f   :  { %3272 = vmatpush.msrb.mxu3 %v11605_v14  ;;  %2811 = vmatmul.f32.gmra.mxu0 %v17083_v44  ;;  %v3131_v30 = vand.u32 4294901760, %v3130_v8  ;;  %17086 = vst [vmem:[#allocation166_spill] sm:$0xff] %v11703_v41  ;;  %v3137_v8 = vand.u32 4294901760, %v3136_v11  ;;  %v11716_v44 = vsub.f32 %v379_v15, %v11692_v19  ;;  %v364_v11 = vld [vmem:[#allocation5 + $0x8f0] sm:$0xff]  ;;  %v17093_v15 = vand.u32 4294901760, %v11690_v28 }
 0x190   :  { %2862 = vmatmul.f32.gmra.mxu1 %v17085_v17  ;;  %2998 = vmatmul.f32.gmra.mxu3 %v17046_v12  ;;  %v17087_v17 = vand.u32 4294901760, %v11646_v53 }
 0x191   :  { %3120 = vmatpush.msrb.mxu1 %v3119_v46  ;;  %3027 = vmatpush.msrb.mxu0 %v11622_v16  ;;  %v369_v46 = vld [vmem:[#allocation5 + $0x918] sm:$0xff]  ;;  %v3510_v31 = vsub.f32 %v11690_v28, %v17093_v15  ;;  %v17097_v15 = vand.u32 4294901760, %v11703_v41  ;;  %v17101_v2 = vand.u32 4294901760, %v11716_v44 }
 0x192   :  { %3215 = vmatpush.msrb.mxu2 %v11627_v9  ;;  %3274 = vmatpush.msrb.mxu3 %v11622_v16  ;;  %v3142_v0 = vsub.f32 %v11646_v53, %v17087_v17  ;;  %v17088_v17 = vand.u32 4294901760, %v11664_v35  ;;  %v11729_v40 = vand.u32 4294901760, %v369_v46 }
 0x193   :  { %2949 = vmatmul.f32.gmra.mxu2 %v17046_v12  ;;  %3126 = vmatpush.msrb.mxu1 %v3125_v60  ;;  %v3148_v60 = vsub.f32 %v11661_v55, %v17089_v39  ;;  %v11738_v39 = vsub.f32 %v374_v18, %v11710_v13  ;;  %v3522_v36 = vsub.f32 %v11716_v44, %v17101_v2  ;;  %v17104_v2 = vand.u32 4294901760, %v11480_v50 }
 0x194   :  { %3029 = vmatpush.msrb.mxu0 %v11631_v33  ;;  %3218 = vmatpush.msrb.mxu2 %v11646_v53  ;;  %v3504_v59 = vsub.f32 %v11664_v35, %v17088_v17  ;;  %v11731_v12 = vpop.f32.mrf.mxu0  ;;  %v3143_v17 = vand.u32 4294901760, %v3142_v0  ;;  %v11750_v0 = vand.u32 4294901760, %v364_v11  ;;  %v11765_v29 = vsub.f32 %v369_v46, %v11729_v40 }
 0x195   :  { %3276 = vmatpush.msrb.mxu3 %v11631_v33  ;;  %3132 = vmatpush.msrb.mxu1 %v3131_v30  ;;  %17090 = vst [vmem:[#allocation167_spill] sm:$0xff] %v11731_v12  ;;  %v11733_v51 = vpop.f32.mrf.mxu1  ;;  %v11740_v30 = vpop.f32.mrf.mxu2  ;;  %v17094_v12 = vand.u32 4294901760, %v11687_v6  ;;  %v17108_v50 = vand.u32 4294901760, %v11492_v37  ;;  %v17110_v37 = vand.u32 4294901760, %v11503_v26  ;;  %v17114_v26 = vld [vmem:[#allocation46_spill] sm:$0xff] }
 0x196   :  { %17091 = vst [vmem:[#allocation168_spill] sm:$0xff] %v11733_v51  ;;  %3031 = vmatpush.msrb.mxu0 %v11649_v49  ;;  %3221 = vmatpush.msrb.mxu2 %v11661_v55  ;;  %v3505_v18 = vand.u32 4294901760, %v3504_v59  ;;  %v11754_v34 = vpop.f32.mrf.mxu3  ;;  %v354_v59 = vld [vmem:[#allocation5 + $0x8a0] sm:$0xff]  ;;  %v11777_v46 = vsub.f32 %v364_v11, %v11750_v0  ;;  %v344_v11 = vld [vmem:[#allocation5 + $0x850] sm:$0xff] }
 0x197   :  { %17092 = vst [vmem:[#allocation169_spill] sm:$0xff] %v11740_v30  ;;  %3278 = vmatpush.msrb.mxu3 %v11649_v49  ;;  %3138 = vmatpush.msrb.mxu1 %v3137_v8  ;;  %v3154_v51 = vsub.f32 %v11687_v6, %v17094_v12  ;;  %v3149_v30 = vand.u32 4294901760, %v3148_v60  ;;  %v17096_v8 = vld [vmem:[#allocation42_spill] sm:$0xff]  ;;  %v3516_v12 = vsub.f32 %v11703_v41, %v17097_v15  ;;  %v17099_v60 = vld [vmem:[#allocation57_spill] sm:$0xff]  ;;  %v3511_v15 = vand.u32 4294901760, %v3510_v31 }
 0x198   :  { %3033 = vmatpush.msrb.mxu0 %v11672_v57  ;;  %3224 = vmatpush.msrb.mxu2 %v11687_v6  ;;  %17095 = vst [vmem:[#allocation170_spill] sm:$0xff] %v11754_v34  ;;  %v349_v34 = vld [vmem:[#allocation5 + $0x878] sm:$0xff]  ;;  %v3161_v31 = vand.u32 4294901760, %v3160_v24  ;;  %v11786_v41 = vsub.f32 %v359_v20, %v11767_v38  ;;  %v11813_v24 = vand.u32 4294901760, %v344_v11 }
 0x199   :  { %3280 = vmatpush.msrb.mxu3 %v11672_v57  ;;  %2868 = vmatmul.f32.gmra.mxu1 %v17096_v8  ;;  %v17100_v8 = vld [vmem:[#allocation52_spill] sm:$0xff]  ;;  %v3155_v23 = vand.u32 4294901760, %v3154_v51  ;;  %v17102_v57 = vand.u32 4294901760, %v11464_v21  ;;  %v16590_v51 = vand.u32 4294901760, %v11765_v29 }
 0x19a   :  { %3039 = vmatmul.f32.vlgmr.msrb.gmra.mxu0 %v17099_v60  ;;  %3144 = vmatpush.msrb.mxu1 %v3143_v17  ;;  %v11781_v17 = vand.u32 4294901760, %v354_v59  ;;  %v3517_v60 = vand.u32 4294901760, %v3516_v12 }
 0x19b   :  { %3284 = vmatmul.f32.vlgmr.msrb.gmra.mxu3 %v17100_v8  ;;  %3227 = vmatpush.msrb.mxu2 %v11700_v32  ;;  %v17103_v8 = vld [vmem:[#allocation48_spill] sm:$0xff] }
 0x19c   :  { %3309 = vmatpush.msra.mxu0 %v17102_v57  ;;  %3506 = vmatpush.msra.mxu3 %v3505_v18  ;;  %v17105_v57 = vand.u32 4294901760, %v11738_v39  ;;  %v11795_v18 = vand.u32 4294901760, %v349_v34 }
 0x19d   :  { %3150 = vmatpush.msrb.mxu1 %v3149_v30  ;;  %3230 = vmatmul.f32.vlgmr.msrb.gmra.mxu2 %v17103_v8  ;;  %v3523_v30 = vand.u32 4294901760, %v3522_v36 }
 0x19e   :  { %3313 = vmatpush.msra.mxu0 %v17104_v2  ;;  %3437 = vmatpush.msra.mxu2 %v11633_v22  ;;  %v3528_v21 = vsub.f32 %v11738_v39, %v17105_v57  ;;  %v11797_v12 = vpop.f32.mrf.mxu1  ;;  %v11805_v2 = vsub.f32 %v354_v59, %v11781_v17  ;;  %v339_v57 = vld [vmem:[#allocation5 + $0x828] sm:$0xff] }
 0x19f   :  { %3512 = vmatpush.msra.mxu3 %v3511_v15  ;;  %3156 = vmatpush.msrb.mxu1 %v3155_v23  ;;  %17106 = vst [vmem:[#allocation171_spill] sm:$0xff] %v11797_v12  ;;  %v11799_v20 = vpop.f32.mrf.mxu0  ;;  %v11807_v15 = vpop.f32.mrf.mxu2  ;;  %v3534_v23 = vsub.f32 %v11765_v29, %v16590_v51  ;;  %v11825_v51 = vsub.f32 %v349_v34, %v11795_v18  ;;  %v11827_v36 = vand.u32 4294901760, %v339_v57  ;;  %v334_v12 = vld [vmem:[#allocation5 + $0x800] sm:$0xff] }
 0x1a0   :  { %17107 = vst [vmem:[#allocation172_spill] sm:$0xff] %v11799_v20  ;;  %3317 = vmatpush.msra.mxu0 %v17108_v50  ;;  %3439 = vmatpush.msra.mxu2 %v11652_v10  ;;  %v3529_v59 = vand.u32 4294901760, %v3528_v21  ;;  %v11818_v50 = vpop.f32.mrf.mxu3  ;;  %v11839_v20 = vsub.f32 %v344_v11, %v11813_v24  ;;  %v17118_v21 = vld [vmem:[#allocation56_spill] sm:$0xff]  ;;  %v17120_v11 = vand.u32 4294901760, %v11805_v2 }
 0x1a1   :  { %17109 = vst [vmem:[#allocation173_spill] sm:$0xff] %v11807_v15  ;;  %3518 = vmatpush.msra.mxu3 %v3517_v60  ;;  %3162 = vmatpush.msrb.mxu1 %v3161_v31  ;;  %v17112_v15 = vld [vmem:[#allocation61_spill] sm:$0xff]  ;;  %v17113_v60 = vand.u32 4294901760, %v11777_v46 }
 0x1a2   :  { %3321 = vmatpush.msra.mxu0 %v17110_v37  ;;  %3441 = vmatpush.msra.mxu2 %v11674_v4  ;;  %17111 = vst [vmem:[#allocation174_spill] sm:$0xff] %v11818_v50  ;;  %v17115_v37 = vld [vmem:[#allocation58_spill] sm:$0xff]  ;;  %v3535_v50 = vand.u32 4294901760, %v3534_v23  ;;  %v11848_v23 = vsub.f32 %v339_v57, %v11827_v36 }
 0x1a3   :  { %3524 = vmatpush.msra.mxu3 %v3523_v30  ;;  %3047 = vmatmul.f32.gmra.mxu0 %v17112_v15  ;;  %v3540_v31 = vsub.f32 %v11777_v46, %v17113_v60  ;;  %v17116_v30 = vand.u32 4294901760, %v11524_v5  ;;  %v17117_v60 = vand.u32 4294901760, %v11786_v41  ;;  %v11842_v15 = vand.u32 4294901760, %v334_v12 }
 0x1a4   :  { %3164 = vmatmul.f32.vlgmr.msrb.gmra.mxu1 %v17114_v26  ;;  %3290 = vmatmul.f32.gmra.mxu3 %v17115_v37  ;;  %v329_v37 = vld [vmem:[#allocation5 + $0x7d8] sm:$0xff] }
 0x1a5   :  { %3388 = vmatpush.msra.mxu1 %v11449_v45  ;;  %3325 = vmatpush.msra.mxu0 %v17116_v30  ;;  %v3546_v34 = vsub.f32 %v11786_v41, %v17117_v60  ;;  %v3541_v45 = vand.u32 4294901760, %v3540_v31  ;;  %v17119_v30 = vand.u32 4294901760, %v11543_v7  ;;  %v324_v60 = vld [vmem:[#allocation5 + $0x7b0] sm:$0xff]  ;;  %v11858_v5 = vand.u32 4294901760, %v329_v37 }
 0x1a6   :  { %3443 = vmatpush.msra.mxu2 %v11692_v19  ;;  %3530 = vmatpush.msra.mxu3 %v3529_v59  ;;  %v3552_v59 = vsub.f32 %v11805_v2, %v17120_v11  ;;  %v17123_v7 = vand.u32 4294901760, %v11557_v56  ;;  %v17126_v56 = vand.u32 4294901760, %v11566_v54  ;;  %v17131_v54 = vld [vmem:[#allocation63_spill] sm:$0xff] }
 0x1a7   :  { %3235 = vmatmul.f32.gmra.mxu2 %v17118_v21  ;;  %3390 = vmatpush.msra.mxu1 %v11456_v1  ;;  %v3547_v1 = vand.u32 4294901760, %v3546_v34 }
 0x1a8   :  { %3329 = vmatpush.msra.mxu0 %v17119_v30  ;;  %3445 = vmatpush.msra.mxu2 %v11710_v13  ;;  %v11860_v57 = vpop.f32.mrf.mxu0  ;;  %v11868_v30 = vsub.f32 %v334_v12, %v11842_v15  ;;  %v11870_v11 = vpop.f32.mrf.mxu2  ;;  %v3553_v12 = vand.u32 4294901760, %v3552_v59 }
 0x1a9   :  { %3536 = vmatpush.msra.mxu3 %v3535_v50  ;;  %3392 = vmatpush.msra.mxu1 %v11466_v43  ;;  %17121 = vst [vmem:[#allocation175_spill] sm:$0xff] %v11860_v57  ;;  %v11862_v21 = vpop.f32.mrf.mxu1  ;;  %v319_v50 = vld [vmem:[#allocation5 + $0x788] sm:$0xff]  ;;  %v17125_v43 = vand.u32 4294901760, %v11825_v51  ;;  %v11877_v57 = vand.u32 4294901760, %v324_v60 }
 0x1aa   :  { %17122 = vst [vmem:[#allocation176_spill] sm:$0xff] %v11862_v21  ;;  %3333 = vmatpush.msra.mxu0 %v17123_v7  ;;  %3447 = vmatpush.msra.mxu2 %v11729_v40  ;;  %v11882_v7 = vpop.f32.mrf.mxu3  ;;  %v11891_v31 = vand.u32 4294901760, %v319_v50  ;;  %v17130_v21 = vld [vmem:[#allocation54_spill] sm:$0xff] }
 0x1ab   :  { %17124 = vst [vmem:[#allocation177_spill] sm:$0xff] %v11870_v11  ;;  %3542 = vmatpush.msra.mxu3 %v3541_v45  ;;  %3394 = vmatpush.msra.mxu1 %v11482_v52  ;;  %v3558_v34 = vsub.f32 %v11825_v51, %v17125_v43  ;;  %v17128_v45 = vld [vmem:[#allocation66_spill] sm:$0xff]  ;;  %v17129_v52 = vand.u32 4294901760, %v11839_v20  ;;  %v11889_v43 = vsub.f32 %v329_v37, %v11858_v5 }
 0x1ac   :  { %3337 = vmatpush.msra.mxu0 %v17126_v56  ;;  %3449 = vmatpush.msra.mxu2 %v11750_v0  ;;  %17127 = vst [vmem:[#allocation178_spill] sm:$0xff] %v11882_v7  ;;  %v17133_v7 = vand.u32 4294901760, %v11848_v23  ;;  %v11903_v37 = vsub.f32 %v324_v60, %v11877_v57  ;;  %v17136_v60 = vand.u32 4294901760, %v11868_v30 }
 0x1ad   :  { %3548 = vmatpush.msra.mxu3 %v3547_v1  ;;  %3055 = vmatmul.f32.gmra.mxu0 %v17128_v45  ;;  %v3564_v11 = vsub.f32 %v11839_v20, %v17129_v52  ;;  %v17132_v1 = vand.u32 4294901760, %v11585_v63  ;;  %v3559_v56 = vand.u32 4294901760, %v3558_v34  ;;  %v17134_v45 = vld [vmem:[#allocation60_spill] sm:$0xff]  ;;  %v11910_v63 = vsub.f32 %v319_v50, %v11891_v31 }
 0x1ae   :  { %3168 = vmatmul.f32.gmra.mxu1 %v17130_v21  ;;  %3296 = vmatmul.f32.gmra.mxu3 %v17131_v54  ;;  %v3570_v52 = vsub.f32 %v11848_v23, %v17133_v7  ;;  %v17135_v34 = vand.u32 4294901760, %v11597_v42  ;;  %v3576_v7 = vsub.f32 %v11868_v30, %v17136_v60  ;;  %v17139_v50 = vand.u32 4294901760, %v11617_v27  ;;  %v17143_v60 = vld [vmem:[#allocation73_spill] sm:$0xff] }
 0x1af   :  { %3396 = vmatpush.msra.mxu1 %v11500_v61  ;;  %3341 = vmatpush.msra.mxu0 %v17132_v1  ;;  %v3565_v59 = vand.u32 4294901760, %v3564_v11  ;;  %v16592_v61 = vand.u32 4294901760, %v11889_v43 }
 0x1b0   :  { %3451 = vmatpush.msra.mxu2 %v11767_v38  ;;  %3554 = vmatpush.msra.mxu3 %v3553_v12  ;;  %v3571_v12 = vand.u32 4294901760, %v3570_v52  ;;  %v17141_v52 = vand.u32 4294901760, %v11627_v9  ;;  %v3577_v27 = vand.u32 4294901760, %v3576_v7  ;;  %v17146_v9 = vand.u32 4294901760, %v11646_v53 }
 0x1b1   :  { %3240 = vmatmul.f32.gmra.mxu2 %v17134_v45  ;;  %3398 = vmatpush.msra.mxu1 %v11513_v62  ;;  %v16591_v62 = vand.u32 4294901760, %v11903_v37 }
 0x1b2   :  { %3345 = vmatpush.msra.mxu0 %v17135_v34  ;;  %3453 = vmatpush.msra.mxu2 %v11781_v17  ;;  %v11920_v11 = vpop.f32.mrf.mxu0  ;;  %v11927_v42 = vpop.f32.mrf.mxu2 }
 0x1b3   :  { %3560 = vmatpush.msra.mxu3 %v3559_v56  ;;  %3400 = vmatpush.msra.mxu1 %v11526_v25  ;;  %17137 = vst [vmem:[#allocation179_spill] sm:$0xff] %v11920_v11  ;;  %v11922_v1 = vpop.f32.mrf.mxu1  ;;  %v3582_v25 = vsub.f32 %v11889_v43, %v16592_v61  ;;  %v3593_v56 = vand.u32 4294901760, %v11910_v63  ;;  %v11937_v34 = vpop.f32.mrf.mxu3  ;;  %v17148_v61 = vand.u32 4294901760, %v11661_v55  ;;  %v17153_v55 = vand.u32 4294901760, %v11700_v32 }
 0x1b4   :  { %17138 = vst [vmem:[#allocation180_spill] sm:$0xff] %v11922_v1  ;;  %3349 = vmatpush.msra.mxu0 %v17139_v50  ;;  %3455 = vmatpush.msra.mxu2 %v11795_v18  ;;  %v17145_v50 = vld [vmem:[#allocation70_spill] sm:$0xff]  ;;  %v17158_v32 = vand.u32 4294901760, %v11664_v35 }
 0x1b5   :  { %17140 = vst [vmem:[#allocation181_spill] sm:$0xff] %v11927_v42  ;;  %3566 = vmatpush.msra.mxu3 %v3565_v59  ;;  %3402 = vmatpush.msra.mxu1 %v11545_v48  ;;  %v3588_v48 = vsub.f32 %v11903_v37, %v16591_v62  ;;  %v17144_v59 = vld [vmem:[#allocation59_spill] sm:$0xff]  ;;  %v3594_v7 = vsub.f32 %v11910_v63, %v3593_v56 }
 0x1b6   :  { %3353 = vmatpush.msra.mxu0 %v17141_v52  ;;  %3457 = vmatpush.msra.mxu2 %v11813_v24  ;;  %17142 = vst [vmem:[#allocation182_spill] sm:$0xff] %v11937_v34  ;;  %v3583_v52 = vand.u32 4294901760, %v3582_v25 }
 0x1b7   :  { %3572 = vmatpush.msra.mxu3 %v3571_v12  ;;  %3063 = vmatmul.f32.gmra.mxu0 %v17143_v60  ;;  %v17147_v12 = vld [vmem:[#allocation65_spill] sm:$0xff]  ;;  %v3589_v62 = vand.u32 4294901760, %v3588_v48  ;;  %v3595_v53 = vand.u32 4294901760, %v3594_v7  ;;  %v17161_v48 = vld [vmem:[#allocation166_spill] sm:$0xff]  ;;  %v17168_v7 = vand.u32 4294901760, %v11716_v44 }
 0x1b8   :  { %3172 = vmatmul.f32.gmra.mxu1 %v17144_v59  ;;  %3302 = vmatmul.f32.gmra.mxu3 %v17145_v50  ;;  %v200_v50 = vld [vmem:[#allocation5 + $0x3d0] sm:$0xff] }
 0x1b9   :  { %3404 = vmatpush.msra.mxu1 %v11563_v47  ;;  %3357 = vmatpush.msra.mxu0 %v17146_v9  ;;  %v17162_v9 = vand.u32 4294901760, %v11690_v28 }
 0x1ba   :  { %3459 = vmatpush.msra.mxu2 %v11827_v36  ;;  %3578 = vmatpush.msra.mxu3 %v3577_v27  ;;  %v17151_v27 = vand.u32 4294901760, %v11687_v6  ;;  %v17156_v6 = vld [vmem:[#allocation72_spill] sm:$0xff] }
 0x1bb   :  { %3245 = vmatmul.f32.gmra.mxu2 %v17147_v12  ;;  %3406 = vmatpush.msra.mxu1 %v11571_v58 }
 0x1bc   :  { %3361 = vmatpush.msra.mxu0 %v17148_v61  ;;  %3461 = vmatpush.msra.mxu2 %v11842_v15  ;;  %v11958_v47 = vpop.f32.mrf.mxu0  ;;  %v11965_v58 = vpop.f32.mrf.mxu2  ;;  %v17155_v61 = vld [vmem:[#allocation64_spill] sm:$0xff] }
 0x1bd   :  { %3584 = vmatpush.msra.mxu3 %v3583_v52  ;;  %3408 = vmatpush.msra.mxu1 %v11587_v3  ;;  %17149 = vst [vmem:[#allocation183_spill] sm:$0xff] %v11958_v47  ;;  %v11960_v25 = vpop.f32.mrf.mxu1  ;;  %v11971_v3 = vpop.f32.mrf.mxu3  ;;  %v17164_v52 = vld [vmem:[#allocation164_spill] sm:$0xff]  ;;  %v235_v47 = vld [vmem:[#allocation5 + $0x4e8] sm:$0xff] }
 0x1be   :  { %17150 = vst [vmem:[#allocation184_spill] sm:$0xff] %v11960_v25  ;;  %3365 = vmatpush.msra.mxu0 %v17151_v27  ;;  %3463 = vmatpush.msra.mxu2 %v11858_v5  ;;  %v17170_v27 = vand.u32 4294901760, %v11738_v39  ;;  %v12257_v42 = vand.u32 4294901760, %v235_v47  ;;  %v230_v25 = vld [vmem:[#allocation5 + $0x4c0] sm:$0xff] }
 0x1bf   :  { %17152 = vst [vmem:[#allocation185_spill] sm:$0xff] %v11965_v58  ;;  %3590 = vmatpush.msra.mxu3 %v3589_v62  ;;  %3410 = vmatpush.msra.mxu1 %v11605_v14  ;;  %v17157_v14 = vld [vmem:[#allocation85_spill] sm:$0xff] }
 0x1c0   :  { %3369 = vmatpush.msra.mxu0 %v17153_v55  ;;  %3465 = vmatpush.msra.mxu2 %v11877_v57  ;;  %17154 = vst [vmem:[#allocation186_spill] sm:$0xff] %v11971_v3 }
 0x1c1   :  { %3596 = vmatpush.msra.mxu3 %v3595_v53  ;;  %3176 = vmatmul.f32.gmra.mxu1 %v17155_v61  ;;  %v17169_v53 = vld [vmem:[#allocation86_spill] sm:$0xff] }
 0x1c2   :  { %3371 = vmatmul.f32.vlgmr.msra.gmra.mxu0 %v17114_v26  ;;  %3412 = vmatpush.msra.mxu1 %v11622_v16 }
 0x1c3   :  { %3598 = vmatmul.f32.vlgmr.msra.gmra.mxu3 %v17156_v6  ;;  %3467 = vmatpush.msra.mxu2 %v11891_v31 }
 0x1c4   :  { %3616 = vmatpush.msrb.mxu0 %v11664_v35  ;;  %3822 = vmatpush.msrb.mxu3 %v11633_v22  ;;  %v17165_v35 = vand.u32 4294901760, %v17161_v48 }
 0x1c5   :  { %3414 = vmatpush.msra.mxu1 %v11631_v33  ;;  %3473 = vmatmul.f32.vlgmr.msra.gmra.mxu2 %v17157_v14 }
 0x1c6   :  { %3619 = vmatpush.msrb.mxu0 %v11690_v28  ;;  %3743 = vmatpush.msrb.mxu2 %v17158_v32  ;;  %v11987_v16 = vpop.f32.mrf.mxu1  ;;  %v11994_v33 = vpop.f32.mrf.mxu2  ;;  %v17167_v28 = vld [vmem:[#allocation80_spill] sm:$0xff] }
 0x1c7   :  { %3824 = vmatpush.msrb.mxu3 %v11652_v10  ;;  %3416 = vmatpush.msra.mxu1 %v11649_v49  ;;  %17159 = vst [vmem:[#allocation187_spill] sm:$0xff] %v11987_v16  ;;  %v11989_v62 = vpop.f32.mrf.mxu0  ;;  %v12001_v49 = vpop.f32.mrf.mxu3  ;;  %v90_v16 = vld [vmem:[#allocation5 + $0x60] sm:$0xff] }
 0x1c8   :  { %17160 = vst [vmem:[#allocation188_spill] sm:$0xff] %v11989_v62  ;;  %3622 = vmatpush.msrb.mxu0 %v17161_v48  ;;  %3747 = vmatpush.msrb.mxu2 %v17162_v9  ;;  %v17215_v62 = vld [vmem:[#allocation45_spill] sm:$0xff] }
 0x1c9   :  { %17163 = vst [vmem:[#allocation166_spill] sm:$0xff] %v11994_v33  ;;  %3826 = vmatpush.msrb.mxu3 %v11674_v4  ;;  %3418 = vmatpush.msra.mxu1 %v17164_v52  ;;  %v150_v52 = vld [vmem:[#allocation5 + $0x240] sm:$0xff] }
 0x1ca   :  { %3625 = vmatpush.msrb.mxu0 %v11716_v44  ;;  %3751 = vmatpush.msrb.mxu2 %v17165_v35  ;;  %17166 = vst [vmem:[#allocation164_spill] sm:$0xff] %v12001_v49  ;;  %v17173_v44 = vand.u32 4294901760, %v11765_v29  ;;  %v145_v35 = vld [vmem:[#allocation5 + $0x218] sm:$0xff] }
 0x1cb   :  { %3828 = vmatpush.msrb.mxu3 %v11692_v19  ;;  %3375 = vmatmul.f32.gmra.mxu0 %v17130_v21  ;;  %v17205_v49 = vld [vmem:[#allocation79_spill] sm:$0xff] }
 0x1cc   :  { %3420 = vmatmul.f32.vlgmr.msra.gmra.mxu1 %v17114_v26  ;;  %3602 = vmatmul.f32.gmra.mxu3 %v17167_v28 }
 0x1cd   :  { %3684 = vmatpush.msrb.mxu1 %v11633_v22  ;;  %3628 = vmatpush.msrb.mxu0 %v11738_v39  ;;  %v17179_v39 = vld [vmem:[#allocation94_spill] sm:$0xff] }
 0x1ce   :  { %3755 = vmatpush.msrb.mxu2 %v17168_v7  ;;  %3830 = vmatpush.msrb.mxu3 %v11710_v13  ;;  %v17189_v7 = vld [vmem:[#allocation100_spill] sm:$0xff] }
 0x1cf   :  { %3481 = vmatmul.f32.gmra.mxu2 %v17169_v53  ;;  %3686 = vmatpush.msrb.mxu1 %v11652_v10  ;;  %v17175_v10 = vand.u32 4294901760, %v11777_v46 }
 0x1d0   :  { %3631 = vmatpush.msrb.mxu0 %v11765_v29  ;;  %3759 = vmatpush.msrb.mxu2 %v17170_v27  ;;  %v12019_v22 = vpop.f32.mrf.mxu0  ;;  %v12026_v32 = vpop.f32.mrf.mxu2  ;;  %v17177_v29 = vld [vmem:[#allocation50_spill] sm:$0xff]  ;;  %v12080_v27 = vand.u32 4294901760, %v150_v52 }
 0x1d1   :  { %3832 = vmatpush.msrb.mxu3 %v11729_v40  ;;  %3688 = vmatpush.msrb.mxu1 %v11674_v4  ;;  %17171 = vst [vmem:[#allocation189_spill] sm:$0xff] %v12019_v22  ;;  %v12021_v55 = vpop.f32.mrf.mxu1  ;;  %v12033_v4 = vpop.f32.mrf.mxu3 }
 0x1d2   :  { %17172 = vst [vmem:[#allocation190_spill] sm:$0xff] %v12021_v55  ;;  %3634 = vmatpush.msrb.mxu0 %v11777_v46  ;;  %3763 = vmatpush.msrb.mxu2 %v17173_v44  ;;  %v17180_v46 = vand.u32 4294901760, %v11805_v2  ;;  %v140_v44 = vld [vmem:[#allocation5 + $0x1f0] sm:$0xff]  ;;  %v85_v55 = vld [vmem:[#allocation5 + $0x38] sm:$0xff] }
 0x1d3   :  { %17174 = vst [vmem:[#allocation191_spill] sm:$0xff] %v12026_v32  ;;  %3834 = vmatpush.msrb.mxu3 %v11750_v0  ;;  %3690 = vmatpush.msrb.mxu1 %v11692_v19  ;;  %v17178_v19 = vand.u32 4294901760, %v11786_v41 }
 0x1d4   :  { %3637 = vmatpush.msrb.mxu0 %v11786_v41  ;;  %3767 = vmatpush.msrb.mxu2 %v17175_v10  ;;  %17176 = vst [vmem:[#allocation192_spill] sm:$0xff] %v12033_v4  ;;  %v17183_v41 = vand.u32 4294901760, %v11825_v51  ;;  %v12090_v10 = vand.u32 4294901760, %v145_v35  ;;  %v105_v4 = vld [vmem:[#allocation5 + $0xd8] sm:$0xff] }
 0x1d5   :  { %3836 = vmatpush.msrb.mxu3 %v11767_v38  ;;  %3379 = vmatmul.f32.gmra.mxu0 %v17144_v59 }
 0x1d6   :  { %3424 = vmatmul.f32.gmra.mxu1 %v17130_v21  ;;  %3606 = vmatmul.f32.gmra.mxu3 %v17177_v29  ;;  %v12391_v21 = vand.u32 4294901760, %v200_v50 }
 0x1d7   :  { %3692 = vmatpush.msrb.mxu1 %v11710_v13  ;;  %3640 = vmatpush.msrb.mxu0 %v11805_v2 }
 0x1d8   :  { %3771 = vmatpush.msrb.mxu2 %v17178_v19  ;;  %3838 = vmatpush.msrb.mxu3 %v11781_v17 }
 0x1d9   :  { %3489 = vmatmul.f32.gmra.mxu2 %v17179_v39  ;;  %3694 = vmatpush.msrb.mxu1 %v11729_v40  ;;  %v17185_v40 = vand.u32 4294901760, %v11839_v20  ;;  %v12065_v2 = vpop.f32.mrf.mxu3 }
 0x1da   :  { %3643 = vmatpush.msrb.mxu0 %v11825_v51  ;;  %3775 = vmatpush.msrb.mxu2 %v17180_v46  ;;  %v12051_v13 = vpop.f32.mrf.mxu0  ;;  %v12058_v9 = vpop.f32.mrf.mxu2  ;;  %17186 = vst [vmem:[#allocation196_spill] sm:$0xff] %v12065_v2  ;;  %v17187_v51 = vld [vmem:[#allocation88_spill] sm:$0xff]  ;;  %v17193_v46 = vand.u32 4294901760, %v11889_v43 }
 0x1db   :  { %3840 = vmatpush.msrb.mxu3 %v11795_v18  ;;  %3696 = vmatpush.msrb.mxu1 %v11750_v0  ;;  %17181 = vst [vmem:[#allocation193_spill] sm:$0xff] %v12051_v13  ;;  %v12053_v48 = vpop.f32.mrf.mxu1  ;;  %v155_v0 = vld [vmem:[#allocation5 + $0x268] sm:$0xff] }
 0x1dc   :  { %17182 = vst [vmem:[#allocation194_spill] sm:$0xff] %v12053_v48  ;;  %3646 = vmatpush.msrb.mxu0 %v11839_v20  ;;  %3779 = vmatpush.msrb.mxu2 %v17183_v41  ;;  %v17188_v20 = vand.u32 4294901760, %v11848_v23  ;;  %v12106_v41 = vand.u32 4294901760, %v140_v44 }
 0x1dd   :  { %17184 = vst [vmem:[#allocation195_spill] sm:$0xff] %v12058_v9  ;;  %3842 = vmatpush.msrb.mxu3 %v11813_v24  ;;  %3698 = vmatpush.msrb.mxu1 %v11767_v38  ;;  %v12073_v38 = vand.u32 4294901760, %v155_v0 }
 0x1de   :  { %3649 = vmatpush.msrb.mxu0 %v11848_v23  ;;  %3783 = vmatpush.msrb.mxu2 %v17185_v40  ;;  %v17195_v40 = vand.u32 4294901760, %v11903_v37 }
 0x1df   :  { %3844 = vmatpush.msrb.mxu3 %v11827_v36  ;;  %3383 = vmatmul.f32.gmra.mxu0 %v17155_v61  ;;  %v12088_v23 = vsub.f32 %v155_v0, %v12073_v38  ;;  %v135_v0 = vld [vmem:[#allocation5 + $0x1c8] sm:$0xff] }
 0x1e0   :  { %3428 = vmatmul.f32.gmra.mxu1 %v17144_v59  ;;  %3610 = vmatmul.f32.gmra.mxu3 %v17187_v51 }
 0x1e1   :  { %3700 = vmatpush.msrb.mxu1 %v11781_v17  ;;  %3652 = vmatpush.msrb.mxu0 %v11868_v30  ;;  %v17190_v17 = vand.u32 4294901760, %v11868_v30 }
 0x1e2   :  { %3787 = vmatpush.msrb.mxu2 %v17188_v20  ;;  %3846 = vmatpush.msrb.mxu3 %v11842_v15  ;;  %v12111_v20 = vpop.f32.mrf.mxu3 }
 0x1e3   :  { %3497 = vmatmul.f32.gmra.mxu2 %v17189_v7  ;;  %3702 = vmatpush.msrb.mxu1 %v11795_v18  ;;  %17196 = vst [vmem:[#allocation200_spill] sm:$0xff] %v12111_v20 }
 0x1e4   :  { %3655 = vmatpush.msrb.mxu0 %v11889_v43  ;;  %3791 = vmatpush.msrb.mxu2 %v17190_v17  ;;  %v12092_v19 = vpop.f32.mrf.mxu0  ;;  %v12099_v30 = vpop.f32.mrf.mxu2  ;;  %v12116_v43 = vsub.f32 %v145_v35, %v12090_v10  ;;  %v130_v17 = vld [vmem:[#allocation5 + $0x1a0] sm:$0xff] }
 0x1e5   :  { %3848 = vmatpush.msrb.mxu3 %v11858_v5  ;;  %3704 = vmatpush.msrb.mxu1 %v11813_v24  ;;  %17191 = vst [vmem:[#allocation197_spill] sm:$0xff] %v12092_v19  ;;  %v12094_v18 = vpop.f32.mrf.mxu1  ;;  %v12104_v24 = vsub.f32 %v150_v52, %v12080_v27  ;;  %v17197_v52 = vld [vmem:[#allocation77_spill] sm:$0xff] }
 0x1e6   :  { %17192 = vst [vmem:[#allocation198_spill] sm:$0xff] %v12094_v18  ;;  %3658 = vmatpush.msrb.mxu0 %v11903_v37  ;;  %3795 = vmatpush.msrb.mxu2 %v17193_v46  ;;  %v12124_v37 = vand.u32 4294901760, %v135_v0  ;;  %v12127_v46 = vsub.f32 %v140_v44, %v12106_v41  ;;  %v120_v44 = vld [vmem:[#allocation5 + $0x150] sm:$0xff]  ;;  %v110_v18 = vld [vmem:[#allocation5 + $0x100] sm:$0xff] }
 0x1e7   :  { %17194 = vst [vmem:[#allocation199_spill] sm:$0xff] %v12099_v30  ;;  %3850 = vmatpush.msrb.mxu3 %v11877_v57  ;;  %3706 = vmatpush.msrb.mxu1 %v11827_v36  ;;  %v16593_v36 = vand.u32 4294901760, %v12088_v23  ;;  %v16594_v35 = vand.u32 4294901760, %v12104_v24 }
 0x1e8   :  { %3661 = vmatpush.msrb.mxu0 %v11910_v63  ;;  %3799 = vmatpush.msrb.mxu2 %v17195_v40  ;;  %v125_v40 = vld [vmem:[#allocation5 + $0x178] sm:$0xff]  ;;  %v12137_v63 = vand.u32 4294901760, %v130_v17  ;;  %v12148_v20 = vsub.f32 %v135_v0, %v12124_v37  ;;  %v17204_v9 = vand.u32 4294901760, %v12127_v46 }
 0x1e9   :  { %3852 = vmatpush.msrb.mxu3 %v11891_v31  ;;  %3432 = vmatmul.f32.gmra.mxu1 %v17155_v61 }
 0x1ea   :  { %3664 = vmatmul.f32.vlgmr.msrb.gmra.mxu0 %v17197_v52  ;;  %3708 = vmatpush.msrb.mxu1 %v11842_v15  ;;  %v3938_v15 = vsub.f32 %v12088_v23, %v16593_v36  ;;  %v12150_v36 = vand.u32 4294901760, %v125_v40 }
 0x1eb   :  { %3854 = vmatmul.f32.vlgmr.msrb.gmra.mxu3 %v17156_v6  ;;  %3803 = vmatpush.msrb.mxu2 %v3593_v56  ;;  %v12167_v56 = vsub.f32 %v130_v17, %v12137_v63 }
 0x1ec   :  { %3871 = vmatpush.msra.mxu0 %v12073_v38  ;;  %4118 = vmatpush.msra.mxu3 %v12073_v38  ;;  %v3939_v0 = vand.u32 4294901760, %v3938_v15  ;;  %v12181_v17 = vsub.f32 %v125_v40, %v12150_v36  ;;  %v12195_v40 = vand.u32 4294901760, %v110_v18 }
 0x1ed   :  { %3710 = vmatpush.msrb.mxu1 %v11858_v5  ;;  %3805 = vmatmul.f32.vlgmr.msrb.gmra.mxu2 %v17156_v6  ;;  %v3944_v5 = vsub.f32 %v12104_v24, %v16594_v35  ;;  %v17201_v35 = vand.u32 4294901760, %v12116_v43  ;;  %v17207_v32 = vand.u32 4294901760, %v12167_v56 }
 0x1ee   :  { %3873 = vmatpush.msra.mxu0 %v12080_v27  ;;  %4050 = vmatpush.msra.mxu2 %v12088_v23  ;;  %v12153_v2 = vpop.f32.mrf.mxu1 }
 0x1ef   :  { %4120 = vmatpush.msra.mxu3 %v12080_v27  ;;  %3712 = vmatpush.msrb.mxu1 %v11877_v57  ;;  %17198 = vst [vmem:[#allocation201_spill] sm:$0xff] %v12153_v2  ;;  %v12155_v30 = vpop.f32.mrf.mxu0  ;;  %v12159_v57 = vpop.f32.mrf.mxu2  ;;  %v3950_v19 = vsub.f32 %v12116_v43, %v17201_v35  ;;  %v12169_v2 = vand.u32 4294901760, %v120_v44  ;;  %v3945_v15 = vand.u32 4294901760, %v3944_v5  ;;  %v3956_v35 = vsub.f32 %v12127_v46, %v17204_v9  ;;  %v100_v9 = vld [vmem:[#allocation5 + $0xb0] sm:$0xff] }
 0x1f0   :  { %17199 = vst [vmem:[#allocation202_spill] sm:$0xff] %v12155_v30  ;;  %3875 = vmatpush.msra.mxu0 %v12090_v10  ;;  %4053 = vmatpush.msra.mxu2 %v12104_v24  ;;  %v115_v30 = vld [vmem:[#allocation5 + $0x128] sm:$0xff]  ;;  %v3968_v22 = vsub.f32 %v12167_v56, %v17207_v32 }
 0x1f1   :  { %17200 = vst [vmem:[#allocation203_spill] sm:$0xff] %v12159_v57  ;;  %4122 = vmatpush.msra.mxu3 %v12090_v10  ;;  %3714 = vmatpush.msrb.mxu1 %v11891_v31  ;;  %v12173_v57 = vpop.f32.mrf.mxu3  ;;  %v17203_v31 = vld [vmem:[#allocation44_spill] sm:$0xff]  ;;  %v12187_v48 = vand.u32 4294901760, %v115_v30  ;;  %v12190_v5 = vsub.f32 %v120_v44, %v12169_v2 }
 0x1f2   :  { %3877 = vmatpush.msra.mxu0 %v12106_v41  ;;  %4056 = vmatpush.msra.mxu2 %v12116_v43  ;;  %17202 = vst [vmem:[#allocation204_spill] sm:$0xff] %v12173_v57  ;;  %v3951_v57 = vand.u32 4294901760, %v3950_v19  ;;  %v17206_v19 = vand.u32 4294901760, %v12148_v20 }
 0x1f3   :  { %4124 = vmatpush.msra.mxu3 %v12106_v41  ;;  %3669 = vmatmul.f32.gmra.mxu0 %v17203_v31 }
 0x1f4   :  { %3718 = vmatmul.f32.vlgmr.msrb.gmra.mxu1 %v17205_v49  ;;  %3858 = vmatmul.f32.gmra.mxu3 %v17167_v28  ;;  %v3962_v13 = vsub.f32 %v12148_v20, %v17206_v19 }
 0x1f5   :  { %3940 = vmatpush.msra.mxu1 %v3939_v0  ;;  %3879 = vmatpush.msra.mxu0 %v12124_v37  ;;  %v3957_v0 = vand.u32 4294901760, %v3956_v35  ;;  %v12211_v35 = vand.u32 4294901760, %v105_v4 }
 0x1f6   :  { %4059 = vmatpush.msra.mxu2 %v12127_v46  ;;  %4126 = vmatpush.msra.mxu3 %v12124_v37  ;;  %v3963_v32 = vand.u32 4294901760, %v3962_v13  ;;  %v17214_v13 = vand.u32 4294901760, %v12190_v5 }
 0x1f7   :  { %3809 = vmatmul.f32.gmra.mxu2 %v17167_v28  ;;  %3946 = vmatpush.msra.mxu1 %v3945_v15  ;;  %v12209_v15 = vsub.f32 %v115_v30, %v12187_v48  ;;  %v17211_v30 = vand.u32 4294901760, %v12181_v17 }
 0x1f8   :  { %3881 = vmatpush.msra.mxu0 %v12137_v63  ;;  %4062 = vmatpush.msra.mxu2 %v12148_v20  ;;  %v12214_v44 = vpop.f32.mrf.mxu0  ;;  %v12223_v3 = vpop.f32.mrf.mxu2 }
 0x1f9   :  { %4128 = vmatpush.msra.mxu3 %v12137_v63  ;;  %3952 = vmatpush.msra.mxu1 %v3951_v57  ;;  %17208 = vst [vmem:[#allocation205_spill] sm:$0xff] %v12214_v44  ;;  %v12216_v33 = vpop.f32.mrf.mxu1  ;;  %v12221_v57 = vsub.f32 %v110_v18, %v12195_v40  ;;  %v3974_v19 = vsub.f32 %v12181_v17, %v17211_v30  ;;  %v12229_v44 = vand.u32 4294901760, %v100_v9  ;;  %v12233_v34 = vpop.f32.mrf.mxu3  ;;  %v17213_v18 = vld [vmem:[#allocation55_spill] sm:$0xff]  ;;  %v17216_v58 = vand.u32 4294901760, %v12209_v15 }
 0x1fa   :  { %17209 = vst [vmem:[#allocation206_spill] sm:$0xff] %v12216_v33  ;;  %3883 = vmatpush.msra.mxu0 %v12150_v36  ;;  %4065 = vmatpush.msra.mxu2 %v12167_v56  ;;  %v95_v33 = vld [vmem:[#allocation5 + $0x88] sm:$0xff]  ;;  %v12241_v30 = vsub.f32 %v105_v4, %v12211_v35  ;;  %v12255_v4 = vand.u32 4294901760, %v90_v16 }
 0x1fb   :  { %17210 = vst [vmem:[#allocation207_spill] sm:$0xff] %v12223_v3  ;;  %4130 = vmatpush.msra.mxu3 %v12150_v36  ;;  %3958 = vmatpush.msra.mxu1 %v3957_v0  ;;  %v3969_v3 = vand.u32 4294901760, %v3968_v22  ;;  %v3980_v0 = vsub.f32 %v12190_v5, %v17214_v13  ;;  %v3975_v22 = vand.u32 4294901760, %v3974_v19  ;;  %v12251_v13 = vsub.f32 %v100_v9, %v12229_v44 }
 0x1fc   :  { %3885 = vmatpush.msra.mxu0 %v12169_v2  ;;  %4068 = vmatpush.msra.mxu2 %v12181_v17  ;;  %17212 = vst [vmem:[#allocation208_spill] sm:$0xff] %v12233_v34  ;;  %v12246_v34 = vand.u32 4294901760, %v95_v33  ;;  %v3986_v19 = vsub.f32 %v12209_v15, %v17216_v58  ;;  %v17217_v11 = vand.u32 4294901760, %v12221_v57  ;;  %v12276_v9 = vand.u32 4294901760, %v230_v25 }
 0x1fd   :  { %4132 = vmatpush.msra.mxu3 %v12169_v2  ;;  %3674 = vmatmul.f32.gmra.mxu0 %v17213_v18  ;;  %v80_v18 = vld [vmem:[#allocation5 + $0x10] sm:$0xff] }
 0x1fe   :  { %3724 = vmatmul.f32.gmra.mxu1 %v17215_v62  ;;  %3862 = vmatmul.f32.gmra.mxu3 %v17177_v29  ;;  %v3992_v1 = vsub.f32 %v12221_v57, %v17217_v11  ;;  %v12270_v62 = vsub.f32 %v95_v33, %v12246_v34  ;;  %v12285_v11 = vsub.f32 %v90_v16, %v12255_v4  ;;  %v3987_v58 = vand.u32 4294901760, %v3986_v19  ;;  %v17226_v16 = vld [vmem:[#allocation87_spill] sm:$0xff] }
 0x1ff   :  { %3964 = vmatpush.msra.mxu1 %v3963_v32  ;;  %3887 = vmatpush.msra.mxu0 %v12187_v48  ;;  %v3981_v32 = vand.u32 4294901760, %v3980_v0  ;;  %v12273_v0 = vand.u32 4294901760, %v85_v55  ;;  %v12288_v33 = vsub.f32 %v235_v47, %v12257_v42  ;;  %v12296_v7 = vand.u32 4294901760, %v80_v18 }
 0x200   :  { %4071 = vmatpush.msra.mxu2 %v12190_v5  ;;  %4134 = vmatpush.msra.mxu3 %v12187_v48  ;;  %v3993_v47 = vand.u32 4294901760, %v3992_v1  ;;  %v17225_v19 = vand.u32 4294901760, %v12251_v13  ;;  %v12314_v53 = vsub.f32 %v230_v25, %v12276_v9  ;;  %v215_v1 = vld [vmem:[#allocation5 + $0x448] sm:$0xff]  ;;  %v17230_v61 = vand.u32 4294901760, %v12285_v11 }
 0x201   :  { %3813 = vmatmul.f32.gmra.mxu2 %v17177_v29  ;;  %3970 = vmatpush.msra.mxu1 %v3969_v3  ;;  %v225_v3 = vld [vmem:[#allocation5 + $0x498] sm:$0xff]  ;;  %17222 = vst [vmem:[#allocation212_spill] sm:$0xff] %v12296_v7  ;;  %v12311_v29 = vsub.f32 %v85_v55, %v12273_v0  ;;  %v12324_v55 = vsub.f32 %v80_v18, %v12296_v7  ;;  %v12334_v14 = vand.u32 4294901760, %v215_v1 }
 0x202   :  { %3889 = vmatpush.msra.mxu0 %v12195_v40  ;;  %4074 = vmatpush.msra.mxu2 %v12209_v15  ;;  %v12278_v49 = vpop.f32.mrf.mxu0  ;;  %v12290_v52 = vpop.f32.mrf.mxu2  ;;  %v12298_v39 = vand.u32 4294901760, %v225_v3 }
 0x203   :  { %4136 = vmatpush.msra.mxu3 %v12195_v40  ;;  %3976 = vmatpush.msra.mxu1 %v3975_v22  ;;  %17218 = vst [vmem:[#allocation209_spill] sm:$0xff] %v12278_v49  ;;  %v12280_v31 = vpop.f32.mrf.mxu1  ;;  %v220_v22 = vld [vmem:[#allocation5 + $0x470] sm:$0xff]  ;;  %v17221_v49 = vand.u32 4294901760, %v12241_v30  ;;  %v17239_v59 = vand.u32 4294901760, %v12324_v55 }
 0x204   :  { %17219 = vst [vmem:[#allocation210_spill] sm:$0xff] %v12280_v31  ;;  %3891 = vmatpush.msra.mxu0 %v12211_v35  ;;  %4077 = vmatpush.msra.mxu2 %v12221_v57  ;;  %v12316_v28 = vand.u32 4294901760, %v220_v22  ;;  %v12327_v25 = vsub.f32 %v225_v3, %v12298_v39 }
 0x205   :  { %17220 = vst [vmem:[#allocation211_spill] sm:$0xff] %v12290_v52  ;;  %4138 = vmatpush.msra.mxu3 %v12211_v35  ;;  %3982 = vmatpush.msra.mxu1 %v3981_v32  ;;  %v3998_v31 = vsub.f32 %v12241_v30, %v17221_v49  ;;  %v12303_v52 = vpop.f32.mrf.mxu3  ;;  %v17224_v32 = vld [vmem:[#allocation92_spill] sm:$0xff]  ;;  %v4004_v49 = vsub.f32 %v12251_v13, %v17225_v19 }
 0x206   :  { %3893 = vmatpush.msra.mxu0 %v12229_v44  ;;  %4080 = vmatpush.msra.mxu2 %v12241_v30  ;;  %17223 = vst [vmem:[#allocation213_spill] sm:$0xff] %v12303_v52  ;;  %v4028_v45 = vsub.f32 %v12324_v55, %v17239_v59 }
 0x207   :  { %4140 = vmatpush.msra.mxu3 %v12229_v44  ;;  %3679 = vmatmul.f32.gmra.mxu0 %v17224_v32  ;;  %v3999_v19 = vand.u32 4294901760, %v3998_v31  ;;  %17227 = vst [vmem:[#allocation214_spill] sm:$0xff] %v12327_v25  ;;  %v4005_v31 = vand.u32 4294901760, %v4004_v49  ;;  %v12340_v32 = vsub.f32 %v220_v22, %v12316_v28  ;;  %v205_v49 = vld [vmem:[#allocation5 + $0x3f8] sm:$0xff]  ;;  %v17234_v22 = vand.u32 4294901760, %v12314_v53 }
 0x208   :  { %3730 = vmatmul.f32.gmra.mxu1 %v17226_v16  ;;  %3866 = vmatmul.f32.gmra.mxu3 %v17187_v51  ;;  %v17228_v16 = vand.u32 4294901760, %v12270_v62 }
 0x209   :  { %3988 = vmatpush.msra.mxu1 %v3987_v58  ;;  %3895 = vmatpush.msra.mxu0 %v12246_v34  ;;  %v210_v58 = vld [vmem:[#allocation5 + $0x420] sm:$0xff]  ;;  %v4378_v3 = vsub.f32 %v12314_v53, %v17234_v22  ;;  %v17238_v22 = vand.u32 4294901760, %v12327_v25  ;;  %v17242_v8 = vand.u32 4294901760, %v12340_v32 }
 0x20a   :  { %4083 = vmatpush.msra.mxu2 %v12251_v13  ;;  %4142 = vmatpush.msra.mxu3 %v12246_v34  ;;  %v4010_v52 = vsub.f32 %v12270_v62, %v17228_v16  ;;  %v17229_v16 = vand.u32 4294901760, %v12288_v33  ;;  %v12353_v18 = vand.u32 4294901760, %v210_v58 }
 0x20b   :  { %3817 = vmatmul.f32.gmra.mxu2 %v17187_v51  ;;  %3994 = vmatpush.msra.mxu1 %v3993_v47  ;;  %v4016_v47 = vsub.f32 %v12285_v11, %v17230_v61  ;;  %v12362_v61 = vsub.f32 %v215_v1, %v12334_v14  ;;  %v4390_v59 = vsub.f32 %v12340_v32, %v17242_v8  ;;  %v17245_v8 = vand.u32 4294901760, %v12104_v24 }
 0x20c   :  { %3897 = vmatpush.msra.mxu0 %v12255_v4  ;;  %4086 = vmatpush.msra.mxu2 %v12270_v62  ;;  %v4372_v6 = vsub.f32 %v12288_v33, %v17229_v16  ;;  %v12355_v51 = vpop.f32.mrf.mxu0  ;;  %v4011_v16 = vand.u32 4294901760, %v4010_v52  ;;  %v12374_v52 = vand.u32 4294901760, %v205_v49  ;;  %v12389_v54 = vsub.f32 %v210_v58, %v12353_v18 }
 0x20d   :  { %4144 = vmatpush.msra.mxu3 %v12255_v4  ;;  %4000 = vmatpush.msra.mxu1 %v3999_v19  ;;  %17231 = vst [vmem:[#allocation215_spill] sm:$0xff] %v12355_v51  ;;  %v12357_v12 = vpop.f32.mrf.mxu1  ;;  %v12364_v19 = vpop.f32.mrf.mxu2  ;;  %v17235_v51 = vand.u32 4294901760, %v12311_v29  ;;  %v17249_v24 = vand.u32 4294901760, %v12116_v43  ;;  %v17251_v43 = vand.u32 4294901760, %v12127_v46  ;;  %v17255_v46 = vld [vmem:[#allocation15_spill] sm:$0xff] }
 0x20e   :  { %17232 = vst [vmem:[#allocation216_spill] sm:$0xff] %v12357_v12  ;;  %3899 = vmatpush.msra.mxu0 %v12273_v0  ;;  %4089 = vmatpush.msra.mxu2 %v12285_v11  ;;  %v4373_v1 = vand.u32 4294901760, %v4372_v6  ;;  %v12378_v60 = vpop.f32.mrf.mxu3  ;;  %v195_v6 = vld [vmem:[#allocation5 + $0x3a8] sm:$0xff]  ;;  %v12401_v58 = vsub.f32 %v205_v49, %v12374_v52  ;;  %v185_v49 = vld [vmem:[#allocation5 + $0x358] sm:$0xff] }
 0x20f   :  { %17233 = vst [vmem:[#allocation217_spill] sm:$0xff] %v12364_v19  ;;  %4146 = vmatpush.msra.mxu3 %v12273_v0  ;;  %4006 = vmatpush.msra.mxu1 %v4005_v31  ;;  %v4022_v12 = vsub.f32 %v12311_v29, %v17235_v51  ;;  %v4017_v19 = vand.u32 4294901760, %v4016_v47  ;;  %v17237_v31 = vld [vmem:[#allocation95_spill] sm:$0xff]  ;;  %v4384_v51 = vsub.f32 %v12327_v25, %v17238_v22  ;;  %v17240_v47 = vld [vmem:[#allocation25_spill] sm:$0xff]  ;;  %v4379_v22 = vand.u32 4294901760, %v4378_v3 }
 0x210   :  { %3901 = vmatpush.msra.mxu0 %v12296_v7  ;;  %4092 = vmatpush.msra.mxu2 %v12311_v29  ;;  %17236 = vst [vmem:[#allocation218_spill] sm:$0xff] %v12378_v60  ;;  %v190_v60 = vld [vmem:[#allocation5 + $0x380] sm:$0xff]  ;;  %v4029_v3 = vand.u32 4294901760, %v4028_v45  ;;  %v12410_v25 = vsub.f32 %v200_v50, %v12391_v21  ;;  %v12437_v45 = vand.u32 4294901760, %v185_v49 }
 0x211   :  { %4148 = vmatpush.msra.mxu3 %v12296_v7  ;;  %3736 = vmatmul.f32.gmra.mxu1 %v17237_v31  ;;  %v17241_v31 = vld [vmem:[#allocation20_spill] sm:$0xff]  ;;  %v4023_v26 = vand.u32 4294901760, %v4022_v12  ;;  %v17243_v7 = vand.u32 4294901760, %v12088_v23  ;;  %v16606_v12 = vand.u32 4294901760, %v12389_v54 }
 0x212   :  { %3907 = vmatmul.f32.vlgmr.msra.gmra.mxu0 %v17240_v47  ;;  %4012 = vmatpush.msra.mxu1 %v4011_v16  ;;  %v12405_v16 = vand.u32 4294901760, %v195_v6  ;;  %v4385_v47 = vand.u32 4294901760, %v4384_v51 }
 0x213   :  { %4152 = vmatmul.f32.vlgmr.msra.gmra.mxu3 %v17241_v31  ;;  %4095 = vmatpush.msra.mxu2 %v12324_v55  ;;  %v17244_v31 = vld [vmem:[#allocation17_spill] sm:$0xff] }
 0x214   :  { %4177 = vmatpush.msrb.mxu0 %v17243_v7  ;;  %4374 = vmatpush.msrb.mxu3 %v4373_v1  ;;  %v17246_v7 = vand.u32 4294901760, %v12362_v61  ;;  %v12419_v1 = vand.u32 4294901760, %v190_v60 }
 0x215   :  { %4018 = vmatpush.msra.mxu1 %v4017_v19  ;;  %4098 = vmatmul.f32.vlgmr.msra.gmra.mxu2 %v17244_v31  ;;  %v4391_v19 = vand.u32 4294901760, %v4390_v59 }
 0x216   :  { %4181 = vmatpush.msrb.mxu0 %v17245_v8  ;;  %4305 = vmatpush.msrb.mxu2 %v12257_v42  ;;  %v4396_v23 = vsub.f32 %v12362_v61, %v17246_v7  ;;  %v12421_v51 = vpop.f32.mrf.mxu1  ;;  %v12429_v8 = vsub.f32 %v195_v6, %v12405_v16  ;;  %v180_v7 = vld [vmem:[#allocation5 + $0x330] sm:$0xff] }
 0x217   :  { %4380 = vmatpush.msrb.mxu3 %v4379_v22  ;;  %4024 = vmatpush.msra.mxu1 %v4023_v26  ;;  %17247 = vst [vmem:[#allocation219_spill] sm:$0xff] %v12421_v51  ;;  %v12423_v50 = vpop.f32.mrf.mxu0  ;;  %v12431_v22 = vpop.f32.mrf.mxu2  ;;  %v4402_v26 = vsub.f32 %v12389_v54, %v16606_v12  ;;  %v12449_v12 = vsub.f32 %v190_v60, %v12419_v1  ;;  %v12451_v59 = vand.u32 4294901760, %v180_v7  ;;  %v175_v51 = vld [vmem:[#allocation5 + $0x308] sm:$0xff] }
 0x218   :  { %17248 = vst [vmem:[#allocation220_spill] sm:$0xff] %v12423_v50  ;;  %4185 = vmatpush.msrb.mxu0 %v17249_v24  ;;  %4307 = vmatpush.msrb.mxu2 %v12276_v9  ;;  %v4397_v6 = vand.u32 4294901760, %v4396_v23  ;;  %v12442_v24 = vpop.f32.mrf.mxu3  ;;  %v12463_v50 = vsub.f32 %v185_v49, %v12437_v45  ;;  %v17259_v23 = vld [vmem:[#allocation24_spill] sm:$0xff]  ;;  %v17261_v49 = vand.u32 4294901760, %v12429_v8 }
 0x219   :  { %17250 = vst [vmem:[#allocation221_spill] sm:$0xff] %v12431_v22  ;;  %4386 = vmatpush.msrb.mxu3 %v4385_v47  ;;  %4030 = vmatpush.msra.mxu1 %v4029_v3  ;;  %v17253_v22 = vld [vmem:[#allocation29_spill] sm:$0xff]  ;;  %v17254_v47 = vand.u32 4294901760, %v12401_v58 }
 0x21a   :  { %4189 = vmatpush.msrb.mxu0 %v17251_v43  ;;  %4309 = vmatpush.msrb.mxu2 %v12298_v39  ;;  %17252 = vst [vmem:[#allocation222_spill] sm:$0xff] %v12442_v24  ;;  %v17256_v43 = vld [vmem:[#allocation26_spill] sm:$0xff]  ;;  %v4403_v24 = vand.u32 4294901760, %v4402_v26  ;;  %v12472_v26 = vsub.f32 %v180_v7, %v12451_v59 }
 0x21b   :  { %4392 = vmatpush.msrb.mxu3 %v4391_v19  ;;  %3915 = vmatmul.f32.gmra.mxu0 %v17253_v22  ;;  %v4408_v3 = vsub.f32 %v12401_v58, %v17254_v47  ;;  %v17257_v19 = vand.u32 4294901760, %v12148_v20  ;;  %v17258_v47 = vand.u32 4294901760, %v12410_v25  ;;  %v12466_v22 = vand.u32 4294901760, %v175_v51 }
 0x21c   :  { %4032 = vmatmul.f32.vlgmr.msra.gmra.mxu1 %v17255_v46  ;;  %4158 = vmatmul.f32.gmra.mxu3 %v17256_v43  ;;  %v170_v43 = vld [vmem:[#allocation5 + $0x2e0] sm:$0xff] }
 0x21d   :  { %4256 = vmatpush.msrb.mxu1 %v12073_v38  ;;  %4193 = vmatpush.msrb.mxu0 %v17257_v19  ;;  %v4414_v60 = vsub.f32 %v12410_v25, %v17258_v47  ;;  %v4409_v38 = vand.u32 4294901760, %v4408_v3  ;;  %v17260_v19 = vand.u32 4294901760, %v12167_v56  ;;  %v165_v47 = vld [vmem:[#allocation5 + $0x2b8] sm:$0xff]  ;;  %v12482_v20 = vand.u32 4294901760, %v170_v43 }
 0x21e   :  { %4311 = vmatpush.msrb.mxu2 %v12316_v28  ;;  %4398 = vmatpush.msrb.mxu3 %v4397_v6  ;;  %v4420_v6 = vsub.f32 %v12429_v8, %v17261_v49  ;;  %v17264_v56 = vand.u32 4294901760, %v12181_v17  ;;  %v17267_v17 = vand.u32 4294901760, %v12190_v5  ;;  %v17272_v5 = vld [vmem:[#allocation30_spill] sm:$0xff] }
 0x21f   :  { %4103 = vmatmul.f32.gmra.mxu2 %v17259_v23  ;;  %4258 = vmatpush.msrb.mxu1 %v12080_v27  ;;  %v4415_v27 = vand.u32 4294901760, %v4414_v60 }
 0x220   :  { %4197 = vmatpush.msrb.mxu0 %v17260_v19  ;;  %4313 = vmatpush.msrb.mxu2 %v12334_v14  ;;  %v12484_v7 = vpop.f32.mrf.mxu0  ;;  %v12492_v19 = vsub.f32 %v175_v51, %v12466_v22  ;;  %v12494_v49 = vpop.f32.mrf.mxu2  ;;  %v4421_v51 = vand.u32 4294901760, %v4420_v6 }
 0x221   :  { %4404 = vmatpush.msrb.mxu3 %v4403_v24  ;;  %4260 = vmatpush.msrb.mxu1 %v12090_v10  ;;  %17262 = vst [vmem:[#allocation223_spill] sm:$0xff] %v12484_v7  ;;  %v12486_v23 = vpop.f32.mrf.mxu1  ;;  %v160_v24 = vld [vmem:[#allocation5 + $0x290] sm:$0xff]  ;;  %v17266_v10 = vand.u32 4294901760, %v12449_v12  ;;  %v12501_v7 = vand.u32 4294901760, %v165_v47 }
 0x222   :  { %17263 = vst [vmem:[#allocation224_spill] sm:$0xff] %v12486_v23  ;;  %4201 = vmatpush.msrb.mxu0 %v17264_v56  ;;  %4315 = vmatpush.msrb.mxu2 %v12353_v18  ;;  %v12506_v56 = vpop.f32.mrf.mxu3  ;;  %v12515_v3 = vand.u32 4294901760, %v160_v24  ;;  %v17271_v23 = vld [vmem:[#allocation22_spill] sm:$0xff] }
 0x223   :  { %17265 = vst [vmem:[#allocation225_spill] sm:$0xff] %v12494_v49  ;;  %4410 = vmatpush.msrb.mxu3 %v4409_v38  ;;  %4262 = vmatpush.msrb.mxu1 %v12106_v41  ;;  %v4426_v60 = vsub.f32 %v12449_v12, %v17266_v10  ;;  %v17269_v38 = vld [vmem:[#allocation33_spill] sm:$0xff]  ;;  %v17270_v41 = vand.u32 4294901760, %v12463_v50  ;;  %v12513_v10 = vsub.f32 %v170_v43, %v12482_v20 }
 0x224   :  { %4205 = vmatpush.msrb.mxu0 %v17267_v17  ;;  %4317 = vmatpush.msrb.mxu2 %v12374_v52  ;;  %17268 = vst [vmem:[#allocation226_spill] sm:$0xff] %v12506_v56  ;;  %v17274_v56 = vand.u32 4294901760, %v12472_v26  ;;  %v12527_v43 = vsub.f32 %v165_v47, %v12501_v7  ;;  %v17277_v47 = vand.u32 4294901760, %v12492_v19 }
 0x225   :  { %4416 = vmatpush.msrb.mxu3 %v4415_v27  ;;  %3923 = vmatmul.f32.gmra.mxu0 %v17269_v38  ;;  %v4432_v49 = vsub.f32 %v12463_v50, %v17270_v41  ;;  %v17273_v27 = vand.u32 4294901760, %v12209_v15  ;;  %v4427_v17 = vand.u32 4294901760, %v4426_v60  ;;  %v17275_v38 = vld [vmem:[#allocation28_spill] sm:$0xff]  ;;  %v12534_v15 = vsub.f32 %v160_v24, %v12515_v3 }
 0x226   :  { %4036 = vmatmul.f32.gmra.mxu1 %v17271_v23  ;;  %4164 = vmatmul.f32.gmra.mxu3 %v17272_v5  ;;  %v4438_v41 = vsub.f32 %v12472_v26, %v17274_v56  ;;  %v17276_v60 = vand.u32 4294901760, %v12221_v57  ;;  %v4444_v56 = vsub.f32 %v12492_v19, %v17277_v47  ;;  %v17280_v24 = vand.u32 4294901760, %v12241_v30  ;;  %v17284_v47 = vld [vmem:[#allocation36_spill] sm:$0xff] }
 0x227   :  { %4264 = vmatpush.msrb.mxu1 %v12124_v37  ;;  %4209 = vmatpush.msrb.mxu0 %v17273_v27  ;;  %v4433_v6 = vand.u32 4294901760, %v4432_v49  ;;  %v16608_v37 = vand.u32 4294901760, %v12513_v10 }
 0x228   :  { %4319 = vmatpush.msrb.mxu2 %v12391_v21  ;;  %4422 = vmatpush.msrb.mxu3 %v4421_v51  ;;  %v4439_v51 = vand.u32 4294901760, %v4438_v41  ;;  %v17282_v41 = vand.u32 4294901760, %v12251_v13  ;;  %v4445_v30 = vand.u32 4294901760, %v4444_v56  ;;  %v17287_v13 = vand.u32 4294901760, %v12270_v62 }
 0x229   :  { %4108 = vmatmul.f32.gmra.mxu2 %v17275_v38  ;;  %4266 = vmatpush.msrb.mxu1 %v12137_v63  ;;  %v16607_v63 = vand.u32 4294901760, %v12527_v43 }
 0x22a   :  { %4213 = vmatpush.msrb.mxu0 %v17276_v60  ;;  %4321 = vmatpush.msrb.mxu2 %v12405_v16  ;;  %v12544_v49 = vpop.f32.mrf.mxu0  ;;  %v12551_v57 = vpop.f32.mrf.mxu2 }
 0x22b   :  { %4428 = vmatpush.msrb.mxu3 %v4427_v17  ;;  %4268 = vmatpush.msrb.mxu1 %v12150_v36  ;;  %17278 = vst [vmem:[#allocation227_spill] sm:$0xff] %v12544_v49  ;;  %v12546_v27 = vpop.f32.mrf.mxu1  ;;  %v4450_v36 = vsub.f32 %v12513_v10, %v16608_v37  ;;  %v4461_v17 = vand.u32 4294901760, %v12534_v15  ;;  %v12561_v60 = vpop.f32.mrf.mxu3  ;;  %v17289_v37 = vand.u32 4294901760, %v12285_v11  ;;  %v17294_v11 = vand.u32 4294901760, %v12324_v55 }
 0x22c   :  { %17279 = vst [vmem:[#allocation228_spill] sm:$0xff] %v12546_v27  ;;  %4217 = vmatpush.msrb.mxu0 %v17280_v24  ;;  %4323 = vmatpush.msrb.mxu2 %v12419_v1  ;;  %v17286_v24 = vld [vmem:[#allocation34_spill] sm:$0xff]  ;;  %v17299_v55 = vand.u32 4294901760, %v12288_v33 }
 0x22d   :  { %17281 = vst [vmem:[#allocation229_spill] sm:$0xff] %v12551_v57  ;;  %4434 = vmatpush.msrb.mxu3 %v4433_v6  ;;  %4270 = vmatpush.msrb.mxu1 %v12169_v2  ;;  %v4456_v2 = vsub.f32 %v12527_v43, %v16607_v63  ;;  %v17285_v6 = vld [vmem:[#allocation27_spill] sm:$0xff]  ;;  %v4462_v56 = vsub.f32 %v12534_v15, %v4461_v17 }
 0x22e   :  { %4221 = vmatpush.msrb.mxu0 %v17282_v41  ;;  %4325 = vmatpush.msrb.mxu2 %v12437_v45  ;;  %17283 = vst [vmem:[#allocation230_spill] sm:$0xff] %v12561_v60  ;;  %v4451_v41 = vand.u32 4294901760, %v4450_v36  ;;  %v245_v60 = vld [vmem:[#allocation5 + $0x538] sm:$0xff] }
 0x22f   :  { %4440 = vmatpush.msrb.mxu3 %v4439_v51  ;;  %3931 = vmatmul.f32.gmra.mxu0 %v17284_v47  ;;  %v17288_v51 = vld [vmem:[#allocation32_spill] sm:$0xff]  ;;  %v4457_v63 = vand.u32 4294901760, %v4456_v2  ;;  %v4463_v62 = vand.u32 4294901760, %v4462_v56  ;;  %v17302_v2 = vld [vmem:[#allocation214_spill] sm:$0xff]  ;;  %v17309_v56 = vand.u32 4294901760, %v12340_v32 }
 0x230   :  { %4040 = vmatmul.f32.gmra.mxu1 %v17285_v6  ;;  %4170 = vmatmul.f32.gmra.mxu3 %v17286_v24  ;;  %v360_v24 = vld [vmem:[#allocation5 + $0x8d0] sm:$0xff] }
 0x231   :  { %4272 = vmatpush.msrb.mxu1 %v12187_v48  ;;  %4225 = vmatpush.msrb.mxu0 %v17287_v13  ;;  %v17303_v13 = vand.u32 4294901760, %v12314_v53 }
 0x232   :  { %4327 = vmatpush.msrb.mxu2 %v12451_v59  ;;  %4446 = vmatpush.msrb.mxu3 %v4445_v30  ;;  %v17292_v30 = vand.u32 4294901760, %v12311_v29  ;;  %v17297_v29 = vld [vmem:[#allocation35_spill] sm:$0xff] }
 0x233   :  { %4113 = vmatmul.f32.gmra.mxu2 %v17288_v51  ;;  %4274 = vmatpush.msrb.mxu1 %v12195_v40 }
 0x234   :  { %4229 = vmatpush.msrb.mxu0 %v17289_v37  ;;  %4329 = vmatpush.msrb.mxu2 %v12466_v22  ;;  %v12582_v48 = vpop.f32.mrf.mxu0  ;;  %v12589_v40 = vpop.f32.mrf.mxu2  ;;  %v17296_v37 = vld [vmem:[#allocation31_spill] sm:$0xff] }
 0x235   :  { %4452 = vmatpush.msrb.mxu3 %v4451_v41  ;;  %4276 = vmatpush.msrb.mxu1 %v12211_v35  ;;  %17290 = vst [vmem:[#allocation231_spill] sm:$0xff] %v12582_v48  ;;  %v12584_v36 = vpop.f32.mrf.mxu1  ;;  %v12595_v35 = vpop.f32.mrf.mxu3  ;;  %v17305_v41 = vld [vmem:[#allocation212_spill] sm:$0xff]  ;;  %v17356_v48 = vld [vmem:[#allocation13_spill] sm:$0xff] }
 0x236   :  { %17291 = vst [vmem:[#allocation232_spill] sm:$0xff] %v12584_v36  ;;  %4233 = vmatpush.msrb.mxu0 %v17292_v30  ;;  %4331 = vmatpush.msrb.mxu2 %v12482_v20  ;;  %v17311_v30 = vand.u32 4294901760, %v12362_v61  ;;  %v390_v36 = vld [vmem:[#allocation5 + $0x9c0] sm:$0xff] }
 0x237   :  { %17293 = vst [vmem:[#allocation233_spill] sm:$0xff] %v12589_v40  ;;  %4458 = vmatpush.msrb.mxu3 %v4457_v63  ;;  %4278 = vmatpush.msrb.mxu1 %v12229_v44  ;;  %v17298_v44 = vld [vmem:[#allocation40_spill] sm:$0xff]  ;;  %v395_v40 = vld [vmem:[#allocation5 + $0x9e8] sm:$0xff] }
 0x238   :  { %4237 = vmatpush.msrb.mxu0 %v17294_v11  ;;  %4333 = vmatpush.msrb.mxu2 %v12501_v7  ;;  %17295 = vst [vmem:[#allocation234_spill] sm:$0xff] %v12595_v35  ;;  %v12881_v57 = vand.u32 4294901760, %v395_v40 }
 0x239   :  { %4464 = vmatpush.msrb.mxu3 %v4463_v62  ;;  %4044 = vmatmul.f32.gmra.mxu1 %v17296_v37  ;;  %v17310_v62 = vld [vmem:[#allocation21_spill] sm:$0xff] }
 0x23a   :  { %4239 = vmatmul.f32.vlgmr.msrb.gmra.mxu0 %v17255_v46  ;;  %4280 = vmatpush.msrb.mxu1 %v12246_v34 }
 0x23b   :  { %4466 = vmatmul.f32.vlgmr.msrb.gmra.mxu3 %v17297_v29  ;;  %4335 = vmatpush.msrb.mxu2 %v12515_v3 }
 0x23c   :  { %4484 = vmatpush.msra.mxu0 %v12288_v33  ;;  %4690 = vmatpush.msra.mxu3 %v12257_v42  ;;  %v17306_v33 = vand.u32 4294901760, %v17302_v2 }
 0x23d   :  { %4282 = vmatpush.msrb.mxu1 %v12255_v4  ;;  %4341 = vmatmul.f32.vlgmr.msrb.gmra.mxu2 %v17298_v44 }
 0x23e   :  { %4487 = vmatpush.msra.mxu0 %v12314_v53  ;;  %4611 = vmatpush.msra.mxu2 %v17299_v55  ;;  %v12611_v34 = vpop.f32.mrf.mxu1  ;;  %v12618_v4 = vpop.f32.mrf.mxu2  ;;  %v17308_v53 = vld [vmem:[#allocation39_spill] sm:$0xff] }
 0x23f   :  { %4692 = vmatpush.msra.mxu3 %v12276_v9  ;;  %4284 = vmatpush.msrb.mxu1 %v12273_v0  ;;  %17300 = vst [vmem:[#allocation235_spill] sm:$0xff] %v12611_v34  ;;  %v12613_v63 = vpop.f32.mrf.mxu0  ;;  %v12625_v0 = vpop.f32.mrf.mxu3 }
 0x240   :  { %17301 = vst [vmem:[#allocation236_spill] sm:$0xff] %v12613_v63  ;;  %4490 = vmatpush.msra.mxu0 %v17302_v2  ;;  %4615 = vmatpush.msra.mxu2 %v17303_v13 }
 0x241   :  { %17304 = vst [vmem:[#allocation214_spill] sm:$0xff] %v12618_v4  ;;  %4694 = vmatpush.msra.mxu3 %v12298_v39  ;;  %4286 = vmatpush.msrb.mxu1 %v17305_v41  ;;  %v310_v41 = vld [vmem:[#allocation5 + $0x740] sm:$0xff] }
 0x242   :  { %4493 = vmatpush.msra.mxu0 %v12340_v32  ;;  %4619 = vmatpush.msra.mxu2 %v17306_v33  ;;  %17307 = vst [vmem:[#allocation212_spill] sm:$0xff] %v12625_v0  ;;  %v17314_v32 = vand.u32 4294901760, %v12389_v54  ;;  %v305_v33 = vld [vmem:[#allocation5 + $0x718] sm:$0xff] }
 0x243   :  { %4696 = vmatpush.msra.mxu3 %v12316_v28  ;;  %4243 = vmatmul.f32.gmra.mxu0 %v17271_v23 }
 0x244   :  { %4288 = vmatmul.f32.vlgmr.msrb.gmra.mxu1 %v17255_v46  ;;  %4470 = vmatmul.f32.gmra.mxu3 %v17308_v53 }
 0x245   :  { %4552 = vmatpush.msra.mxu1 %v12257_v42  ;;  %4496 = vmatpush.msra.mxu0 %v12362_v61  ;;  %v17320_v61 = vld [vmem:[#allocation41_spill] sm:$0xff] }
 0x246   :  { %4623 = vmatpush.msra.mxu2 %v17309_v56  ;;  %4698 = vmatpush.msra.mxu3 %v12334_v14  ;;  %v17330_v56 = vld [vmem:[#allocation43_spill] sm:$0xff] }
 0x247   :  { %4349 = vmatmul.f32.gmra.mxu2 %v17310_v62  ;;  %4554 = vmatpush.msra.mxu1 %v12276_v9  ;;  %v17316_v9 = vand.u32 4294901760, %v12401_v58 }
 0x248   :  { %4499 = vmatpush.msra.mxu0 %v12389_v54  ;;  %4627 = vmatpush.msra.mxu2 %v17311_v30  ;;  %v12643_v42 = vpop.f32.mrf.mxu0  ;;  %v12650_v55 = vpop.f32.mrf.mxu2  ;;  %v17318_v54 = vld [vmem:[#allocation19_spill] sm:$0xff]  ;;  %v12704_v30 = vand.u32 4294901760, %v310_v41 }
 0x249   :  { %4700 = vmatpush.msra.mxu3 %v12353_v18  ;;  %4556 = vmatpush.msra.mxu1 %v12298_v39  ;;  %17312 = vst [vmem:[#allocation237_spill] sm:$0xff] %v12643_v42  ;;  %v12645_v11 = vpop.f32.mrf.mxu1  ;;  %v12657_v39 = vpop.f32.mrf.mxu3 }
 0x24a   :  { %17313 = vst [vmem:[#allocation238_spill] sm:$0xff] %v12645_v11  ;;  %4502 = vmatpush.msra.mxu0 %v12401_v58  ;;  %4631 = vmatpush.msra.mxu2 %v17314_v32  ;;  %v17321_v58 = vand.u32 4294901760, %v12429_v8  ;;  %v300_v32 = vld [vmem:[#allocation5 + $0x6f0] sm:$0xff]  ;;  %v250_v11 = vld [vmem:[#allocation5 + $0x560] sm:$0xff] }
 0x24b   :  { %17315 = vst [vmem:[#allocation239_spill] sm:$0xff] %v12650_v55  ;;  %4702 = vmatpush.msra.mxu3 %v12374_v52  ;;  %4558 = vmatpush.msra.mxu1 %v12316_v28  ;;  %v17319_v28 = vand.u32 4294901760, %v12410_v25 }
 0x24c   :  { %4505 = vmatpush.msra.mxu0 %v12410_v25  ;;  %4635 = vmatpush.msra.mxu2 %v17316_v9  ;;  %17317 = vst [vmem:[#allocation240_spill] sm:$0xff] %v12657_v39  ;;  %v17324_v25 = vand.u32 4294901760, %v12449_v12  ;;  %v12714_v9 = vand.u32 4294901760, %v305_v33  ;;  %v270_v39 = vld [vmem:[#allocation5 + $0x600] sm:$0xff] }
 0x24d   :  { %4704 = vmatpush.msra.mxu3 %v12391_v21  ;;  %4247 = vmatmul.f32.gmra.mxu0 %v17285_v6 }
 0x24e   :  { %4292 = vmatmul.f32.gmra.mxu1 %v17271_v23  ;;  %4474 = vmatmul.f32.gmra.mxu3 %v17318_v54  ;;  %v13015_v23 = vand.u32 4294901760, %v360_v24 }
 0x24f   :  { %4560 = vmatpush.msra.mxu1 %v12334_v14  ;;  %4508 = vmatpush.msra.mxu0 %v12429_v8 }
 0x250   :  { %4639 = vmatpush.msra.mxu2 %v17319_v28  ;;  %4706 = vmatpush.msra.mxu3 %v12405_v16 }
 0x251   :  { %4357 = vmatmul.f32.gmra.mxu2 %v17320_v61  ;;  %4562 = vmatpush.msra.mxu1 %v12353_v18  ;;  %v17326_v18 = vand.u32 4294901760, %v12463_v50  ;;  %v12689_v8 = vpop.f32.mrf.mxu3 }
 0x252   :  { %4511 = vmatpush.msra.mxu0 %v12449_v12  ;;  %4643 = vmatpush.msra.mxu2 %v17321_v58  ;;  %v12675_v14 = vpop.f32.mrf.mxu0  ;;  %v12682_v13 = vpop.f32.mrf.mxu2  ;;  %17327 = vst [vmem:[#allocation244_spill] sm:$0xff] %v12689_v8  ;;  %v17328_v12 = vld [vmem:[#allocation23_spill] sm:$0xff]  ;;  %v17334_v58 = vand.u32 4294901760, %v12513_v10 }
 0x253   :  { %4708 = vmatpush.msra.mxu3 %v12419_v1  ;;  %4564 = vmatpush.msra.mxu1 %v12374_v52  ;;  %17322 = vst [vmem:[#allocation241_spill] sm:$0xff] %v12675_v14  ;;  %v12677_v2 = vpop.f32.mrf.mxu1  ;;  %v315_v52 = vld [vmem:[#allocation5 + $0x768] sm:$0xff] }
 0x254   :  { %17323 = vst [vmem:[#allocation242_spill] sm:$0xff] %v12677_v2  ;;  %4514 = vmatpush.msra.mxu0 %v12463_v50  ;;  %4647 = vmatpush.msra.mxu2 %v17324_v25  ;;  %v17329_v50 = vand.u32 4294901760, %v12472_v26  ;;  %v12730_v25 = vand.u32 4294901760, %v300_v32 }
 0x255   :  { %17325 = vst [vmem:[#allocation243_spill] sm:$0xff] %v12682_v13  ;;  %4710 = vmatpush.msra.mxu3 %v12437_v45  ;;  %4566 = vmatpush.msra.mxu1 %v12391_v21  ;;  %v12697_v21 = vand.u32 4294901760, %v315_v52  ;;  %v17346_v13 = vld [vmem:[#allocation38_spill] sm:$0xff] }
 0x256   :  { %4517 = vmatpush.msra.mxu0 %v12472_v26  ;;  %4651 = vmatpush.msra.mxu2 %v17326_v18  ;;  %v17336_v18 = vand.u32 4294901760, %v12527_v43 }
 0x257   :  { %4712 = vmatpush.msra.mxu3 %v12451_v59  ;;  %4251 = vmatmul.f32.gmra.mxu0 %v17296_v37  ;;  %v12712_v26 = vsub.f32 %v315_v52, %v12697_v21  ;;  %v295_v52 = vld [vmem:[#allocation5 + $0x6c8] sm:$0xff] }
 0x258   :  { %4296 = vmatmul.f32.gmra.mxu1 %v17285_v6  ;;  %4478 = vmatmul.f32.gmra.mxu3 %v17328_v12 }
 0x259   :  { %4568 = vmatpush.msra.mxu1 %v12405_v16  ;;  %4520 = vmatpush.msra.mxu0 %v12492_v19  ;;  %v17331_v16 = vand.u32 4294901760, %v12492_v19 }
 0x25a   :  { %4655 = vmatpush.msra.mxu2 %v17329_v50  ;;  %4714 = vmatpush.msra.mxu3 %v12466_v22  ;;  %v12735_v50 = vpop.f32.mrf.mxu3 }
 0x25b   :  { %4365 = vmatmul.f32.gmra.mxu2 %v17330_v56  ;;  %4570 = vmatpush.msra.mxu1 %v12419_v1  ;;  %17337 = vst [vmem:[#allocation248_spill] sm:$0xff] %v12735_v50 }
 0x25c   :  { %4523 = vmatpush.msra.mxu0 %v12513_v10  ;;  %4659 = vmatpush.msra.mxu2 %v17331_v16  ;;  %v12716_v28 = vpop.f32.mrf.mxu0  ;;  %v12723_v19 = vpop.f32.mrf.mxu2  ;;  %v12740_v10 = vsub.f32 %v305_v33, %v12714_v9  ;;  %v290_v16 = vld [vmem:[#allocation5 + $0x6a0] sm:$0xff] }
 0x25d   :  { %4716 = vmatpush.msra.mxu3 %v12482_v20  ;;  %4572 = vmatpush.msra.mxu1 %v12437_v45  ;;  %17332 = vst [vmem:[#allocation245_spill] sm:$0xff] %v12716_v28  ;;  %v12718_v1 = vpop.f32.mrf.mxu1  ;;  %v12728_v45 = vsub.f32 %v310_v41, %v12704_v30  ;;  %v17338_v41 = vld [vmem:[#allocation37_spill] sm:$0xff] }
 0x25e   :  { %17333 = vst [vmem:[#allocation246_spill] sm:$0xff] %v12718_v1  ;;  %4526 = vmatpush.msra.mxu0 %v12527_v43  ;;  %4663 = vmatpush.msra.mxu2 %v17334_v58  ;;  %v12748_v43 = vand.u32 4294901760, %v295_v52  ;;  %v12751_v58 = vsub.f32 %v300_v32, %v12730_v25  ;;  %v280_v32 = vld [vmem:[#allocation5 + $0x650] sm:$0xff]  ;;  %v265_v1 = vld [vmem:[#allocation5 + $0x5d8] sm:$0xff] }
 0x25f   :  { %17335 = vst [vmem:[#allocation247_spill] sm:$0xff] %v12723_v19  ;;  %4718 = vmatpush.msra.mxu3 %v12501_v7  ;;  %4574 = vmatpush.msra.mxu1 %v12451_v59  ;;  %v16609_v59 = vand.u32 4294901760, %v12712_v26  ;;  %v16610_v33 = vand.u32 4294901760, %v12728_v45 }
 0x260   :  { %4529 = vmatpush.msra.mxu0 %v12534_v15  ;;  %4667 = vmatpush.msra.mxu2 %v17336_v18  ;;  %v285_v18 = vld [vmem:[#allocation5 + $0x678] sm:$0xff]  ;;  %v12761_v15 = vand.u32 4294901760, %v290_v16  ;;  %v12772_v50 = vsub.f32 %v295_v52, %v12748_v43  ;;  %v17345_v8 = vand.u32 4294901760, %v12751_v58 }
 0x261   :  { %4720 = vmatpush.msra.mxu3 %v12515_v3  ;;  %4300 = vmatmul.f32.gmra.mxu1 %v17296_v37 }
 0x262   :  { %4532 = vmatmul.f32.vlgmr.msra.gmra.mxu0 %v17338_v41  ;;  %4576 = vmatpush.msra.mxu1 %v12466_v22  ;;  %v4806_v22 = vsub.f32 %v12712_v26, %v16609_v59  ;;  %v12774_v59 = vand.u32 4294901760, %v285_v18 }
 0x263   :  { %4722 = vmatmul.f32.vlgmr.msra.gmra.mxu3 %v17297_v29  ;;  %4671 = vmatpush.msra.mxu2 %v4461_v17  ;;  %v12791_v17 = vsub.f32 %v290_v16, %v12761_v15 }
 0x264   :  { %4739 = vmatpush.msrb.mxu0 %v12697_v21  ;;  %4986 = vmatpush.msrb.mxu3 %v12697_v21  ;;  %v4807_v52 = vand.u32 4294901760, %v4806_v22  ;;  %v12805_v16 = vsub.f32 %v285_v18, %v12774_v59  ;;  %v12819_v18 = vand.u32 4294901760, %v270_v39 }
 0x265   :  { %4578 = vmatpush.msra.mxu1 %v12482_v20  ;;  %4673 = vmatmul.f32.vlgmr.msra.gmra.mxu2 %v17297_v29  ;;  %v4812_v20 = vsub.f32 %v12728_v45, %v16610_v33  ;;  %v17342_v33 = vand.u32 4294901760, %v12740_v10  ;;  %v17348_v2 = vand.u32 4294901760, %v12791_v17 }
 0x266   :  { %4741 = vmatpush.msrb.mxu0 %v12704_v30  ;;  %4918 = vmatpush.msrb.mxu2 %v12712_v26  ;;  %v12777_v28 = vpop.f32.mrf.mxu1 }
 0x267   :  { %4988 = vmatpush.msrb.mxu3 %v12704_v30  ;;  %4580 = vmatpush.msra.mxu1 %v12501_v7  ;;  %17339 = vst [vmem:[#allocation249_spill] sm:$0xff] %v12777_v28  ;;  %v12779_v0 = vpop.f32.mrf.mxu0  ;;  %v12783_v7 = vpop.f32.mrf.mxu2  ;;  %v4818_v19 = vsub.f32 %v12740_v10, %v17342_v33  ;;  %v12793_v28 = vand.u32 4294901760, %v280_v32  ;;  %v4813_v22 = vand.u32 4294901760, %v4812_v20  ;;  %v4824_v33 = vsub.f32 %v12751_v58, %v17345_v8  ;;  %v260_v8 = vld [vmem:[#allocation5 + $0x5b0] sm:$0xff] }
 0x268   :  { %17340 = vst [vmem:[#allocation250_spill] sm:$0xff] %v12779_v0  ;;  %4743 = vmatpush.msrb.mxu0 %v12714_v9  ;;  %4921 = vmatpush.msrb.mxu2 %v12728_v45  ;;  %v275_v0 = vld [vmem:[#allocation5 + $0x628] sm:$0xff]  ;;  %v4836_v55 = vsub.f32 %v12791_v17, %v17348_v2  ;;  %v17352_v2 = vand.u32 4294901760, %v12805_v16 }
 0x269   :  { %17341 = vst [vmem:[#allocation251_spill] sm:$0xff] %v12783_v7  ;;  %4990 = vmatpush.msrb.mxu3 %v12714_v9  ;;  %4582 = vmatpush.msra.mxu1 %v12515_v3  ;;  %v12797_v7 = vpop.f32.mrf.mxu3  ;;  %v17344_v3 = vld [vmem:[#allocation12_spill] sm:$0xff]  ;;  %v12811_v14 = vand.u32 4294901760, %v275_v0  ;;  %v12814_v20 = vsub.f32 %v280_v32, %v12793_v28 }
 0x26a   :  { %4745 = vmatpush.msrb.mxu0 %v12730_v25  ;;  %4924 = vmatpush.msrb.mxu2 %v12740_v10  ;;  %17343 = vst [vmem:[#allocation252_spill] sm:$0xff] %v12797_v7  ;;  %v4819_v7 = vand.u32 4294901760, %v4818_v19  ;;  %v17347_v19 = vand.u32 4294901760, %v12772_v50 }
 0x26b   :  { %4992 = vmatpush.msrb.mxu3 %v12730_v25  ;;  %4537 = vmatmul.f32.gmra.mxu0 %v17344_v3 }
 0x26c   :  { %4586 = vmatmul.f32.vlgmr.msra.gmra.mxu1 %v17346_v13  ;;  %4726 = vmatmul.f32.gmra.mxu3 %v17308_v53  ;;  %v4830_v4 = vsub.f32 %v12772_v50, %v17347_v19  ;;  %v4842_v19 = vsub.f32 %v12805_v16, %v17352_v2 }
 0x26d   :  { %4808 = vmatpush.msrb.mxu1 %v4807_v52  ;;  %4747 = vmatpush.msrb.mxu0 %v12748_v43  ;;  %v4825_v52 = vand.u32 4294901760, %v4824_v33  ;;  %v12835_v33 = vand.u32 4294901760, %v265_v1 }
 0x26e   :  { %4927 = vmatpush.msrb.mxu2 %v12751_v58  ;;  %4994 = vmatpush.msrb.mxu3 %v12748_v43 }
 0x26f   :  { %4677 = vmatmul.f32.gmra.mxu2 %v17308_v53  ;;  %4814 = vmatpush.msrb.mxu1 %v4813_v22  ;;  %v12833_v22 = vsub.f32 %v275_v0, %v12811_v14  ;;  %v4831_v0 = vand.u32 4294901760, %v4830_v4  ;;  %v17355_v4 = vand.u32 4294901760, %v12814_v20  ;;  %v12865_v2 = vsub.f32 %v265_v1, %v12835_v33 }
 0x270   :  { %4749 = vmatpush.msrb.mxu0 %v12761_v15  ;;  %4930 = vmatpush.msrb.mxu2 %v12772_v50  ;;  %v12838_v32 = vpop.f32.mrf.mxu0  ;;  %v12847_v42 = vpop.f32.mrf.mxu2  ;;  %v12879_v1 = vand.u32 4294901760, %v250_v11 }
 0x271   :  { %4996 = vmatpush.msrb.mxu3 %v12761_v15  ;;  %4820 = vmatpush.msrb.mxu1 %v4819_v7  ;;  %17349 = vst [vmem:[#allocation253_spill] sm:$0xff] %v12838_v32  ;;  %v12840_v35 = vpop.f32.mrf.mxu1  ;;  %v12845_v7 = vsub.f32 %v270_v39, %v12819_v18  ;;  %v12853_v32 = vand.u32 4294901760, %v260_v8  ;;  %v12857_v34 = vpop.f32.mrf.mxu3  ;;  %v17354_v39 = vld [vmem:[#allocation14_spill] sm:$0xff]  ;;  %v17357_v63 = vand.u32 4294901760, %v12833_v22 }
 0x272   :  { %17350 = vst [vmem:[#allocation254_spill] sm:$0xff] %v12840_v35  ;;  %4751 = vmatpush.msrb.mxu0 %v12774_v59  ;;  %4933 = vmatpush.msrb.mxu2 %v12791_v17  ;;  %v255_v35 = vld [vmem:[#allocation5 + $0x588] sm:$0xff] }
 0x273   :  { %17351 = vst [vmem:[#allocation255_spill] sm:$0xff] %v12847_v42  ;;  %4998 = vmatpush.msrb.mxu3 %v12774_v59  ;;  %4826 = vmatpush.msrb.mxu1 %v4825_v52  ;;  %v4837_v42 = vand.u32 4294901760, %v4836_v55  ;;  %v4848_v52 = vsub.f32 %v12814_v20, %v17355_v4  ;;  %v4843_v55 = vand.u32 4294901760, %v4842_v19  ;;  %v12875_v4 = vsub.f32 %v260_v8, %v12853_v32 }
 0x274   :  { %4753 = vmatpush.msrb.mxu0 %v12793_v28  ;;  %4936 = vmatpush.msrb.mxu2 %v12805_v16  ;;  %17353 = vst [vmem:[#allocation256_spill] sm:$0xff] %v12857_v34  ;;  %v12870_v34 = vand.u32 4294901760, %v255_v35  ;;  %v4854_v19 = vsub.f32 %v12833_v22, %v17357_v63  ;;  %v17358_v27 = vand.u32 4294901760, %v12845_v7  ;;  %v12900_v8 = vand.u32 4294901760, %v390_v36 }
 0x275   :  { %5000 = vmatpush.msrb.mxu3 %v12793_v28  ;;  %4542 = vmatmul.f32.gmra.mxu0 %v17354_v39  ;;  %v240_v39 = vld [vmem:[#allocation5 + $0x510] sm:$0xff] }
 0x276   :  { %4592 = vmatmul.f32.gmra.mxu1 %v17356_v48  ;;  %4730 = vmatmul.f32.gmra.mxu3 %v17318_v54  ;;  %v4860_v49 = vsub.f32 %v12845_v7, %v17358_v27  ;;  %v12894_v48 = vsub.f32 %v255_v35, %v12870_v34  ;;  %v12909_v27 = vsub.f32 %v250_v11, %v12879_v1  ;;  %v4855_v63 = vand.u32 4294901760, %v4854_v19  ;;  %v17367_v11 = vld [vmem:[#allocation16_spill] sm:$0xff] }
 0x277   :  { %4832 = vmatpush.msrb.mxu1 %v4831_v0  ;;  %4755 = vmatpush.msrb.mxu0 %v12811_v14  ;;  %v4849_v0 = vand.u32 4294901760, %v4848_v52  ;;  %v12897_v52 = vand.u32 4294901760, %v245_v60  ;;  %v12912_v35 = vsub.f32 %v395_v40, %v12881_v57  ;;  %v12920_v56 = vand.u32 4294901760, %v240_v39 }
 0x278   :  { %4939 = vmatpush.msrb.mxu2 %v12814_v20  ;;  %5002 = vmatpush.msrb.mxu3 %v12811_v14  ;;  %v4861_v40 = vand.u32 4294901760, %v4860_v49  ;;  %v17366_v19 = vand.u32 4294901760, %v12875_v4  ;;  %v12938_v62 = vsub.f32 %v390_v36, %v12900_v8  ;;  %v375_v49 = vld [vmem:[#allocation5 + $0x948] sm:$0xff]  ;;  %v17371_v37 = vand.u32 4294901760, %v12909_v27 }
 0x279   :  { %4681 = vmatmul.f32.gmra.mxu2 %v17318_v54  ;;  %4838 = vmatpush.msrb.mxu1 %v4837_v42  ;;  %v385_v42 = vld [vmem:[#allocation5 + $0x998] sm:$0xff]  ;;  %17363 = vst [vmem:[#allocation260_spill] sm:$0xff] %v12920_v56  ;;  %v12935_v54 = vsub.f32 %v245_v60, %v12897_v52  ;;  %v12948_v60 = vsub.f32 %v240_v39, %v12920_v56  ;;  %v12958_v44 = vand.u32 4294901760, %v375_v49 }
 0x27a   :  { %4757 = vmatpush.msrb.mxu0 %v12819_v18  ;;  %4942 = vmatpush.msrb.mxu2 %v12833_v22  ;;  %v12902_v13 = vpop.f32.mrf.mxu0  ;;  %v12914_v41 = vpop.f32.mrf.mxu2  ;;  %v12922_v61 = vand.u32 4294901760, %v385_v42 }
 0x27b   :  { %5004 = vmatpush.msrb.mxu3 %v12819_v18  ;;  %4844 = vmatpush.msrb.mxu1 %v4843_v55  ;;  %17359 = vst [vmem:[#allocation257_spill] sm:$0xff] %v12902_v13  ;;  %v12904_v3 = vpop.f32.mrf.mxu1  ;;  %v380_v55 = vld [vmem:[#allocation5 + $0x970] sm:$0xff]  ;;  %v17362_v13 = vand.u32 4294901760, %v12865_v2  ;;  %v17380_v6 = vand.u32 4294901760, %v12948_v60 }
 0x27c   :  { %17360 = vst [vmem:[#allocation258_spill] sm:$0xff] %v12904_v3  ;;  %4759 = vmatpush.msrb.mxu0 %v12835_v33  ;;  %4945 = vmatpush.msrb.mxu2 %v12845_v7  ;;  %v12940_v53 = vand.u32 4294901760, %v380_v55  ;;  %v12951_v36 = vsub.f32 %v385_v42, %v12922_v61 }
 0x27d   :  { %17361 = vst [vmem:[#allocation259_spill] sm:$0xff] %v12914_v41  ;;  %5006 = vmatpush.msrb.mxu3 %v12835_v33  ;;  %4850 = vmatpush.msrb.mxu1 %v4849_v0  ;;  %v4866_v3 = vsub.f32 %v12865_v2, %v17362_v13  ;;  %v12927_v41 = vpop.f32.mrf.mxu3  ;;  %v17365_v0 = vld [vmem:[#allocation18_spill] sm:$0xff]  ;;  %v4872_v13 = vsub.f32 %v12875_v4, %v17366_v19 }
 0x27e   :  { %4761 = vmatpush.msrb.mxu0 %v12853_v32  ;;  %4948 = vmatpush.msrb.mxu2 %v12865_v2  ;;  %17364 = vst [vmem:[#allocation261_spill] sm:$0xff] %v12927_v41  ;;  %v4896_v38 = vsub.f32 %v12948_v60, %v17380_v6 }
 0x27f   :  { %5008 = vmatpush.msrb.mxu3 %v12853_v32  ;;  %4547 = vmatmul.f32.gmra.mxu0 %v17365_v0  ;;  %v4867_v19 = vand.u32 4294901760, %v4866_v3  ;;  %17368 = vst [vmem:[#allocation262_spill] sm:$0xff] %v12951_v36  ;;  %v4873_v3 = vand.u32 4294901760, %v4872_v13  ;;  %v12964_v0 = vsub.f32 %v380_v55, %v12940_v53  ;;  %v365_v13 = vld [vmem:[#allocation5 + $0x8f8] sm:$0xff]  ;;  %v17375_v55 = vand.u32 4294901760, %v12938_v62 }
 0x280   :  { %4598 = vmatmul.f32.gmra.mxu1 %v17367_v11  ;;  %4734 = vmatmul.f32.gmra.mxu3 %v17328_v12  ;;  %v17369_v11 = vand.u32 4294901760, %v12894_v48 }
 0x281   :  { %4856 = vmatpush.msrb.mxu1 %v4855_v63  ;;  %4763 = vmatpush.msrb.mxu0 %v12870_v34  ;;  %v370_v63 = vld [vmem:[#allocation5 + $0x920] sm:$0xff]  ;;  %v5246_v42 = vsub.f32 %v12938_v62, %v17375_v55  ;;  %v17379_v55 = vand.u32 4294901760, %v12951_v36  ;;  %v17383_v31 = vand.u32 4294901760, %v12964_v0 }
 0x282   :  { %4951 = vmatpush.msrb.mxu2 %v12875_v4  ;;  %5010 = vmatpush.msrb.mxu3 %v12870_v34  ;;  %v4878_v41 = vsub.f32 %v12894_v48, %v17369_v11  ;;  %v17370_v11 = vand.u32 4294901760, %v12912_v35  ;;  %v12977_v39 = vand.u32 4294901760, %v370_v63 }
 0x283   :  { %4685 = vmatmul.f32.gmra.mxu2 %v17328_v12  ;;  %4862 = vmatpush.msrb.mxu1 %v4861_v40  ;;  %v4884_v40 = vsub.f32 %v12909_v27, %v17371_v37  ;;  %v12986_v37 = vsub.f32 %v375_v49, %v12958_v44  ;;  %v5258_v6 = vsub.f32 %v12964_v0, %v17383_v31  ;;  %v17386_v31 = vand.u32 4294901760, %v12728_v45 }
 0x284   :  { %4765 = vmatpush.msrb.mxu0 %v12879_v1  ;;  %4954 = vmatpush.msrb.mxu2 %v12894_v48  ;;  %v5240_v29 = vsub.f32 %v12912_v35, %v17370_v11  ;;  %v12979_v12 = vpop.f32.mrf.mxu0  ;;  %v4879_v11 = vand.u32 4294901760, %v4878_v41  ;;  %v12998_v41 = vand.u32 4294901760, %v365_v13  ;;  %v13013_v5 = vsub.f32 %v370_v63, %v12977_v39 }
 0x285   :  { %5012 = vmatpush.msrb.mxu3 %v12879_v1  ;;  %4868 = vmatpush.msrb.mxu1 %v4867_v19  ;;  %17372 = vst [vmem:[#allocation263_spill] sm:$0xff] %v12979_v12  ;;  %v12981_v51 = vpop.f32.mrf.mxu1  ;;  %v12988_v19 = vpop.f32.mrf.mxu2  ;;  %v17376_v12 = vand.u32 4294901760, %v12935_v54  ;;  %v17390_v45 = vand.u32 4294901760, %v12740_v10  ;;  %v17392_v10 = vand.u32 4294901760, %v12751_v58  ;;  %v17396_v58 = vld [vmem:[#allocation46_spill] sm:$0xff] }
 0x286   :  { %17373 = vst [vmem:[#allocation264_spill] sm:$0xff] %v12981_v51  ;;  %4767 = vmatpush.msrb.mxu0 %v12897_v52  ;;  %4957 = vmatpush.msrb.mxu2 %v12909_v27  ;;  %v5241_v49 = vand.u32 4294901760, %v5240_v29  ;;  %v13002_v47 = vpop.f32.mrf.mxu3  ;;  %v355_v29 = vld [vmem:[#allocation5 + $0x8a8] sm:$0xff]  ;;  %v13025_v63 = vsub.f32 %v365_v13, %v12998_v41  ;;  %v345_v13 = vld [vmem:[#allocation5 + $0x858] sm:$0xff] }
 0x287   :  { %17374 = vst [vmem:[#allocation265_spill] sm:$0xff] %v12988_v19  ;;  %5014 = vmatpush.msrb.mxu3 %v12897_v52  ;;  %4874 = vmatpush.msrb.mxu1 %v4873_v3  ;;  %v4890_v51 = vsub.f32 %v12935_v54, %v17376_v12  ;;  %v4885_v19 = vand.u32 4294901760, %v4884_v40  ;;  %v17378_v3 = vld [vmem:[#allocation42_spill] sm:$0xff]  ;;  %v5252_v12 = vsub.f32 %v12951_v36, %v17379_v55  ;;  %v17381_v40 = vld [vmem:[#allocation57_spill] sm:$0xff]  ;;  %v5247_v55 = vand.u32 4294901760, %v5246_v42 }
 0x288   :  { %4769 = vmatpush.msrb.mxu0 %v12920_v56  ;;  %4960 = vmatpush.msrb.mxu2 %v12935_v54  ;;  %17377 = vst [vmem:[#allocation266_spill] sm:$0xff] %v13002_v47  ;;  %v350_v47 = vld [vmem:[#allocation5 + $0x880] sm:$0xff]  ;;  %v4897_v42 = vand.u32 4294901760, %v4896_v38  ;;  %v13034_v36 = vsub.f32 %v360_v24, %v13015_v23  ;;  %v13061_v38 = vand.u32 4294901760, %v345_v13 }
 0x289   :  { %5016 = vmatpush.msrb.mxu3 %v12920_v56  ;;  %4604 = vmatmul.f32.gmra.mxu1 %v17378_v3  ;;  %v17382_v3 = vld [vmem:[#allocation52_spill] sm:$0xff]  ;;  %v4891_v46 = vand.u32 4294901760, %v4890_v51  ;;  %v17384_v56 = vand.u32 4294901760, %v12712_v26  ;;  %v16622_v51 = vand.u32 4294901760, %v13013_v5 }
 0x28a   :  { %4775 = vmatmul.f32.vlgmr.msrb.gmra.mxu0 %v17381_v40  ;;  %4880 = vmatpush.msrb.mxu1 %v4879_v11  ;;  %v13029_v11 = vand.u32 4294901760, %v355_v29  ;;  %v5253_v40 = vand.u32 4294901760, %v5252_v12 }
 0x28b   :  { %5020 = vmatmul.f32.vlgmr.msrb.gmra.mxu3 %v17382_v3  ;;  %4963 = vmatpush.msrb.mxu2 %v12948_v60  ;;  %v17385_v3 = vld [vmem:[#allocation48_spill] sm:$0xff] }
 0x28c   :  { %5045 = vmatpush.msra.mxu0 %v17384_v56  ;;  %5242 = vmatpush.msra.mxu3 %v5241_v49  ;;  %v17387_v56 = vand.u32 4294901760, %v12986_v37  ;;  %v13043_v49 = vand.u32 4294901760, %v350_v47 }
 0x28d   :  { %4886 = vmatpush.msrb.mxu1 %v4885_v19  ;;  %4966 = vmatmul.f32.vlgmr.msrb.gmra.mxu2 %v17385_v3  ;;  %v5259_v19 = vand.u32 4294901760, %v5258_v6 }
 0x28e   :  { %5049 = vmatpush.msra.mxu0 %v17386_v31  ;;  %5173 = vmatpush.msra.mxu2 %v12881_v57  ;;  %v5264_v26 = vsub.f32 %v12986_v37, %v17387_v56  ;;  %v13045_v12 = vpop.f32.mrf.mxu1  ;;  %v13053_v31 = vsub.f32 %v355_v29, %v13029_v11  ;;  %v340_v56 = vld [vmem:[#allocation5 + $0x830] sm:$0xff] }
 0x28f   :  { %5248 = vmatpush.msra.mxu3 %v5247_v55  ;;  %4892 = vmatpush.msrb.mxu1 %v4891_v46  ;;  %17388 = vst [vmem:[#allocation267_spill] sm:$0xff] %v13045_v12  ;;  %v13047_v24 = vpop.f32.mrf.mxu0  ;;  %v13055_v55 = vpop.f32.mrf.mxu2  ;;  %v5270_v46 = vsub.f32 %v13013_v5, %v16622_v51  ;;  %v13073_v51 = vsub.f32 %v350_v47, %v13043_v49  ;;  %v13075_v6 = vand.u32 4294901760, %v340_v56  ;;  %v335_v12 = vld [vmem:[#allocation5 + $0x808] sm:$0xff] }
 0x290   :  { %17389 = vst [vmem:[#allocation268_spill] sm:$0xff] %v13047_v24  ;;  %5053 = vmatpush.msra.mxu0 %v17390_v45  ;;  %5175 = vmatpush.msra.mxu2 %v12900_v8  ;;  %v5265_v29 = vand.u32 4294901760, %v5264_v26  ;;  %v13066_v45 = vpop.f32.mrf.mxu3  ;;  %v13087_v24 = vsub.f32 %v345_v13, %v13061_v38  ;;  %v17400_v26 = vld [vmem:[#allocation56_spill] sm:$0xff]  ;;  %v17402_v13 = vand.u32 4294901760, %v13053_v31 }
 0x291   :  { %17391 = vst [vmem:[#allocation269_spill] sm:$0xff] %v13055_v55  ;;  %5254 = vmatpush.msra.mxu3 %v5253_v40  ;;  %4898 = vmatpush.msrb.mxu1 %v4897_v42  ;;  %v17394_v55 = vld [vmem:[#allocation61_spill] sm:$0xff]  ;;  %v17395_v40 = vand.u32 4294901760, %v13025_v63 }
 0x292   :  { %5057 = vmatpush.msra.mxu0 %v17392_v10  ;;  %5177 = vmatpush.msra.mxu2 %v12922_v61  ;;  %17393 = vst [vmem:[#allocation270_spill] sm:$0xff] %v13066_v45  ;;  %v17397_v10 = vld [vmem:[#allocation58_spill] sm:$0xff]  ;;  %v5271_v45 = vand.u32 4294901760, %v5270_v46  ;;  %v13096_v46 = vsub.f32 %v340_v56, %v13075_v6 }
 0x293   :  { %5260 = vmatpush.msra.mxu3 %v5259_v19  ;;  %4783 = vmatmul.f32.gmra.mxu0 %v17394_v55  ;;  %v5276_v42 = vsub.f32 %v13025_v63, %v17395_v40  ;;  %v17398_v19 = vand.u32 4294901760, %v12772_v50  ;;  %v17399_v40 = vand.u32 4294901760, %v13034_v36  ;;  %v13090_v55 = vand.u32 4294901760, %v335_v12 }
 0x294   :  { %4900 = vmatmul.f32.vlgmr.msrb.gmra.mxu1 %v17396_v58  ;;  %5026 = vmatmul.f32.gmra.mxu3 %v17397_v10  ;;  %v330_v10 = vld [vmem:[#allocation5 + $0x7e0] sm:$0xff] }
 0x295   :  { %5124 = vmatpush.msra.mxu1 %v12697_v21  ;;  %5061 = vmatpush.msra.mxu0 %v17398_v19  ;;  %v5282_v47 = vsub.f32 %v13034_v36, %v17399_v40  ;;  %v5277_v21 = vand.u32 4294901760, %v5276_v42  ;;  %v17401_v19 = vand.u32 4294901760, %v12791_v17  ;;  %v325_v40 = vld [vmem:[#allocation5 + $0x7b8] sm:$0xff]  ;;  %v13106_v50 = vand.u32 4294901760, %v330_v10 }
 0x296   :  { %5179 = vmatpush.msra.mxu2 %v12940_v53  ;;  %5266 = vmatpush.msra.mxu3 %v5265_v29  ;;  %v5288_v29 = vsub.f32 %v13053_v31, %v17402_v13  ;;  %v17405_v17 = vand.u32 4294901760, %v12805_v16  ;;  %v17408_v16 = vand.u32 4294901760, %v12814_v20  ;;  %v17413_v20 = vld [vmem:[#allocation63_spill] sm:$0xff] }
 0x297   :  { %4971 = vmatmul.f32.gmra.mxu2 %v17400_v26  ;;  %5126 = vmatpush.msra.mxu1 %v12704_v30  ;;  %v5283_v30 = vand.u32 4294901760, %v5282_v47 }
 0x298   :  { %5065 = vmatpush.msra.mxu0 %v17401_v19  ;;  %5181 = vmatpush.msra.mxu2 %v12958_v44  ;;  %v13108_v56 = vpop.f32.mrf.mxu0  ;;  %v13116_v19 = vsub.f32 %v335_v12, %v13090_v55  ;;  %v13118_v13 = vpop.f32.mrf.mxu2  ;;  %v5289_v12 = vand.u32 4294901760, %v5288_v29 }
 0x299   :  { %5272 = vmatpush.msra.mxu3 %v5271_v45  ;;  %5128 = vmatpush.msra.mxu1 %v12714_v9  ;;  %17403 = vst [vmem:[#allocation271_spill] sm:$0xff] %v13108_v56  ;;  %v13110_v26 = vpop.f32.mrf.mxu1  ;;  %v320_v45 = vld [vmem:[#allocation5 + $0x790] sm:$0xff]  ;;  %v17407_v9 = vand.u32 4294901760, %v13073_v51  ;;  %v13125_v56 = vand.u32 4294901760, %v325_v40 }
 0x29a   :  { %17404 = vst [vmem:[#allocation272_spill] sm:$0xff] %v13110_v26  ;;  %5069 = vmatpush.msra.mxu0 %v17405_v17  ;;  %5183 = vmatpush.msra.mxu2 %v12977_v39  ;;  %v13130_v17 = vpop.f32.mrf.mxu3  ;;  %v13139_v42 = vand.u32 4294901760, %v320_v45  ;;  %v17412_v26 = vld [vmem:[#allocation54_spill] sm:$0xff] }
 0x29b   :  { %17406 = vst [vmem:[#allocation273_spill] sm:$0xff] %v13118_v13  ;;  %5278 = vmatpush.msra.mxu3 %v5277_v21  ;;  %5130 = vmatpush.msra.mxu1 %v12730_v25  ;;  %v5294_v47 = vsub.f32 %v13073_v51, %v17407_v9  ;;  %v17410_v21 = vld [vmem:[#allocation66_spill] sm:$0xff]  ;;  %v17411_v25 = vand.u32 4294901760, %v13087_v24  ;;  %v13137_v9 = vsub.f32 %v330_v10, %v13106_v50 }
 0x29c   :  { %5073 = vmatpush.msra.mxu0 %v17408_v16  ;;  %5185 = vmatpush.msra.mxu2 %v12998_v41  ;;  %17409 = vst [vmem:[#allocation274_spill] sm:$0xff] %v13130_v17  ;;  %v17415_v17 = vand.u32 4294901760, %v13096_v46  ;;  %v13151_v10 = vsub.f32 %v325_v40, %v13125_v56  ;;  %v17418_v40 = vand.u32 4294901760, %v13116_v19 }
 0x29d   :  { %5284 = vmatpush.msra.mxu3 %v5283_v30  ;;  %4791 = vmatmul.f32.gmra.mxu0 %v17410_v21  ;;  %v5300_v13 = vsub.f32 %v13087_v24, %v17411_v25  ;;  %v17414_v30 = vand.u32 4294901760, %v12833_v22  ;;  %v5295_v16 = vand.u32 4294901760, %v5294_v47  ;;  %v17416_v21 = vld [vmem:[#allocation60_spill] sm:$0xff]  ;;  %v13158_v22 = vsub.f32 %v320_v45, %v13139_v42 }
 0x29e   :  { %4904 = vmatmul.f32.gmra.mxu1 %v17412_v26  ;;  %5032 = vmatmul.f32.gmra.mxu3 %v17413_v20  ;;  %v5306_v25 = vsub.f32 %v13096_v46, %v17415_v17  ;;  %v17417_v47 = vand.u32 4294901760, %v12845_v7  ;;  %v5312_v17 = vsub.f32 %v13116_v19, %v17418_v40  ;;  %v17421_v45 = vand.u32 4294901760, %v12865_v2  ;;  %v17425_v40 = vld [vmem:[#allocation73_spill] sm:$0xff] }
 0x29f   :  { %5132 = vmatpush.msra.mxu1 %v12748_v43  ;;  %5077 = vmatpush.msra.mxu0 %v17414_v30  ;;  %v5301_v29 = vand.u32 4294901760, %v5300_v13  ;;  %v16624_v43 = vand.u32 4294901760, %v13137_v9 }
 0x2a0   :  { %5187 = vmatpush.msra.mxu2 %v13015_v23  ;;  %5290 = vmatpush.msra.mxu3 %v5289_v12  ;;  %v5307_v12 = vand.u32 4294901760, %v5306_v25  ;;  %v17423_v25 = vand.u32 4294901760, %v12875_v4  ;;  %v5313_v2 = vand.u32 4294901760, %v5312_v17  ;;  %v17428_v4 = vand.u32 4294901760, %v12894_v48 }
 0x2a1   :  { %4976 = vmatmul.f32.gmra.mxu2 %v17416_v21  ;;  %5134 = vmatpush.msra.mxu1 %v12761_v15  ;;  %v16623_v15 = vand.u32 4294901760, %v13151_v10 }
 0x2a2   :  { %5081 = vmatpush.msra.mxu0 %v17417_v47  ;;  %5189 = vmatpush.msra.mxu2 %v13029_v11  ;;  %v13168_v13 = vpop.f32.mrf.mxu0  ;;  %v13175_v7 = vpop.f32.mrf.mxu2 }
 0x2a3   :  { %5296 = vmatpush.msra.mxu3 %v5295_v16  ;;  %5136 = vmatpush.msra.mxu1 %v12774_v59  ;;  %17419 = vst [vmem:[#allocation275_spill] sm:$0xff] %v13168_v13  ;;  %v13170_v30 = vpop.f32.mrf.mxu1  ;;  %v5318_v59 = vsub.f32 %v13137_v9, %v16624_v43  ;;  %v5329_v16 = vand.u32 4294901760, %v13158_v22  ;;  %v13185_v47 = vpop.f32.mrf.mxu3  ;;  %v17430_v43 = vand.u32 4294901760, %v12909_v27  ;;  %v17435_v27 = vand.u32 4294901760, %v12948_v60 }
 0x2a4   :  { %17420 = vst [vmem:[#allocation276_spill] sm:$0xff] %v13170_v30  ;;  %5085 = vmatpush.msra.mxu0 %v17421_v45  ;;  %5191 = vmatpush.msra.mxu2 %v13043_v49  ;;  %v17427_v45 = vld [vmem:[#allocation70_spill] sm:$0xff]  ;;  %v17440_v60 = vand.u32 4294901760, %v12912_v35 }
 0x2a5   :  { %17422 = vst [vmem:[#allocation277_spill] sm:$0xff] %v13175_v7  ;;  %5302 = vmatpush.msra.mxu3 %v5301_v29  ;;  %5138 = vmatpush.msra.mxu1 %v12793_v28  ;;  %v5324_v28 = vsub.f32 %v13151_v10, %v16623_v15  ;;  %v17426_v29 = vld [vmem:[#allocation59_spill] sm:$0xff]  ;;  %v5330_v17 = vsub.f32 %v13158_v22, %v5329_v16  ;;  %v17497_v7 = vld [vmem:[#allocation45_spill] sm:$0xff] }
 0x2a6   :  { %5089 = vmatpush.msra.mxu0 %v17423_v25  ;;  %5193 = vmatpush.msra.mxu2 %v13061_v38  ;;  %17424 = vst [vmem:[#allocation278_spill] sm:$0xff] %v13185_v47  ;;  %v5319_v25 = vand.u32 4294901760, %v5318_v59 }
 0x2a7   :  { %5308 = vmatpush.msra.mxu3 %v5307_v12  ;;  %4799 = vmatmul.f32.gmra.mxu0 %v17425_v40  ;;  %v17429_v12 = vld [vmem:[#allocation65_spill] sm:$0xff]  ;;  %v5325_v15 = vand.u32 4294901760, %v5324_v28  ;;  %v5331_v48 = vand.u32 4294901760, %v5330_v17  ;;  %v17443_v28 = vld [vmem:[#allocation262_spill] sm:$0xff]  ;;  %v17450_v17 = vand.u32 4294901760, %v12964_v0 }
 0x2a8   :  { %4908 = vmatmul.f32.gmra.mxu1 %v17426_v29  ;;  %5038 = vmatmul.f32.gmra.mxu3 %v17427_v45  ;;  %v201_v45 = vld [vmem:[#allocation5 + $0x3d8] sm:$0xff] }
 0x2a9   :  { %5140 = vmatpush.msra.mxu1 %v12811_v14  ;;  %5093 = vmatpush.msra.mxu0 %v17428_v4  ;;  %v17444_v4 = vand.u32 4294901760, %v12938_v62 }
 0x2aa   :  { %5195 = vmatpush.msra.mxu2 %v13075_v6  ;;  %5314 = vmatpush.msra.mxu3 %v5313_v2  ;;  %v17433_v2 = vand.u32 4294901760, %v12935_v54  ;;  %v17438_v54 = vld [vmem:[#allocation72_spill] sm:$0xff] }
 0x2ab   :  { %4981 = vmatmul.f32.gmra.mxu2 %v17429_v12  ;;  %5142 = vmatpush.msra.mxu1 %v12819_v18 }
 0x2ac   :  { %5097 = vmatpush.msra.mxu0 %v17430_v43  ;;  %5197 = vmatpush.msra.mxu2 %v13090_v55  ;;  %v13206_v14 = vpop.f32.mrf.mxu0  ;;  %v13213_v18 = vpop.f32.mrf.mxu2  ;;  %v17437_v43 = vld [vmem:[#allocation64_spill] sm:$0xff] }
 0x2ad   :  { %5320 = vmatpush.msra.mxu3 %v5319_v25  ;;  %5144 = vmatpush.msra.mxu1 %v12835_v33  ;;  %17431 = vst [vmem:[#allocation279_spill] sm:$0xff] %v13206_v14  ;;  %v13208_v59 = vpop.f32.mrf.mxu1  ;;  %v13219_v33 = vpop.f32.mrf.mxu3  ;;  %v17446_v25 = vld [vmem:[#allocation260_spill] sm:$0xff] }
 0x2ae   :  { %17432 = vst [vmem:[#allocation280_spill] sm:$0xff] %v13208_v59  ;;  %5101 = vmatpush.msra.mxu0 %v17433_v2  ;;  %5199 = vmatpush.msra.mxu2 %v13106_v50  ;;  %v17452_v2 = vand.u32 4294901760, %v12986_v37  ;;  %v231_v59 = vld [vmem:[#allocation5 + $0x4c8] sm:$0xff] }
 0x2af   :  { %17434 = vst [vmem:[#allocation281_spill] sm:$0xff] %v13213_v18  ;;  %5326 = vmatpush.msra.mxu3 %v5325_v15  ;;  %5146 = vmatpush.msra.mxu1 %v12853_v32  ;;  %v17439_v32 = vld [vmem:[#allocation85_spill] sm:$0xff]  ;;  %v236_v18 = vld [vmem:[#allocation5 + $0x4f0] sm:$0xff] }
 0x2b0   :  { %5105 = vmatpush.msra.mxu0 %v17435_v27  ;;  %5201 = vmatpush.msra.mxu2 %v13125_v56  ;;  %17436 = vst [vmem:[#allocation282_spill] sm:$0xff] %v13219_v33  ;;  %v13505_v14 = vand.u32 4294901760, %v236_v18 }
 0x2b1   :  { %5332 = vmatpush.msra.mxu3 %v5331_v48  ;;  %4912 = vmatmul.f32.gmra.mxu1 %v17437_v43  ;;  %v17451_v48 = vld [vmem:[#allocation86_spill] sm:$0xff] }
 0x2b2   :  { %5107 = vmatmul.f32.vlgmr.msra.gmra.mxu0 %v17396_v58  ;;  %5148 = vmatpush.msra.mxu1 %v12870_v34 }
 0x2b3   :  { %5334 = vmatmul.f32.vlgmr.msra.gmra.mxu3 %v17438_v54  ;;  %5203 = vmatpush.msra.mxu2 %v13139_v42 }
 0x2b4   :  { %5352 = vmatpush.msrb.mxu0 %v12912_v35  ;;  %5558 = vmatpush.msrb.mxu3 %v12881_v57  ;;  %v17447_v35 = vand.u32 4294901760, %v17443_v28 }
 0x2b5   :  { %5150 = vmatpush.msra.mxu1 %v12879_v1  ;;  %5209 = vmatmul.f32.vlgmr.msra.gmra.mxu2 %v17439_v32 }
 0x2b6   :  { %5355 = vmatpush.msrb.mxu0 %v12938_v62  ;;  %5479 = vmatpush.msrb.mxu2 %v17440_v60  ;;  %v13235_v34 = vpop.f32.mrf.mxu1  ;;  %v13242_v1 = vpop.f32.mrf.mxu2  ;;  %v17449_v62 = vld [vmem:[#allocation80_spill] sm:$0xff] }
 0x2b7   :  { %5560 = vmatpush.msrb.mxu3 %v12900_v8  ;;  %5152 = vmatpush.msra.mxu1 %v12897_v52  ;;  %17441 = vst [vmem:[#allocation283_spill] sm:$0xff] %v13235_v34  ;;  %v13237_v15 = vpop.f32.mrf.mxu0  ;;  %v13249_v52 = vpop.f32.mrf.mxu3 }
 0x2b8   :  { %17442 = vst [vmem:[#allocation284_spill] sm:$0xff] %v13237_v15  ;;  %5358 = vmatpush.msrb.mxu0 %v17443_v28  ;;  %5483 = vmatpush.msrb.mxu2 %v17444_v4  ;;  %v91_v15 = vld [vmem:[#allocation5 + $0x68] sm:$0xff] }
 0x2b9   :  { %17445 = vst [vmem:[#allocation262_spill] sm:$0xff] %v13242_v1  ;;  %5562 = vmatpush.msrb.mxu3 %v12922_v61  ;;  %5154 = vmatpush.msra.mxu1 %v17446_v25  ;;  %v151_v25 = vld [vmem:[#allocation5 + $0x248] sm:$0xff]  ;;  %v86_v1 = vld [vmem:[#allocation5 + $0x40] sm:$0xff] }
 0x2ba   :  { %5361 = vmatpush.msrb.mxu0 %v12964_v0  ;;  %5487 = vmatpush.msrb.mxu2 %v17447_v35  ;;  %17448 = vst [vmem:[#allocation260_spill] sm:$0xff] %v13249_v52  ;;  %v17455_v0 = vand.u32 4294901760, %v13013_v5  ;;  %v146_v35 = vld [vmem:[#allocation5 + $0x220] sm:$0xff] }
 0x2bb   :  { %5564 = vmatpush.msrb.mxu3 %v12940_v53  ;;  %5111 = vmatmul.f32.gmra.mxu0 %v17412_v26 }
 0x2bc   :  { %5156 = vmatmul.f32.vlgmr.msra.gmra.mxu1 %v17396_v58  ;;  %5338 = vmatmul.f32.gmra.mxu3 %v17449_v62 }
 0x2bd   :  { %5420 = vmatpush.msrb.mxu1 %v12881_v57  ;;  %5364 = vmatpush.msrb.mxu0 %v12986_v37  ;;  %v17461_v37 = vld [vmem:[#allocation94_spill] sm:$0xff] }
 0x2be   :  { %5491 = vmatpush.msrb.mxu2 %v17450_v17  ;;  %5566 = vmatpush.msrb.mxu3 %v12958_v44  ;;  %v17471_v17 = vld [vmem:[#allocation100_spill] sm:$0xff] }
 0x2bf   :  { %5217 = vmatmul.f32.gmra.mxu2 %v17451_v48  ;;  %5422 = vmatpush.msrb.mxu1 %v12900_v8  ;;  %v17457_v8 = vand.u32 4294901760, %v13025_v63 }
 0x2c0   :  { %5367 = vmatpush.msrb.mxu0 %v13013_v5  ;;  %5495 = vmatpush.msrb.mxu2 %v17452_v2  ;;  %v13267_v57 = vpop.f32.mrf.mxu0  ;;  %v13274_v60 = vpop.f32.mrf.mxu2  ;;  %v17459_v5 = vld [vmem:[#allocation50_spill] sm:$0xff]  ;;  %v13328_v2 = vand.u32 4294901760, %v151_v25 }
 0x2c1   :  { %5568 = vmatpush.msrb.mxu3 %v12977_v39  ;;  %5424 = vmatpush.msrb.mxu1 %v12922_v61  ;;  %17453 = vst [vmem:[#allocation285_spill] sm:$0xff] %v13267_v57  ;;  %v13269_v27 = vpop.f32.mrf.mxu1  ;;  %v13281_v61 = vpop.f32.mrf.mxu3 }
 0x2c2   :  { %17454 = vst [vmem:[#allocation286_spill] sm:$0xff] %v13269_v27  ;;  %5370 = vmatpush.msrb.mxu0 %v13025_v63  ;;  %5499 = vmatpush.msrb.mxu2 %v17455_v0  ;;  %v17462_v63 = vand.u32 4294901760, %v13053_v31  ;;  %v141_v0 = vld [vmem:[#allocation5 + $0x1f8] sm:$0xff] }
 0x2c3   :  { %17456 = vst [vmem:[#allocation287_spill] sm:$0xff] %v13274_v60  ;;  %5570 = vmatpush.msrb.mxu3 %v12998_v41  ;;  %5426 = vmatpush.msrb.mxu1 %v12940_v53  ;;  %v17460_v53 = vand.u32 4294901760, %v13034_v36 }
 0x2c4   :  { %5373 = vmatpush.msrb.mxu0 %v13034_v36  ;;  %5503 = vmatpush.msrb.mxu2 %v17457_v8  ;;  %17458 = vst [vmem:[#allocation288_spill] sm:$0xff] %v13281_v61  ;;  %v17465_v36 = vand.u32 4294901760, %v13073_v51  ;;  %v13338_v8 = vand.u32 4294901760, %v146_v35 }
 0x2c5   :  { %5572 = vmatpush.msrb.mxu3 %v13015_v23  ;;  %5115 = vmatmul.f32.gmra.mxu0 %v17426_v29 }
 0x2c6   :  { %5160 = vmatmul.f32.gmra.mxu1 %v17412_v26  ;;  %5342 = vmatmul.f32.gmra.mxu3 %v17459_v5  ;;  %v13639_v26 = vand.u32 4294901760, %v201_v45 }
 0x2c7   :  { %5428 = vmatpush.msrb.mxu1 %v12958_v44  ;;  %5376 = vmatpush.msrb.mxu0 %v13053_v31 }
 0x2c8   :  { %5507 = vmatpush.msrb.mxu2 %v17460_v53  ;;  %5574 = vmatpush.msrb.mxu3 %v13029_v11 }
 0x2c9   :  { %5225 = vmatmul.f32.gmra.mxu2 %v17461_v37  ;;  %5430 = vmatpush.msrb.mxu1 %v12977_v39  ;;  %v17467_v39 = vand.u32 4294901760, %v13087_v24  ;;  %v13313_v31 = vpop.f32.mrf.mxu3 }
 0x2ca   :  { %5379 = vmatpush.msrb.mxu0 %v13073_v51  ;;  %5511 = vmatpush.msrb.mxu2 %v17462_v63  ;;  %v13299_v44 = vpop.f32.mrf.mxu0  ;;  %v13306_v4 = vpop.f32.mrf.mxu2  ;;  %17468 = vst [vmem:[#allocation292_spill] sm:$0xff] %v13313_v31  ;;  %v17469_v51 = vld [vmem:[#allocation88_spill] sm:$0xff]  ;;  %v17475_v63 = vand.u32 4294901760, %v13137_v9 }
 0x2cb   :  { %5576 = vmatpush.msrb.mxu3 %v13043_v49  ;;  %5432 = vmatpush.msrb.mxu1 %v12998_v41  ;;  %17463 = vst [vmem:[#allocation289_spill] sm:$0xff] %v13299_v44  ;;  %v13301_v28 = vpop.f32.mrf.mxu1  ;;  %v156_v41 = vld [vmem:[#allocation5 + $0x270] sm:$0xff]  ;;  %v17487_v44 = vld [vmem:[#allocation79_spill] sm:$0xff] }
 0x2cc   :  { %17464 = vst [vmem:[#allocation290_spill] sm:$0xff] %v13301_v28  ;;  %5382 = vmatpush.msrb.mxu0 %v13087_v24  ;;  %5515 = vmatpush.msrb.mxu2 %v17465_v36  ;;  %v17470_v24 = vand.u32 4294901760, %v13096_v46  ;;  %v13354_v36 = vand.u32 4294901760, %v141_v0 }
 0x2cd   :  { %17466 = vst [vmem:[#allocation291_spill] sm:$0xff] %v13306_v4  ;;  %5578 = vmatpush.msrb.mxu3 %v13061_v38  ;;  %5434 = vmatpush.msrb.mxu1 %v13015_v23  ;;  %v13321_v23 = vand.u32 4294901760, %v156_v41 }
 0x2ce   :  { %5385 = vmatpush.msrb.mxu0 %v13096_v46  ;;  %5519 = vmatpush.msrb.mxu2 %v17467_v39  ;;  %v17477_v39 = vand.u32 4294901760, %v13151_v10 }
 0x2cf   :  { %5580 = vmatpush.msrb.mxu3 %v13075_v6  ;;  %5119 = vmatmul.f32.gmra.mxu0 %v17437_v43  ;;  %v13336_v46 = vsub.f32 %v156_v41, %v13321_v23  ;;  %v136_v41 = vld [vmem:[#allocation5 + $0x1d0] sm:$0xff] }
 0x2d0   :  { %5164 = vmatmul.f32.gmra.mxu1 %v17426_v29  ;;  %5346 = vmatmul.f32.gmra.mxu3 %v17469_v51 }
 0x2d1   :  { %5436 = vmatpush.msrb.mxu1 %v13029_v11  ;;  %5388 = vmatpush.msrb.mxu0 %v13116_v19  ;;  %v17472_v11 = vand.u32 4294901760, %v13116_v19 }
 0x2d2   :  { %5523 = vmatpush.msrb.mxu2 %v17470_v24  ;;  %5582 = vmatpush.msrb.mxu3 %v13090_v55  ;;  %v13359_v24 = vpop.f32.mrf.mxu3 }
 0x2d3   :  { %5233 = vmatmul.f32.gmra.mxu2 %v17471_v17  ;;  %5438 = vmatpush.msrb.mxu1 %v13043_v49  ;;  %17478 = vst [vmem:[#allocation296_spill] sm:$0xff] %v13359_v24 }
 0x2d4   :  { %5391 = vmatpush.msrb.mxu0 %v13137_v9  ;;  %5527 = vmatpush.msrb.mxu2 %v17472_v11  ;;  %v13340_v53 = vpop.f32.mrf.mxu0  ;;  %v13347_v19 = vpop.f32.mrf.mxu2  ;;  %v13364_v9 = vsub.f32 %v146_v35, %v13338_v8  ;;  %v131_v11 = vld [vmem:[#allocation5 + $0x1a8] sm:$0xff] }
 0x2d5   :  { %5584 = vmatpush.msrb.mxu3 %v13106_v50  ;;  %5440 = vmatpush.msrb.mxu1 %v13061_v38  ;;  %17473 = vst [vmem:[#allocation293_spill] sm:$0xff] %v13340_v53  ;;  %v13342_v49 = vpop.f32.mrf.mxu1  ;;  %v13352_v38 = vsub.f32 %v151_v25, %v13328_v2  ;;  %v17479_v25 = vld [vmem:[#allocation77_spill] sm:$0xff] }
 0x2d6   :  { %17474 = vst [vmem:[#allocation294_spill] sm:$0xff] %v13342_v49  ;;  %5394 = vmatpush.msrb.mxu0 %v13151_v10  ;;  %5531 = vmatpush.msrb.mxu2 %v17475_v63  ;;  %v13372_v10 = vand.u32 4294901760, %v136_v41  ;;  %v13375_v63 = vsub.f32 %v141_v0, %v13354_v36  ;;  %v121_v0 = vld [vmem:[#allocation5 + $0x158] sm:$0xff]  ;;  %v111_v53 = vld [vmem:[#allocation5 + $0x108] sm:$0xff]  ;;  %v106_v49 = vld [vmem:[#allocation5 + $0xe0] sm:$0xff] }
 0x2d7   :  { %17476 = vst [vmem:[#allocation295_spill] sm:$0xff] %v13347_v19  ;;  %5586 = vmatpush.msrb.mxu3 %v13125_v56  ;;  %5442 = vmatpush.msrb.mxu1 %v13075_v6  ;;  %v16625_v6 = vand.u32 4294901760, %v13336_v46  ;;  %v16626_v35 = vand.u32 4294901760, %v13352_v38 }
 0x2d8   :  { %5397 = vmatpush.msrb.mxu0 %v13158_v22  ;;  %5535 = vmatpush.msrb.mxu2 %v17477_v39  ;;  %v126_v39 = vld [vmem:[#allocation5 + $0x180] sm:$0xff]  ;;  %v13385_v22 = vand.u32 4294901760, %v131_v11  ;;  %v13396_v24 = vsub.f32 %v136_v41, %v13372_v10  ;;  %v17486_v4 = vand.u32 4294901760, %v13375_v63 }
 0x2d9   :  { %5588 = vmatpush.msrb.mxu3 %v13139_v42  ;;  %5168 = vmatmul.f32.gmra.mxu1 %v17437_v43 }
 0x2da   :  { %5400 = vmatmul.f32.vlgmr.msrb.gmra.mxu0 %v17479_v25  ;;  %5444 = vmatpush.msrb.mxu1 %v13090_v55  ;;  %v5674_v55 = vsub.f32 %v13336_v46, %v16625_v6  ;;  %v13398_v6 = vand.u32 4294901760, %v126_v39 }
 0x2db   :  { %5590 = vmatmul.f32.vlgmr.msrb.gmra.mxu3 %v17438_v54  ;;  %5539 = vmatpush.msrb.mxu2 %v5329_v16  ;;  %v13415_v16 = vsub.f32 %v131_v11, %v13385_v22 }
 0x2dc   :  { %5607 = vmatpush.msra.mxu0 %v13321_v23  ;;  %5854 = vmatpush.msra.mxu3 %v13321_v23  ;;  %v5675_v41 = vand.u32 4294901760, %v5674_v55  ;;  %v13429_v11 = vsub.f32 %v126_v39, %v13398_v6  ;;  %v13443_v39 = vand.u32 4294901760, %v111_v53 }
 0x2dd   :  { %5446 = vmatpush.msrb.mxu1 %v13106_v50  ;;  %5541 = vmatmul.f32.vlgmr.msrb.gmra.mxu2 %v17438_v54  ;;  %v5680_v50 = vsub.f32 %v13352_v38, %v16626_v35  ;;  %v17483_v35 = vand.u32 4294901760, %v13364_v9  ;;  %v17489_v52 = vand.u32 4294901760, %v13415_v16 }
 0x2de   :  { %5609 = vmatpush.msra.mxu0 %v13328_v2  ;;  %5786 = vmatpush.msra.mxu2 %v13336_v46  ;;  %v13401_v31 = vpop.f32.mrf.mxu1 }
 0x2df   :  { %5856 = vmatpush.msra.mxu3 %v13328_v2  ;;  %5448 = vmatpush.msrb.mxu1 %v13125_v56  ;;  %17480 = vst [vmem:[#allocation297_spill] sm:$0xff] %v13401_v31  ;;  %v13403_v19 = vpop.f32.mrf.mxu0  ;;  %v13407_v56 = vpop.f32.mrf.mxu2  ;;  %v5686_v61 = vsub.f32 %v13364_v9, %v17483_v35  ;;  %v13417_v31 = vand.u32 4294901760, %v121_v0  ;;  %v5681_v55 = vand.u32 4294901760, %v5680_v50  ;;  %v5692_v35 = vsub.f32 %v13375_v63, %v17486_v4  ;;  %v101_v4 = vld [vmem:[#allocation5 + $0xb8] sm:$0xff] }
 0x2e0   :  { %17481 = vst [vmem:[#allocation298_spill] sm:$0xff] %v13403_v19  ;;  %5611 = vmatpush.msra.mxu0 %v13338_v8  ;;  %5789 = vmatpush.msra.mxu2 %v13352_v38  ;;  %v116_v19 = vld [vmem:[#allocation5 + $0x130] sm:$0xff]  ;;  %v5704_v33 = vsub.f32 %v13415_v16, %v17489_v52 }
 0x2e1   :  { %17482 = vst [vmem:[#allocation299_spill] sm:$0xff] %v13407_v56  ;;  %5858 = vmatpush.msra.mxu3 %v13338_v8  ;;  %5450 = vmatpush.msrb.mxu1 %v13139_v42  ;;  %v13421_v56 = vpop.f32.mrf.mxu3  ;;  %v17485_v42 = vld [vmem:[#allocation44_spill] sm:$0xff]  ;;  %v13435_v28 = vand.u32 4294901760, %v116_v19  ;;  %v13438_v50 = vsub.f32 %v121_v0, %v13417_v31 }
 0x2e2   :  { %5613 = vmatpush.msra.mxu0 %v13354_v36  ;;  %5792 = vmatpush.msra.mxu2 %v13364_v9  ;;  %17484 = vst [vmem:[#allocation300_spill] sm:$0xff] %v13421_v56  ;;  %v5687_v56 = vand.u32 4294901760, %v5686_v61  ;;  %v17488_v61 = vand.u32 4294901760, %v13396_v24 }
 0x2e3   :  { %5860 = vmatpush.msra.mxu3 %v13354_v36  ;;  %5405 = vmatmul.f32.gmra.mxu0 %v17485_v42 }
 0x2e4   :  { %5454 = vmatmul.f32.vlgmr.msrb.gmra.mxu1 %v17487_v44  ;;  %5594 = vmatmul.f32.gmra.mxu3 %v17449_v62  ;;  %v5698_v60 = vsub.f32 %v13396_v24, %v17488_v61 }
 0x2e5   :  { %5676 = vmatpush.msra.mxu1 %v5675_v41  ;;  %5615 = vmatpush.msra.mxu0 %v13372_v10  ;;  %v5693_v41 = vand.u32 4294901760, %v5692_v35  ;;  %v13459_v35 = vand.u32 4294901760, %v106_v49 }
 0x2e6   :  { %5795 = vmatpush.msra.mxu2 %v13375_v63  ;;  %5862 = vmatpush.msra.mxu3 %v13372_v10  ;;  %v5699_v52 = vand.u32 4294901760, %v5698_v60  ;;  %v17496_v60 = vand.u32 4294901760, %v13438_v50 }
 0x2e7   :  { %5545 = vmatmul.f32.gmra.mxu2 %v17449_v62  ;;  %5682 = vmatpush.msra.mxu1 %v5681_v55  ;;  %v13457_v55 = vsub.f32 %v116_v19, %v13435_v28  ;;  %v17493_v19 = vand.u32 4294901760, %v13429_v11 }
 0x2e8   :  { %5617 = vmatpush.msra.mxu0 %v13385_v22  ;;  %5798 = vmatpush.msra.mxu2 %v13396_v24  ;;  %v13462_v0 = vpop.f32.mrf.mxu0  ;;  %v13471_v27 = vpop.f32.mrf.mxu2 }
 0x2e9   :  { %5864 = vmatpush.msra.mxu3 %v13385_v22  ;;  %5688 = vmatpush.msra.mxu1 %v5687_v56  ;;  %17490 = vst [vmem:[#allocation301_spill] sm:$0xff] %v13462_v0  ;;  %v13464_v57 = vpop.f32.mrf.mxu1  ;;  %v13469_v56 = vsub.f32 %v111_v53, %v13443_v39  ;;  %v5710_v61 = vsub.f32 %v13429_v11, %v17493_v19  ;;  %v13477_v0 = vand.u32 4294901760, %v101_v4  ;;  %v13481_v47 = vpop.f32.mrf.mxu3  ;;  %v17495_v53 = vld [vmem:[#allocation55_spill] sm:$0xff]  ;;  %v17498_v34 = vand.u32 4294901760, %v13457_v55 }
 0x2ea   :  { %17491 = vst [vmem:[#allocation302_spill] sm:$0xff] %v13464_v57  ;;  %5619 = vmatpush.msra.mxu0 %v13398_v6  ;;  %5801 = vmatpush.msra.mxu2 %v13415_v16  ;;  %v96_v57 = vld [vmem:[#allocation5 + $0x90] sm:$0xff]  ;;  %v13489_v19 = vsub.f32 %v106_v49, %v13459_v35  ;;  %v13503_v49 = vand.u32 4294901760, %v91_v15 }
 0x2eb   :  { %17492 = vst [vmem:[#allocation303_spill] sm:$0xff] %v13471_v27  ;;  %5866 = vmatpush.msra.mxu3 %v13398_v6  ;;  %5694 = vmatpush.msra.mxu1 %v5693_v41  ;;  %v5705_v27 = vand.u32 4294901760, %v5704_v33  ;;  %v5716_v41 = vsub.f32 %v13438_v50, %v17496_v60  ;;  %v5711_v33 = vand.u32 4294901760, %v5710_v61  ;;  %v13499_v60 = vsub.f32 %v101_v4, %v13477_v0 }
 0x2ec   :  { %5621 = vmatpush.msra.mxu0 %v13417_v31  ;;  %5804 = vmatpush.msra.mxu2 %v13429_v11  ;;  %17494 = vst [vmem:[#allocation304_spill] sm:$0xff] %v13481_v47  ;;  %v13494_v47 = vand.u32 4294901760, %v96_v57  ;;  %v5722_v61 = vsub.f32 %v13457_v55, %v17498_v34  ;;  %v17499_v13 = vand.u32 4294901760, %v13469_v56  ;;  %v13524_v4 = vand.u32 4294901760, %v231_v59 }
 0x2ed   :  { %5868 = vmatpush.msra.mxu3 %v13417_v31  ;;  %5410 = vmatmul.f32.gmra.mxu0 %v17495_v53  ;;  %v81_v53 = vld [vmem:[#allocation5 + $0x18] sm:$0xff] }
 0x2ee   :  { %5460 = vmatmul.f32.gmra.mxu1 %v17497_v7  ;;  %5598 = vmatmul.f32.gmra.mxu3 %v17459_v5  ;;  %v5728_v30 = vsub.f32 %v13469_v56, %v17499_v13  ;;  %v13518_v7 = vsub.f32 %v96_v57, %v13494_v47  ;;  %v13533_v13 = vsub.f32 %v91_v15, %v13503_v49  ;;  %v5723_v34 = vand.u32 4294901760, %v5722_v61  ;;  %v17508_v15 = vld [vmem:[#allocation87_spill] sm:$0xff] }
 0x2ef   :  { %5700 = vmatpush.msra.mxu1 %v5699_v52  ;;  %5623 = vmatpush.msra.mxu0 %v13435_v28  ;;  %v5717_v52 = vand.u32 4294901760, %v5716_v41  ;;  %v13521_v41 = vand.u32 4294901760, %v86_v1  ;;  %v13536_v57 = vsub.f32 %v236_v18, %v13505_v14  ;;  %v13544_v17 = vand.u32 4294901760, %v81_v53 }
 0x2f0   :  { %5807 = vmatpush.msra.mxu2 %v13438_v50  ;;  %5870 = vmatpush.msra.mxu3 %v13435_v28  ;;  %v5729_v18 = vand.u32 4294901760, %v5728_v30  ;;  %v17507_v61 = vand.u32 4294901760, %v13499_v60  ;;  %v13562_v48 = vsub.f32 %v231_v59, %v13524_v4  ;;  %v216_v30 = vld [vmem:[#allocation5 + $0x450] sm:$0xff]  ;;  %v17512_v43 = vand.u32 4294901760, %v13533_v13 }
 0x2f1   :  { %5549 = vmatmul.f32.gmra.mxu2 %v17459_v5  ;;  %5706 = vmatpush.msra.mxu1 %v5705_v27  ;;  %v226_v27 = vld [vmem:[#allocation5 + $0x4a0] sm:$0xff]  ;;  %17504 = vst [vmem:[#allocation308_spill] sm:$0xff] %v13544_v17  ;;  %v13559_v5 = vsub.f32 %v86_v1, %v13521_v41  ;;  %v13572_v1 = vsub.f32 %v81_v53, %v13544_v17  ;;  %v13582_v32 = vand.u32 4294901760, %v216_v30 }
 0x2f2   :  { %5625 = vmatpush.msra.mxu0 %v13443_v39  ;;  %5810 = vmatpush.msra.mxu2 %v13457_v55  ;;  %v13526_v44 = vpop.f32.mrf.mxu0  ;;  %v13538_v25 = vpop.f32.mrf.mxu2  ;;  %v13546_v37 = vand.u32 4294901760, %v226_v27 }
 0x2f3   :  { %5872 = vmatpush.msra.mxu3 %v13443_v39  ;;  %5712 = vmatpush.msra.mxu1 %v5711_v33  ;;  %17500 = vst [vmem:[#allocation305_spill] sm:$0xff] %v13526_v44  ;;  %v13528_v42 = vpop.f32.mrf.mxu1  ;;  %v221_v33 = vld [vmem:[#allocation5 + $0x478] sm:$0xff]  ;;  %v17503_v44 = vand.u32 4294901760, %v13489_v19  ;;  %v17521_v29 = vand.u32 4294901760, %v13572_v1 }
 0x2f4   :  { %17501 = vst [vmem:[#allocation306_spill] sm:$0xff] %v13528_v42  ;;  %5627 = vmatpush.msra.mxu0 %v13459_v35  ;;  %5813 = vmatpush.msra.mxu2 %v13469_v56  ;;  %v13564_v62 = vand.u32 4294901760, %v221_v33  ;;  %v13575_v59 = vsub.f32 %v226_v27, %v13546_v37 }
 0x2f5   :  { %17502 = vst [vmem:[#allocation307_spill] sm:$0xff] %v13538_v25  ;;  %5874 = vmatpush.msra.mxu3 %v13459_v35  ;;  %5718 = vmatpush.msra.mxu1 %v5717_v52  ;;  %v5734_v42 = vsub.f32 %v13489_v19, %v17503_v44  ;;  %v13551_v25 = vpop.f32.mrf.mxu3  ;;  %v17506_v52 = vld [vmem:[#allocation92_spill] sm:$0xff]  ;;  %v5740_v44 = vsub.f32 %v13499_v60, %v17507_v61 }
 0x2f6   :  { %5629 = vmatpush.msra.mxu0 %v13477_v0  ;;  %5816 = vmatpush.msra.mxu2 %v13489_v19  ;;  %17505 = vst [vmem:[#allocation309_spill] sm:$0xff] %v13551_v25  ;;  %v5764_v21 = vsub.f32 %v13572_v1, %v17521_v29 }
 0x2f7   :  { %5876 = vmatpush.msra.mxu3 %v13477_v0  ;;  %5415 = vmatmul.f32.gmra.mxu0 %v17506_v52  ;;  %v5735_v61 = vand.u32 4294901760, %v5734_v42  ;;  %17509 = vst [vmem:[#allocation310_spill] sm:$0xff] %v13575_v59  ;;  %v5741_v42 = vand.u32 4294901760, %v5740_v44  ;;  %v13588_v52 = vsub.f32 %v221_v33, %v13564_v62  ;;  %v206_v44 = vld [vmem:[#allocation5 + $0x400] sm:$0xff]  ;;  %v17516_v33 = vand.u32 4294901760, %v13562_v48 }
 0x2f8   :  { %5466 = vmatmul.f32.gmra.mxu1 %v17508_v15  ;;  %5602 = vmatmul.f32.gmra.mxu3 %v17469_v51  ;;  %v17510_v15 = vand.u32 4294901760, %v13518_v7 }
 0x2f9   :  { %5724 = vmatpush.msra.mxu1 %v5723_v34  ;;  %5631 = vmatpush.msra.mxu0 %v13494_v47  ;;  %v211_v34 = vld [vmem:[#allocation5 + $0x428] sm:$0xff]  ;;  %v6114_v27 = vsub.f32 %v13562_v48, %v17516_v33  ;;  %v17520_v33 = vand.u32 4294901760, %v13575_v59  ;;  %v17524_v3 = vand.u32 4294901760, %v13588_v52 }
 0x2fa   :  { %5819 = vmatpush.msra.mxu2 %v13499_v60  ;;  %5878 = vmatpush.msra.mxu3 %v13494_v47  ;;  %v5746_v25 = vsub.f32 %v13518_v7, %v17510_v15  ;;  %v17511_v15 = vand.u32 4294901760, %v13536_v57  ;;  %v13601_v53 = vand.u32 4294901760, %v211_v34 }
 0x2fb   :  { %5553 = vmatmul.f32.gmra.mxu2 %v17469_v51  ;;  %5730 = vmatpush.msra.mxu1 %v5729_v18  ;;  %v5752_v18 = vsub.f32 %v13533_v13, %v17512_v43  ;;  %v13610_v43 = vsub.f32 %v216_v30, %v13582_v32  ;;  %v6126_v29 = vsub.f32 %v13588_v52, %v17524_v3  ;;  %v17527_v3 = vand.u32 4294901760, %v13352_v38 }
 0x2fc   :  { %5633 = vmatpush.msra.mxu0 %v13503_v49  ;;  %5822 = vmatpush.msra.mxu2 %v13518_v7  ;;  %v6108_v54 = vsub.f32 %v13536_v57, %v17511_v15  ;;  %v13603_v51 = vpop.f32.mrf.mxu0  ;;  %v5747_v15 = vand.u32 4294901760, %v5746_v25  ;;  %v13622_v25 = vand.u32 4294901760, %v206_v44  ;;  %v13637_v20 = vsub.f32 %v211_v34, %v13601_v53 }
 0x2fd   :  { %5880 = vmatpush.msra.mxu3 %v13503_v49  ;;  %5736 = vmatpush.msra.mxu1 %v5735_v61  ;;  %17513 = vst [vmem:[#allocation311_spill] sm:$0xff] %v13603_v51  ;;  %v13605_v12 = vpop.f32.mrf.mxu1  ;;  %v13612_v61 = vpop.f32.mrf.mxu2  ;;  %v17531_v38 = vand.u32 4294901760, %v13364_v9  ;;  %v17533_v9 = vand.u32 4294901760, %v13375_v63  ;;  %v17537_v63 = vld [vmem:[#allocation15_spill] sm:$0xff] }
 0x2fe   :  { %17514 = vst [vmem:[#allocation312_spill] sm:$0xff] %v13605_v12  ;;  %5635 = vmatpush.msra.mxu0 %v13521_v41  ;;  %5825 = vmatpush.msra.mxu2 %v13533_v13  ;;  %v17517_v12 = vand.u32 4294901760, %v13559_v5  ;;  %v6109_v30 = vand.u32 4294901760, %v6108_v54  ;;  %v13626_v40 = vpop.f32.mrf.mxu3  ;;  %v196_v54 = vld [vmem:[#allocation5 + $0x3b0] sm:$0xff]  ;;  %v13649_v34 = vsub.f32 %v206_v44, %v13622_v25  ;;  %v186_v44 = vld [vmem:[#allocation5 + $0x360] sm:$0xff] }
 0x2ff   :  { %17515 = vst [vmem:[#allocation313_spill] sm:$0xff] %v13612_v61  ;;  %5882 = vmatpush.msra.mxu3 %v13521_v41  ;;  %5742 = vmatpush.msra.mxu1 %v5741_v42  ;;  %v5753_v61 = vand.u32 4294901760, %v5752_v18  ;;  %v17519_v42 = vld [vmem:[#allocation95_spill] sm:$0xff]  ;;  %v17522_v18 = vld [vmem:[#allocation25_spill] sm:$0xff] }
 0x300   :  { %v5758_v51 = vsub.f32 %v13559_v5, %v17517_v12  ;;  %5637 = vmatpush.msra.mxu0 %v13544_v17  ;;  %5828 = vmatpush.msra.mxu2 %v13559_v5  ;;  %17518 = vst [vmem:[#allocation314_spill] sm:$0xff] %v13626_v40  ;;  %v6120_v12 = vsub.f32 %v13575_v59, %v17520_v33  ;;  %v6115_v33 = vand.u32 4294901760, %v6114_v27  ;;  %v191_v40 = vld [vmem:[#allocation5 + $0x388] sm:$0xff]  ;;  %v5765_v27 = vand.u32 4294901760, %v5764_v21 }
 0x301   :  { %5884 = vmatpush.msra.mxu3 %v13544_v17  ;;  %5472 = vmatmul.f32.gmra.mxu1 %v17519_v42  ;;  %v17523_v42 = vld [vmem:[#allocation20_spill] sm:$0xff]  ;;  %v17525_v17 = vand.u32 4294901760, %v13336_v46  ;;  %v13658_v59 = vsub.f32 %v201_v45, %v13639_v26  ;;  %v13685_v21 = vand.u32 4294901760, %v186_v44 }
 0x302   :  { %5643 = vmatmul.f32.vlgmr.msra.gmra.mxu0 %v17522_v18  ;;  %5748 = vmatpush.msra.mxu1 %v5747_v15  ;;  %v5759_v58 = vand.u32 4294901760, %v5758_v51  ;;  %v13653_v15 = vand.u32 4294901760, %v196_v54  ;;  %v6121_v18 = vand.u32 4294901760, %v6120_v12  ;;  %v16638_v51 = vand.u32 4294901760, %v13637_v20 }
 0x303   :  { %5888 = vmatmul.f32.vlgmr.msra.gmra.mxu3 %v17523_v42  ;;  %5831 = vmatpush.msra.mxu2 %v13572_v1  ;;  %v17526_v42 = vld [vmem:[#allocation17_spill] sm:$0xff] }
 0x304   :  { %5913 = vmatpush.msrb.mxu0 %v17525_v17  ;;  %6110 = vmatpush.msrb.mxu3 %v6109_v30  ;;  %v17528_v17 = vand.u32 4294901760, %v13610_v43  ;;  %v13667_v30 = vand.u32 4294901760, %v191_v40 }
 0x305   :  { %5754 = vmatpush.msra.mxu1 %v5753_v61  ;;  %5834 = vmatmul.f32.vlgmr.msra.gmra.mxu2 %v17526_v42  ;;  %v6127_v61 = vand.u32 4294901760, %v6126_v29 }
 0x306   :  { %5917 = vmatpush.msrb.mxu0 %v17527_v3  ;;  %6041 = vmatpush.msrb.mxu2 %v13505_v14  ;;  %v6132_v46 = vsub.f32 %v13610_v43, %v17528_v17  ;;  %v13669_v12 = vpop.f32.mrf.mxu1  ;;  %v13677_v3 = vsub.f32 %v196_v54, %v13653_v15  ;;  %v181_v17 = vld [vmem:[#allocation5 + $0x338] sm:$0xff] }
 0x307   :  { %6116 = vmatpush.msrb.mxu3 %v6115_v33  ;;  %5760 = vmatpush.msra.mxu1 %v5759_v58  ;;  %17529 = vst [vmem:[#allocation315_spill] sm:$0xff] %v13669_v12  ;;  %v13671_v45 = vpop.f32.mrf.mxu0  ;;  %v13679_v33 = vpop.f32.mrf.mxu2  ;;  %v6138_v58 = vsub.f32 %v13637_v20, %v16638_v51  ;;  %v13697_v51 = vsub.f32 %v191_v40, %v13667_v30  ;;  %v13699_v29 = vand.u32 4294901760, %v181_v17  ;;  %v176_v12 = vld [vmem:[#allocation5 + $0x310] sm:$0xff] }
 0x308   :  { %17530 = vst [vmem:[#allocation316_spill] sm:$0xff] %v13671_v45  ;;  %5921 = vmatpush.msrb.mxu0 %v17531_v38  ;;  %6043 = vmatpush.msrb.mxu2 %v13524_v4  ;;  %v6133_v54 = vand.u32 4294901760, %v6132_v46  ;;  %v13690_v38 = vpop.f32.mrf.mxu3  ;;  %v13711_v45 = vsub.f32 %v186_v44, %v13685_v21  ;;  %v17541_v46 = vld [vmem:[#allocation24_spill] sm:$0xff]  ;;  %v17543_v44 = vand.u32 4294901760, %v13677_v3 }
 0x309   :  { %17532 = vst [vmem:[#allocation317_spill] sm:$0xff] %v13679_v33  ;;  %6122 = vmatpush.msrb.mxu3 %v6121_v18  ;;  %5766 = vmatpush.msra.mxu1 %v5765_v27  ;;  %v17535_v33 = vld [vmem:[#allocation29_spill] sm:$0xff]  ;;  %v17536_v18 = vand.u32 4294901760, %v13649_v34 }
 0x30a   :  { %5925 = vmatpush.msrb.mxu0 %v17533_v9  ;;  %6045 = vmatpush.msrb.mxu2 %v13546_v37  ;;  %17534 = vst [vmem:[#allocation318_spill] sm:$0xff] %v13690_v38  ;;  %v17538_v9 = vld [vmem:[#allocation26_spill] sm:$0xff]  ;;  %v6139_v38 = vand.u32 4294901760, %v6138_v58  ;;  %v13720_v58 = vsub.f32 %v181_v17, %v13699_v29 }
 0x30b   :  { %6128 = vmatpush.msrb.mxu3 %v6127_v61  ;;  %5651 = vmatmul.f32.gmra.mxu0 %v17535_v33  ;;  %v6144_v27 = vsub.f32 %v13649_v34, %v17536_v18  ;;  %v17539_v61 = vand.u32 4294901760, %v13396_v24  ;;  %v17540_v18 = vand.u32 4294901760, %v13658_v59  ;;  %v13714_v33 = vand.u32 4294901760, %v176_v12 }
 0x30c   :  { %5768 = vmatmul.f32.vlgmr.msra.gmra.mxu1 %v17537_v63  ;;  %5894 = vmatmul.f32.gmra.mxu3 %v17538_v9  ;;  %v171_v9 = vld [vmem:[#allocation5 + $0x2e8] sm:$0xff] }
 0x30d   :  { %5992 = vmatpush.msrb.mxu1 %v13321_v23  ;;  %5929 = vmatpush.msrb.mxu0 %v17539_v61  ;;  %v6150_v40 = vsub.f32 %v13658_v59, %v17540_v18  ;;  %v6145_v23 = vand.u32 4294901760, %v6144_v27  ;;  %v17542_v61 = vand.u32 4294901760, %v13415_v16  ;;  %v166_v18 = vld [vmem:[#allocation5 + $0x2c0] sm:$0xff]  ;;  %v13730_v24 = vand.u32 4294901760, %v171_v9 }
 0x30e   :  { %6047 = vmatpush.msrb.mxu2 %v13564_v62  ;;  %6134 = vmatpush.msrb.mxu3 %v6133_v54  ;;  %v6156_v54 = vsub.f32 %v13677_v3, %v17543_v44  ;;  %v17546_v16 = vand.u32 4294901760, %v13429_v11  ;;  %v17549_v11 = vand.u32 4294901760, %v13438_v50  ;;  %v17554_v50 = vld [vmem:[#allocation30_spill] sm:$0xff] }
 0x30f   :  { %5839 = vmatmul.f32.gmra.mxu2 %v17541_v46  ;;  %5994 = vmatpush.msrb.mxu1 %v13328_v2  ;;  %v6151_v2 = vand.u32 4294901760, %v6150_v40 }
 0x310   :  { %5933 = vmatpush.msrb.mxu0 %v17542_v61  ;;  %6049 = vmatpush.msrb.mxu2 %v13582_v32  ;;  %v13732_v17 = vpop.f32.mrf.mxu0  ;;  %v13740_v61 = vsub.f32 %v176_v12, %v13714_v33  ;;  %v13742_v44 = vpop.f32.mrf.mxu2  ;;  %v6157_v12 = vand.u32 4294901760, %v6156_v54 }
 0x311   :  { %6140 = vmatpush.msrb.mxu3 %v6139_v38  ;;  %5996 = vmatpush.msrb.mxu1 %v13338_v8  ;;  %17544 = vst [vmem:[#allocation319_spill] sm:$0xff] %v13732_v17  ;;  %v13734_v46 = vpop.f32.mrf.mxu1  ;;  %v161_v38 = vld [vmem:[#allocation5 + $0x298] sm:$0xff]  ;;  %v17548_v8 = vand.u32 4294901760, %v13697_v51  ;;  %v13749_v17 = vand.u32 4294901760, %v166_v18 }
 0x312   :  { %17545 = vst [vmem:[#allocation320_spill] sm:$0xff] %v13734_v46  ;;  %5937 = vmatpush.msrb.mxu0 %v17546_v16  ;;  %6051 = vmatpush.msrb.mxu2 %v13601_v53  ;;  %v13754_v16 = vpop.f32.mrf.mxu3  ;;  %v13763_v27 = vand.u32 4294901760, %v161_v38  ;;  %v17553_v46 = vld [vmem:[#allocation22_spill] sm:$0xff] }
 0x313   :  { %17547 = vst [vmem:[#allocation321_spill] sm:$0xff] %v13742_v44  ;;  %6146 = vmatpush.msrb.mxu3 %v6145_v23  ;;  %5998 = vmatpush.msrb.mxu1 %v13354_v36  ;;  %v6162_v40 = vsub.f32 %v13697_v51, %v17548_v8  ;;  %v17551_v23 = vld [vmem:[#allocation33_spill] sm:$0xff]  ;;  %v17552_v36 = vand.u32 4294901760, %v13711_v45  ;;  %v13761_v8 = vsub.f32 %v171_v9, %v13730_v24 }
 0x314   :  { %5941 = vmatpush.msrb.mxu0 %v17549_v11  ;;  %6053 = vmatpush.msrb.mxu2 %v13622_v25  ;;  %17550 = vst [vmem:[#allocation322_spill] sm:$0xff] %v13754_v16  ;;  %v17556_v16 = vand.u32 4294901760, %v13720_v58  ;;  %v13775_v9 = vsub.f32 %v166_v18, %v13749_v17  ;;  %v17559_v18 = vand.u32 4294901760, %v13740_v61 }
 0x315   :  { %6152 = vmatpush.msrb.mxu3 %v6151_v2  ;;  %5659 = vmatmul.f32.gmra.mxu0 %v17551_v23  ;;  %v6168_v44 = vsub.f32 %v13711_v45, %v17552_v36  ;;  %v17555_v2 = vand.u32 4294901760, %v13457_v55  ;;  %v6163_v11 = vand.u32 4294901760, %v6162_v40  ;;  %v17557_v23 = vld [vmem:[#allocation28_spill] sm:$0xff]  ;;  %v13782_v55 = vsub.f32 %v161_v38, %v13763_v27 }
 0x316   :  { %5772 = vmatmul.f32.gmra.mxu1 %v17553_v46  ;;  %5900 = vmatmul.f32.gmra.mxu3 %v17554_v50  ;;  %v6174_v36 = vsub.f32 %v13720_v58, %v17556_v16  ;;  %v17558_v40 = vand.u32 4294901760, %v13469_v56  ;;  %v6180_v16 = vsub.f32 %v13740_v61, %v17559_v18  ;;  %v17562_v38 = vand.u32 4294901760, %v13489_v19  ;;  %v17566_v18 = vld [vmem:[#allocation36_spill] sm:$0xff] }
 0x317   :  { %6000 = vmatpush.msrb.mxu1 %v13372_v10  ;;  %5945 = vmatpush.msrb.mxu0 %v17555_v2  ;;  %v6169_v54 = vand.u32 4294901760, %v6168_v44  ;;  %v16640_v10 = vand.u32 4294901760, %v13761_v8 }
 0x318   :  { %6055 = vmatpush.msrb.mxu2 %v13639_v26  ;;  %6158 = vmatpush.msrb.mxu3 %v6157_v12  ;;  %v6175_v12 = vand.u32 4294901760, %v6174_v36  ;;  %v17564_v36 = vand.u32 4294901760, %v13499_v60  ;;  %v6181_v19 = vand.u32 4294901760, %v6180_v16  ;;  %v17569_v60 = vand.u32 4294901760, %v13518_v7 }
 0x319   :  { %5844 = vmatmul.f32.gmra.mxu2 %v17557_v23  ;;  %6002 = vmatpush.msrb.mxu1 %v13385_v22  ;;  %v16639_v22 = vand.u32 4294901760, %v13775_v9 }
 0x31a   :  { %5949 = vmatpush.msrb.mxu0 %v17558_v40  ;;  %6057 = vmatpush.msrb.mxu2 %v13653_v15  ;;  %v13792_v44 = vpop.f32.mrf.mxu0  ;;  %v13799_v56 = vpop.f32.mrf.mxu2 }
 0x31b   :  { %6164 = vmatpush.msrb.mxu3 %v6163_v11  ;;  %6004 = vmatpush.msrb.mxu1 %v13398_v6  ;;  %17560 = vst [vmem:[#allocation323_spill] sm:$0xff] %v13792_v44  ;;  %v13794_v2 = vpop.f32.mrf.mxu1  ;;  %v6186_v6 = vsub.f32 %v13761_v8, %v16640_v10  ;;  %v6197_v11 = vand.u32 4294901760, %v13782_v55  ;;  %v13809_v40 = vpop.f32.mrf.mxu3  ;;  %v17571_v10 = vand.u32 4294901760, %v13533_v13  ;;  %v17576_v13 = vand.u32 4294901760, %v13572_v1 }
 0x31c   :  { %17561 = vst [vmem:[#allocation324_spill] sm:$0xff] %v13794_v2  ;;  %5953 = vmatpush.msrb.mxu0 %v17562_v38  ;;  %6059 = vmatpush.msrb.mxu2 %v13667_v30  ;;  %v17568_v38 = vld [vmem:[#allocation34_spill] sm:$0xff]  ;;  %v17581_v1 = vand.u32 4294901760, %v13536_v57 }
 0x31d   :  { %17563 = vst [vmem:[#allocation325_spill] sm:$0xff] %v13799_v56  ;;  %6170 = vmatpush.msrb.mxu3 %v6169_v54  ;;  %6006 = vmatpush.msrb.mxu1 %v13417_v31  ;;  %v6192_v31 = vsub.f32 %v13775_v9, %v16639_v22  ;;  %v17567_v54 = vld [vmem:[#allocation27_spill] sm:$0xff]  ;;  %v6198_v16 = vsub.f32 %v13782_v55, %v6197_v11  ;;  %v17638_v56 = vld [vmem:[#allocation13_spill] sm:$0xff] }
 0x31e   :  { %5957 = vmatpush.msrb.mxu0 %v17564_v36  ;;  %6061 = vmatpush.msrb.mxu2 %v13685_v21  ;;  %17565 = vst [vmem:[#allocation326_spill] sm:$0xff] %v13809_v40  ;;  %v6187_v36 = vand.u32 4294901760, %v6186_v6 }
 0x31f   :  { %6176 = vmatpush.msrb.mxu3 %v6175_v12  ;;  %5667 = vmatmul.f32.gmra.mxu0 %v17566_v18  ;;  %v17570_v12 = vld [vmem:[#allocation32_spill] sm:$0xff]  ;;  %v6193_v22 = vand.u32 4294901760, %v6192_v31  ;;  %v6199_v7 = vand.u32 4294901760, %v6198_v16  ;;  %v17584_v31 = vld [vmem:[#allocation310_spill] sm:$0xff]  ;;  %v17591_v16 = vand.u32 4294901760, %v13588_v52 }
 0x320   :  { %5776 = vmatmul.f32.gmra.mxu1 %v17567_v54  ;;  %5906 = vmatmul.f32.gmra.mxu3 %v17568_v38  ;;  %v361_v38 = vld [vmem:[#allocation5 + $0x8d8] sm:$0xff] }
 0x321   :  { %6008 = vmatpush.msrb.mxu1 %v13435_v28  ;;  %5961 = vmatpush.msrb.mxu0 %v17569_v60  ;;  %v17585_v60 = vand.u32 4294901760, %v13562_v48 }
 0x322   :  { %6063 = vmatpush.msrb.mxu2 %v13699_v29  ;;  %6182 = vmatpush.msrb.mxu3 %v6181_v19  ;;  %v17574_v19 = vand.u32 4294901760, %v13559_v5  ;;  %v17579_v5 = vld [vmem:[#allocation35_spill] sm:$0xff] }
 0x323   :  { %5849 = vmatmul.f32.gmra.mxu2 %v17570_v12  ;;  %6010 = vmatpush.msrb.mxu1 %v13443_v39 }
 0x324   :  { %5965 = vmatpush.msrb.mxu0 %v17571_v10  ;;  %6065 = vmatpush.msrb.mxu2 %v13714_v33  ;;  %v13830_v28 = vpop.f32.mrf.mxu0  ;;  %v13837_v39 = vpop.f32.mrf.mxu2  ;;  %v17578_v10 = vld [vmem:[#allocation31_spill] sm:$0xff] }
 0x325   :  { %6188 = vmatpush.msrb.mxu3 %v6187_v36  ;;  %6012 = vmatpush.msrb.mxu1 %v13459_v35  ;;  %17572 = vst [vmem:[#allocation327_spill] sm:$0xff] %v13830_v28  ;;  %v13832_v6 = vpop.f32.mrf.mxu1  ;;  %v13843_v35 = vpop.f32.mrf.mxu3  ;;  %v17587_v36 = vld [vmem:[#allocation308_spill] sm:$0xff]  ;;  %v396_v28 = vld [vmem:[#allocation5 + $0x9f0] sm:$0xff] }
 0x326   :  { %17573 = vst [vmem:[#allocation328_spill] sm:$0xff] %v13832_v6  ;;  %5969 = vmatpush.msrb.mxu0 %v17574_v19  ;;  %6067 = vmatpush.msrb.mxu2 %v13730_v24  ;;  %v17593_v19 = vand.u32 4294901760, %v13610_v43  ;;  %v14129_v6 = vand.u32 4294901760, %v396_v28 }
 0x327   :  { %17575 = vst [vmem:[#allocation329_spill] sm:$0xff] %v13837_v39  ;;  %6194 = vmatpush.msrb.mxu3 %v6193_v22  ;;  %6014 = vmatpush.msrb.mxu1 %v13477_v0  ;;  %v17580_v0 = vld [vmem:[#allocation40_spill] sm:$0xff]  ;;  %v251_v39 = vld [vmem:[#allocation5 + $0x568] sm:$0xff] }
 0x328   :  { %5973 = vmatpush.msrb.mxu0 %v17576_v13  ;;  %6069 = vmatpush.msrb.mxu2 %v13749_v17  ;;  %17577 = vst [vmem:[#allocation330_spill] sm:$0xff] %v13843_v35 }
 0x329   :  { %6200 = vmatpush.msrb.mxu3 %v6199_v7  ;;  %5780 = vmatmul.f32.gmra.mxu1 %v17578_v10  ;;  %v17592_v7 = vld [vmem:[#allocation21_spill] sm:$0xff] }
 0x32a   :  { %5975 = vmatmul.f32.vlgmr.msrb.gmra.mxu0 %v17537_v63  ;;  %6016 = vmatpush.msrb.mxu1 %v13494_v47 }
 0x32b   :  { %6202 = vmatmul.f32.vlgmr.msrb.gmra.mxu3 %v17579_v5  ;;  %6071 = vmatpush.msrb.mxu2 %v13763_v27 }
 0x32c   :  { %6220 = vmatpush.msra.mxu0 %v13536_v57  ;;  %6426 = vmatpush.msra.mxu3 %v13505_v14  ;;  %v17588_v57 = vand.u32 4294901760, %v17584_v31 }
 0x32d   :  { %6018 = vmatpush.msrb.mxu1 %v13503_v49  ;;  %6077 = vmatmul.f32.vlgmr.msrb.gmra.mxu2 %v17580_v0 }
 0x32e   :  { %6223 = vmatpush.msra.mxu0 %v13562_v48  ;;  %6347 = vmatpush.msra.mxu2 %v17581_v1  ;;  %v13859_v47 = vpop.f32.mrf.mxu1  ;;  %v13866_v49 = vpop.f32.mrf.mxu2  ;;  %v17590_v48 = vld [vmem:[#allocation39_spill] sm:$0xff] }
 0x32f   :  { %6428 = vmatpush.msra.mxu3 %v13524_v4  ;;  %6020 = vmatpush.msrb.mxu1 %v13521_v41  ;;  %17582 = vst [vmem:[#allocation331_spill] sm:$0xff] %v13859_v47  ;;  %v13861_v22 = vpop.f32.mrf.mxu0  ;;  %v13873_v41 = vpop.f32.mrf.mxu3 }
 0x330   :  { %17583 = vst [vmem:[#allocation332_spill] sm:$0xff] %v13861_v22  ;;  %6226 = vmatpush.msra.mxu0 %v17584_v31  ;;  %6351 = vmatpush.msra.mxu2 %v17585_v60  ;;  %v391_v22 = vld [vmem:[#allocation5 + $0x9c8] sm:$0xff] }
 0x331   :  { %17586 = vst [vmem:[#allocation310_spill] sm:$0xff] %v13866_v49  ;;  %6430 = vmatpush.msra.mxu3 %v13546_v37  ;;  %6022 = vmatpush.msrb.mxu1 %v17587_v36  ;;  %v311_v36 = vld [vmem:[#allocation5 + $0x748] sm:$0xff] }
 0x332   :  { %6229 = vmatpush.msra.mxu0 %v13588_v52  ;;  %6355 = vmatpush.msra.mxu2 %v17588_v57  ;;  %17589 = vst [vmem:[#allocation308_spill] sm:$0xff] %v13873_v41  ;;  %v17596_v52 = vand.u32 4294901760, %v13637_v20  ;;  %v306_v57 = vld [vmem:[#allocation5 + $0x720] sm:$0xff]  ;;  %v276_v41 = vld [vmem:[#allocation5 + $0x630] sm:$0xff] }
 0x333   :  { %6432 = vmatpush.msra.mxu3 %v13564_v62  ;;  %5979 = vmatmul.f32.gmra.mxu0 %v17553_v46  ;;  %v14059_v49 = vand.u32 4294901760, %v276_v41 }
 0x334   :  { %6024 = vmatmul.f32.vlgmr.msrb.gmra.mxu1 %v17537_v63  ;;  %6206 = vmatmul.f32.gmra.mxu3 %v17590_v48 }
 0x335   :  { %6288 = vmatpush.msra.mxu1 %v13505_v14  ;;  %6232 = vmatpush.msra.mxu0 %v13610_v43  ;;  %v17602_v43 = vld [vmem:[#allocation41_spill] sm:$0xff] }
 0x336   :  { %6359 = vmatpush.msra.mxu2 %v17591_v16  ;;  %6434 = vmatpush.msra.mxu3 %v13582_v32  ;;  %v17612_v16 = vld [vmem:[#allocation43_spill] sm:$0xff] }
 0x337   :  { %6085 = vmatmul.f32.gmra.mxu2 %v17592_v7  ;;  %6290 = vmatpush.msra.mxu1 %v13524_v4  ;;  %v17598_v4 = vand.u32 4294901760, %v13649_v34 }
 0x338   :  { %6235 = vmatpush.msra.mxu0 %v13637_v20  ;;  %6363 = vmatpush.msra.mxu2 %v17593_v19  ;;  %v13891_v14 = vpop.f32.mrf.mxu0  ;;  %v13898_v1 = vpop.f32.mrf.mxu2  ;;  %v17600_v20 = vld [vmem:[#allocation19_spill] sm:$0xff]  ;;  %v13952_v19 = vand.u32 4294901760, %v311_v36 }
 0x339   :  { %6436 = vmatpush.msra.mxu3 %v13601_v53  ;;  %6292 = vmatpush.msra.mxu1 %v13546_v37  ;;  %17594 = vst [vmem:[#allocation333_spill] sm:$0xff] %v13891_v14  ;;  %v13893_v13 = vpop.f32.mrf.mxu1  ;;  %v13905_v37 = vpop.f32.mrf.mxu3 }
 0x33a   :  { %17595 = vst [vmem:[#allocation334_spill] sm:$0xff] %v13893_v13  ;;  %6238 = vmatpush.msra.mxu0 %v13649_v34  ;;  %6367 = vmatpush.msra.mxu2 %v17596_v52  ;;  %v17603_v34 = vand.u32 4294901760, %v13677_v3  ;;  %v301_v52 = vld [vmem:[#allocation5 + $0x6f8] sm:$0xff] }
 0x33b   :  { %17597 = vst [vmem:[#allocation335_spill] sm:$0xff] %v13898_v1  ;;  %6438 = vmatpush.msra.mxu3 %v13622_v25  ;;  %6294 = vmatpush.msra.mxu1 %v13564_v62  ;;  %v17601_v62 = vand.u32 4294901760, %v13658_v59  ;;  %v246_v1 = vld [vmem:[#allocation5 + $0x540] sm:$0xff] }
 0x33c   :  { %6241 = vmatpush.msra.mxu0 %v13658_v59  ;;  %6371 = vmatpush.msra.mxu2 %v17598_v4  ;;  %17599 = vst [vmem:[#allocation336_spill] sm:$0xff] %v13905_v37  ;;  %v17606_v59 = vand.u32 4294901760, %v13697_v51  ;;  %v13962_v4 = vand.u32 4294901760, %v306_v57 }
 0x33d   :  { %6440 = vmatpush.msra.mxu3 %v13639_v26  ;;  %5983 = vmatmul.f32.gmra.mxu0 %v17567_v54 }
 0x33e   :  { %6028 = vmatmul.f32.gmra.mxu1 %v17553_v46  ;;  %6210 = vmatmul.f32.gmra.mxu3 %v17600_v20  ;;  %v14263_v46 = vand.u32 4294901760, %v361_v38 }
 0x33f   :  { %6296 = vmatpush.msra.mxu1 %v13582_v32  ;;  %6244 = vmatpush.msra.mxu0 %v13677_v3 }
 0x340   :  { %6375 = vmatpush.msra.mxu2 %v17601_v62  ;;  %6442 = vmatpush.msra.mxu3 %v13653_v15 }
 0x341   :  { %6093 = vmatmul.f32.gmra.mxu2 %v17602_v43  ;;  %6298 = vmatpush.msra.mxu1 %v13601_v53  ;;  %v17608_v53 = vand.u32 4294901760, %v13711_v45  ;;  %v13937_v3 = vpop.f32.mrf.mxu3 }
 0x342   :  { %6247 = vmatpush.msra.mxu0 %v13697_v51  ;;  %6379 = vmatpush.msra.mxu2 %v17603_v34  ;;  %v13923_v32 = vpop.f32.mrf.mxu0  ;;  %v13930_v60 = vpop.f32.mrf.mxu2  ;;  %17609 = vst [vmem:[#allocation340_spill] sm:$0xff] %v13937_v3  ;;  %v17610_v51 = vld [vmem:[#allocation23_spill] sm:$0xff]  ;;  %v17616_v34 = vand.u32 4294901760, %v13761_v8 }
 0x343   :  { %6444 = vmatpush.msra.mxu3 %v13667_v30  ;;  %6300 = vmatpush.msra.mxu1 %v13622_v25  ;;  %17604 = vst [vmem:[#allocation337_spill] sm:$0xff] %v13923_v32  ;;  %v13925_v31 = vpop.f32.mrf.mxu1  ;;  %v316_v25 = vld [vmem:[#allocation5 + $0x770] sm:$0xff]  ;;  %v271_v32 = vld [vmem:[#allocation5 + $0x608] sm:$0xff] }
 0x344   :  { %17605 = vst [vmem:[#allocation338_spill] sm:$0xff] %v13925_v31  ;;  %6250 = vmatpush.msra.mxu0 %v13711_v45  ;;  %6383 = vmatpush.msra.mxu2 %v17606_v59  ;;  %v17611_v45 = vand.u32 4294901760, %v13720_v58  ;;  %v13978_v59 = vand.u32 4294901760, %v301_v52 }
 0x345   :  { %17607 = vst [vmem:[#allocation339_spill] sm:$0xff] %v13930_v60  ;;  %6446 = vmatpush.msra.mxu3 %v13685_v21  ;;  %6302 = vmatpush.msra.mxu1 %v13639_v26  ;;  %v13945_v26 = vand.u32 4294901760, %v316_v25  ;;  %v266_v60 = vld [vmem:[#allocation5 + $0x5e0] sm:$0xff] }
 0x346   :  { %6253 = vmatpush.msra.mxu0 %v13720_v58  ;;  %6387 = vmatpush.msra.mxu2 %v17608_v53  ;;  %v17618_v53 = vand.u32 4294901760, %v13775_v9 }
 0x347   :  { %6448 = vmatpush.msra.mxu3 %v13699_v29  ;;  %5987 = vmatmul.f32.gmra.mxu0 %v17578_v10  ;;  %v13960_v58 = vsub.f32 %v316_v25, %v13945_v26  ;;  %v296_v25 = vld [vmem:[#allocation5 + $0x6d0] sm:$0xff] }
 0x348   :  { %6032 = vmatmul.f32.gmra.mxu1 %v17567_v54  ;;  %6214 = vmatmul.f32.gmra.mxu3 %v17610_v51 }
 0x349   :  { %6304 = vmatpush.msra.mxu1 %v13653_v15  ;;  %6256 = vmatpush.msra.mxu0 %v13740_v61  ;;  %v17613_v15 = vand.u32 4294901760, %v13740_v61 }
 0x34a   :  { %6391 = vmatpush.msra.mxu2 %v17611_v45  ;;  %6450 = vmatpush.msra.mxu3 %v13714_v33  ;;  %v13983_v45 = vpop.f32.mrf.mxu3 }
 0x34b   :  { %6101 = vmatmul.f32.gmra.mxu2 %v17612_v16  ;;  %6306 = vmatpush.msra.mxu1 %v13667_v30  ;;  %17619 = vst [vmem:[#allocation344_spill] sm:$0xff] %v13983_v45 }
 0x34c   :  { %6259 = vmatpush.msra.mxu0 %v13761_v8  ;;  %6395 = vmatpush.msra.mxu2 %v17613_v15  ;;  %v13964_v62 = vpop.f32.mrf.mxu0  ;;  %v13971_v61 = vpop.f32.mrf.mxu2  ;;  %v13988_v8 = vsub.f32 %v306_v57, %v13962_v4  ;;  %v291_v15 = vld [vmem:[#allocation5 + $0x6a8] sm:$0xff] }
 0x34d   :  { %6452 = vmatpush.msra.mxu3 %v13730_v24  ;;  %6308 = vmatpush.msra.mxu1 %v13685_v21  ;;  %17614 = vst [vmem:[#allocation341_spill] sm:$0xff] %v13964_v62  ;;  %v13966_v30 = vpop.f32.mrf.mxu1  ;;  %v13976_v21 = vsub.f32 %v311_v36, %v13952_v19  ;;  %v17620_v36 = vld [vmem:[#allocation37_spill] sm:$0xff] }
 0x34e   :  { %17615 = vst [vmem:[#allocation342_spill] sm:$0xff] %v13966_v30  ;;  %6262 = vmatpush.msra.mxu0 %v13775_v9  ;;  %6399 = vmatpush.msra.mxu2 %v17616_v34  ;;  %v13996_v9 = vand.u32 4294901760, %v296_v25  ;;  %v13999_v34 = vsub.f32 %v301_v52, %v13978_v59  ;;  %v281_v52 = vld [vmem:[#allocation5 + $0x658] sm:$0xff] }
 0x34f   :  { %17617 = vst [vmem:[#allocation343_spill] sm:$0xff] %v13971_v61  ;;  %6454 = vmatpush.msra.mxu3 %v13749_v17  ;;  %6310 = vmatpush.msra.mxu1 %v13699_v29  ;;  %v16641_v29 = vand.u32 4294901760, %v13960_v58  ;;  %v16642_v57 = vand.u32 4294901760, %v13976_v21 }
 0x350   :  { %6265 = vmatpush.msra.mxu0 %v13782_v55  ;;  %6403 = vmatpush.msra.mxu2 %v17618_v53  ;;  %v286_v53 = vld [vmem:[#allocation5 + $0x680] sm:$0xff]  ;;  %v14009_v55 = vand.u32 4294901760, %v291_v15  ;;  %v14020_v45 = vsub.f32 %v296_v25, %v13996_v9  ;;  %v17627_v30 = vand.u32 4294901760, %v13999_v34 }
 0x351   :  { %6456 = vmatpush.msra.mxu3 %v13763_v27  ;;  %6036 = vmatmul.f32.gmra.mxu1 %v17578_v10 }
 0x352   :  { %6268 = vmatmul.f32.vlgmr.msra.gmra.mxu0 %v17620_v36  ;;  %6312 = vmatpush.msra.mxu1 %v13714_v33  ;;  %v6542_v33 = vsub.f32 %v13960_v58, %v16641_v29  ;;  %v14022_v29 = vand.u32 4294901760, %v286_v53 }
 0x353   :  { %6458 = vmatmul.f32.vlgmr.msra.gmra.mxu3 %v17579_v5  ;;  %6407 = vmatpush.msra.mxu2 %v6197_v11  ;;  %v14039_v11 = vsub.f32 %v291_v15, %v14009_v55 }
 0x354   :  { %6475 = vmatpush.msrb.mxu0 %v13945_v26  ;;  %6722 = vmatpush.msrb.mxu3 %v13945_v26  ;;  %v6543_v25 = vand.u32 4294901760, %v6542_v33  ;;  %v14053_v15 = vsub.f32 %v286_v53, %v14022_v29  ;;  %v14067_v53 = vand.u32 4294901760, %v271_v32 }
 0x355   :  { %6314 = vmatpush.msra.mxu1 %v13730_v24  ;;  %6409 = vmatmul.f32.vlgmr.msra.gmra.mxu2 %v17579_v5  ;;  %v6548_v24 = vsub.f32 %v13976_v21, %v16642_v57  ;;  %v17624_v57 = vand.u32 4294901760, %v13988_v8  ;;  %v17630_v37 = vand.u32 4294901760, %v14039_v11 }
 0x356   :  { %6477 = vmatpush.msrb.mxu0 %v13952_v19  ;;  %6654 = vmatpush.msrb.mxu2 %v13960_v58  ;;  %v14025_v61 = vpop.f32.mrf.mxu1 }
 0x357   :  { %6724 = vmatpush.msrb.mxu3 %v13952_v19  ;;  %6316 = vmatpush.msra.mxu1 %v13749_v17  ;;  %17621 = vst [vmem:[#allocation345_spill] sm:$0xff] %v14025_v61  ;;  %v14027_v62 = vpop.f32.mrf.mxu0  ;;  %v14031_v17 = vpop.f32.mrf.mxu2  ;;  %v6554_v3 = vsub.f32 %v13988_v8, %v17624_v57  ;;  %v14041_v61 = vand.u32 4294901760, %v281_v52  ;;  %v6549_v33 = vand.u32 4294901760, %v6548_v24  ;;  %v6560_v57 = vsub.f32 %v13999_v34, %v17627_v30  ;;  %v261_v30 = vld [vmem:[#allocation5 + $0x5b8] sm:$0xff] }
 0x358   :  { %17622 = vst [vmem:[#allocation346_spill] sm:$0xff] %v14027_v62  ;;  %6479 = vmatpush.msrb.mxu0 %v13962_v4  ;;  %6657 = vmatpush.msrb.mxu2 %v13976_v21  ;;  %v17628_v62 = vld [vmem:[#allocation38_spill] sm:$0xff]  ;;  %v6572_v14 = vsub.f32 %v14039_v11, %v17630_v37  ;;  %v17634_v37 = vand.u32 4294901760, %v14053_v15 }
 0x359   :  { %17623 = vst [vmem:[#allocation347_spill] sm:$0xff] %v14031_v17  ;;  %6726 = vmatpush.msrb.mxu3 %v13962_v4  ;;  %6318 = vmatpush.msra.mxu1 %v13763_v27  ;;  %v14045_v17 = vpop.f32.mrf.mxu3  ;;  %v17626_v27 = vld [vmem:[#allocation12_spill] sm:$0xff]  ;;  %v14062_v24 = vsub.f32 %v281_v52, %v14041_v61 }
 0x35a   :  { %6481 = vmatpush.msrb.mxu0 %v13978_v59  ;;  %6660 = vmatpush.msrb.mxu2 %v13988_v8  ;;  %17625 = vst [vmem:[#allocation348_spill] sm:$0xff] %v14045_v17  ;;  %v6555_v17 = vand.u32 4294901760, %v6554_v3  ;;  %v17629_v3 = vand.u32 4294901760, %v14020_v45 }
 0x35b   :  { %6728 = vmatpush.msrb.mxu3 %v13978_v59  ;;  %6273 = vmatmul.f32.gmra.mxu0 %v17626_v27 }
 0x35c   :  { %6322 = vmatmul.f32.vlgmr.msra.gmra.mxu1 %v17628_v62  ;;  %6462 = vmatmul.f32.gmra.mxu3 %v17590_v48  ;;  %v6566_v31 = vsub.f32 %v14020_v45, %v17629_v3  ;;  %v6578_v3 = vsub.f32 %v14053_v15, %v17634_v37 }
 0x35d   :  { %6544 = vmatpush.msrb.mxu1 %v6543_v25  ;;  %6483 = vmatpush.msrb.mxu0 %v13996_v9  ;;  %v6561_v25 = vand.u32 4294901760, %v6560_v57  ;;  %v14083_v57 = vand.u32 4294901760, %v266_v60 }
 0x35e   :  { %6663 = vmatpush.msrb.mxu2 %v13999_v34  ;;  %6730 = vmatpush.msrb.mxu3 %v13996_v9 }
 0x35f   :  { %6413 = vmatmul.f32.gmra.mxu2 %v17590_v48  ;;  %6550 = vmatpush.msrb.mxu1 %v6549_v33  ;;  %v14081_v33 = vsub.f32 %v276_v41, %v14059_v49  ;;  %v6567_v41 = vand.u32 4294901760, %v6566_v31  ;;  %v17637_v31 = vand.u32 4294901760, %v14062_v24  ;;  %v14113_v37 = vsub.f32 %v266_v60, %v14083_v57 }
 0x360   :  { %6485 = vmatpush.msrb.mxu0 %v14009_v55  ;;  %6666 = vmatpush.msrb.mxu2 %v14020_v45  ;;  %v14086_v52 = vpop.f32.mrf.mxu0  ;;  %v14095_v47 = vpop.f32.mrf.mxu2  ;;  %v14127_v60 = vand.u32 4294901760, %v251_v39 }
 0x361   :  { %6732 = vmatpush.msrb.mxu3 %v14009_v55  ;;  %6556 = vmatpush.msrb.mxu1 %v6555_v17  ;;  %17631 = vst [vmem:[#allocation349_spill] sm:$0xff] %v14086_v52  ;;  %v14088_v35 = vpop.f32.mrf.mxu1  ;;  %v14093_v17 = vsub.f32 %v271_v32, %v14067_v53  ;;  %v14101_v52 = vand.u32 4294901760, %v261_v30  ;;  %v14105_v40 = vpop.f32.mrf.mxu3  ;;  %v17636_v32 = vld [vmem:[#allocation14_spill] sm:$0xff]  ;;  %v17639_v13 = vand.u32 4294901760, %v14081_v33 }
 0x362   :  { %17632 = vst [vmem:[#allocation350_spill] sm:$0xff] %v14088_v35  ;;  %6487 = vmatpush.msrb.mxu0 %v14022_v29  ;;  %6669 = vmatpush.msrb.mxu2 %v14039_v11  ;;  %v256_v35 = vld [vmem:[#allocation5 + $0x590] sm:$0xff] }
 0x363   :  { %17633 = vst [vmem:[#allocation351_spill] sm:$0xff] %v14095_v47  ;;  %6734 = vmatpush.msrb.mxu3 %v14022_v29  ;;  %6562 = vmatpush.msrb.mxu1 %v6561_v25  ;;  %v6573_v47 = vand.u32 4294901760, %v6572_v14  ;;  %v6584_v25 = vsub.f32 %v14062_v24, %v17637_v31  ;;  %v6579_v14 = vand.u32 4294901760, %v6578_v3  ;;  %v14123_v31 = vsub.f32 %v261_v30, %v14101_v52 }
 0x364   :  { %6489 = vmatpush.msrb.mxu0 %v14041_v61  ;;  %6672 = vmatpush.msrb.mxu2 %v14053_v15  ;;  %17635 = vst [vmem:[#allocation352_spill] sm:$0xff] %v14105_v40  ;;  %v14118_v40 = vand.u32 4294901760, %v256_v35  ;;  %v6590_v3 = vsub.f32 %v14081_v33, %v17639_v13  ;;  %v17640_v2 = vand.u32 4294901760, %v14093_v17  ;;  %v14148_v30 = vand.u32 4294901760, %v391_v22 }
 0x365   :  { %6736 = vmatpush.msrb.mxu3 %v14041_v61  ;;  %6278 = vmatmul.f32.gmra.mxu0 %v17636_v32  ;;  %v241_v32 = vld [vmem:[#allocation5 + $0x518] sm:$0xff] }
 0x366   :  { %6328 = vmatmul.f32.gmra.mxu1 %v17638_v56  ;;  %6466 = vmatmul.f32.gmra.mxu3 %v17600_v20  ;;  %v6596_v44 = vsub.f32 %v14093_v17, %v17640_v2  ;;  %v14142_v56 = vsub.f32 %v256_v35, %v14118_v40  ;;  %v14157_v2 = vsub.f32 %v251_v39, %v14127_v60  ;;  %v6591_v13 = vand.u32 4294901760, %v6590_v3  ;;  %v17649_v39 = vld [vmem:[#allocation16_spill] sm:$0xff] }
 0x367   :  { %6568 = vmatpush.msrb.mxu1 %v6567_v41  ;;  %6491 = vmatpush.msrb.mxu0 %v14059_v49  ;;  %v6585_v41 = vand.u32 4294901760, %v6584_v25  ;;  %v14145_v25 = vand.u32 4294901760, %v246_v1  ;;  %v14160_v35 = vsub.f32 %v396_v28, %v14129_v6  ;;  %v14168_v16 = vand.u32 4294901760, %v241_v32 }
 0x368   :  { %6675 = vmatpush.msrb.mxu2 %v14062_v24  ;;  %6738 = vmatpush.msrb.mxu3 %v14059_v49  ;;  %v6597_v28 = vand.u32 4294901760, %v6596_v44  ;;  %v17648_v3 = vand.u32 4294901760, %v14123_v31  ;;  %v14186_v7 = vsub.f32 %v391_v22, %v14148_v30  ;;  %v376_v44 = vld [vmem:[#allocation5 + $0x950] sm:$0xff]  ;;  %v17653_v10 = vand.u32 4294901760, %v14157_v2 }
 0x369   :  { %6417 = vmatmul.f32.gmra.mxu2 %v17600_v20  ;;  %6574 = vmatpush.msrb.mxu1 %v6573_v47  ;;  %v386_v47 = vld [vmem:[#allocation5 + $0x9a0] sm:$0xff]  ;;  %17645 = vst [vmem:[#allocation356_spill] sm:$0xff] %v14168_v16  ;;  %v14183_v20 = vsub.f32 %v246_v1, %v14145_v25  ;;  %v14196_v1 = vsub.f32 %v241_v32, %v14168_v16  ;;  %v14206_v0 = vand.u32 4294901760, %v376_v44 }
 0x36a   :  { %6493 = vmatpush.msrb.mxu0 %v14067_v53  ;;  %6678 = vmatpush.msrb.mxu2 %v14081_v33  ;;  %v14150_v62 = vpop.f32.mrf.mxu0  ;;  %v14162_v36 = vpop.f32.mrf.mxu2  ;;  %v14170_v43 = vand.u32 4294901760, %v386_v47 }
 0x36b   :  { %6740 = vmatpush.msrb.mxu3 %v14067_v53  ;;  %6580 = vmatpush.msrb.mxu1 %v6579_v14  ;;  %17641 = vst [vmem:[#allocation353_spill] sm:$0xff] %v14150_v62  ;;  %v14152_v27 = vpop.f32.mrf.mxu1  ;;  %v381_v14 = vld [vmem:[#allocation5 + $0x978] sm:$0xff]  ;;  %v17644_v62 = vand.u32 4294901760, %v14113_v37  ;;  %v17662_v54 = vand.u32 4294901760, %v14196_v1 }
 0x36c   :  { %17642 = vst [vmem:[#allocation354_spill] sm:$0xff] %v14152_v27  ;;  %6495 = vmatpush.msrb.mxu0 %v14083_v57  ;;  %6681 = vmatpush.msrb.mxu2 %v14093_v17  ;;  %v14188_v48 = vand.u32 4294901760, %v381_v14  ;;  %v14199_v22 = vsub.f32 %v386_v47, %v14170_v43 }
 0x36d   :  { %17643 = vst [vmem:[#allocation355_spill] sm:$0xff] %v14162_v36  ;;  %6742 = vmatpush.msrb.mxu3 %v14083_v57  ;;  %6586 = vmatpush.msrb.mxu1 %v6585_v41  ;;  %v6602_v27 = vsub.f32 %v14113_v37, %v17644_v62  ;;  %v14175_v36 = vpop.f32.mrf.mxu3  ;;  %v17647_v41 = vld [vmem:[#allocation18_spill] sm:$0xff]  ;;  %v6608_v62 = vsub.f32 %v14123_v31, %v17648_v3 }
 0x36e   :  { %6497 = vmatpush.msrb.mxu0 %v14101_v52  ;;  %6684 = vmatpush.msrb.mxu2 %v14113_v37  ;;  %17646 = vst [vmem:[#allocation357_spill] sm:$0xff] %v14175_v36  ;;  %v6632_v23 = vsub.f32 %v14196_v1, %v17662_v54 }
 0x36f   :  { %6744 = vmatpush.msrb.mxu3 %v14101_v52  ;;  %6283 = vmatmul.f32.gmra.mxu0 %v17647_v41  ;;  %v6603_v3 = vand.u32 4294901760, %v6602_v27  ;;  %17650 = vst [vmem:[#allocation358_spill] sm:$0xff] %v14199_v22  ;;  %v6609_v27 = vand.u32 4294901760, %v6608_v62  ;;  %v14212_v41 = vsub.f32 %v381_v14, %v14188_v48  ;;  %v366_v62 = vld [vmem:[#allocation5 + $0x900] sm:$0xff]  ;;  %v17657_v14 = vand.u32 4294901760, %v14186_v7 }
 0x370   :  { %6334 = vmatmul.f32.gmra.mxu1 %v17649_v39  ;;  %6470 = vmatmul.f32.gmra.mxu3 %v17610_v51  ;;  %v17651_v39 = vand.u32 4294901760, %v14142_v56 }
 0x371   :  { %6592 = vmatpush.msrb.mxu1 %v6591_v13  ;;  %6499 = vmatpush.msrb.mxu0 %v14118_v40  ;;  %v371_v13 = vld [vmem:[#allocation5 + $0x928] sm:$0xff]  ;;  %v6982_v47 = vsub.f32 %v14186_v7, %v17657_v14  ;;  %v17661_v14 = vand.u32 4294901760, %v14199_v22  ;;  %v17665_v42 = vand.u32 4294901760, %v14212_v41 }
 0x372   :  { %6687 = vmatpush.msrb.mxu2 %v14123_v31  ;;  %6746 = vmatpush.msrb.mxu3 %v14118_v40  ;;  %v6614_v36 = vsub.f32 %v14142_v56, %v17651_v39  ;;  %v17652_v39 = vand.u32 4294901760, %v14160_v35  ;;  %v14225_v32 = vand.u32 4294901760, %v371_v13 }
 0x373   :  { %6421 = vmatmul.f32.gmra.mxu2 %v17610_v51  ;;  %6598 = vmatpush.msrb.mxu1 %v6597_v28  ;;  %v6620_v28 = vsub.f32 %v14157_v2, %v17653_v10  ;;  %v14234_v10 = vsub.f32 %v376_v44, %v14206_v0  ;;  %v6994_v54 = vsub.f32 %v14212_v41, %v17665_v42  ;;  %v17668_v42 = vand.u32 4294901760, %v13976_v21 }
 0x374   :  { %6501 = vmatpush.msrb.mxu0 %v14127_v60  ;;  %6690 = vmatpush.msrb.mxu2 %v14142_v56  ;;  %v6976_v5 = vsub.f32 %v14160_v35, %v17652_v39  ;;  %v14227_v51 = vpop.f32.mrf.mxu0  ;;  %v6615_v39 = vand.u32 4294901760, %v6614_v36  ;;  %v14246_v36 = vand.u32 4294901760, %v366_v62  ;;  %v14261_v50 = vsub.f32 %v371_v13, %v14225_v32 }
 0x375   :  { %6748 = vmatpush.msrb.mxu3 %v14127_v60  ;;  %6604 = vmatpush.msrb.mxu1 %v6603_v3  ;;  %17654 = vst [vmem:[#allocation359_spill] sm:$0xff] %v14227_v51  ;;  %v14229_v12 = vpop.f32.mrf.mxu1  ;;  %v14236_v3 = vpop.f32.mrf.mxu2  ;;  %v17658_v51 = vand.u32 4294901760, %v14183_v20  ;;  %v17672_v21 = vand.u32 4294901760, %v13988_v8  ;;  %v17674_v8 = vand.u32 4294901760, %v13999_v34  ;;  %v17678_v34 = vld [vmem:[#allocation46_spill] sm:$0xff] }
 0x376   :  { %17655 = vst [vmem:[#allocation360_spill] sm:$0xff] %v14229_v12  ;;  %6503 = vmatpush.msrb.mxu0 %v14145_v25  ;;  %6693 = vmatpush.msrb.mxu2 %v14157_v2  ;;  %v6977_v44 = vand.u32 4294901760, %v6976_v5  ;;  %v14250_v18 = vpop.f32.mrf.mxu3  ;;  %v356_v5 = vld [vmem:[#allocation5 + $0x8b0] sm:$0xff]  ;;  %v14273_v13 = vsub.f32 %v366_v62, %v14246_v36  ;;  %v346_v62 = vld [vmem:[#allocation5 + $0x860] sm:$0xff] }
 0x377   :  { %17656 = vst [vmem:[#allocation361_spill] sm:$0xff] %v14236_v3  ;;  %6750 = vmatpush.msrb.mxu3 %v14145_v25  ;;  %6610 = vmatpush.msrb.mxu1 %v6609_v27  ;;  %v6626_v12 = vsub.f32 %v14183_v20, %v17658_v51  ;;  %v6621_v3 = vand.u32 4294901760, %v6620_v28  ;;  %v17660_v27 = vld [vmem:[#allocation42_spill] sm:$0xff]  ;;  %v6988_v51 = vsub.f32 %v14199_v22, %v17661_v14  ;;  %v17663_v28 = vld [vmem:[#allocation57_spill] sm:$0xff]  ;;  %v6983_v14 = vand.u32 4294901760, %v6982_v47 }
 0x378   :  { %6505 = vmatpush.msrb.mxu0 %v14168_v16  ;;  %6696 = vmatpush.msrb.mxu2 %v14183_v20  ;;  %17659 = vst [vmem:[#allocation362_spill] sm:$0xff] %v14250_v18  ;;  %v351_v18 = vld [vmem:[#allocation5 + $0x888] sm:$0xff]  ;;  %v6633_v47 = vand.u32 4294901760, %v6632_v23  ;;  %v14282_v22 = vsub.f32 %v361_v38, %v14263_v46  ;;  %v14309_v23 = vand.u32 4294901760, %v346_v62 }
 0x379   :  { %6752 = vmatpush.msrb.mxu3 %v14168_v16  ;;  %6340 = vmatmul.f32.gmra.mxu1 %v17660_v27  ;;  %v17664_v27 = vld [vmem:[#allocation52_spill] sm:$0xff]  ;;  %v6627_v63 = vand.u32 4294901760, %v6626_v12  ;;  %v17666_v16 = vand.u32 4294901760, %v13960_v58  ;;  %v16654_v12 = vand.u32 4294901760, %v14261_v50 }
 0x37a   :  { %6511 = vmatmul.f32.vlgmr.msrb.gmra.mxu0 %v17663_v28  ;;  %6616 = vmatpush.msrb.mxu1 %v6615_v39  ;;  %v14277_v39 = vand.u32 4294901760, %v356_v5  ;;  %v6989_v28 = vand.u32 4294901760, %v6988_v51 }
 0x37b   :  { %6756 = vmatmul.f32.vlgmr.msrb.gmra.mxu3 %v17664_v27  ;;  %6699 = vmatpush.msrb.mxu2 %v14196_v1  ;;  %v17667_v27 = vld [vmem:[#allocation48_spill] sm:$0xff] }
 0x37c   :  { %6781 = vmatpush.msra.mxu0 %v17666_v16  ;;  %6978 = vmatpush.msra.mxu3 %v6977_v44  ;;  %v17669_v16 = vand.u32 4294901760, %v14234_v10  ;;  %v14291_v44 = vand.u32 4294901760, %v351_v18 }
 0x37d   :  { %6622 = vmatpush.msrb.mxu1 %v6621_v3  ;;  %6702 = vmatmul.f32.vlgmr.msrb.gmra.mxu2 %v17667_v27  ;;  %v6995_v3 = vand.u32 4294901760, %v6994_v54 }
 0x37e   :  { %6785 = vmatpush.msra.mxu0 %v17668_v42  ;;  %6909 = vmatpush.msra.mxu2 %v14129_v6  ;;  %v7000_v58 = vsub.f32 %v14234_v10, %v17669_v16  ;;  %v14293_v51 = vpop.f32.mrf.mxu1  ;;  %v14301_v42 = vsub.f32 %v356_v5, %v14277_v39  ;;  %v341_v16 = vld [vmem:[#allocation5 + $0x838] sm:$0xff] }
 0x37f   :  { %6984 = vmatpush.msra.mxu3 %v6983_v14  ;;  %6628 = vmatpush.msrb.mxu1 %v6627_v63  ;;  %17670 = vst [vmem:[#allocation363_spill] sm:$0xff] %v14293_v51  ;;  %v14295_v38 = vpop.f32.mrf.mxu0  ;;  %v14303_v14 = vpop.f32.mrf.mxu2  ;;  %v7006_v63 = vsub.f32 %v14261_v50, %v16654_v12  ;;  %v14321_v12 = vsub.f32 %v351_v18, %v14291_v44  ;;  %v14323_v54 = vand.u32 4294901760, %v341_v16  ;;  %v336_v51 = vld [vmem:[#allocation5 + $0x810] sm:$0xff] }
 0x380   :  { %17671 = vst [vmem:[#allocation364_spill] sm:$0xff] %v14295_v38  ;;  %6789 = vmatpush.msra.mxu0 %v17672_v21  ;;  %6911 = vmatpush.msra.mxu2 %v14148_v30  ;;  %v7001_v5 = vand.u32 4294901760, %v7000_v58  ;;  %v14314_v21 = vpop.f32.mrf.mxu3  ;;  %v14335_v38 = vsub.f32 %v346_v62, %v14309_v23  ;;  %v17682_v58 = vld [vmem:[#allocation56_spill] sm:$0xff]  ;;  %v17684_v62 = vand.u32 4294901760, %v14301_v42 }
 0x381   :  { %17673 = vst [vmem:[#allocation365_spill] sm:$0xff] %v14303_v14  ;;  %6990 = vmatpush.msra.mxu3 %v6989_v28  ;;  %6634 = vmatpush.msrb.mxu1 %v6633_v47  ;;  %v17676_v14 = vld [vmem:[#allocation61_spill] sm:$0xff]  ;;  %v17677_v28 = vand.u32 4294901760, %v14273_v13 }
 0x382   :  { %6793 = vmatpush.msra.mxu0 %v17674_v8  ;;  %6913 = vmatpush.msra.mxu2 %v14170_v43  ;;  %17675 = vst [vmem:[#allocation366_spill] sm:$0xff] %v14314_v21  ;;  %v17679_v8 = vld [vmem:[#allocation58_spill] sm:$0xff]  ;;  %v7007_v21 = vand.u32 4294901760, %v7006_v63  ;;  %v14344_v63 = vsub.f32 %v341_v16, %v14323_v54 }
 0x383   :  { %6996 = vmatpush.msra.mxu3 %v6995_v3  ;;  %6519 = vmatmul.f32.gmra.mxu0 %v17676_v14  ;;  %v7012_v47 = vsub.f32 %v14273_v13, %v17677_v28  ;;  %v17680_v3 = vand.u32 4294901760, %v14020_v45  ;;  %v17681_v28 = vand.u32 4294901760, %v14282_v22  ;;  %v14338_v14 = vand.u32 4294901760, %v336_v51 }
 0x384   :  { %6636 = vmatmul.f32.vlgmr.msrb.gmra.mxu1 %v17678_v34  ;;  %6762 = vmatmul.f32.gmra.mxu3 %v17679_v8  ;;  %v331_v8 = vld [vmem:[#allocation5 + $0x7e8] sm:$0xff] }
 0x385   :  { %6860 = vmatpush.msra.mxu1 %v13945_v26  ;;  %6797 = vmatpush.msra.mxu0 %v17680_v3  ;;  %v7018_v18 = vsub.f32 %v14282_v22, %v17681_v28  ;;  %v7013_v26 = vand.u32 4294901760, %v7012_v47  ;;  %v17683_v3 = vand.u32 4294901760, %v14039_v11  ;;  %v326_v28 = vld [vmem:[#allocation5 + $0x7c0] sm:$0xff]  ;;  %v14354_v45 = vand.u32 4294901760, %v331_v8 }
 0x386   :  { %6915 = vmatpush.msra.mxu2 %v14188_v48  ;;  %7002 = vmatpush.msra.mxu3 %v7001_v5  ;;  %v7024_v5 = vsub.f32 %v14301_v42, %v17684_v62  ;;  %v17687_v11 = vand.u32 4294901760, %v14053_v15  ;;  %v17690_v15 = vand.u32 4294901760, %v14062_v24  ;;  %v17695_v24 = vld [vmem:[#allocation63_spill] sm:$0xff] }
 0x387   :  { %6707 = vmatmul.f32.gmra.mxu2 %v17682_v58  ;;  %6862 = vmatpush.msra.mxu1 %v13952_v19  ;;  %v7019_v19 = vand.u32 4294901760, %v7018_v18 }
 0x388   :  { %6801 = vmatpush.msra.mxu0 %v17683_v3  ;;  %6917 = vmatpush.msra.mxu2 %v14206_v0  ;;  %v14356_v16 = vpop.f32.mrf.mxu0  ;;  %v14364_v3 = vsub.f32 %v336_v51, %v14338_v14  ;;  %v14366_v62 = vpop.f32.mrf.mxu2  ;;  %v7025_v51 = vand.u32 4294901760, %v7024_v5 }
 0x389   :  { %7008 = vmatpush.msra.mxu3 %v7007_v21  ;;  %6864 = vmatpush.msra.mxu1 %v13962_v4  ;;  %17685 = vst [vmem:[#allocation367_spill] sm:$0xff] %v14356_v16  ;;  %v14358_v58 = vpop.f32.mrf.mxu1  ;;  %v321_v21 = vld [vmem:[#allocation5 + $0x798] sm:$0xff]  ;;  %v17689_v4 = vand.u32 4294901760, %v14321_v12  ;;  %v14373_v16 = vand.u32 4294901760, %v326_v28 }
 0x38a   :  { %17686 = vst [vmem:[#allocation368_spill] sm:$0xff] %v14358_v58  ;;  %6805 = vmatpush.msra.mxu0 %v17687_v11  ;;  %6919 = vmatpush.msra.mxu2 %v14225_v32  ;;  %v14378_v11 = vpop.f32.mrf.mxu3  ;;  %v14387_v47 = vand.u32 4294901760, %v321_v21  ;;  %v17694_v58 = vld [vmem:[#allocation54_spill] sm:$0xff] }
 0x38b   :  { %17688 = vst [vmem:[#allocation369_spill] sm:$0xff] %v14366_v62  ;;  %7014 = vmatpush.msra.mxu3 %v7013_v26  ;;  %6866 = vmatpush.msra.mxu1 %v13978_v59  ;;  %v7030_v18 = vsub.f32 %v14321_v12, %v17689_v4  ;;  %v17692_v26 = vld [vmem:[#allocation66_spill] sm:$0xff]  ;;  %v17693_v59 = vand.u32 4294901760, %v14335_v38  ;;  %v14385_v4 = vsub.f32 %v331_v8, %v14354_v45 }
 0x38c   :  { %6809 = vmatpush.msra.mxu0 %v17690_v15  ;;  %6921 = vmatpush.msra.mxu2 %v14246_v36  ;;  %17691 = vst [vmem:[#allocation370_spill] sm:$0xff] %v14378_v11  ;;  %v17697_v11 = vand.u32 4294901760, %v14344_v63  ;;  %v14399_v8 = vsub.f32 %v326_v28, %v14373_v16  ;;  %v17700_v28 = vand.u32 4294901760, %v14364_v3 }
 0x38d   :  { %7020 = vmatpush.msra.mxu3 %v7019_v19  ;;  %6527 = vmatmul.f32.gmra.mxu0 %v17692_v26  ;;  %v7036_v62 = vsub.f32 %v14335_v38, %v17693_v59  ;;  %v17696_v19 = vand.u32 4294901760, %v14081_v33  ;;  %v7031_v15 = vand.u32 4294901760, %v7030_v18  ;;  %v17698_v26 = vld [vmem:[#allocation60_spill] sm:$0xff]  ;;  %v14406_v33 = vsub.f32 %v321_v21, %v14387_v47 }
 0x38e   :  { %6640 = vmatmul.f32.gmra.mxu1 %v17694_v58  ;;  %6768 = vmatmul.f32.gmra.mxu3 %v17695_v24  ;;  %v7042_v59 = vsub.f32 %v14344_v63, %v17697_v11  ;;  %v17699_v18 = vand.u32 4294901760, %v14093_v17  ;;  %v7048_v11 = vsub.f32 %v14364_v3, %v17700_v28  ;;  %v17703_v21 = vand.u32 4294901760, %v14113_v37  ;;  %v17707_v28 = vld [vmem:[#allocation73_spill] sm:$0xff] }
 0x38f   :  { %6868 = vmatpush.msra.mxu1 %v13996_v9  ;;  %6813 = vmatpush.msra.mxu0 %v17696_v19  ;;  %v7037_v5 = vand.u32 4294901760, %v7036_v62  ;;  %v16656_v9 = vand.u32 4294901760, %v14385_v4 }
 0x390   :  { %6923 = vmatpush.msra.mxu2 %v14263_v46  ;;  %7026 = vmatpush.msra.mxu3 %v7025_v51  ;;  %v7043_v51 = vand.u32 4294901760, %v7042_v59  ;;  %v17705_v59 = vand.u32 4294901760, %v14123_v31  ;;  %v7049_v37 = vand.u32 4294901760, %v7048_v11  ;;  %v17710_v31 = vand.u32 4294901760, %v14142_v56 }
 0x391   :  { %6712 = vmatmul.f32.gmra.mxu2 %v17698_v26  ;;  %6870 = vmatpush.msra.mxu1 %v14009_v55  ;;  %v16655_v55 = vand.u32 4294901760, %v14399_v8 }
 0x392   :  { %6817 = vmatpush.msra.mxu0 %v17699_v18  ;;  %6925 = vmatpush.msra.mxu2 %v14277_v39  ;;  %v14416_v62 = vpop.f32.mrf.mxu0  ;;  %v14423_v17 = vpop.f32.mrf.mxu2 }
 0x393   :  { %7032 = vmatpush.msra.mxu3 %v7031_v15  ;;  %6872 = vmatpush.msra.mxu1 %v14022_v29  ;;  %17701 = vst [vmem:[#allocation371_spill] sm:$0xff] %v14416_v62  ;;  %v14418_v19 = vpop.f32.mrf.mxu1  ;;  %v7054_v29 = vsub.f32 %v14385_v4, %v16656_v9  ;;  %v7065_v15 = vand.u32 4294901760, %v14406_v33  ;;  %v14433_v18 = vpop.f32.mrf.mxu3  ;;  %v17712_v9 = vand.u32 4294901760, %v14157_v2  ;;  %v17717_v2 = vand.u32 4294901760, %v14196_v1 }
 0x394   :  { %17702 = vst [vmem:[#allocation372_spill] sm:$0xff] %v14418_v19  ;;  %6821 = vmatpush.msra.mxu0 %v17703_v21  ;;  %6927 = vmatpush.msra.mxu2 %v14291_v44  ;;  %v17709_v21 = vld [vmem:[#allocation70_spill] sm:$0xff]  ;;  %v17722_v1 = vand.u32 4294901760, %v14160_v35 }
 0x395   :  { %17704 = vst [vmem:[#allocation373_spill] sm:$0xff] %v14423_v17  ;;  %7038 = vmatpush.msra.mxu3 %v7037_v5  ;;  %6874 = vmatpush.msra.mxu1 %v14041_v61  ;;  %v7060_v61 = vsub.f32 %v14399_v8, %v16655_v55  ;;  %v17708_v5 = vld [vmem:[#allocation59_spill] sm:$0xff]  ;;  %v7066_v11 = vsub.f32 %v14406_v33, %v7065_v15 }
 0x396   :  { %6825 = vmatpush.msra.mxu0 %v17705_v59  ;;  %6929 = vmatpush.msra.mxu2 %v14309_v23  ;;  %17706 = vst [vmem:[#allocation374_spill] sm:$0xff] %v14433_v18  ;;  %v7055_v59 = vand.u32 4294901760, %v7054_v29 }
 0x397   :  { %7044 = vmatpush.msra.mxu3 %v7043_v51  ;;  %6535 = vmatmul.f32.gmra.mxu0 %v17707_v28  ;;  %v17711_v51 = vld [vmem:[#allocation65_spill] sm:$0xff]  ;;  %v7061_v55 = vand.u32 4294901760, %v7060_v61  ;;  %v7067_v56 = vand.u32 4294901760, %v7066_v11  ;;  %v17725_v61 = vld [vmem:[#allocation358_spill] sm:$0xff]  ;;  %v17732_v11 = vand.u32 4294901760, %v14212_v41 }
 0x398   :  { %6644 = vmatmul.f32.gmra.mxu1 %v17708_v5  ;;  %6774 = vmatmul.f32.gmra.mxu3 %v17709_v21  ;;  %v202_v21 = vld [vmem:[#allocation5 + $0x3e0] sm:$0xff] }
 0x399   :  { %6876 = vmatpush.msra.mxu1 %v14059_v49  ;;  %6829 = vmatpush.msra.mxu0 %v17710_v31  ;;  %v17726_v31 = vand.u32 4294901760, %v14186_v7 }
 0x39a   :  { %6931 = vmatpush.msra.mxu2 %v14323_v54  ;;  %7050 = vmatpush.msra.mxu3 %v7049_v37  ;;  %v17715_v37 = vand.u32 4294901760, %v14183_v20  ;;  %v17720_v20 = vld [vmem:[#allocation72_spill] sm:$0xff] }
 0x39b   :  { %6717 = vmatmul.f32.gmra.mxu2 %v17711_v51  ;;  %6878 = vmatpush.msra.mxu1 %v14067_v53 }
 0x39c   :  { %6833 = vmatpush.msra.mxu0 %v17712_v9  ;;  %6933 = vmatpush.msra.mxu2 %v14338_v14  ;;  %v14454_v49 = vpop.f32.mrf.mxu0  ;;  %v14461_v53 = vpop.f32.mrf.mxu2  ;;  %v17719_v9 = vld [vmem:[#allocation64_spill] sm:$0xff] }
 0x39d   :  { %7056 = vmatpush.msra.mxu3 %v7055_v59  ;;  %6880 = vmatpush.msra.mxu1 %v14083_v57  ;;  %17713 = vst [vmem:[#allocation375_spill] sm:$0xff] %v14454_v49  ;;  %v14456_v29 = vpop.f32.mrf.mxu1  ;;  %v14467_v57 = vpop.f32.mrf.mxu3  ;;  %v17728_v59 = vld [vmem:[#allocation356_spill] sm:$0xff] }
 0x39e   :  { %17714 = vst [vmem:[#allocation376_spill] sm:$0xff] %v14456_v29  ;;  %6837 = vmatpush.msra.mxu0 %v17715_v37  ;;  %6935 = vmatpush.msra.mxu2 %v14354_v45  ;;  %v17734_v37 = vand.u32 4294901760, %v14234_v10  ;;  %v82_v29 = vld [vmem:[#allocation5 + $0x20] sm:$0xff] }
 0x39f   :  { %17716 = vst [vmem:[#allocation377_spill] sm:$0xff] %v14461_v53  ;;  %7062 = vmatpush.msra.mxu3 %v7061_v55  ;;  %6882 = vmatpush.msra.mxu1 %v14101_v52  ;;  %v17721_v52 = vld [vmem:[#allocation85_spill] sm:$0xff]  ;;  %v232_v53 = vld [vmem:[#allocation5 + $0x4d0] sm:$0xff] }
 0x3a0   :  { %6841 = vmatpush.msra.mxu0 %v17717_v2  ;;  %6937 = vmatpush.msra.mxu2 %v14373_v16  ;;  %17718 = vst [vmem:[#allocation378_spill] sm:$0xff] %v14467_v57 }
 0x3a1   :  { %7068 = vmatpush.msra.mxu3 %v7067_v56  ;;  %6648 = vmatmul.f32.gmra.mxu1 %v17719_v9  ;;  %v17733_v56 = vld [vmem:[#allocation86_spill] sm:$0xff] }
 0x3a2   :  { %6843 = vmatmul.f32.vlgmr.msra.gmra.mxu0 %v17678_v34  ;;  %6884 = vmatpush.msra.mxu1 %v14118_v40 }
 0x3a3   :  { %7070 = vmatmul.f32.vlgmr.msra.gmra.mxu3 %v17720_v20  ;;  %6939 = vmatpush.msra.mxu2 %v14387_v47 }
 0x3a4   :  { %7088 = vmatpush.msrb.mxu0 %v14160_v35  ;;  %7294 = vmatpush.msrb.mxu3 %v14129_v6  ;;  %v17729_v35 = vand.u32 4294901760, %v17725_v61 }
 0x3a5   :  { %6886 = vmatpush.msra.mxu1 %v14127_v60  ;;  %6945 = vmatmul.f32.vlgmr.msra.gmra.mxu2 %v17721_v52 }
 0x3a6   :  { %7091 = vmatpush.msrb.mxu0 %v14186_v7  ;;  %7215 = vmatpush.msrb.mxu2 %v17722_v1  ;;  %v14483_v40 = vpop.f32.mrf.mxu1  ;;  %v14490_v60 = vpop.f32.mrf.mxu2  ;;  %v17731_v7 = vld [vmem:[#allocation80_spill] sm:$0xff] }
 0x3a7   :  { %7296 = vmatpush.msrb.mxu3 %v14148_v30  ;;  %6888 = vmatpush.msra.mxu1 %v14145_v25  ;;  %17723 = vst [vmem:[#allocation379_spill] sm:$0xff] %v14483_v40  ;;  %v14485_v55 = vpop.f32.mrf.mxu0  ;;  %v14497_v25 = vpop.f32.mrf.mxu3 }
 0x3a8   :  { %17724 = vst [vmem:[#allocation380_spill] sm:$0xff] %v14485_v55  ;;  %7094 = vmatpush.msrb.mxu0 %v17725_v61  ;;  %7219 = vmatpush.msrb.mxu2 %v17726_v31 }
 0x3a9   :  { %17727 = vst [vmem:[#allocation358_spill] sm:$0xff] %v14490_v60  ;;  %7298 = vmatpush.msrb.mxu3 %v14170_v43  ;;  %6890 = vmatpush.msra.mxu1 %v17728_v59  ;;  %v152_v59 = vld [vmem:[#allocation5 + $0x250] sm:$0xff]  ;;  %v17769_v60 = vld [vmem:[#allocation79_spill] sm:$0xff] }
 0x3aa   :  { %7097 = vmatpush.msrb.mxu0 %v14212_v41  ;;  %7223 = vmatpush.msrb.mxu2 %v17729_v35  ;;  %17730 = vst [vmem:[#allocation356_spill] sm:$0xff] %v14497_v25  ;;  %v17737_v41 = vand.u32 4294901760, %v14261_v50  ;;  %v147_v35 = vld [vmem:[#allocation5 + $0x228] sm:$0xff]  ;;  %v117_v25 = vld [vmem:[#allocation5 + $0x138] sm:$0xff] }
 0x3ab   :  { %7300 = vmatpush.msrb.mxu3 %v14188_v48  ;;  %6847 = vmatmul.f32.gmra.mxu0 %v17694_v58 }
 0x3ac   :  { %6892 = vmatmul.f32.vlgmr.msra.gmra.mxu1 %v17678_v34  ;;  %7074 = vmatmul.f32.gmra.mxu3 %v17731_v7 }
 0x3ad   :  { %7156 = vmatpush.msrb.mxu1 %v14129_v6  ;;  %7100 = vmatpush.msrb.mxu0 %v14234_v10  ;;  %v17743_v10 = vld [vmem:[#allocation94_spill] sm:$0xff] }
 0x3ae   :  { %7227 = vmatpush.msrb.mxu2 %v17732_v11  ;;  %7302 = vmatpush.msrb.mxu3 %v14206_v0  ;;  %v17753_v11 = vld [vmem:[#allocation100_spill] sm:$0xff] }
 0x3af   :  { %6953 = vmatmul.f32.gmra.mxu2 %v17733_v56  ;;  %7158 = vmatpush.msrb.mxu1 %v14148_v30  ;;  %v17739_v30 = vand.u32 4294901760, %v14273_v13 }
 0x3b0   :  { %7103 = vmatpush.msrb.mxu0 %v14261_v50  ;;  %7231 = vmatpush.msrb.mxu2 %v17734_v37  ;;  %v14515_v6 = vpop.f32.mrf.mxu0  ;;  %v14522_v1 = vpop.f32.mrf.mxu2  ;;  %v17741_v50 = vld [vmem:[#allocation50_spill] sm:$0xff]  ;;  %v14576_v37 = vand.u32 4294901760, %v152_v59 }
 0x3b1   :  { %7304 = vmatpush.msrb.mxu3 %v14225_v32  ;;  %7160 = vmatpush.msrb.mxu1 %v14170_v43  ;;  %17735 = vst [vmem:[#allocation381_spill] sm:$0xff] %v14515_v6  ;;  %v14517_v2 = vpop.f32.mrf.mxu1  ;;  %v14529_v43 = vpop.f32.mrf.mxu3  ;;  %v17779_v6 = vld [vmem:[#allocation45_spill] sm:$0xff] }
 0x3b2   :  { %17736 = vst [vmem:[#allocation382_spill] sm:$0xff] %v14517_v2  ;;  %7106 = vmatpush.msrb.mxu0 %v14273_v13  ;;  %7235 = vmatpush.msrb.mxu2 %v17737_v41  ;;  %v17744_v13 = vand.u32 4294901760, %v14301_v42  ;;  %v142_v41 = vld [vmem:[#allocation5 + $0x200] sm:$0xff]  ;;  %v14792_v2 = vand.u32 4294901760, %v82_v29 }
 0x3b3   :  { %17738 = vst [vmem:[#allocation383_spill] sm:$0xff] %v14522_v1  ;;  %7306 = vmatpush.msrb.mxu3 %v14246_v36  ;;  %7162 = vmatpush.msrb.mxu1 %v14188_v48  ;;  %v17742_v48 = vand.u32 4294901760, %v14282_v22 }
 0x3b4   :  { %7109 = vmatpush.msrb.mxu0 %v14282_v22  ;;  %7239 = vmatpush.msrb.mxu2 %v17739_v30  ;;  %17740 = vst [vmem:[#allocation384_spill] sm:$0xff] %v14529_v43  ;;  %v17747_v22 = vand.u32 4294901760, %v14321_v12  ;;  %v14586_v30 = vand.u32 4294901760, %v147_v35  ;;  %v237_v43 = vld [vmem:[#allocation5 + $0x4f8] sm:$0xff] }
 0x3b5   :  { %7308 = vmatpush.msrb.mxu3 %v14263_v46  ;;  %6851 = vmatmul.f32.gmra.mxu0 %v17708_v5  ;;  %17786 = vst [vmem:[#allocation404_spill] sm:$0xff] %v14792_v2 }
 0x3b6   :  { %6896 = vmatmul.f32.gmra.mxu1 %v17694_v58  ;;  %7078 = vmatmul.f32.gmra.mxu3 %v17741_v50  ;;  %v14887_v58 = vand.u32 4294901760, %v202_v21 }
 0x3b7   :  { %7164 = vmatpush.msrb.mxu1 %v14206_v0  ;;  %7112 = vmatpush.msrb.mxu0 %v14301_v42 }
 0x3b8   :  { %7243 = vmatpush.msrb.mxu2 %v17742_v48  ;;  %7310 = vmatpush.msrb.mxu3 %v14277_v39 }
 0x3b9   :  { %6961 = vmatmul.f32.gmra.mxu2 %v17743_v10  ;;  %7166 = vmatpush.msrb.mxu1 %v14225_v32  ;;  %v17749_v32 = vand.u32 4294901760, %v14335_v38  ;;  %v14561_v42 = vpop.f32.mrf.mxu3 }
 0x3ba   :  { %7115 = vmatpush.msrb.mxu0 %v14321_v12  ;;  %7247 = vmatpush.msrb.mxu2 %v17744_v13  ;;  %v14547_v0 = vpop.f32.mrf.mxu0  ;;  %v14554_v31 = vpop.f32.mrf.mxu2  ;;  %17750 = vst [vmem:[#allocation388_spill] sm:$0xff] %v14561_v42  ;;  %v17751_v12 = vld [vmem:[#allocation88_spill] sm:$0xff]  ;;  %v17757_v13 = vand.u32 4294901760, %v14385_v4 }
 0x3bb   :  { %7312 = vmatpush.msrb.mxu3 %v14291_v44  ;;  %7168 = vmatpush.msrb.mxu1 %v14246_v36  ;;  %17745 = vst [vmem:[#allocation385_spill] sm:$0xff] %v14547_v0  ;;  %v14549_v61 = vpop.f32.mrf.mxu1  ;;  %v157_v36 = vld [vmem:[#allocation5 + $0x278] sm:$0xff] }
 0x3bc   :  { %17746 = vst [vmem:[#allocation386_spill] sm:$0xff] %v14549_v61  ;;  %7118 = vmatpush.msrb.mxu0 %v14335_v38  ;;  %7251 = vmatpush.msrb.mxu2 %v17747_v22  ;;  %v17752_v38 = vand.u32 4294901760, %v14344_v63  ;;  %v14602_v22 = vand.u32 4294901760, %v142_v41  ;;  %v92_v61 = vld [vmem:[#allocation5 + $0x70] sm:$0xff] }
 0x3bd   :  { %17748 = vst [vmem:[#allocation387_spill] sm:$0xff] %v14554_v31  ;;  %7314 = vmatpush.msrb.mxu3 %v14309_v23  ;;  %7170 = vmatpush.msrb.mxu1 %v14263_v46  ;;  %v14569_v46 = vand.u32 4294901760, %v157_v36 }
 0x3be   :  { %7121 = vmatpush.msrb.mxu0 %v14344_v63  ;;  %7255 = vmatpush.msrb.mxu2 %v17749_v32  ;;  %v17759_v32 = vand.u32 4294901760, %v14399_v8 }
 0x3bf   :  { %7316 = vmatpush.msrb.mxu3 %v14323_v54  ;;  %6855 = vmatmul.f32.gmra.mxu0 %v17719_v9  ;;  %v14584_v63 = vsub.f32 %v157_v36, %v14569_v46  ;;  %v137_v36 = vld [vmem:[#allocation5 + $0x1d8] sm:$0xff] }
 0x3c0   :  { %6900 = vmatmul.f32.gmra.mxu1 %v17708_v5  ;;  %7082 = vmatmul.f32.gmra.mxu3 %v17751_v12 }
 0x3c1   :  { %7172 = vmatpush.msrb.mxu1 %v14277_v39  ;;  %7124 = vmatpush.msrb.mxu0 %v14364_v3  ;;  %v17754_v39 = vand.u32 4294901760, %v14364_v3 }
 0x3c2   :  { %7259 = vmatpush.msrb.mxu2 %v17752_v38  ;;  %7318 = vmatpush.msrb.mxu3 %v14338_v14  ;;  %v14607_v38 = vpop.f32.mrf.mxu3 }
 0x3c3   :  { %6969 = vmatmul.f32.gmra.mxu2 %v17753_v11  ;;  %7174 = vmatpush.msrb.mxu1 %v14291_v44  ;;  %17760 = vst [vmem:[#allocation392_spill] sm:$0xff] %v14607_v38  ;;  %v107_v11 = vld [vmem:[#allocation5 + $0xe8] sm:$0xff] }
 0x3c4   :  { %7127 = vmatpush.msrb.mxu0 %v14385_v4  ;;  %7263 = vmatpush.msrb.mxu2 %v17754_v39  ;;  %v14588_v48 = vpop.f32.mrf.mxu0  ;;  %v14595_v3 = vpop.f32.mrf.mxu2  ;;  %v14612_v4 = vsub.f32 %v147_v35, %v14586_v30  ;;  %v132_v39 = vld [vmem:[#allocation5 + $0x1b0] sm:$0xff] }
 0x3c5   :  { %7320 = vmatpush.msrb.mxu3 %v14354_v45  ;;  %7176 = vmatpush.msrb.mxu1 %v14309_v23  ;;  %17755 = vst [vmem:[#allocation389_spill] sm:$0xff] %v14588_v48  ;;  %v14590_v44 = vpop.f32.mrf.mxu1  ;;  %v14600_v23 = vsub.f32 %v152_v59, %v14576_v37  ;;  %v17761_v59 = vld [vmem:[#allocation77_spill] sm:$0xff] }
 0x3c6   :  { %17756 = vst [vmem:[#allocation390_spill] sm:$0xff] %v14590_v44  ;;  %7130 = vmatpush.msrb.mxu0 %v14399_v8  ;;  %7267 = vmatpush.msrb.mxu2 %v17757_v13  ;;  %v14620_v8 = vand.u32 4294901760, %v137_v36  ;;  %v14623_v13 = vsub.f32 %v142_v41, %v14602_v22  ;;  %v122_v41 = vld [vmem:[#allocation5 + $0x160] sm:$0xff]  ;;  %v112_v44 = vld [vmem:[#allocation5 + $0x110] sm:$0xff] }
 0x3c7   :  { %17758 = vst [vmem:[#allocation391_spill] sm:$0xff] %v14595_v3  ;;  %7322 = vmatpush.msrb.mxu3 %v14373_v16  ;;  %7178 = vmatpush.msrb.mxu1 %v14323_v54  ;;  %v16657_v54 = vand.u32 4294901760, %v14584_v63  ;;  %v16658_v35 = vand.u32 4294901760, %v14600_v23 }
 0x3c8   :  { %7133 = vmatpush.msrb.mxu0 %v14406_v33  ;;  %7271 = vmatpush.msrb.mxu2 %v17759_v32  ;;  %v127_v32 = vld [vmem:[#allocation5 + $0x188] sm:$0xff]  ;;  %v14633_v33 = vand.u32 4294901760, %v132_v39  ;;  %v14644_v38 = vsub.f32 %v137_v36, %v14620_v8  ;;  %v17768_v42 = vand.u32 4294901760, %v14623_v13 }
 0x3c9   :  { %7324 = vmatpush.msrb.mxu3 %v14387_v47  ;;  %6904 = vmatmul.f32.gmra.mxu1 %v17719_v9 }
 0x3ca   :  { %7136 = vmatmul.f32.vlgmr.msrb.gmra.mxu0 %v17761_v59  ;;  %7180 = vmatpush.msrb.mxu1 %v14338_v14  ;;  %v7410_v14 = vsub.f32 %v14584_v63, %v16657_v54  ;;  %v14646_v54 = vand.u32 4294901760, %v127_v32 }
 0x3cb   :  { %7326 = vmatmul.f32.vlgmr.msrb.gmra.mxu3 %v17720_v20  ;;  %7275 = vmatpush.msrb.mxu2 %v7065_v15  ;;  %v14663_v15 = vsub.f32 %v132_v39, %v14633_v33 }
 0x3cc   :  { %7343 = vmatpush.msra.mxu0 %v14569_v46  ;;  %7590 = vmatpush.msra.mxu3 %v14569_v46  ;;  %v7411_v36 = vand.u32 4294901760, %v7410_v14  ;;  %v14677_v39 = vsub.f32 %v127_v32, %v14646_v54  ;;  %v14691_v32 = vand.u32 4294901760, %v112_v44 }
 0x3cd   :  { %7182 = vmatpush.msrb.mxu1 %v14354_v45  ;;  %7277 = vmatmul.f32.vlgmr.msrb.gmra.mxu2 %v17720_v20  ;;  %v7416_v45 = vsub.f32 %v14600_v23, %v16658_v35  ;;  %v17765_v35 = vand.u32 4294901760, %v14612_v4  ;;  %v17771_v31 = vand.u32 4294901760, %v14663_v15 }
 0x3ce   :  { %7345 = vmatpush.msra.mxu0 %v14576_v37  ;;  %7522 = vmatpush.msra.mxu2 %v14584_v63  ;;  %v14649_v59 = vpop.f32.mrf.mxu1 }
 0x3cf   :  { %7592 = vmatpush.msra.mxu3 %v14576_v37  ;;  %7184 = vmatpush.msrb.mxu1 %v14373_v16  ;;  %17762 = vst [vmem:[#allocation393_spill] sm:$0xff] %v14649_v59  ;;  %v14651_v48 = vpop.f32.mrf.mxu0  ;;  %v14655_v16 = vpop.f32.mrf.mxu2  ;;  %v7422_v3 = vsub.f32 %v14612_v4, %v17765_v35  ;;  %v14665_v59 = vand.u32 4294901760, %v122_v41  ;;  %v7417_v14 = vand.u32 4294901760, %v7416_v45  ;;  %v7428_v35 = vsub.f32 %v14623_v13, %v17768_v42  ;;  %v102_v42 = vld [vmem:[#allocation5 + $0xc0] sm:$0xff] }
 0x3d0   :  { %17763 = vst [vmem:[#allocation394_spill] sm:$0xff] %v14651_v48  ;;  %7347 = vmatpush.msra.mxu0 %v14586_v30  ;;  %7525 = vmatpush.msra.mxu2 %v14600_v23  ;;  %v7440_v0 = vsub.f32 %v14663_v15, %v17771_v31  ;;  %v17775_v31 = vand.u32 4294901760, %v14677_v39  ;;  %v87_v48 = vld [vmem:[#allocation5 + $0x48] sm:$0xff] }
 0x3d1   :  { %17764 = vst [vmem:[#allocation395_spill] sm:$0xff] %v14655_v16  ;;  %7594 = vmatpush.msra.mxu3 %v14586_v30  ;;  %7186 = vmatpush.msrb.mxu1 %v14387_v47  ;;  %v14669_v16 = vpop.f32.mrf.mxu3  ;;  %v17767_v47 = vld [vmem:[#allocation44_spill] sm:$0xff]  ;;  %v14686_v45 = vsub.f32 %v122_v41, %v14665_v59 }
 0x3d2   :  { %7349 = vmatpush.msra.mxu0 %v14602_v22  ;;  %7528 = vmatpush.msra.mxu2 %v14612_v4  ;;  %17766 = vst [vmem:[#allocation396_spill] sm:$0xff] %v14669_v16  ;;  %v7423_v16 = vand.u32 4294901760, %v7422_v3  ;;  %v17770_v3 = vand.u32 4294901760, %v14644_v38 }
 0x3d3   :  { %7596 = vmatpush.msra.mxu3 %v14602_v22  ;;  %7141 = vmatmul.f32.gmra.mxu0 %v17767_v47  ;;  %v14683_v47 = vand.u32 4294901760, %v117_v25 }
 0x3d4   :  { %7190 = vmatmul.f32.vlgmr.msrb.gmra.mxu1 %v17769_v60  ;;  %7330 = vmatmul.f32.gmra.mxu3 %v17731_v7  ;;  %v7434_v60 = vsub.f32 %v14644_v38, %v17770_v3  ;;  %v7446_v3 = vsub.f32 %v14677_v39, %v17775_v31 }
 0x3d5   :  { %7412 = vmatpush.msra.mxu1 %v7411_v36  ;;  %7351 = vmatpush.msra.mxu0 %v14620_v8  ;;  %v7429_v36 = vand.u32 4294901760, %v7428_v35  ;;  %v14707_v35 = vand.u32 4294901760, %v107_v11 }
 0x3d6   :  { %7531 = vmatpush.msra.mxu2 %v14623_v13  ;;  %7598 = vmatpush.msra.mxu3 %v14620_v8 }
 0x3d7   :  { %7281 = vmatmul.f32.gmra.mxu2 %v17731_v7  ;;  %7418 = vmatpush.msra.mxu1 %v7417_v14  ;;  %v14705_v14 = vsub.f32 %v117_v25, %v14683_v47  ;;  %v7435_v25 = vand.u32 4294901760, %v7434_v60  ;;  %v17778_v60 = vand.u32 4294901760, %v14686_v45  ;;  %v14737_v31 = vsub.f32 %v107_v11, %v14707_v35 }
 0x3d8   :  { %7353 = vmatpush.msra.mxu0 %v14633_v33  ;;  %7534 = vmatpush.msra.mxu2 %v14644_v38  ;;  %v14710_v41 = vpop.f32.mrf.mxu0  ;;  %v14719_v40 = vpop.f32.mrf.mxu2  ;;  %v14751_v11 = vand.u32 4294901760, %v92_v61 }
 0x3d9   :  { %7600 = vmatpush.msra.mxu3 %v14633_v33  ;;  %7424 = vmatpush.msra.mxu1 %v7423_v16  ;;  %17772 = vst [vmem:[#allocation397_spill] sm:$0xff] %v14710_v41  ;;  %v14712_v57 = vpop.f32.mrf.mxu1  ;;  %v14717_v16 = vsub.f32 %v112_v44, %v14691_v32  ;;  %v14725_v41 = vand.u32 4294901760, %v102_v42  ;;  %v14729_v49 = vpop.f32.mrf.mxu3  ;;  %v17777_v44 = vld [vmem:[#allocation55_spill] sm:$0xff] }
 0x3da   :  { %17773 = vst [vmem:[#allocation398_spill] sm:$0xff] %v14712_v57  ;;  %7355 = vmatpush.msra.mxu0 %v14646_v54  ;;  %7537 = vmatpush.msra.mxu2 %v14663_v15  ;;  %v97_v57 = vld [vmem:[#allocation5 + $0x98] sm:$0xff] }
 0x3db   :  { %17774 = vst [vmem:[#allocation399_spill] sm:$0xff] %v14719_v40  ;;  %7602 = vmatpush.msra.mxu3 %v14646_v54  ;;  %7430 = vmatpush.msra.mxu1 %v7429_v36  ;;  %v7441_v40 = vand.u32 4294901760, %v7440_v0  ;;  %v7452_v36 = vsub.f32 %v14686_v45, %v17778_v60  ;;  %v7447_v0 = vand.u32 4294901760, %v7446_v3  ;;  %v14747_v60 = vsub.f32 %v102_v42, %v14725_v41 }
 0x3dc   :  { %7357 = vmatpush.msra.mxu0 %v14665_v59  ;;  %7540 = vmatpush.msra.mxu2 %v14677_v39  ;;  %17776 = vst [vmem:[#allocation400_spill] sm:$0xff] %v14729_v49  ;;  %v14742_v49 = vand.u32 4294901760, %v97_v57  ;;  %v17781_v10 = vand.u32 4294901760, %v14717_v16  ;;  %v14772_v42 = vand.u32 4294901760, %v232_v53 }
 0x3dd   :  { %7604 = vmatpush.msra.mxu3 %v14665_v59  ;;  %7146 = vmatmul.f32.gmra.mxu0 %v17777_v44  ;;  %v17780_v44 = vand.u32 4294901760, %v14705_v14 }
 0x3de   :  { %7196 = vmatmul.f32.gmra.mxu1 %v17779_v6  ;;  %7334 = vmatmul.f32.gmra.mxu3 %v17741_v50  ;;  %v14753_v6 = vand.u32 4294901760, %v237_v43  ;;  %v7464_v18 = vsub.f32 %v14717_v16, %v17781_v10  ;;  %v14766_v1 = vsub.f32 %v97_v57, %v14742_v49  ;;  %v14781_v57 = vsub.f32 %v92_v61, %v14751_v11  ;;  %v17790_v61 = vld [vmem:[#allocation87_spill] sm:$0xff] }
 0x3df   :  { %7436 = vmatpush.msra.mxu1 %v7435_v25  ;;  %7359 = vmatpush.msra.mxu0 %v14683_v47  ;;  %v7453_v25 = vand.u32 4294901760, %v7452_v36  ;;  %v7458_v3 = vsub.f32 %v14705_v14, %v17780_v44  ;;  %v14769_v36 = vand.u32 4294901760, %v87_v48  ;;  %v14810_v56 = vsub.f32 %v232_v53, %v14772_v42 }
 0x3e0   :  { %7543 = vmatpush.msra.mxu2 %v14686_v45  ;;  %7606 = vmatpush.msra.mxu3 %v14683_v47  ;;  %v14784_v10 = vsub.f32 %v237_v43, %v14753_v6  ;;  %v7465_v43 = vand.u32 4294901760, %v7464_v18  ;;  %v217_v18 = vld [vmem:[#allocation5 + $0x458] sm:$0xff]  ;;  %v17794_v9 = vand.u32 4294901760, %v14781_v57 }
 0x3e1   :  { %7285 = vmatmul.f32.gmra.mxu2 %v17741_v50  ;;  %7442 = vmatpush.msra.mxu1 %v7441_v40  ;;  %v227_v40 = vld [vmem:[#allocation5 + $0x4a8] sm:$0xff]  ;;  %v7459_v44 = vand.u32 4294901760, %v7458_v3  ;;  %v17789_v3 = vand.u32 4294901760, %v14747_v60  ;;  %v14807_v19 = vsub.f32 %v87_v48, %v14769_v36  ;;  %v14820_v48 = vsub.f32 %v82_v29, %v14792_v2 }
 0x3e2   :  { %7361 = vmatpush.msra.mxu0 %v14691_v32  ;;  %7546 = vmatpush.msra.mxu2 %v14705_v14  ;;  %v14774_v62 = vpop.f32.mrf.mxu0  ;;  %v14786_v17 = vpop.f32.mrf.mxu2  ;;  %v14794_v55 = vand.u32 4294901760, %v227_v40  ;;  %v14830_v52 = vand.u32 4294901760, %v217_v18 }
 0x3e3   :  { %7608 = vmatpush.msra.mxu3 %v14691_v32  ;;  %7448 = vmatpush.msra.mxu1 %v7447_v0  ;;  %17782 = vst [vmem:[#allocation401_spill] sm:$0xff] %v14774_v62  ;;  %v14776_v50 = vpop.f32.mrf.mxu1  ;;  %v222_v0 = vld [vmem:[#allocation5 + $0x480] sm:$0xff]  ;;  %v17785_v62 = vand.u32 4294901760, %v14737_v31  ;;  %v17803_v5 = vand.u32 4294901760, %v14820_v48 }
 0x3e4   :  { %17783 = vst [vmem:[#allocation402_spill] sm:$0xff] %v14776_v50  ;;  %7363 = vmatpush.msra.mxu0 %v14707_v35  ;;  %7549 = vmatpush.msra.mxu2 %v14717_v16  ;;  %v14812_v7 = vand.u32 4294901760, %v222_v0  ;;  %v14823_v53 = vsub.f32 %v227_v40, %v14794_v55 }
 0x3e5   :  { %17784 = vst [vmem:[#allocation403_spill] sm:$0xff] %v14786_v17  ;;  %7610 = vmatpush.msra.mxu3 %v14707_v35  ;;  %7454 = vmatpush.msra.mxu1 %v7453_v25  ;;  %v7470_v50 = vsub.f32 %v14737_v31, %v17785_v62  ;;  %v14799_v17 = vpop.f32.mrf.mxu3  ;;  %v17788_v25 = vld [vmem:[#allocation92_spill] sm:$0xff]  ;;  %v7476_v62 = vsub.f32 %v14747_v60, %v17789_v3 }
 0x3e6   :  { %7365 = vmatpush.msra.mxu0 %v14725_v41  ;;  %7552 = vmatpush.msra.mxu2 %v14737_v31  ;;  %17787 = vst [vmem:[#allocation405_spill] sm:$0xff] %v14799_v17  ;;  %v7500_v26 = vsub.f32 %v14820_v48, %v17803_v5 }
 0x3e7   :  { %7612 = vmatpush.msra.mxu3 %v14725_v41  ;;  %7151 = vmatmul.f32.gmra.mxu0 %v17788_v25  ;;  %v7471_v3 = vand.u32 4294901760, %v7470_v50  ;;  %17791 = vst [vmem:[#allocation406_spill] sm:$0xff] %v14823_v53  ;;  %v7477_v50 = vand.u32 4294901760, %v7476_v62  ;;  %v14836_v25 = vsub.f32 %v222_v0, %v14812_v7  ;;  %v207_v62 = vld [vmem:[#allocation5 + $0x408] sm:$0xff]  ;;  %v17798_v0 = vand.u32 4294901760, %v14810_v56 }
 0x3e8   :  { %7202 = vmatmul.f32.gmra.mxu1 %v17790_v61  ;;  %7338 = vmatmul.f32.gmra.mxu3 %v17751_v12  ;;  %v17792_v61 = vand.u32 4294901760, %v14766_v1 }
 0x3e9   :  { %7460 = vmatpush.msra.mxu1 %v7459_v44  ;;  %7367 = vmatpush.msra.mxu0 %v14742_v49  ;;  %v212_v44 = vld [vmem:[#allocation5 + $0x430] sm:$0xff]  ;;  %v7850_v40 = vsub.f32 %v14810_v56, %v17798_v0  ;;  %v17802_v0 = vand.u32 4294901760, %v14823_v53  ;;  %v17806_v27 = vand.u32 4294901760, %v14836_v25 }
 0x3ea   :  { %7555 = vmatpush.msra.mxu2 %v14747_v60  ;;  %7614 = vmatpush.msra.mxu3 %v14742_v49  ;;  %v7482_v17 = vsub.f32 %v14766_v1, %v17792_v61  ;;  %v17793_v61 = vand.u32 4294901760, %v14784_v10  ;;  %v14849_v29 = vand.u32 4294901760, %v212_v44 }
 0x3eb   :  { %7289 = vmatmul.f32.gmra.mxu2 %v17751_v12  ;;  %7466 = vmatpush.msra.mxu1 %v7465_v43  ;;  %v7488_v43 = vsub.f32 %v14781_v57, %v17794_v9  ;;  %v14858_v9 = vsub.f32 %v217_v18, %v14830_v52  ;;  %v7862_v5 = vsub.f32 %v14836_v25, %v17806_v27  ;;  %v17809_v27 = vand.u32 4294901760, %v14600_v23 }
 0x3ec   :  { %7369 = vmatpush.msra.mxu0 %v14751_v11  ;;  %7558 = vmatpush.msra.mxu2 %v14766_v1  ;;  %v7844_v20 = vsub.f32 %v14784_v10, %v17793_v61  ;;  %v14851_v12 = vpop.f32.mrf.mxu0  ;;  %v7483_v61 = vand.u32 4294901760, %v7482_v17  ;;  %v14870_v17 = vand.u32 4294901760, %v207_v62  ;;  %v14885_v24 = vsub.f32 %v212_v44, %v14849_v29 }
 0x3ed   :  { %7616 = vmatpush.msra.mxu3 %v14751_v11  ;;  %7472 = vmatpush.msra.mxu1 %v7471_v3  ;;  %17795 = vst [vmem:[#allocation407_spill] sm:$0xff] %v14851_v12  ;;  %v14853_v51 = vpop.f32.mrf.mxu1  ;;  %v14860_v3 = vpop.f32.mrf.mxu2  ;;  %v17799_v12 = vand.u32 4294901760, %v14807_v19  ;;  %v17813_v23 = vand.u32 4294901760, %v14612_v4  ;;  %v17815_v4 = vand.u32 4294901760, %v14623_v13  ;;  %v17819_v13 = vld [vmem:[#allocation15_spill] sm:$0xff] }
 0x3ee   :  { %17796 = vst [vmem:[#allocation408_spill] sm:$0xff] %v14853_v51  ;;  %7371 = vmatpush.msra.mxu0 %v14769_v36  ;;  %7561 = vmatpush.msra.mxu2 %v14781_v57  ;;  %v7845_v18 = vand.u32 4294901760, %v7844_v20  ;;  %v14874_v28 = vpop.f32.mrf.mxu3  ;;  %v197_v20 = vld [vmem:[#allocation5 + $0x3b8] sm:$0xff]  ;;  %v14897_v44 = vsub.f32 %v207_v62, %v14870_v17  ;;  %v187_v62 = vld [vmem:[#allocation5 + $0x368] sm:$0xff] }
 0x3ef   :  { %17797 = vst [vmem:[#allocation409_spill] sm:$0xff] %v14860_v3  ;;  %7618 = vmatpush.msra.mxu3 %v14769_v36  ;;  %7478 = vmatpush.msra.mxu1 %v7477_v50  ;;  %v7494_v51 = vsub.f32 %v14807_v19, %v17799_v12  ;;  %v7489_v3 = vand.u32 4294901760, %v7488_v43  ;;  %v17801_v50 = vld [vmem:[#allocation95_spill] sm:$0xff]  ;;  %v7856_v12 = vsub.f32 %v14823_v53, %v17802_v0  ;;  %v17804_v43 = vld [vmem:[#allocation25_spill] sm:$0xff]  ;;  %v7851_v0 = vand.u32 4294901760, %v7850_v40 }
 0x3f0   :  { %7373 = vmatpush.msra.mxu0 %v14792_v2  ;;  %7564 = vmatpush.msra.mxu2 %v14807_v19  ;;  %17800 = vst [vmem:[#allocation410_spill] sm:$0xff] %v14874_v28  ;;  %v7501_v40 = vand.u32 4294901760, %v7500_v26  ;;  %v14906_v53 = vsub.f32 %v202_v21, %v14887_v58  ;;  %v17817_v26 = vld [vmem:[#allocation29_spill] sm:$0xff] }
 0x3f1   :  { %7620 = vmatpush.msra.mxu3 %v14792_v2  ;;  %7208 = vmatmul.f32.gmra.mxu1 %v17801_v50  ;;  %v17805_v50 = vld [vmem:[#allocation20_spill] sm:$0xff]  ;;  %v7495_v34 = vand.u32 4294901760, %v7494_v51  ;;  %v17807_v2 = vand.u32 4294901760, %v14584_v63  ;;  %v7857_v28 = vand.u32 4294901760, %v7856_v12  ;;  %v16670_v51 = vand.u32 4294901760, %v14885_v24 }
 0x3f2   :  { %7379 = vmatmul.f32.vlgmr.msra.gmra.mxu0 %v17804_v43  ;;  %7484 = vmatpush.msra.mxu1 %v7483_v61  ;;  %v14901_v61 = vand.u32 4294901760, %v197_v20  ;;  %v192_v43 = vld [vmem:[#allocation5 + $0x390] sm:$0xff] }
 0x3f3   :  { %7624 = vmatmul.f32.vlgmr.msra.gmra.mxu3 %v17805_v50  ;;  %7567 = vmatpush.msra.mxu2 %v14820_v48  ;;  %v17808_v50 = vld [vmem:[#allocation17_spill] sm:$0xff] }
 0x3f4   :  { %7649 = vmatpush.msrb.mxu0 %v17807_v2  ;;  %7846 = vmatpush.msrb.mxu3 %v7845_v18  ;;  %v17810_v2 = vand.u32 4294901760, %v14858_v9  ;;  %v14915_v18 = vand.u32 4294901760, %v192_v43 }
 0x3f5   :  { %7490 = vmatpush.msra.mxu1 %v7489_v3  ;;  %7570 = vmatmul.f32.vlgmr.msra.gmra.mxu2 %v17808_v50  ;;  %v7863_v3 = vand.u32 4294901760, %v7862_v5  ;;  %v14925_v50 = vsub.f32 %v197_v20, %v14901_v61 }
 0x3f6   :  { %7653 = vmatpush.msrb.mxu0 %v17809_v27  ;;  %7777 = vmatpush.msrb.mxu2 %v14753_v6  ;;  %v7868_v63 = vsub.f32 %v14858_v9, %v17810_v2  ;;  %v14917_v12 = vpop.f32.mrf.mxu1  ;;  %v182_v27 = vld [vmem:[#allocation5 + $0x340] sm:$0xff]  ;;  %v14933_v2 = vand.u32 4294901760, %v187_v62 }
 0x3f7   :  { %7852 = vmatpush.msrb.mxu3 %v7851_v0  ;;  %7496 = vmatpush.msra.mxu1 %v7495_v34  ;;  %17811 = vst [vmem:[#allocation25_spill] sm:$0xff] %v14917_v12  ;;  %v14919_v21 = vpop.f32.mrf.mxu0  ;;  %v14927_v0 = vpop.f32.mrf.mxu2  ;;  %v7874_v34 = vsub.f32 %v14885_v24, %v16670_v51  ;;  %v14945_v51 = vsub.f32 %v192_v43, %v14915_v18  ;;  %v14947_v5 = vand.u32 4294901760, %v182_v27 }
 0x3f8   :  { %17812 = vst [vmem:[#allocation20_spill] sm:$0xff] %v14919_v21  ;;  %7657 = vmatpush.msrb.mxu0 %v17813_v23  ;;  %7779 = vmatpush.msrb.mxu2 %v14772_v42  ;;  %v7869_v20 = vand.u32 4294901760, %v7868_v63  ;;  %v14938_v23 = vpop.f32.mrf.mxu3  ;;  %v17823_v63 = vld [vmem:[#allocation24_spill] sm:$0xff]  ;;  %v17979_v21 = vld [vmem:[#allocation121_spill] sm:$0xff] }
 0x3f9   :  { %17814 = vst [vmem:[#allocation17_spill] sm:$0xff] %v14927_v0  ;;  %7858 = vmatpush.msrb.mxu3 %v7857_v28  ;;  %7502 = vmatpush.msra.mxu1 %v7501_v40  ;;  %v17818_v28 = vand.u32 4294901760, %v14897_v44  ;;  %v177_v0 = vld [vmem:[#allocation5 + $0x318] sm:$0xff] }
 0x3fa   :  { %7661 = vmatpush.msrb.mxu0 %v17815_v4  ;;  %7781 = vmatpush.msrb.mxu2 %v14794_v55  ;;  %17816 = vst [vmem:[#allocation411_spill] sm:$0xff] %v14938_v23  ;;  %v17820_v4 = vld [vmem:[#allocation26_spill] sm:$0xff]  ;;  %v14959_v23 = vsub.f32 %v187_v62, %v14933_v2  ;;  %v14962_v12 = vand.u32 4294901760, %v177_v0  ;;  %v17825_v62 = vand.u32 4294901760, %v14925_v50 }
 0x3fb   :  { %7864 = vmatpush.msrb.mxu3 %v7863_v3  ;;  %7387 = vmatmul.f32.gmra.mxu0 %v17817_v26  ;;  %v7880_v40 = vsub.f32 %v14897_v44, %v17818_v28  ;;  %v17821_v3 = vand.u32 4294901760, %v14644_v38  ;;  %v7875_v26 = vand.u32 4294901760, %v7874_v34  ;;  %v17822_v28 = vand.u32 4294901760, %v14906_v53 }
 0x3fc   :  { %7504 = vmatmul.f32.vlgmr.msra.gmra.mxu1 %v17819_v13  ;;  %7630 = vmatmul.f32.gmra.mxu3 %v17820_v4  ;;  %v172_v4 = vld [vmem:[#allocation5 + $0x2f0] sm:$0xff]  ;;  %v14968_v34 = vsub.f32 %v182_v27, %v14947_v5 }
 0x3fd   :  { %7728 = vmatpush.msrb.mxu1 %v14569_v46  ;;  %7665 = vmatpush.msrb.mxu0 %v17821_v3  ;;  %v7886_v43 = vsub.f32 %v14906_v53, %v17822_v28  ;;  %v7881_v46 = vand.u32 4294901760, %v7880_v40  ;;  %v17824_v3 = vand.u32 4294901760, %v14663_v15  ;;  %v167_v28 = vld [vmem:[#allocation5 + $0x2c8] sm:$0xff]  ;;  %v17828_v15 = vand.u32 4294901760, %v14677_v39 }
 0x3fe   :  { %7783 = vmatpush.msrb.mxu2 %v14812_v7  ;;  %7870 = vmatpush.msrb.mxu3 %v7869_v20  ;;  %v7892_v20 = vsub.f32 %v14925_v50, %v17825_v62  ;;  %v17831_v39 = vand.u32 4294901760, %v14686_v45  ;;  %v17836_v45 = vld [vmem:[#allocation30_spill] sm:$0xff] }
 0x3ff   :  { %7575 = vmatmul.f32.gmra.mxu2 %v17823_v63  ;;  %7730 = vmatpush.msrb.mxu1 %v14576_v37  ;;  %v7887_v37 = vand.u32 4294901760, %v7886_v43  ;;  %v14978_v63 = vand.u32 4294901760, %v172_v4 }
 0x400   :  { %7669 = vmatpush.msrb.mxu0 %v17824_v3  ;;  %7785 = vmatpush.msrb.mxu2 %v14830_v52  ;;  %v14980_v27 = vpop.f32.mrf.mxu0  ;;  %v14988_v3 = vsub.f32 %v177_v0, %v14962_v12  ;;  %v14990_v62 = vpop.f32.mrf.mxu2  ;;  %v7893_v0 = vand.u32 4294901760, %v7892_v20 }
 0x401   :  { %7876 = vmatpush.msrb.mxu3 %v7875_v26  ;;  %7732 = vmatpush.msrb.mxu1 %v14586_v30  ;;  %17826 = vst [vmem:[#allocation29_spill] sm:$0xff] %v14980_v27  ;;  %v14982_v38 = vpop.f32.mrf.mxu1  ;;  %v162_v26 = vld [vmem:[#allocation5 + $0x2a0] sm:$0xff]  ;;  %v17830_v30 = vand.u32 4294901760, %v14945_v51  ;;  %v14997_v27 = vand.u32 4294901760, %v167_v28 }
 0x402   :  { %17827 = vst [vmem:[#allocation15_spill] sm:$0xff] %v14982_v38  ;;  %7673 = vmatpush.msrb.mxu0 %v17828_v15  ;;  %7787 = vmatpush.msrb.mxu2 %v14849_v29  ;;  %v15002_v15 = vpop.f32.mrf.mxu3  ;;  %v15011_v40 = vand.u32 4294901760, %v162_v26  ;;  %v17835_v38 = vld [vmem:[#allocation22_spill] sm:$0xff]  ;;  %v7915_v20 = vand.u32 4294901760, %v14988_v3 }
 0x403   :  { %17829 = vst [vmem:[#allocation26_spill] sm:$0xff] %v14990_v62  ;;  %7882 = vmatpush.msrb.mxu3 %v7881_v46  ;;  %7734 = vmatpush.msrb.mxu1 %v14602_v22  ;;  %v7898_v43 = vsub.f32 %v14945_v51, %v17830_v30  ;;  %v17833_v46 = vld [vmem:[#allocation33_spill] sm:$0xff]  ;;  %v17834_v22 = vand.u32 4294901760, %v14959_v23  ;;  %v15009_v30 = vsub.f32 %v172_v4, %v14978_v63 }
 0x404   :  { %7677 = vmatpush.msrb.mxu0 %v17831_v39  ;;  %7789 = vmatpush.msrb.mxu2 %v14870_v17  ;;  %17832 = vst [vmem:[#allocation24_spill] sm:$0xff] %v15002_v15  ;;  %v15023_v4 = vsub.f32 %v167_v28, %v14997_v27  ;;  %v17839_v15 = vld [vmem:[#allocation28_spill] sm:$0xff]  ;;  %v7916_v28 = vsub.f32 %v14988_v3, %v7915_v20 }
 0x405   :  { %7888 = vmatpush.msrb.mxu3 %v7887_v37  ;;  %7395 = vmatmul.f32.gmra.mxu0 %v17833_v46  ;;  %v7904_v62 = vsub.f32 %v14959_v23, %v17834_v22  ;;  %v17837_v37 = vand.u32 4294901760, %v14705_v14  ;;  %v7899_v39 = vand.u32 4294901760, %v7898_v43  ;;  %v17838_v46 = vand.u32 4294901760, %v14968_v34 }
 0x406   :  { %7508 = vmatmul.f32.gmra.mxu1 %v17835_v38  ;;  %7636 = vmatmul.f32.gmra.mxu3 %v17836_v45  ;;  %v15030_v14 = vsub.f32 %v162_v26, %v15011_v40  ;;  %v17840_v43 = vand.u32 4294901760, %v14717_v16  ;;  %v17843_v26 = vand.u32 4294901760, %v14737_v31  ;;  %v7917_v31 = vand.u32 4294901760, %v7916_v28 }
 0x407   :  { %7736 = vmatpush.msrb.mxu1 %v14620_v8  ;;  %7681 = vmatpush.msrb.mxu0 %v17837_v37  ;;  %v7910_v22 = vsub.f32 %v14968_v34, %v17838_v46  ;;  %v7905_v45 = vand.u32 4294901760, %v7904_v62  ;;  %v7921_v8 = vand.u32 4294901760, %v15009_v30 }
 0x408   :  { %7791 = vmatpush.msrb.mxu2 %v14887_v58  ;;  %7894 = vmatpush.msrb.mxu3 %v7893_v0  ;;  %v7933_v37 = vand.u32 4294901760, %v15030_v14 }
 0x409   :  { %7580 = vmatmul.f32.gmra.mxu2 %v17839_v15  ;;  %7738 = vmatpush.msrb.mxu1 %v14633_v33  ;;  %v7911_v0 = vand.u32 4294901760, %v7910_v22  ;;  %v7927_v33 = vand.u32 4294901760, %v15023_v4  ;;  %v17847_v22 = vld [vmem:[#allocation36_spill] sm:$0xff] }
 0x40a   :  { %7685 = vmatpush.msrb.mxu0 %v17840_v43  ;;  %7793 = vmatpush.msrb.mxu2 %v14901_v61  ;;  %v15040_v62 = vpop.f32.mrf.mxu0  ;;  %v15047_v16 = vpop.f32.mrf.mxu2  ;;  %v17849_v43 = vld [vmem:[#allocation34_spill] sm:$0xff]  ;;  %v7934_v28 = vsub.f32 %v15030_v14, %v7933_v37 }
 0x40b   :  { %7900 = vmatpush.msrb.mxu3 %v7899_v39  ;;  %7740 = vmatpush.msrb.mxu1 %v14646_v54  ;;  %17841 = vst [vmem:[#allocation33_spill] sm:$0xff] %v15040_v62  ;;  %v15042_v15 = vpop.f32.mrf.mxu1  ;;  %v7922_v54 = vsub.f32 %v15009_v30, %v7921_v8  ;;  %v17845_v39 = vand.u32 4294901760, %v14747_v60  ;;  %v15057_v46 = vpop.f32.mrf.mxu3  ;;  %v17850_v60 = vand.u32 4294901760, %v14766_v1  ;;  %v17967_v62 = vld [vmem:[#allocation16_spill] sm:$0xff] }
 0x40c   :  { %17842 = vst [vmem:[#allocation22_spill] sm:$0xff] %v15042_v15  ;;  %7689 = vmatpush.msrb.mxu0 %v17843_v26  ;;  %7795 = vmatpush.msrb.mxu2 %v14915_v18  ;;  %v7935_v1 = vand.u32 4294901760, %v7934_v28  ;;  %v17868_v28 = vld [vmem:[#allocation404_spill] sm:$0xff] }
 0x40d   :  { %17844 = vst [vmem:[#allocation30_spill] sm:$0xff] %v15047_v16  ;;  %7906 = vmatpush.msrb.mxu3 %v7905_v45  ;;  %7742 = vmatpush.msrb.mxu1 %v14665_v59  ;;  %v7928_v59 = vsub.f32 %v15023_v4, %v7927_v33  ;;  %v17848_v45 = vld [vmem:[#allocation27_spill] sm:$0xff]  ;;  %v7923_v26 = vand.u32 4294901760, %v7922_v54 }
 0x40e   :  { %7693 = vmatpush.msrb.mxu0 %v17845_v39  ;;  %7797 = vmatpush.msrb.mxu2 %v14933_v2  ;;  %17846 = vst [vmem:[#allocation28_spill] sm:$0xff] %v15057_v46 }
 0x40f   :  { %7912 = vmatpush.msrb.mxu3 %v7911_v0  ;;  %7403 = vmatmul.f32.gmra.mxu0 %v17847_v22  ;;  %v17851_v0 = vld [vmem:[#allocation32_spill] sm:$0xff]  ;;  %v7929_v39 = vand.u32 4294901760, %v7928_v59  ;;  %v17852_v22 = vand.u32 4294901760, %v14781_v57  ;;  %v17857_v57 = vand.u32 4294901760, %v14820_v48  ;;  %v17859_v59 = vld [vmem:[#allocation31_spill] sm:$0xff]  ;;  %v17862_v48 = vand.u32 4294901760, %v14784_v10 }
 0x410   :  { %7512 = vmatmul.f32.gmra.mxu1 %v17848_v45  ;;  %7642 = vmatmul.f32.gmra.mxu3 %v17849_v43 }
 0x411   :  { %7744 = vmatpush.msrb.mxu1 %v14683_v47  ;;  %7697 = vmatpush.msrb.mxu0 %v17850_v60  ;;  %v17865_v60 = vld [vmem:[#allocation406_spill] sm:$0xff] }
 0x412   :  { %7799 = vmatpush.msrb.mxu2 %v14947_v5  ;;  %7918 = vmatpush.msrb.mxu3 %v7917_v31  ;;  %v17855_v31 = vand.u32 4294901760, %v14807_v19  ;;  %v17860_v19 = vld [vmem:[#allocation35_spill] sm:$0xff] }
 0x413   :  { %7585 = vmatmul.f32.gmra.mxu2 %v17851_v0  ;;  %7746 = vmatpush.msrb.mxu1 %v14691_v32  ;;  %v17872_v0 = vand.u32 4294901760, %v14836_v25 }
 0x414   :  { %7701 = vmatpush.msrb.mxu0 %v17852_v22  ;;  %7801 = vmatpush.msrb.mxu2 %v14962_v12  ;;  %v15078_v47 = vpop.f32.mrf.mxu0  ;;  %v15085_v32 = vpop.f32.mrf.mxu2  ;;  %v17874_v22 = vand.u32 4294901760, %v14858_v9 }
 0x415   :  { %7924 = vmatpush.msrb.mxu3 %v7923_v26  ;;  %7748 = vmatpush.msrb.mxu1 %v14707_v35  ;;  %17853 = vst [vmem:[#allocation36_spill] sm:$0xff] %v15078_v47  ;;  %v15080_v54 = vpop.f32.mrf.mxu1  ;;  %v15091_v35 = vpop.f32.mrf.mxu3  ;;  %v17866_v26 = vand.u32 4294901760, %v14810_v56 }
 0x416   :  { %17854 = vst [vmem:[#allocation27_spill] sm:$0xff] %v15080_v54  ;;  %7705 = vmatpush.msrb.mxu0 %v17855_v31  ;;  %7803 = vmatpush.msrb.mxu2 %v14978_v63 }
 0x417   :  { %17856 = vst [vmem:[#allocation34_spill] sm:$0xff] %v15085_v32  ;;  %7930 = vmatpush.msrb.mxu3 %v7929_v39  ;;  %7750 = vmatpush.msrb.mxu1 %v14725_v41  ;;  %v17861_v41 = vld [vmem:[#allocation40_spill] sm:$0xff]  ;;  %v17873_v39 = vld [vmem:[#allocation21_spill] sm:$0xff] }
 0x418   :  { %7709 = vmatpush.msrb.mxu0 %v17857_v57  ;;  %7805 = vmatpush.msrb.mxu2 %v14997_v27  ;;  %17858 = vst [vmem:[#allocation32_spill] sm:$0xff] %v15091_v35  ;;  %v312_v57 = vld [vmem:[#allocation5 + $0x750] sm:$0xff]  ;;  %v17943_v35 = vld [vmem:[#allocation99_spill] sm:$0xff] }
 0x419   :  { %7936 = vmatpush.msrb.mxu3 %v7935_v1  ;;  %7516 = vmatmul.f32.gmra.mxu1 %v17859_v59 }
 0x41a   :  { %7711 = vmatmul.f32.vlgmr.msrb.gmra.mxu0 %v17819_v13  ;;  %7752 = vmatpush.msrb.mxu1 %v14742_v49 }
 0x41b   :  { %7938 = vmatmul.f32.vlgmr.msrb.gmra.mxu3 %v17860_v19  ;;  %7807 = vmatpush.msrb.mxu2 %v15011_v40 }
 0x41c   :  { %7956 = vmatpush.msra.mxu0 %v14784_v10  ;;  %8162 = vmatpush.msra.mxu3 %v14753_v6  ;;  %v17869_v10 = vand.u32 4294901760, %v17865_v60 }
 0x41d   :  { %7754 = vmatpush.msrb.mxu1 %v14751_v11  ;;  %7813 = vmatmul.f32.vlgmr.msrb.gmra.mxu2 %v17861_v41  ;;  %v307_v41 = vld [vmem:[#allocation5 + $0x728] sm:$0xff] }
 0x41e   :  { %7959 = vmatpush.msra.mxu0 %v14810_v56  ;;  %8083 = vmatpush.msra.mxu2 %v17862_v48  ;;  %v15107_v49 = vpop.f32.mrf.mxu1  ;;  %v15114_v11 = vpop.f32.mrf.mxu2  ;;  %v17871_v56 = vld [vmem:[#allocation39_spill] sm:$0xff] }
 0x41f   :  { %8164 = vmatpush.msra.mxu3 %v14772_v42  ;;  %7756 = vmatpush.msrb.mxu1 %v14769_v36  ;;  %17863 = vst [vmem:[#allocation31_spill] sm:$0xff] %v15107_v49  ;;  %v15109_v43 = vpop.f32.mrf.mxu0  ;;  %v15121_v36 = vpop.f32.mrf.mxu3  ;;  %v17893_v48 = vld [vmem:[#allocation43_spill] sm:$0xff] }
 0x420   :  { %17864 = vst [vmem:[#allocation35_spill] sm:$0xff] %v15109_v43  ;;  %7962 = vmatpush.msra.mxu0 %v17865_v60  ;;  %8087 = vmatpush.msra.mxu2 %v17866_v26  ;;  %v15210_v60 = vand.u32 4294901760, %v307_v41 }
 0x421   :  { %17867 = vst [vmem:[#allocation40_spill] sm:$0xff] %v15114_v11  ;;  %8166 = vmatpush.msra.mxu3 %v14794_v55  ;;  %7758 = vmatpush.msrb.mxu1 %v17868_v28  ;;  %v297_v28 = vld [vmem:[#allocation5 + $0x6d8] sm:$0xff]  ;;  %v17934_v11 = vld [vmem:[#allocation101_spill] sm:$0xff] }
 0x422   :  { %7965 = vmatpush.msra.mxu0 %v14836_v25  ;;  %8091 = vmatpush.msra.mxu2 %v17869_v10  ;;  %17870 = vst [vmem:[#allocation406_spill] sm:$0xff] %v15121_v36  ;;  %v17877_v25 = vand.u32 4294901760, %v14885_v24  ;;  %v262_v36 = vld [vmem:[#allocation5 + $0x5c0] sm:$0xff] }
 0x423   :  { %8168 = vmatpush.msra.mxu3 %v14812_v7  ;;  %7715 = vmatmul.f32.gmra.mxu0 %v17835_v38 }
 0x424   :  { %7760 = vmatmul.f32.vlgmr.msrb.gmra.mxu1 %v17819_v13  ;;  %7942 = vmatmul.f32.gmra.mxu3 %v17871_v56 }
 0x425   :  { %8024 = vmatpush.msra.mxu1 %v14753_v6  ;;  %7968 = vmatpush.msra.mxu0 %v14858_v9  ;;  %v17883_v9 = vld [vmem:[#allocation41_spill] sm:$0xff] }
 0x426   :  { %8095 = vmatpush.msra.mxu2 %v17872_v0  ;;  %8170 = vmatpush.msra.mxu3 %v14830_v52  ;;  %v17899_v0 = vld [vmem:[#allocation68_spill] sm:$0xff] }
 0x427   :  { %7821 = vmatmul.f32.gmra.mxu2 %v17873_v39  ;;  %8026 = vmatpush.msra.mxu1 %v14772_v42  ;;  %v17879_v42 = vand.u32 4294901760, %v14897_v44 }
 0x428   :  { %7971 = vmatpush.msra.mxu0 %v14885_v24  ;;  %8099 = vmatpush.msra.mxu2 %v17874_v22  ;;  %v15139_v6 = vpop.f32.mrf.mxu0  ;;  %v15146_v1 = vpop.f32.mrf.mxu2  ;;  %v17881_v24 = vld [vmem:[#allocation19_spill] sm:$0xff]  ;;  %v17900_v22 = vld [vmem:[#allocation37_spill] sm:$0xff] }
 0x429   :  { %8172 = vmatpush.msra.mxu3 %v14849_v29  ;;  %8028 = vmatpush.msra.mxu1 %v14794_v55  ;;  %17875 = vst [vmem:[#allocation404_spill] sm:$0xff] %v15139_v6  ;;  %v15141_v13 = vpop.f32.mrf.mxu1  ;;  %v15153_v55 = vpop.f32.mrf.mxu3  ;;  %v17959_v6 = vld [vmem:[#allocation104_spill] sm:$0xff] }
 0x42a   :  { %17876 = vst [vmem:[#allocation39_spill] sm:$0xff] %v15141_v13  ;;  %7974 = vmatpush.msra.mxu0 %v14897_v44  ;;  %8103 = vmatpush.msra.mxu2 %v17877_v25  ;;  %v17884_v44 = vand.u32 4294901760, %v14925_v50 }
 0x42b   :  { %17878 = vst [vmem:[#allocation21_spill] sm:$0xff] %v15146_v1  ;;  %8174 = vmatpush.msra.mxu3 %v14870_v17  ;;  %8030 = vmatpush.msra.mxu1 %v14812_v7  ;;  %v17882_v7 = vand.u32 4294901760, %v14906_v53 }
 0x42c   :  { %7977 = vmatpush.msra.mxu0 %v14906_v53  ;;  %8107 = vmatpush.msra.mxu2 %v17879_v42  ;;  %17880 = vst [vmem:[#allocation412_spill] sm:$0xff] %v15153_v55  ;;  %v17887_v53 = vand.u32 4294901760, %v14945_v51  ;;  %v17901_v42 = vld [vmem:[#allocation67_spill] sm:$0xff] }
 0x42d   :  { %8176 = vmatpush.msra.mxu3 %v14887_v58  ;;  %7719 = vmatmul.f32.gmra.mxu0 %v17848_v45 }
 0x42e   :  { %7764 = vmatmul.f32.gmra.mxu1 %v17835_v38  ;;  %7946 = vmatmul.f32.gmra.mxu3 %v17881_v24 }
 0x42f   :  { %8032 = vmatpush.msra.mxu1 %v14830_v52  ;;  %7980 = vmatpush.msra.mxu0 %v14925_v50 }
 0x430   :  { %8111 = vmatpush.msra.mxu2 %v17882_v7  ;;  %8178 = vmatpush.msra.mxu3 %v14901_v61  ;;  %v17902_v7 = vld [vmem:[#allocation75_spill] sm:$0xff] }
 0x431   :  { %7829 = vmatmul.f32.gmra.mxu2 %v17883_v9  ;;  %8034 = vmatpush.msra.mxu1 %v14849_v29  ;;  %v17889_v29 = vand.u32 4294901760, %v14959_v23  ;;  %v15185_v50 = vpop.f32.mrf.mxu3  ;;  %v566_v9 = vadd.f32 %v17902_v7, %v17901_v42 }
 0x432   :  { %7983 = vmatpush.msra.mxu0 %v14945_v51  ;;  %8115 = vmatpush.msra.mxu2 %v17884_v44  ;;  %v15171_v52 = vpop.f32.mrf.mxu0  ;;  %v15178_v31 = vpop.f32.mrf.mxu2  ;;  %17890 = vst [vmem:[#allocation414_spill] sm:$0xff] %v15185_v50  ;;  %v17891_v51 = vld [vmem:[#allocation23_spill] sm:$0xff] }
 0x433   :  { %8180 = vmatpush.msra.mxu3 %v14915_v18  ;;  %8036 = vmatpush.msra.mxu1 %v14870_v17  ;;  %17885 = vst [vmem:[#allocation19_spill] sm:$0xff] %v15171_v52  ;;  %v15173_v38 = vpop.f32.mrf.mxu1  ;;  %v317_v17 = vld [vmem:[#allocation5 + $0x778] sm:$0xff]  ;;  %v17935_v52 = vld [vmem:[#allocation102_spill] sm:$0xff] }
 0x434   :  { %17886 = vst [vmem:[#allocation41_spill] sm:$0xff] %v15173_v38  ;;  %7986 = vmatpush.msra.mxu0 %v14959_v23  ;;  %8119 = vmatpush.msra.mxu2 %v17887_v53  ;;  %v17892_v23 = vand.u32 4294901760, %v14968_v34  ;;  %v17903_v53 = vld [vmem:[#allocation69_spill] sm:$0xff] }
 0x435   :  { %17888 = vst [vmem:[#allocation413_spill] sm:$0xff] %v15178_v31  ;;  %8182 = vmatpush.msra.mxu3 %v14933_v2  ;;  %8038 = vmatpush.msra.mxu1 %v14887_v58  ;;  %v15193_v58 = vand.u32 4294901760, %v317_v17 }
 0x436   :  { %7989 = vmatpush.msra.mxu0 %v14968_v34  ;;  %8123 = vmatpush.msra.mxu2 %v17889_v29 }
 0x437   :  { %8184 = vmatpush.msra.mxu3 %v14947_v5  ;;  %7723 = vmatmul.f32.gmra.mxu0 %v17859_v59  ;;  %v15208_v34 = vsub.f32 %v317_v17, %v15193_v58  ;;  %v282_v17 = vld [vmem:[#allocation5 + $0x660] sm:$0xff] }
 0x438   :  { %7768 = vmatmul.f32.gmra.mxu1 %v17848_v45  ;;  %7950 = vmatmul.f32.gmra.mxu3 %v17891_v51  ;;  %v15200_v45 = vand.u32 4294901760, %v312_v57 }
 0x439   :  { %8040 = vmatpush.msra.mxu1 %v14901_v61  ;;  %7992 = vmatpush.msra.mxu0 %v14988_v3  ;;  %v302_v61 = vld [vmem:[#allocation5 + $0x700] sm:$0xff]  ;;  %v15231_v10 = vpop.f32.mrf.mxu3 }
 0x43a   :  { %8127 = vmatpush.msra.mxu2 %v17892_v23  ;;  %8186 = vmatpush.msra.mxu3 %v14962_v12  ;;  %17897 = vst [vmem:[#allocation416_spill] sm:$0xff] %v15231_v10  ;;  %v17916_v10 = vld [vmem:[#allocation53_spill] sm:$0xff] }
 0x43b   :  { %7837 = vmatmul.f32.gmra.mxu2 %v17893_v48  ;;  %8042 = vmatpush.msra.mxu1 %v14915_v18 }
 0x43c   :  { %7995 = vmatpush.msra.mxu0 %v15009_v30  ;;  %8131 = vmatpush.msra.mxu2 %v7915_v20  ;;  %v15212_v26 = vpop.f32.mrf.mxu0  ;;  %v15219_v3 = vpop.f32.mrf.mxu2  ;;  %v15226_v20 = vand.u32 4294901760, %v302_v61  ;;  %v15236_v30 = vsub.f32 %v307_v41, %v15210_v60 }
 0x43d   :  { %8188 = vmatpush.msra.mxu3 %v14978_v63  ;;  %8044 = vmatpush.msra.mxu1 %v14933_v2  ;;  %17894 = vst [vmem:[#allocation23_spill] sm:$0xff] %v15212_v26  ;;  %v15214_v18 = vpop.f32.mrf.mxu1  ;;  %v15224_v2 = vsub.f32 %v312_v57, %v15200_v45 }
 0x43e   :  { %17895 = vst [vmem:[#allocation43_spill] sm:$0xff] %v15214_v18  ;;  %7998 = vmatpush.msra.mxu0 %v15023_v4  ;;  %8135 = vmatpush.msra.mxu2 %v7921_v8  ;;  %v17898_v8 = vld [vmem:[#allocation62_spill] sm:$0xff]  ;;  %v16672_v44 = vand.u32 4294901760, %v15236_v30 }
 0x43f   :  { %17896 = vst [vmem:[#allocation415_spill] sm:$0xff] %v15219_v3  ;;  %8190 = vmatpush.msra.mxu3 %v14997_v27  ;;  %8046 = vmatpush.msra.mxu1 %v14947_v5  ;;  %v16673_v5 = vand.u32 4294901760, %v15208_v34  ;;  %v562_v39 = vadd.f32 %v17899_v0, %v17898_v8  ;;  %v292_v4 = vld [vmem:[#allocation5 + $0x6b0] sm:$0xff]  ;;  %v16671_v25 = vand.u32 4294901760, %v15224_v2 }
 0x440   :  { %8001 = vmatpush.msra.mxu0 %v15030_v14  ;;  %8139 = vmatpush.msra.mxu2 %v7927_v33  ;;  %v15246_v33 = vand.u32 4294901760, %v297_v28  ;;  %v17907_v0 = vld [vmem:[#allocation74_spill] sm:$0xff]  ;;  %v8290_v42 = vsub.f32 %v15236_v30, %v16672_v44  ;;  %v17914_v44 = vld [vmem:[#allocation12_spill] sm:$0xff] }
 0x441   :  { %8192 = vmatpush.msra.mxu3 %v15011_v40  ;;  %7772 = vmatmul.f32.gmra.mxu1 %v17859_v59  ;;  %v15249_v59 = vsub.f32 %v302_v61, %v15226_v20  ;;  %v8278_v14 = vsub.f32 %v15208_v34, %v16673_v5  ;;  %v628_v29 = vadd.f32 %v17903_v53, %v562_v39  ;;  %v17906_v61 = vld [vmem:[#allocation76_spill] sm:$0xff]  ;;  %v17908_v39 = vld [vmem:[#allocation82_spill] sm:$0xff]  ;;  %v17910_v53 = vld [vmem:[#allocation81_spill] sm:$0xff] }
 0x442   :  { %8004 = vmatmul.f32.vlgmr.msra.gmra.mxu0 %v17900_v22  ;;  %8048 = vmatpush.msra.mxu1 %v14962_v12  ;;  %v287_v12 = vld [vmem:[#allocation5 + $0x688] sm:$0xff]  ;;  %v633_v8 = vadd.f32 %v17906_v61, %v566_v9  ;;  %v15297_v9 = vand.u32 4294901760, %v282_v17  ;;  %v17911_v61 = vld [vmem:[#allocation47_spill] sm:$0xff]  ;;  %v17918_v3 = vld [vmem:[#allocation38_spill] sm:$0xff] }
 0x443   :  { %8194 = vmatmul.f32.vlgmr.msra.gmra.mxu3 %v17860_v19  ;;  %8143 = vmatpush.msra.mxu2 %v7933_v37  ;;  %v15261_v37 = vand.u32 4294901760, %v292_v4  ;;  %v15275_v57 = vand.u32 4294901760, %v287_v12  ;;  %v16674_v23 = vand.u32 4294901760, %v15249_v59 }
 0x444   :  { %8211 = vmatpush.msrb.mxu0 %v15193_v58  ;;  %8458 = vmatpush.msrb.mxu3 %v15193_v58 }
 0x445   :  { %8050 = vmatpush.msra.mxu1 %v14978_v63  ;;  %8145 = vmatmul.f32.vlgmr.msra.gmra.mxu2 %v17860_v19  ;;  %v8284_v63 = vsub.f32 %v15224_v2, %v16671_v25  ;;  %v15273_v19 = vsub.f32 %v297_v28, %v15246_v33  ;;  %v8279_v28 = vand.u32 4294901760, %v8278_v14  ;;  %v15295_v7 = vsub.f32 %v292_v4, %v15261_v37  ;;  %v15304_v14 = vpop.f32.mrf.mxu3 }
 0x446   :  { %8213 = vmatpush.msrb.mxu0 %v15200_v45  ;;  %8390 = vmatpush.msrb.mxu2 %v15208_v34  ;;  %v15278_v41 = vpop.f32.mrf.mxu1  ;;  %v15287_v22 = vpop.f32.mrf.mxu2  ;;  %17913 = vst [vmem:[#allocation67_spill] sm:$0xff] %v15304_v14  ;;  %v8296_v5 = vsub.f32 %v15249_v59, %v16674_v23  ;;  %v17917_v14 = vld [vmem:[#allocation78_spill] sm:$0xff] }
 0x447   :  { %8460 = vmatpush.msrb.mxu3 %v15200_v45  ;;  %8052 = vmatpush.msra.mxu1 %v14997_v27  ;;  %17904 = vst [vmem:[#allocation62_spill] sm:$0xff] %v15278_v41  ;;  %v15280_v48 = vpop.f32.mrf.mxu0  ;;  %v570_v27 = vadd.f32 %v17908_v39, %v17907_v0  ;;  %v574_v0 = vadd.f32 %v17911_v61, %v17910_v53  ;;  %v17912_v39 = vld [vmem:[#allocation71_spill] sm:$0xff]  ;;  %v8285_v4 = vand.u32 4294901760, %v8284_v63  ;;  %v272_v61 = vld [vmem:[#allocation5 + $0x610] sm:$0xff] }
 0x448   :  { %17905 = vst [vmem:[#allocation68_spill] sm:$0xff] %v15280_v48  ;;  %8215 = vmatpush.msrb.mxu0 %v15210_v60  ;;  %8393 = vmatpush.msrb.mxu2 %v15224_v2  ;;  %v682_v25 = vadd.f32 %v17912_v39, %v628_v29  ;;  %v15312_v53 = vsub.f32 %v287_v12, %v15275_v57  ;;  %v16675_v29 = vand.u32 4294901760, %v15273_v19  ;;  %v17915_v39 = vld [vmem:[#allocation83_spill] sm:$0xff] }
 0x449   :  { %17909 = vst [vmem:[#allocation37_spill] sm:$0xff] %v15287_v22  ;;  %8462 = vmatpush.msrb.mxu3 %v15210_v60  ;;  %8054 = vmatpush.msra.mxu1 %v15011_v40  ;;  %v277_v40 = vld [vmem:[#allocation5 + $0x638] sm:$0xff]  ;;  %v638_v22 = vadd.f32 %v17915_v39, %v570_v27  ;;  %v688_v26 = vadd.f32 %v17917_v14, %v633_v8  ;;  %v17919_v27 = vld [vmem:[#allocation49_spill] sm:$0xff] }
 0x44a   :  { %8217 = vmatpush.msrb.mxu0 %v15226_v20  ;;  %8396 = vmatpush.msrb.mxu2 %v15236_v30  ;;  %v769_v41 = vadd.f32 %v17916_v10, %v682_v25  ;;  %v15321_v63 = vand.u32 4294901760, %v277_v40  ;;  %v15324_v12 = vsub.f32 %v282_v17, %v15297_v9  ;;  %v643_v39 = vadd.f32 %v17919_v27, %v574_v0  ;;  %v17920_v10 = vld [vmem:[#allocation89_spill] sm:$0xff] }
 0x44b   :  { %8464 = vmatpush.msrb.mxu3 %v15226_v20  ;;  %8009 = vmatmul.f32.gmra.mxu0 %v17914_v44  ;;  %v8291_v44 = vand.u32 4294901760, %v8290_v42  ;;  %v773_v25 = vadd.f32 %v17920_v10, %v688_v26  ;;  %v267_v8 = vld [vmem:[#allocation5 + $0x5e8] sm:$0xff]  ;;  %v8297_v17 = vand.u32 4294901760, %v8296_v5  ;;  %v8302_v14 = vsub.f32 %v15273_v19, %v16675_v29  ;;  %v17922_v26 = vld [vmem:[#allocation84_spill] sm:$0xff]  ;;  %v17928_v29 = vld [vmem:[#allocation51_spill] sm:$0xff] }
 0x44c   :  { %8058 = vmatmul.f32.vlgmr.msra.gmra.mxu1 %v17918_v3  ;;  %8198 = vmatmul.f32.gmra.mxu3 %v17871_v56  ;;  %v15331_v3 = vand.u32 4294901760, %v272_v61  ;;  %v694_v27 = vadd.f32 %v17922_v26, %v638_v22  ;;  %v17923_v10 = vld [vmem:[#allocation97_spill] sm:$0xff]  ;;  %v17927_v26 = vld [vmem:[#allocation96_spill] sm:$0xff]  ;;  %v700_v0 = vadd.f32 %v17928_v29, %v643_v39  ;;  %v15371_v29 = vand.u32 4294901760, %v262_v36  ;;  %v257_v39 = vld [vmem:[#allocation5 + $0x598] sm:$0xff] }
 0x44d   :  { %8280 = vmatpush.msrb.mxu1 %v8279_v28  ;;  %8219 = vmatpush.msrb.mxu0 %v15246_v33  ;;  %v17921_v28 = vld [vmem:[#allocation90_spill] sm:$0xff]  ;;  %v822_v23 = vadd.f32 %v17923_v10, %v773_v25  ;;  %v8303_v22 = vand.u32 4294901760, %v8302_v14 }
 0x44e   :  { %8399 = vmatpush.msrb.mxu2 %v15249_v59  ;;  %8466 = vmatpush.msrb.mxu3 %v15246_v33  ;;  %v818_v42 = vadd.f32 %v17921_v28, %v769_v41  ;;  %v15348_v41 = vsub.f32 %v277_v40, %v15321_v63  ;;  %v777_v10 = vadd.f32 %v17927_v26, %v694_v27  ;;  %v17933_v26 = vld [vmem:[#allocation98_spill] sm:$0xff] }
 0x44f   :  { %8149 = vmatmul.f32.gmra.mxu2 %v17871_v56  ;;  %8286 = vmatpush.msrb.mxu1 %v8285_v4  ;;  %v17924_v56 = vand.u32 4294901760, %v15295_v7  ;;  %v15350_v4 = vand.u32 4294901760, %v267_v8  ;;  %17932 = vst [vmem:[#allocation74_spill] sm:$0xff] %v15371_v29  ;;  %v879_v18 = vadd.f32 %v17933_v26, %v822_v23  ;;  %v15391_v26 = vand.u32 4294901760, %v257_v39 }
 0x450   :  { %8221 = vmatpush.msrb.mxu0 %v15261_v37  ;;  %8402 = vmatpush.msrb.mxu2 %v15273_v19  ;;  %v15353_v25 = vpop.f32.mrf.mxu0  ;;  %v15364_v40 = vpop.f32.mrf.mxu2  ;;  %v826_v31 = vadd.f32 %v17935_v52, %v777_v10  ;;  %v252_v52 = vld [vmem:[#allocation5 + $0x570] sm:$0xff]  ;;  %v17939_v10 = vld [vmem:[#allocation13_spill] sm:$0xff] }
 0x451   :  { %8468 = vmatpush.msrb.mxu3 %v15261_v37  ;;  %8292 = vmatpush.msrb.mxu1 %v8291_v44  ;;  %v8308_v5 = vsub.f32 %v15295_v7, %v17924_v56  ;;  %17925 = vst [vmem:[#allocation75_spill] sm:$0xff] %v15353_v25  ;;  %v15355_v28 = vpop.f32.mrf.mxu1  ;;  %v15362_v44 = vsub.f32 %v272_v61, %v15331_v3  ;;  %v17930_v56 = vld [vmem:[#allocation91_spill] sm:$0xff]  ;;  %v17931_v25 = vand.u32 4294901760, %v15312_v53 }
 0x452   :  { %17926 = vst [vmem:[#allocation69_spill] sm:$0xff] %v15355_v28  ;;  %8223 = vmatpush.msrb.mxu0 %v15275_v57  ;;  %8405 = vmatpush.msrb.mxu2 %v15295_v7  ;;  %v871_v50 = vadd.f32 %v17930_v56, %v818_v42  ;;  %v781_v61 = vadd.f32 %v17934_v11, %v700_v0  ;;  %v15378_v42 = vpop.f32.mrf.mxu3  ;;  %v397_v0 = vld [vmem:[#allocation5 + $0x9f8] sm:$0xff]  ;;  %v17942_v11 = vld [vmem:[#allocation93_spill] sm:$0xff] }
 0x453   :  { %17929 = vst [vmem:[#allocation76_spill] sm:$0xff] %v15364_v40  ;;  %8470 = vmatpush.msrb.mxu3 %v15275_v57  ;;  %8298 = vmatpush.msrb.mxu1 %v8297_v17  ;;  %v8314_v27 = vsub.f32 %v15312_v53, %v17931_v25  ;;  %v17937_v17 = vld [vmem:[#allocation14_spill] sm:$0xff]  ;;  %v8309_v14 = vand.u32 4294901760, %v8308_v5  ;;  %v17938_v25 = vand.u32 4294901760, %v15324_v12  ;;  %v15386_v23 = vsub.f32 %v267_v8, %v15350_v4  ;;  %v17941_v5 = vld [vmem:[#allocation105_spill] sm:$0xff] }
 0x454   :  { %8225 = vmatpush.msrb.mxu0 %v15297_v9  ;;  %8408 = vmatpush.msrb.mxu2 %v15312_v53  ;;  %17936 = vst [vmem:[#allocation82_spill] sm:$0xff] %v15378_v42  ;;  %v830_v42 = vadd.f32 %v17941_v5, %v781_v61  ;;  %v15397_v8 = vsub.f32 %v262_v36, %v15371_v29  ;;  %v15405_v49 = vand.u32 4294901760, %v397_v0  ;;  %v17945_v61 = vld [vmem:[#allocation103_spill] sm:$0xff]  ;;  %v17948_v48 = vand.u32 4294901760, %v15362_v44 }
 0x455   :  { %8472 = vmatpush.msrb.mxu3 %v15297_v9  ;;  %8014 = vmatmul.f32.gmra.mxu0 %v17937_v17  ;;  %v8320_v56 = vsub.f32 %v15324_v12, %v17938_v25  ;;  %17940 = vst [vmem:[#allocation81_spill] sm:$0xff] %v15391_v26  ;;  %v8315_v25 = vand.u32 4294901760, %v8314_v27  ;;  %v996_v40 = vadd.f32 %v17942_v11, %v871_v50  ;;  %v247_v17 = vld [vmem:[#allocation5 + $0x548] sm:$0xff]  ;;  %v17946_v50 = vand.u32 4294901760, %v15348_v41  ;;  %v17947_v27 = vld [vmem:[#allocation106_spill] sm:$0xff] }
 0x456   :  { %8064 = vmatmul.f32.gmra.mxu1 %v17939_v10  ;;  %8202 = vmatmul.f32.gmra.mxu3 %v17881_v24  ;;  %v1000_v28 = vadd.f32 %v17943_v35, %v879_v18  ;;  %v15403_v10 = vand.u32 4294901760, %v252_v52  ;;  %v887_v5 = vadd.f32 %v17945_v61, %v826_v31  ;;  %v8332_v31 = vsub.f32 %v15362_v44, %v17948_v48  ;;  %v17949_v61 = vld [vmem:[#allocation107_spill] sm:$0xff]  ;;  %v17953_v48 = vld [vmem:[#allocation110_spill] sm:$0xff] }
 0x457   :  { %8304 = vmatpush.msrb.mxu1 %v8303_v22  ;;  %8227 = vmatpush.msrb.mxu0 %v15321_v63  ;;  %v392_v22 = vld [vmem:[#allocation5 + $0x9d0] sm:$0xff]  ;;  %v8321_v36 = vand.u32 4294901760, %v8320_v56  ;;  %v8326_v35 = vsub.f32 %v15348_v41, %v17946_v50  ;;  %v1062_v11 = vadd.f32 %v17947_v27, %v996_v40  ;;  %v387_v56 = vld [vmem:[#allocation5 + $0x9a8] sm:$0xff]  ;;  %v895_v47 = vadd.f32 %v17949_v61, %v830_v42  ;;  %v382_v61 = vld [vmem:[#allocation5 + $0x980] sm:$0xff] }
 0x458   :  { %8411 = vmatpush.msrb.mxu2 %v15324_v12  ;;  %8474 = vmatpush.msrb.mxu3 %v15321_v63  ;;  %17944 = vst [vmem:[#allocation47_spill] sm:$0xff] %v15403_v10  ;;  %v15424_v50 = vand.u32 4294901760, %v247_v17  ;;  %v15427_v27 = vand.u32 4294901760, %v392_v22  ;;  %v15437_v42 = vsub.f32 %v252_v52, %v15403_v10  ;;  %v15450_v32 = vand.u32 4294901760, %v387_v56  ;;  %v17958_v52 = vld [vmem:[#allocation109_spill] sm:$0xff] }
 0x459   :  { %8153 = vmatmul.f32.gmra.mxu2 %v17881_v24  ;;  %8310 = vmatpush.msrb.mxu1 %v8309_v14  ;;  %v15420_v24 = vsub.f32 %v257_v39, %v15391_v26  ;;  %v242_v14 = vld [vmem:[#allocation5 + $0x520] sm:$0xff]  ;;  %v1116_v39 = vadd.f32 %v17953_v48, %v1062_v11  ;;  %v1067_v55 = vadd.f32 %v17958_v52, %v1000_v28  ;;  %v17962_v46 = vand.u32 4294901760, %v15397_v8  ;;  %v17965_v52 = vld [vmem:[#allocation111_spill] sm:$0xff] }
 0x45a   :  { %8229 = vmatpush.msrb.mxu0 %v15331_v3  ;;  %8414 = vmatpush.msrb.mxu2 %v15348_v41  ;;  %17950 = vst [vmem:[#allocation71_spill] sm:$0xff] %v15424_v50  ;;  %v15429_v18 = vpop.f32.mrf.mxu0  ;;  %v15442_v40 = vpop.f32.mrf.mxu2  ;;  %v15448_v48 = vand.u32 4294901760, %v242_v14  ;;  %v15465_v28 = vsub.f32 %v247_v17, %v15424_v50  ;;  %v17968_v17 = vld [vmem:[#allocation114_spill] sm:$0xff] }
 0x45b   :  { %8476 = vmatpush.msrb.mxu3 %v15331_v3  ;;  %8316 = vmatpush.msrb.mxu1 %v8315_v25  ;;  %17951 = vst [vmem:[#allocation12_spill] sm:$0xff] %v15429_v18  ;;  %v15431_v38 = vpop.f32.mrf.mxu1  ;;  %v15440_v25 = vsub.f32 %v397_v0, %v15405_v49  ;;  %v8327_v18 = vand.u32 4294901760, %v8326_v35  ;;  %v1004_v0 = vadd.f32 %v17959_v6, %v887_v5  ;;  %v15457_v35 = vpop.f32.mrf.mxu3  ;;  %v15470_v5 = vand.u32 4294901760, %v382_v61 }
 0x45c   :  { %17952 = vst [vmem:[#allocation83_spill] sm:$0xff] %v15431_v38  ;;  %8231 = vmatpush.msrb.mxu0 %v15350_v4  ;;  %8417 = vmatpush.msrb.mxu2 %v15362_v44  ;;  %v17956_v38 = vand.u32 4294901760, %v15386_v23  ;;  %v8344_v54 = vsub.f32 %v15397_v8, %v17962_v46  ;;  %v15468_v6 = vsub.f32 %v392_v22, %v15427_v27  ;;  %v16677_v46 = vand.u32 4294901760, %v15437_v42 }
 0x45d   :  { %17954 = vst [vmem:[#allocation53_spill] sm:$0xff] %v15440_v25  ;;  %8478 = vmatpush.msrb.mxu3 %v15350_v4  ;;  %8322 = vmatpush.msrb.mxu1 %v8321_v36  ;;  %v1203_v36 = vadd.f32 %v17965_v52, %v1116_v39  ;;  %v1122_v16 = vadd.f32 %v17968_v17, %v1067_v55  ;;  %v17972_v55 = vand.u32 4294901760, %v15420_v24 }
 0x45e   :  { %17955 = vst [vmem:[#allocation78_spill] sm:$0xff] %v15442_v40  ;;  %v8338_v11 = vsub.f32 %v15386_v23, %v17956_v38  ;;  %8233 = vmatpush.msrb.mxu0 %v15371_v29  ;;  %8420 = vmatpush.msrb.mxu2 %v15386_v23  ;;  %v8333_v40 = vand.u32 4294901760, %v8332_v31  ;;  %v17961_v38 = vld [vmem:[#allocation18_spill] sm:$0xff]  ;;  %v377_v31 = vld [vmem:[#allocation5 + $0x958] sm:$0xff]  ;;  %v15481_v13 = vsub.f32 %v242_v14, %v15448_v48  ;;  %v8345_v14 = vand.u32 4294901760, %v8344_v54 }
 0x45f   :  { %17957 = vst [vmem:[#allocation38_spill] sm:$0xff] %v15448_v48  ;;  %8480 = vmatpush.msrb.mxu3 %v15371_v29  ;;  %8019 = vmatmul.f32.gmra.mxu0 %v17961_v38  ;;  %v16676_v38 = vand.u32 4294901760, %v15440_v25  ;;  %v15484_v39 = vsub.f32 %v387_v56, %v15450_v32  ;;  %v15493_v17 = vand.u32 4294901760, %v377_v31  ;;  %v8356_v54 = vsub.f32 %v15437_v42, %v16677_v46  ;;  %v17994_v29 = vld [vmem:[#allocation57_spill] sm:$0xff] }
 0x460   :  { %17960 = vst [vmem:[#allocation49_spill] sm:$0xff] %v15457_v35  ;;  %v17966_v35 = vld [vmem:[#allocation113_spill] sm:$0xff]  ;;  %8070 = vmatmul.f32.gmra.mxu1 %v17967_v62  ;;  %8206 = vmatmul.f32.gmra.mxu3 %v17891_v51  ;;  %v8339_v22 = vand.u32 4294901760, %v8338_v11  ;;  %v372_v11 = vld [vmem:[#allocation5 + $0x930] sm:$0xff] }
 0x461   :  { %17963 = vst [vmem:[#allocation89_spill] sm:$0xff] %v15465_v28  ;;  %v1072_v1 = vadd.f32 %v17966_v35, %v1004_v0  ;;  %8328 = vmatpush.msrb.mxu1 %v8327_v18  ;;  %8235 = vmatpush.msrb.mxu0 %v15391_v26  ;;  %v17970_v0 = vld [vmem:[#allocation108_spill] sm:$0xff]  ;;  %v8350_v18 = vsub.f32 %v15420_v24, %v17972_v55 }
 0x462   :  { %17964 = vst [vmem:[#allocation90_spill] sm:$0xff] %v15468_v6  ;;  %v1008_v62 = vadd.f32 %v17970_v0, %v895_v47  ;;  %v17971_v35 = vld [vmem:[#allocation120_spill] sm:$0xff]  ;;  %8423 = vmatpush.msrb.mxu2 %v15397_v8  ;;  %8482 = vmatpush.msrb.mxu3 %v15391_v26  ;;  %v8712_v55 = vsub.f32 %v15440_v25, %v16676_v38  ;;  %v17978_v38 = vld [vmem:[#allocation119_spill] sm:$0xff] }
 0x463   :  { %17969 = vst [vmem:[#allocation84_spill] sm:$0xff] %v15484_v39  ;;  %v1128_v52 = vadd.f32 %v17971_v35, %v1072_v1  ;;  %8157 = vmatmul.f32.gmra.mxu2 %v17891_v51  ;;  %8334 = vmatpush.msrb.mxu1 %v8333_v40  ;;  %v15499_v1 = vsub.f32 %v382_v61, %v15470_v5  ;;  %v17974_v0 = vld [vmem:[#allocation112_spill] sm:$0xff]  ;;  %v367_v51 = vld [vmem:[#allocation5 + $0x908] sm:$0xff]  ;;  %v17975_v40 = vld [vmem:[#allocation115_spill] sm:$0xff]  ;;  %v17982_v61 = vand.u32 4294901760, %v15468_v6 }
 0x464   :  { %v1252_v35 = vadd.f32 %v17974_v0, %v1203_v36  ;;  %8237 = vmatpush.msrb.mxu0 %v15403_v10  ;;  %8426 = vmatpush.msrb.mxu2 %v15420_v24  ;;  %v1207_v47 = vadd.f32 %v17975_v40, %v1122_v16  ;;  %v15514_v0 = vand.u32 4294901760, %v372_v11  ;;  %v15516_v56 = vpop.f32.mrf.mxu0  ;;  %v1077_v15 = vadd.f32 %v17978_v38, %v1008_v62  ;;  %v362_v40 = vld [vmem:[#allocation5 + $0x8e0] sm:$0xff]  ;;  %v15527_v36 = vpop.f32.mrf.mxu2 }
 0x465   :  { %17973 = vst [vmem:[#allocation97_spill] sm:$0xff] %v15499_v1  ;;  %8484 = vmatpush.msrb.mxu3 %v15403_v10  ;;  %8340 = vmatpush.msrb.mxu1 %v8339_v22  ;;  %v15518_v43 = vpop.f32.mrf.mxu1  ;;  %v1211_v46 = vadd.f32 %v17979_v21, %v1128_v52  ;;  %v8351_v16 = vand.u32 4294901760, %v8350_v18  ;;  %v15525_v22 = vsub.f32 %v377_v31, %v15493_v17  ;;  %v17983_v21 = vand.u32 4294901760, %v15465_v28  ;;  %v17984_v31 = vld [vmem:[#allocation123_spill] sm:$0xff]  ;;  %v17992_v25 = vld [vmem:[#allocation172_spill] sm:$0xff] }
 0x466   :  { %17976 = vst [vmem:[#allocation96_spill] sm:$0xff] %v15516_v56  ;;  %8239 = vmatpush.msrb.mxu0 %v15424_v50  ;;  %8429 = vmatpush.msrb.mxu2 %v15437_v42  ;;  %v8718_v38 = vsub.f32 %v15468_v6, %v17982_v61  ;;  %v15537_v18 = vand.u32 4294901760, %v367_v51  ;;  %v1134_v56 = vadd.f32 %v17984_v31, %v1077_v15  ;;  %v17987_v61 = vld [vmem:[#allocation42_spill] sm:$0xff]  ;;  %v17989_v15 = vand.u32 4294901760, %v15481_v13  ;;  %v17991_v6 = vld [vmem:[#allocation128_spill] sm:$0xff] }
 0x467   :  { %17977 = vst [vmem:[#allocation51_spill] sm:$0xff] %v15518_v43  ;;  %8486 = vmatpush.msrb.mxu3 %v15424_v50  ;;  %8346 = vmatpush.msrb.mxu1 %v8345_v14  ;;  %v8362_v62 = vsub.f32 %v15465_v28, %v17983_v21  ;;  %v17985_v43 = vld [vmem:[#allocation124_spill] sm:$0xff]  ;;  %v8713_v14 = vand.u32 4294901760, %v8712_v55  ;;  %v15543_v50 = vpop.f32.mrf.mxu3  ;;  %v17988_v21 = vand.u32 4294901760, %v15484_v39  ;;  %v15556_v31 = vand.u32 4294901760, %v362_v40  ;;  %v357_v55 = vld [vmem:[#allocation5 + $0x8b8] sm:$0xff] }
 0x468   :  { %17980 = vst [vmem:[#allocation91_spill] sm:$0xff] %v15525_v22  ;;  %v1305_v10 = vadd.f32 %v17985_v43, %v1252_v35  ;;  %8241 = vmatpush.msrb.mxu0 %v15448_v48  ;;  %8432 = vmatpush.msrb.mxu2 %v15465_v28  ;;  %v8368_v43 = vsub.f32 %v15481_v13, %v17989_v15  ;;  %v17996_v28 = vand.u32 4294901760, %v15499_v1 }
 0x469   :  { %17981 = vst [vmem:[#allocation98_spill] sm:$0xff] %v15527_v36  ;;  %v8357_v36 = vand.u32 4294901760, %v8356_v54  ;;  %8488 = vmatpush.msrb.mxu3 %v15448_v48  ;;  %8076 = vmatmul.f32.gmra.mxu1 %v17987_v61  ;;  %v8724_v52 = vsub.f32 %v15484_v39, %v17988_v21  ;;  %v15554_v35 = vsub.f32 %v372_v11, %v15514_v0  ;;  %v17990_v54 = vld [vmem:[#allocation117_spill] sm:$0xff]  ;;  %v17993_v61 = vld [vmem:[#allocation176_spill] sm:$0xff]  ;;  %v8719_v11 = vand.u32 4294901760, %v8718_v38  ;;  %v352_v38 = vld [vmem:[#allocation5 + $0x890] sm:$0xff] }
 0x46a   :  { %17986 = vst [vmem:[#allocation101_spill] sm:$0xff] %v15543_v50  ;;  %v1256_v50 = vadd.f32 %v17990_v54, %v1207_v47  ;;  %v1430_v48 = vadd.f32 %v17991_v6, %v1305_v10  ;;  %v2298_v26 = vadd.f32 %v17993_v61, %v17992_v25  ;;  %8247 = vmatmul.f32.vlgmr.msrb.gmra.mxu0 %v17994_v29  ;;  %v17995_v39 = vld [vmem:[#allocation52_spill] sm:$0xff]  ;;  %v8363_v15 = vand.u32 4294901760, %v8362_v62  ;;  %v17998_v6 = vld [vmem:[#allocation125_spill] sm:$0xff]  ;;  %v17999_v54 = vld [vmem:[#allocation127_spill] sm:$0xff] }
 0x46b   :  { %8352 = vmatpush.msrb.mxu1 %v8351_v16  ;;  %8492 = vmatmul.f32.vlgmr.msrb.gmra.mxu3 %v17995_v39  ;;  %v8730_v47 = vsub.f32 %v15499_v1, %v17996_v28  ;;  %v15570_v10 = vsub.f32 %v367_v51, %v15537_v18  ;;  %v1215_v25 = vadd.f32 %v17998_v6, %v1134_v56  ;;  %v18000_v16 = vld [vmem:[#allocation122_spill] sm:$0xff]  ;;  %v18001_v21 = vand.u32 4294901760, %v15208_v34  ;;  %v18002_v62 = vld [vmem:[#allocation48_spill] sm:$0xff] }
 0x46c   :  { %8435 = vmatpush.msrb.mxu2 %v15481_v13  ;;  %v1313_v29 = vadd.f32 %v17999_v54, %v1256_v50  ;;  %v1260_v61 = vadd.f32 %v18000_v16, %v1211_v46  ;;  %8714 = vmatpush.msra.mxu3 %v8713_v14  ;;  %v15577_v39 = vand.u32 4294901760, %v357_v55  ;;  %v8725_v28 = vand.u32 4294901760, %v8724_v52  ;;  %v18004_v50 = vld [vmem:[#allocation129_spill] sm:$0xff]  ;;  %v18005_v46 = vld [vmem:[#allocation132_spill] sm:$0xff]  ;;  %v18021_v16 = vld [vmem:[#allocation130_spill] sm:$0xff] }
 0x46d   :  { %17997 = vst [vmem:[#allocation102_spill] sm:$0xff] %v15570_v10  ;;  %8517 = vmatpush.msra.mxu0 %v18001_v21  ;;  %8358 = vmatpush.msrb.mxu1 %v8357_v36  ;;  %v8369_v1 = vand.u32 4294901760, %v8368_v43  ;;  %v15582_v56 = vsub.f32 %v362_v40, %v15556_v31  ;;  %v1496_v6 = vadd.f32 %v18004_v50, %v1430_v48  ;;  %v18006_v34 = vand.u32 4294901760, %v15224_v2  ;;  %v347_v52 = vld [vmem:[#allocation5 + $0x868] sm:$0xff]  ;;  %v18012_v50 = vld [vmem:[#allocation180_spill] sm:$0xff] }
 0x46e   :  { %8438 = vmatmul.f32.vlgmr.msrb.gmra.mxu2 %v18002_v62  ;;  %v1434_v54 = vadd.f32 %v18005_v46, %v1313_v29  ;;  %v18007_v36 = vand.u32 4294901760, %v15525_v22  ;;  %v18008_v43 = vld [vmem:[#allocation177_spill] sm:$0xff]  ;;  %8720 = vmatpush.msra.mxu3 %v8719_v11  ;;  %v8731_v40 = vand.u32 4294901760, %v8730_v47  ;;  %v15594_v48 = vand.u32 4294901760, %v352_v38  ;;  %v15596_v29 = vpop.f32.mrf.mxu1  ;;  %v18011_v62 = vld [vmem:[#allocation175_spill] sm:$0xff]  ;;  %v18014_v51 = vld [vmem:[#allocation184_spill] sm:$0xff] }
 0x46f   :  { %18003 = vst [vmem:[#allocation14_spill] sm:$0xff] %v15582_v56  ;;  %8521 = vmatpush.msra.mxu0 %v18006_v34  ;;  %8645 = vmatpush.msra.mxu2 %v15405_v49  ;;  %v2364_v21 = vadd.f32 %v18008_v43, %v2298_v26  ;;  %v15598_v2 = vpop.f32.mrf.mxu0  ;;  %v2302_v46 = vadd.f32 %v18012_v50, %v18011_v62  ;;  %v18013_v34 = vld [vmem:[#allocation179_spill] sm:$0xff]  ;;  %v342_v11 = vld [vmem:[#allocation5 + $0x840] sm:$0xff]  ;;  %v18018_v47 = vand.u32 4294901760, %v15554_v35  ;;  %v18020_v50 = vld [vmem:[#allocation126_spill] sm:$0xff] }
 0x470   :  { %v8736_v14 = vsub.f32 %v15525_v22, %v18007_v36  ;;  %8364 = vmatpush.msrb.mxu1 %v8363_v15  ;;  %18009 = vst [vmem:[#allocation13_spill] sm:$0xff] %v15596_v29  ;;  %v2306_v36 = vadd.f32 %v18014_v51, %v18013_v34  ;;  %v18015_v22 = vand.u32 4294901760, %v15236_v30  ;;  %v15608_v26 = vsub.f32 %v357_v55, %v15577_v39  ;;  %v15610_v15 = vpop.f32.mrf.mxu2  ;;  %v18019_v30 = vld [vmem:[#allocation131_spill] sm:$0xff]  ;;  %v18025_v62 = vld [vmem:[#allocation61_spill] sm:$0xff] }
 0x471   :  { %18010 = vst [vmem:[#allocation105_spill] sm:$0xff] %v15598_v2  ;;  %8647 = vmatpush.msra.mxu2 %v15427_v27  ;;  %8726 = vmatpush.msra.mxu3 %v8725_v28  ;;  %v8742_v43 = vsub.f32 %v15554_v35, %v18018_v47  ;;  %v15616_v51 = vand.u32 4294901760, %v347_v52  ;;  %v1264_v34 = vadd.f32 %v18020_v50, %v1215_v25  ;;  %v18022_v29 = vand.u32 4294901760, %v15249_v59  ;;  %v15624_v28 = vpop.f32.mrf.mxu3  ;;  %v337_v59 = vld [vmem:[#allocation5 + $0x818] sm:$0xff]  ;;  %v18029_v50 = vld [vmem:[#allocation185_spill] sm:$0xff] }
 0x472   :  { %8525 = vmatpush.msra.mxu0 %v18015_v22  ;;  %18016 = vst [vmem:[#allocation93_spill] sm:$0xff] %v15608_v26  ;;  %8370 = vmatpush.msrb.mxu1 %v8369_v1  ;;  %v1321_v22 = vadd.f32 %v18019_v30, %v1260_v61  ;;  %v1550_v55 = vadd.f32 %v18021_v16, %v1496_v6  ;;  %v8737_v1 = vand.u32 4294901760, %v8736_v14  ;;  %v18026_v2 = vand.u32 4294901760, %v15570_v10  ;;  %v18027_v16 = vld [vmem:[#allocation133_spill] sm:$0xff] }
 0x473   :  { %18017 = vst [vmem:[#allocation99_spill] sm:$0xff] %v15610_v15  ;;  %8649 = vmatpush.msra.mxu2 %v15450_v32  ;;  %v18024_v15 = vld [vmem:[#allocation178_spill] sm:$0xff]  ;;  %8732 = vmatpush.msra.mxu3 %v8731_v40  ;;  %v15632_v25 = vsub.f32 %v352_v38, %v15594_v48  ;;  %v15634_v6 = vand.u32 4294901760, %v342_v11  ;;  %v18028_v14 = vld [vmem:[#allocation181_spill] sm:$0xff]  ;;  %v18033_v38 = vand.u32 4294901760, %v15273_v19 }
 0x474   :  { %8529 = vmatpush.msra.mxu0 %v18022_v29  ;;  %18023 = vst [vmem:[#allocation103_spill] sm:$0xff] %v15624_v28  ;;  %v2418_v47 = vadd.f32 %v18024_v15, %v2364_v21  ;;  %v8748_v61 = vsub.f32 %v15570_v10, %v18026_v2  ;;  %v1501_v29 = vadd.f32 %v18027_v16, %v1434_v54  ;;  %v18030_v21 = vld [vmem:[#allocation46_spill] sm:$0xff]  ;;  %v8743_v10 = vand.u32 4294901760, %v8742_v43  ;;  %v18036_v16 = vld [vmem:[#allocation135_spill] sm:$0xff] }
 0x475   :  { %8255 = vmatmul.f32.gmra.mxu0 %v18025_v62  ;;  %v2369_v30 = vadd.f32 %v18028_v14, %v2302_v46  ;;  %v2374_v28 = vadd.f32 %v18029_v50, %v2306_v36  ;;  %8372 = vmatmul.f32.vlgmr.msrb.gmra.mxu1 %v18030_v21  ;;  %v18031_v40 = vld [vmem:[#allocation58_spill] sm:$0xff]  ;;  %v18032_v62 = vld [vmem:[#allocation188_spill] sm:$0xff]  ;;  %v18034_v54 = vand.u32 4294901760, %v15582_v56  ;;  %v15650_v36 = vsub.f32 %v347_v52, %v15616_v51  ;;  %v18038_v15 = vld [vmem:[#allocation183_spill] sm:$0xff] }
 0x476   :  { %8498 = vmatmul.f32.gmra.mxu3 %v18031_v40  ;;  %v2505_v2 = vadd.f32 %v18032_v62, %v2418_v47  ;;  %8596 = vmatpush.msra.mxu1 %v15193_v58  ;;  %v15653_v14 = vadd.f32 %v18036_v16, %v1264_v34  ;;  %v18037_v50 = vld [vmem:[#allocation136_spill] sm:$0xff]  ;;  %v18039_v47 = vld [vmem:[#allocation187_spill] sm:$0xff]  ;;  %v15659_v58 = vand.u32 4294901760, %v337_v59  ;;  %v332_v19 = vld [vmem:[#allocation5 + $0x7f0] sm:$0xff]  ;;  %v8749_v52 = vand.u32 4294901760, %v8748_v61 }
 0x477   :  { %8533 = vmatpush.msra.mxu0 %v18033_v38  ;;  %v8754_v46 = vsub.f32 %v15582_v56, %v18034_v54  ;;  %18035 = vst [vmem:[#allocation106_spill] sm:$0xff] %v15650_v36  ;;  %v1438_v40 = vadd.f32 %v18037_v50, %v1321_v22  ;;  %v2310_v62 = vadd.f32 %v18039_v47, %v18038_v15  ;;  %v18040_v43 = vld [vmem:[#allocation190_spill] sm:$0xff]  ;;  %v18041_v54 = vld [vmem:[#allocation56_spill] sm:$0xff]  ;;  %v18049_v34 = vld [vmem:[#allocation189_spill] sm:$0xff] }
 0x478   :  { %8651 = vmatpush.msra.mxu2 %v15470_v5  ;;  %8738 = vmatpush.msra.mxu3 %v8737_v1  ;;  %v2554_v38 = vadd.f32 %v18040_v43, %v2505_v2  ;;  %v15666_v22 = vsub.f32 %v342_v11, %v15634_v6  ;;  %v18042_v16 = vld [vmem:[#allocation140_spill] sm:$0xff]  ;;  %v18043_v50 = vld [vmem:[#allocation182_spill] sm:$0xff]  ;;  %v18044_v1 = vand.u32 4294901760, %v15295_v7  ;;  %v18045_v2 = vand.u32 4294901760, %v15608_v26 }
 0x479   :  { %8443 = vmatmul.f32.gmra.mxu2 %v18041_v54  ;;  %8598 = vmatpush.msra.mxu1 %v15200_v45  ;;  %v1637_v15 = vadd.f32 %v18042_v16, %v1550_v55  ;;  %v2424_v47 = vadd.f32 %v18043_v50, %v2369_v30  ;;  %v327_v45 = vld [vmem:[#allocation5 + $0x7c8] sm:$0xff]  ;;  %v18046_v61 = vld [vmem:[#allocation186_spill] sm:$0xff]  ;;  %v8755_v11 = vand.u32 4294901760, %v8754_v46  ;;  %v15679_v16 = vand.u32 4294901760, %v332_v19  ;;  %v15681_v30 = vpop.f32.mrf.mxu0  ;;  %v15683_v7 = vpop.f32.mrf.mxu1  ;;  %v18052_v46 = vld [vmem:[#allocation191_spill] sm:$0xff] }
 0x47a   :  { %8537 = vmatpush.msra.mxu0 %v18044_v1  ;;  %8653 = vmatpush.msra.mxu2 %v15493_v17  ;;  %v8760_v43 = vsub.f32 %v15608_v26, %v18045_v2  ;;  %v2430_v54 = vadd.f32 %v18046_v61, %v2374_v28  ;;  %18047 = vst [vmem:[#allocation107_spill] sm:$0xff] %v15683_v7  ;;  %v18048_v50 = vld [vmem:[#allocation166_spill] sm:$0xff]  ;;  %v18050_v2 = vand.u32 4294901760, %v15312_v53  ;;  %v15693_v28 = vpop.f32.mrf.mxu2  ;;  %v18061_v53 = vand.u32 4294901760, %v15650_v36 }
 0x47b   :  { %8744 = vmatpush.msra.mxu3 %v8743_v10  ;;  %8600 = vmatpush.msra.mxu1 %v15210_v60  ;;  %v2379_v1 = vadd.f32 %v18048_v50, %v2310_v62  ;;  %v2509_v56 = vadd.f32 %v18049_v34, %v2424_v47  ;;  %v15691_v60 = vsub.f32 %v337_v59, %v15659_v58  ;;  %v322_v10 = vld [vmem:[#allocation5 + $0x7a0] sm:$0xff]  ;;  %v18053_v62 = vand.u32 4294901760, %v15632_v25  ;;  %v18054_v50 = vld [vmem:[#allocation142_spill] sm:$0xff]  ;;  %v18055_v59 = vld [vmem:[#allocation193_spill] sm:$0xff] }
 0x47c   :  { %8541 = vmatpush.msra.mxu0 %v18050_v2  ;;  %8655 = vmatpush.msra.mxu2 %v15514_v0  ;;  %18051 = vst [vmem:[#allocation110_spill] sm:$0xff] %v15693_v28  ;;  %v2607_v61 = vadd.f32 %v18052_v46, %v2554_v38  ;;  %v15701_v47 = vand.u32 4294901760, %v327_v45  ;;  %v1686_v2 = vadd.f32 %v18054_v50, %v1637_v15  ;;  %v18056_v7 = vld [vmem:[#allocation194_spill] sm:$0xff]  ;;  %v18057_v28 = vand.u32 4294901760, %v15324_v12  ;;  %v15709_v38 = vpop.f32.mrf.mxu3  ;;  %v18063_v12 = vld [vmem:[#allocation137_spill] sm:$0xff] }
 0x47d   :  { %8750 = vmatpush.msra.mxu3 %v8749_v52  ;;  %8602 = vmatpush.msra.mxu1 %v15226_v20  ;;  %v8766_v34 = vsub.f32 %v15632_v25, %v18053_v62  ;;  %v2513_v55 = vadd.f32 %v18055_v59, %v2430_v54  ;;  %v2558_v26 = vadd.f32 %v18056_v7, %v2509_v56  ;;  %v8761_v20 = vand.u32 4294901760, %v8760_v43  ;;  %v18059_v52 = vld [vmem:[#allocation134_spill] sm:$0xff] }
 0x47e   :  { %8545 = vmatpush.msra.mxu0 %v18057_v28  ;;  %8657 = vmatpush.msra.mxu2 %v15537_v18  ;;  %18058 = vst [vmem:[#allocation109_spill] sm:$0xff] %v15709_v38  ;;  %v1556_v46 = vadd.f32 %v18059_v52, %v1501_v29  ;;  %v18060_v62 = vld [vmem:[#allocation66_spill] sm:$0xff]  ;;  %v8772_v15 = vsub.f32 %v15650_v36, %v18061_v53  ;;  %v15719_v56 = vand.u32 4294901760, %v322_v10  ;;  %v18064_v28 = vld [vmem:[#allocation164_spill] sm:$0xff]  ;;  %v18067_v29 = vld [vmem:[#allocation63_spill] sm:$0xff] }
 0x47f   :  { %8756 = vmatpush.msra.mxu3 %v8755_v11  ;;  %8263 = vmatmul.f32.gmra.mxu0 %v18060_v62  ;;  %v15717_v54 = vsub.f32 %v332_v19, %v15679_v16  ;;  %v1506_v7 = vadd.f32 %v18063_v12, %v1438_v40  ;;  %v2436_v43 = vadd.f32 %v18064_v28, %v2379_v1  ;;  %v18065_v50 = vld [vmem:[#allocation198_spill] sm:$0xff]  ;;  %v18068_v52 = vld [vmem:[#allocation192_spill] sm:$0xff]  ;;  %v18069_v19 = vand.u32 4294901760, %v15348_v41  ;;  %v18071_v12 = vld [vmem:[#allocation143_spill] sm:$0xff] }
 0x480   :  { %18062 = vst [vmem:[#allocation104_spill] sm:$0xff] %v15719_v56  ;;  %v2562_v59 = vadd.f32 %v18065_v50, %v2513_v55  ;;  %v18066_v38 = vld [vmem:[#allocation54_spill] sm:$0xff]  ;;  %8504 = vmatmul.f32.gmra.mxu3 %v18067_v29  ;;  %v2732_v62 = vadd.f32 %v18068_v52, %v2607_v61  ;;  %8604 = vmatpush.msra.mxu1 %v15246_v33  ;;  %v8767_v53 = vand.u32 4294901760, %v8766_v34  ;;  %v18070_v40 = vand.u32 4294901760, %v15666_v22  ;;  %v18072_v50 = vld [vmem:[#allocation195_spill] sm:$0xff]  ;;  %v18073_v11 = vld [vmem:[#allocation197_spill] sm:$0xff] }
 0x481   :  { %8376 = vmatmul.f32.gmra.mxu1 %v18066_v38  ;;  %8549 = vmatpush.msra.mxu0 %v18069_v19  ;;  %v15735_v55 = vsub.f32 %v327_v45, %v15701_v47  ;;  %v1739_v28 = vadd.f32 %v18071_v12, %v1686_v2  ;;  %v2615_v29 = vadd.f32 %v18072_v50, %v2558_v26  ;;  %v18074_v33 = vld [vmem:[#allocation202_spill] sm:$0xff]  ;;  %v18075_v61 = vld [vmem:[#allocation60_spill] sm:$0xff]  ;;  %v8773_v34 = vand.u32 4294901760, %v8772_v15  ;;  %v18076_v2 = vld [vmem:[#allocation141_spill] sm:$0xff] }
 0x482   :  { %v8778_v1 = vsub.f32 %v15666_v22, %v18070_v40  ;;  %v2517_v36 = vadd.f32 %v18073_v11, %v2436_v43  ;;  %8659 = vmatpush.msra.mxu2 %v15556_v31  ;;  %8762 = vmatpush.msra.mxu3 %v8761_v20  ;;  %v2798_v41 = vadd.f32 %v18074_v33, %v2732_v62  ;;  %v16704_v52 = vand.u32 4294901760, %v15717_v54  ;;  %v18077_v26 = vld [vmem:[#allocation199_spill] sm:$0xff]  ;;  %v18081_v62 = vld [vmem:[#allocation206_spill] sm:$0xff] }
 0x483   :  { %8448 = vmatmul.f32.gmra.mxu2 %v18075_v61  ;;  %8606 = vmatpush.msra.mxu1 %v15261_v37  ;;  %v15746_v45 = vsub.f32 %v322_v10, %v15719_v56  ;;  %v1641_v19 = vadd.f32 %v18076_v2, %v1556_v46  ;;  %v2623_v40 = vadd.f32 %v18077_v26, %v2562_v59  ;;  %v18078_v43 = vand.u32 4294901760, %v15362_v44  ;;  %v18080_v37 = vld [vmem:[#allocation201_spill] sm:$0xff]  ;;  %v15760_v59 = vpop.f32.mrf.mxu0  ;;  %v15762_v44 = vpop.f32.mrf.mxu1  ;;  %v18082_v50 = vld [vmem:[#allocation139_spill] sm:$0xff]  ;;  %v18083_v61 = vld [vmem:[#allocation144_spill] sm:$0xff] }
 0x484   :  { %8661 = vmatpush.msra.mxu2 %v15577_v39  ;;  %v18079_v20 = vand.u32 4294901760, %v15691_v60  ;;  %v2566_v15 = vadd.f32 %v18080_v37, %v2517_v36  ;;  %v2852_v12 = vadd.f32 %v18081_v62, %v2798_v41  ;;  %8768 = vmatpush.msra.mxu3 %v8767_v53  ;;  %v8779_v10 = vand.u32 4294901760, %v8778_v1  ;;  %v18084_v26 = vld [vmem:[#allocation196_spill] sm:$0xff]  ;;  %v18086_v53 = vld [vmem:[#allocation138_spill] sm:$0xff]  ;;  %v18089_v37 = vld [vmem:[#allocation205_spill] sm:$0xff] }
 0x485   :  { %8553 = vmatpush.msra.mxu0 %v18078_v43  ;;  %8608 = vmatpush.msra.mxu1 %v15275_v57  ;;  %v16703_v46 = vand.u32 4294901760, %v15735_v55  ;;  %v1442_v33 = vadd.f32 %v18082_v50, %v15653_v14  ;;  %v1864_v2 = vadd.f32 %v18083_v61, %v1739_v28  ;;  %v2736_v43 = vadd.f32 %v18084_v26, %v2615_v29  ;;  %v15771_v57 = vpop.f32.mrf.mxu2  ;;  %v18087_v41 = vld [vmem:[#allocation146_spill] sm:$0xff]  ;;  %v18090_v50 = vld [vmem:[#allocation200_spill] sm:$0xff] }
 0x486   :  { %v8784_v11 = vsub.f32 %v15691_v60, %v18079_v20  ;;  %v18085_v36 = vand.u32 4294901760, %v15386_v23  ;;  %8663 = vmatpush.msra.mxu2 %v15594_v48  ;;  %v1562_v1 = vadd.f32 %v18086_v53, %v1506_v7  ;;  %v1690_v20 = vadd.f32 %v18087_v41, %v1641_v19  ;;  %8774 = vmatpush.msra.mxu3 %v8773_v34  ;;  %v18088_v29 = vld [vmem:[#allocation154_spill] sm:$0xff]  ;;  %v15786_v34 = vpop.f32.mrf.mxu3  ;;  %v18094_v41 = vld [vmem:[#allocation73_spill] sm:$0xff] }
 0x487   :  { %8610 = vmatpush.msra.mxu1 %v15297_v9  ;;  %v8790_v14 = vsub.f32 %v15717_v54, %v16704_v52  ;;  %v16702_v28 = vand.u32 4294901760, %v15746_v45  ;;  %v1930_v23 = vadd.f32 %v18088_v29, %v1864_v2  ;;  %v2803_v62 = vadd.f32 %v18089_v37, %v2736_v43  ;;  %v18092_v9 = vld [vmem:[#allocation203_spill] sm:$0xff]  ;;  %8271 = vmatmul.f32.gmra.mxu0 %v18094_v41  ;;  %v18097_v37 = vld [vmem:[#allocation210_spill] sm:$0xff]  ;;  %v18164_v52 = vld [vmem:[#allocation364_spill] sm:$0xff] }
 0x488   :  { %8557 = vmatpush.msra.mxu0 %v18085_v36  ;;  %v2740_v61 = vadd.f32 %v18090_v50, %v2623_v40  ;;  %v18091_v26 = vand.u32 4294901760, %v15397_v8  ;;  %8665 = vmatpush.msra.mxu2 %v15616_v51  ;;  %v8785_v7 = vand.u32 4294901760, %v8784_v11  ;;  %v2631_v19 = vadd.f32 %v18092_v9, %v2566_v15  ;;  %v18093_v36 = vld [vmem:[#allocation207_spill] sm:$0xff]  ;;  %v18095_v40 = vld [vmem:[#allocation118_spill] sm:$0xff]  ;;  %v18096_v8 = vld [vmem:[#allocation209_spill] sm:$0xff] }
 0x489   :  { %v2939_v53 = vadd.f32 %v18093_v36, %v2852_v12  ;;  %8780 = vmatpush.msra.mxu3 %v8779_v10  ;;  %v8796_v2 = vsub.f32 %v15735_v55, %v16703_v46  ;;  %v1511_v43 = vadd.f32 %v18095_v40, %v1442_v33  ;;  %v2858_v50 = vadd.f32 %v18097_v37, %v2803_v62  ;;  %v18098_v11 = vld [vmem:[#allocation59_spill] sm:$0xff]  ;;  %v18100_v15 = vld [vmem:[#allocation158_spill] sm:$0xff]  ;;  %v18102_v36 = vld [vmem:[#allocation145_spill] sm:$0xff] }
 0x48a   :  { %8561 = vmatpush.msra.mxu0 %v18091_v26  ;;  %v2808_v29 = vadd.f32 %v18096_v8, %v2740_v61  ;;  %8380 = vmatmul.f32.gmra.mxu1 %v18098_v11  ;;  %v18099_v26 = vld [vmem:[#allocation70_spill] sm:$0xff]  ;;  %v1984_v9 = vadd.f32 %v18100_v15, %v1930_v23  ;;  %v18101_v12 = vand.u32 4294901760, %v15420_v24  ;;  %v8791_v10 = vand.u32 4294901760, %v8790_v14  ;;  %v18103_v41 = vld [vmem:[#allocation147_spill] sm:$0xff]  ;;  %v18104_v40 = vld [vmem:[#allocation216_spill] sm:$0xff] }
 0x48b   :  { %8510 = vmatmul.f32.gmra.mxu3 %v18099_v26  ;;  %8612 = vmatpush.msra.mxu1 %v15321_v63  ;;  %v8802_v33 = vsub.f32 %v15746_v45, %v16702_v28  ;;  %v1645_v61 = vadd.f32 %v18102_v36, %v1562_v1  ;;  %v1747_v62 = vadd.f32 %v18103_v41, %v1690_v20  ;;  %v18105_v23 = vld [vmem:[#allocation204_spill] sm:$0xff]  ;;  %v18107_v24 = vld [vmem:[#allocation65_spill] sm:$0xff]  ;;  %v8797_v14 = vand.u32 4294901760, %v8796_v2  ;;  %v18109_v28 = vld [vmem:[#allocation150_spill] sm:$0xff] }
 0x48c   :  { %8565 = vmatpush.msra.mxu0 %v18101_v12  ;;  %v2864_v8 = vadd.f32 %v18104_v40, %v2808_v29  ;;  %8667 = vmatpush.msra.mxu2 %v15634_v6  ;;  %v2744_v37 = vadd.f32 %v18105_v23, %v2631_v19  ;;  %v18106_v63 = vld [vmem:[#allocation208_spill] sm:$0xff]  ;;  %v18110_v36 = vld [vmem:[#allocation211_spill] sm:$0xff]  ;;  %v18111_v29 = vand.u32 4294901760, %v15437_v42  ;;  %v15824_v2 = vpop.f32.mrf.mxu0 }
 0x48d   :  { %8786 = vmatpush.msra.mxu3 %v8785_v7  ;;  %v2988_v26 = vadd.f32 %v18106_v63, %v2939_v53  ;;  %8453 = vmatmul.f32.gmra.mxu2 %v18107_v24  ;;  %v18108_v15 = vld [vmem:[#allocation116_spill] sm:$0xff]  ;;  %v1694_v1 = vadd.f32 %v18109_v28, %v1645_v61  ;;  %v2943_v20 = vadd.f32 %v18110_v36, %v2858_v50  ;;  %v18112_v7 = vld [vmem:[#allocation159_spill] sm:$0xff]  ;;  %v15826_v28 = vpop.f32.mrf.mxu1  ;;  %v18117_v63 = vld [vmem:[#allocation217_spill] sm:$0xff] }
 0x48e   :  { %8614 = vmatpush.msra.mxu1 %v15331_v3  ;;  %v1568_v12 = vadd.f32 %v18108_v15, %v1511_v43  ;;  %8569 = vmatpush.msra.mxu0 %v18111_v29  ;;  %v2071_v19 = vadd.f32 %v18112_v7, %v1984_v9  ;;  %v18113_v41 = vld [vmem:[#allocation215_spill] sm:$0xff]  ;;  %v18114_v40 = vld [vmem:[#allocation220_spill] sm:$0xff]  ;;  %v8803_v3 = vand.u32 4294901760, %v8802_v33  ;;  %v18115_v43 = vld [vmem:[#allocation149_spill] sm:$0xff]  ;;  %v2947_v24 = vadd.f32 %v18117_v63, %v2864_v8 }
 0x48f   :  { %8669 = vmatpush.msra.mxu2 %v15659_v58  ;;  %v2813_v53 = vadd.f32 %v18113_v41, %v2744_v37  ;;  %v3041_v23 = vadd.f32 %v18114_v40, %v2988_v26  ;;  %8792 = vmatpush.msra.mxu3 %v8791_v10  ;;  %v18116_v42 = vld [vmem:[#allocation148_spill] sm:$0xff]  ;;  %v18118_v15 = vld [vmem:[#allocation89_spill] sm:$0xff]  ;;  %v15834_v37 = vpop.f32.mrf.mxu2  ;;  %v18120_v10 = vld [vmem:[#allocation219_spill] sm:$0xff]  ;;  %v18126_v40 = vand.u32 4294901760, %v15481_v13 }
 0x490   :  { %8616 = vmatpush.msra.mxu1 %v15350_v4  ;;  %v1649_v50 = vadd.f32 %v18115_v43, %v1568_v12  ;;  %v1868_v61 = vadd.f32 %v18116_v42, %v1747_v62  ;;  %v18119_v9 = vand.u32 4294901760, %v18118_v15  ;;  %v18121_v33 = vld [vmem:[#allocation224_spill] sm:$0xff]  ;;  %v18122_v36 = vld [vmem:[#allocation74_spill] sm:$0xff]  ;;  %v18123_v29 = vld [vmem:[#allocation153_spill] sm:$0xff]  ;;  %v15845_v43 = vpop.f32.mrf.mxu3 }
 0x491   :  { %8671 = vmatpush.msra.mxu2 %v15679_v16  ;;  %v2870_v4 = vadd.f32 %v18120_v10, %v2813_v53  ;;  %v3166_v26 = vadd.f32 %v18121_v33, %v3041_v23  ;;  %8798 = vmatpush.msra.mxu3 %v8797_v14  ;;  %v18124_v7 = vld [vmem:[#allocation157_spill] sm:$0xff]  ;;  %v18127_v42 = vld [vmem:[#allocation151_spill] sm:$0xff]  ;;  %v18128_v63 = vld [vmem:[#allocation160_spill] sm:$0xff] }
 0x492   :  { %8573 = vmatpush.msra.mxu0 %v18119_v9  ;;  %8618 = vmatpush.msra.mxu1 %v18122_v36  ;;  %v1698_v12 = vadd.f32 %v18123_v29, %v1649_v50  ;;  %v1935_v62 = vadd.f32 %v18124_v7, %v1868_v61  ;;  %v18125_v41 = vld [vmem:[#allocation213_spill] sm:$0xff]  ;;  %v1755_v53 = vadd.f32 %v18127_v42, %v1694_v1  ;;  %v18129_v14 = vld [vmem:[#allocation268_spill] sm:$0xff]  ;;  %v18132_v61 = vld [vmem:[#allocation162_spill] sm:$0xff] }
 0x493   :  { %v2992_v8 = vadd.f32 %v18125_v41, %v2943_v20  ;;  %8673 = vmatpush.msra.mxu2 %v15701_v47  ;;  %v2120_v23 = vadd.f32 %v18128_v63, %v2071_v19  ;;  %v18130_v15 = vld [vmem:[#allocation272_spill] sm:$0xff]  ;;  %8804 = vmatpush.msra.mxu3 %v8803_v3  ;;  %v18133_v20 = vld [vmem:[#allocation223_spill] sm:$0xff]  ;;  %v18134_v13 = vld [vmem:[#allocation218_spill] sm:$0xff] }
 0x494   :  { %8577 = vmatpush.msra.mxu0 %v18126_v40  ;;  %v4034_v9 = vadd.f32 %v18130_v15, %v18129_v14  ;;  %v18131_v50 = vld [vmem:[#allocation64_spill] sm:$0xff]  ;;  %v1990_v10 = vadd.f32 %v18132_v61, %v1935_v62  ;;  %v2996_v36 = vadd.f32 %v18134_v13, %v2947_v24  ;;  %v18135_v29 = vld [vmem:[#allocation81_spill] sm:$0xff]  ;;  %v18139_v3 = vld [vmem:[#allocation155_spill] sm:$0xff] }
 0x495   :  { %8384 = vmatmul.f32.gmra.mxu1 %v18131_v50  ;;  %v3049_v33 = vadd.f32 %v18133_v20, %v2992_v8  ;;  %8579 = vmatmul.f32.vlgmr.msra.gmra.mxu0 %v18030_v21  ;;  %v18136_v7 = vld [vmem:[#allocation221_spill] sm:$0xff]  ;;  %v18138_v40 = vld [vmem:[#allocation72_spill] sm:$0xff]  ;;  %v15862_v42 = vadd.f32 %v18139_v3, %v1698_v12  ;;  %v18141_v62 = vld [vmem:[#allocation227_spill] sm:$0xff]  ;;  %v15874_v12 = vmul.f32 %v2120_v23, %v2120_v23 }
 0x496   :  { %8620 = vmatpush.msra.mxu1 %v18135_v29  ;;  %v2951_v1 = vadd.f32 %v18136_v7, %v2870_v4  ;;  %v18137_v41 = vld [vmem:[#allocation225_spill] sm:$0xff]  ;;  %8806 = vmatmul.f32.vlgmr.msra.gmra.mxu3 %v18138_v40  ;;  %v3057_v63 = vadd.f32 %v18141_v62, %v2996_v36  ;;  %v18142_v8 = vld [vmem:[#allocation228_spill] sm:$0xff]  ;;  %v18148_v7 = vld [vmem:[#allocation47_spill] sm:$0xff] }
 0x497   :  { %v3232_v19 = vadd.f32 %v18137_v41, %v3166_v26  ;;  %8675 = vmatpush.msra.mxu2 %v15719_v56  ;;  %18140 = vst [vmem:[#allocation18_spill] sm:$0xff] %v15862_v42  ;;  %v3170_v14 = vadd.f32 %v18142_v8, %v3049_v33  ;;  %v18143_v24 = vld [vmem:[#allocation53_spill] sm:$0xff]  ;;  %9030 = vmatpush.msrb.mxu3 %v15405_v49  ;;  %v18144_v15 = vld [vmem:[#allocation152_spill] sm:$0xff]  ;;  %v18146_v26 = vld [vmem:[#allocation271_spill] sm:$0xff] }
 0x498   :  { %8824 = vmatpush.msrb.mxu0 %v18143_v24  ;;  %v1872_v61 = vadd.f32 %v18144_v15, %v1755_v53  ;;  %v18145_v4 = vld [vmem:[#allocation273_spill] sm:$0xff]  ;;  %v18147_v13 = vld [vmem:[#allocation276_spill] sm:$0xff]  ;;  %8622 = vmatpush.msra.mxu1 %v18148_v7  ;;  %18150 = vst [vmem:[#allocation111_spill] sm:$0xff] %v15874_v12  ;;  %v18151_v36 = vld [vmem:[#allocation163_spill] sm:$0xff]  ;;  %v18154_v46 = vand.u32 4294901760, %v18143_v24 }
 0x499   :  { %v4100_v20 = vadd.f32 %v18145_v4, %v4034_v9  ;;  %v4038_v29 = vadd.f32 %v18147_v13, %v18146_v26  ;;  %v18149_v41 = vld [vmem:[#allocation85_spill] sm:$0xff]  ;;  %v2075_v3 = vadd.f32 %v18151_v36, %v1990_v10  ;;  %v18152_v33 = vld [vmem:[#allocation232_spill] sm:$0xff]  ;;  %v18153_v8 = vld [vmem:[#allocation90_spill] sm:$0xff]  ;;  %9032 = vmatpush.msrb.mxu3 %v15427_v27  ;;  %v15889_v10 = vpop.f32.mrf.mxu0 }
 0x49a   :  { %8681 = vmatmul.f32.vlgmr.msra.gmra.mxu2 %v18149_v41  ;;  %v3174_v62 = vadd.f32 %v18152_v33, %v3057_v63  ;;  %8827 = vmatpush.msrb.mxu0 %v18153_v8  ;;  %v18155_v53 = vld [vmem:[#allocation222_spill] sm:$0xff]  ;;  %v18157_v26 = vld [vmem:[#allocation275_spill] sm:$0xff]  ;;  %v18158_v13 = vld [vmem:[#allocation280_spill] sm:$0xff]  ;;  %v15887_v41 = vpop.f32.mrf.mxu1  ;;  %18160 = vst [vmem:[#allocation113_spill] sm:$0xff] %v15889_v10 }
 0x49b   :  { %8951 = vmatpush.msrb.mxu2 %v18154_v46  ;;  %v3000_v9 = vadd.f32 %v18155_v53, %v2951_v1  ;;  %v18156_v15 = vld [vmem:[#allocation226_spill] sm:$0xff]  ;;  %v4042_v7 = vadd.f32 %v18158_v13, %v18157_v26  ;;  %v18159_v23 = vld [vmem:[#allocation71_spill] sm:$0xff]  ;;  %v18161_v63 = vld [vmem:[#allocation229_spill] sm:$0xff]  ;;  %v15899_v26 = vpop.f32.mrf.mxu2  ;;  %9034 = vmatpush.msrb.mxu3 %v15450_v32 }
 0x49c   :  { %v3286_v4 = vadd.f32 %v18156_v15, %v3232_v19  ;;  %8624 = vmatpush.msra.mxu1 %v18159_v23  ;;  %v3237_v36 = vadd.f32 %v18161_v63, %v3170_v14  ;;  %v18162_v33 = vld [vmem:[#allocation279_spill] sm:$0xff]  ;;  %v18165_v1 = vld [vmem:[#allocation368_spill] sm:$0xff]  ;;  %v18167_v15 = vand.u32 4294901760, %v18153_v8  ;;  %v18169_v42 = vld [vmem:[#allocation277_spill] sm:$0xff] }
 0x49d   :  { %v18163_v24 = vld [vmem:[#allocation283_spill] sm:$0xff]  ;;  %v5770_v53 = vadd.f32 %v18165_v1, %v18164_v52  ;;  %v18166_v19 = vld [vmem:[#allocation84_spill] sm:$0xff]  ;;  %v4105_v12 = vadd.f32 %v18169_v42, %v4038_v29  ;;  %v18170_v10 = vld [vmem:[#allocation274_spill] sm:$0xff]  ;;  %9036 = vmatpush.msrb.mxu3 %v15470_v5  ;;  %8583 = vmatmul.f32.gmra.mxu0 %v18066_v38 }
 0x49e   :  { %v4046_v46 = vadd.f32 %v18163_v24, %v18162_v33  ;;  %8830 = vmatpush.msrb.mxu0 %v18166_v19  ;;  %8955 = vmatpush.msrb.mxu2 %v18167_v15  ;;  %v18168_v13 = vld [vmem:[#allocation236_spill] sm:$0xff]  ;;  %v4154_v40 = vadd.f32 %v18170_v10, %v4100_v20  ;;  %v18171_v14 = vld [vmem:[#allocation38_spill] sm:$0xff]  ;;  %v18172_v63 = vld [vmem:[#allocation161_spill] sm:$0xff]  ;;  %v18176_v56 = vand.u32 4294901760, %v18166_v19 }
 0x49f   :  { %v3373_v23 = vadd.f32 %v18168_v13, %v3286_v4  ;;  %8626 = vmatpush.msra.mxu1 %v18171_v14  ;;  %v15907_v33 = vadd.f32 %v18172_v63, %v1872_v61  ;;  %v18173_v52 = vld [vmem:[#allocation231_spill] sm:$0xff]  ;;  %v18174_v1 = vld [vmem:[#allocation233_spill] sm:$0xff]  ;;  %v15914_v4 = vpop.f32.mrf.mxu3  ;;  %v18177_v42 = vld [vmem:[#allocation238_spill] sm:$0xff]  ;;  %9038 = vmatpush.msrb.mxu3 %v15493_v17 }
 0x4a0   :  { %v3065_v24 = vadd.f32 %v18173_v52, %v3000_v9  ;;  %v3242_v8 = vadd.f32 %v18174_v1, %v3174_v62  ;;  %v18175_v15 = vld [vmem:[#allocation97_spill] sm:$0xff]  ;;  %8959 = vmatpush.msrb.mxu2 %v18176_v56  ;;  %v18179_v13 = vld [vmem:[#allocation284_spill] sm:$0xff]  ;;  %v18180_v61 = vld [vmem:[#allocation230_spill] sm:$0xff]  ;;  %8628 = vmatmul.f32.vlgmr.msra.gmra.mxu1 %v18030_v21 }
 0x4a1   :  { %8833 = vmatpush.msrb.mxu0 %v18175_v15  ;;  %v3422_v20 = vadd.f32 %v18177_v42, %v3373_v23  ;;  %v18178_v29 = vld [vmem:[#allocation281_spill] sm:$0xff]  ;;  %v4241_v14 = vadd.f32 %v18179_v13, %v4154_v40  ;;  %v3292_v9 = vadd.f32 %v18180_v61, %v3237_v36  ;;  %v18181_v62 = vld [vmem:[#allocation262_spill] sm:$0xff]  ;;  %v18183_v56 = vld [vmem:[#allocation80_spill] sm:$0xff]  ;;  %8892 = vmatpush.msrb.mxu1 %v15405_v49  ;;  %v18191_v21 = vand.u32 4294901760, %v18175_v15 }
 0x4a2   :  { %v4110_v10 = vadd.f32 %v18178_v29, %v4042_v7  ;;  %v4115_v63 = vadd.f32 %v18181_v62, %v4046_v46  ;;  %v18182_v52 = vld [vmem:[#allocation369_spill] sm:$0xff]  ;;  %8810 = vmatmul.f32.gmra.mxu3 %v18183_v56  ;;  %v18185_v7 = vld [vmem:[#allocation278_spill] sm:$0xff]  ;;  %v18187_v13 = vld [vmem:[#allocation91_spill] sm:$0xff]  ;;  %v7510_v15 = vadd.f32 %v15762_v44, %v15681_v30 }
 0x4a3   :  { %v5836_v1 = vadd.f32 %v18182_v52, %v5770_v53  ;;  %v18184_v19 = vld [vmem:[#allocation165_spill] sm:$0xff]  ;;  %v4160_v42 = vadd.f32 %v18185_v7, %v4105_v12  ;;  %v18186_v40 = vld [vmem:[#allocation286_spill] sm:$0xff]  ;;  %8836 = vmatpush.msrb.mxu0 %v18187_v13  ;;  %v18188_v36 = vld [vmem:[#allocation235_spill] sm:$0xff]  ;;  %8963 = vmatpush.msrb.mxu2 %v18191_v21 }
 0x4a4   :  { %v15927_v23 = vadd.f32 %v18184_v19, %v2075_v3  ;;  %v4290_v29 = vadd.f32 %v18186_v40, %v4241_v14  ;;  %v3178_v61 = vadd.f32 %v18188_v36, %v3065_v24  ;;  %v18189_v46 = vld [vmem:[#allocation237_spill] sm:$0xff]  ;;  %v18190_v53 = vld [vmem:[#allocation234_spill] sm:$0xff]  ;;  %v18192_v3 = vld [vmem:[#allocation239_spill] sm:$0xff]  ;;  %8894 = vmatpush.msrb.mxu1 %v15427_v27  ;;  %9040 = vmatpush.msrb.mxu3 %v15514_v0  ;;  %v7716_v27 = vpop.f32.mrf.mxu0 }
 0x4a5   :  { %v3377_v62 = vadd.f32 %v18189_v46, %v3292_v9  ;;  %v3298_v52 = vadd.f32 %v18190_v53, %v3242_v8  ;;  %v3475_v19 = vadd.f32 %v18192_v3, %v3422_v20  ;;  %v18193_v12 = vld [vmem:[#allocation285_spill] sm:$0xff]  ;;  %v18194_v14 = vld [vmem:[#allocation282_spill] sm:$0xff]  ;;  %v18196_v24 = vld [vmem:[#allocation260_spill] sm:$0xff]  ;;  %8839 = vmatpush.msrb.mxu0 %v15554_v35  ;;  %v18198_v8 = vand.u32 4294901760, %v18187_v13 }
 0x4a6   :  { %v4245_v7 = vadd.f32 %v18193_v12, %v4160_v42  ;;  %v4166_v40 = vadd.f32 %v18194_v14, %v4110_v10  ;;  %v18195_v49 = vld [vmem:[#allocation86_spill] sm:$0xff]  ;;  %v4172_v36 = vadd.f32 %v18196_v24, %v4115_v63  ;;  %v18199_v20 = vld [vmem:[#allocation287_spill] sm:$0xff]  ;;  %v18202_v3 = vld [vmem:[#allocation372_spill] sm:$0xff]  ;;  %8896 = vmatpush.msrb.mxu1 %v15450_v32  ;;  %v15957_v63 = vpop.f32.mrf.mxu1  ;;  %9042 = vmatpush.msrb.mxu3 %v15537_v18 }
 0x4a7   :  { %8689 = vmatmul.f32.gmra.mxu2 %v18195_v49  ;;  %v18197_v9 = vld [vmem:[#allocation370_spill] sm:$0xff]  ;;  %v4343_v42 = vadd.f32 %v18199_v20, %v4290_v29  ;;  %v18201_v21 = vld [vmem:[#allocation367_spill] sm:$0xff]  ;;  %v18204_v14 = vld [vmem:[#allocation289_spill] sm:$0xff]  ;;  %v18207_v29 = vand.u32 4294901760, %v15554_v35  ;;  %v7577_v35 = vadd.f32 %v15771_v57, %v7510_v15  ;;  %8587 = vmatmul.f32.gmra.mxu0 %v18098_v11 }
 0x4a8   :  { %v5890_v46 = vadd.f32 %v18197_v9, %v5836_v1  ;;  %8967 = vmatpush.msrb.mxu2 %v18198_v8  ;;  %v18200_v53 = vld [vmem:[#allocation290_spill] sm:$0xff]  ;;  %v5774_v12 = vadd.f32 %v18202_v3, %v18201_v21  ;;  %v4249_v49 = vadd.f32 %v18204_v14, %v4166_v40  ;;  %v18205_v24 = vld [vmem:[#allocation380_spill] sm:$0xff]  ;;  %v18209_v32 = vld [vmem:[#allocation241_spill] sm:$0xff]  ;;  %8898 = vmatpush.msrb.mxu1 %v15470_v5 }
 0x4a9   :  { %v4294_v10 = vadd.f32 %v18200_v53, %v4245_v7  ;;  %v18203_v1 = vld [vmem:[#allocation242_spill] sm:$0xff]  ;;  %v15965_v7 = vpop.f32.mrf.mxu2  ;;  %v3381_v20 = vadd.f32 %v18209_v32, %v3298_v52  ;;  %v18210_v53 = vld [vmem:[#allocation293_spill] sm:$0xff]  ;;  %v18215_v52 = vld [vmem:[#allocation291_spill] sm:$0xff]  ;;  %9044 = vmatpush.msrb.mxu3 %v15556_v31  ;;  %8632 = vmatmul.f32.gmra.mxu1 %v18066_v38 }
 0x4aa   :  { %v3426_v13 = vadd.f32 %v18203_v1, %v3377_v62  ;;  %v5977_v30 = vadd.f32 %v18205_v24, %v5890_v46  ;;  %v18206_v44 = vld [vmem:[#allocation102_spill] sm:$0xff]  ;;  %8971 = vmatpush.msrb.mxu2 %v18207_v29  ;;  %v4253_v21 = vadd.f32 %v18210_v53, %v4172_v36  ;;  %v18216_v36 = vld [vmem:[#allocation288_spill] sm:$0xff]  ;;  %v18218_v5 = vld [vmem:[#allocation243_spill] sm:$0xff]  ;;  %8900 = vmatpush.msrb.mxu1 %v15493_v17 }
 0x4ab   :  { %8842 = vmatpush.msrb.mxu0 %v18206_v44  ;;  %v18208_v9 = vld [vmem:[#allocation214_spill] sm:$0xff]  ;;  %v18214_v14 = vand.u32 4294901760, %v18206_v44  ;;  %v4351_v24 = vadd.f32 %v18215_v52, %v4294_v10  ;;  %v4468_v29 = vadd.f32 %v18216_v36, %v4343_v42  ;;  %v18219_v57 = vld [vmem:[#allocation240_spill] sm:$0xff]  ;;  %9046 = vmatpush.msrb.mxu3 %v15577_v39 }
 0x4ac   :  { %v15968_v8 = vadd.f32 %v18208_v9, %v3178_v61  ;;  %v18211_v62 = vld [vmem:[#allocation294_spill] sm:$0xff]  ;;  %v15980_v61 = vpop.f32.mrf.mxu3  ;;  %v18217_v9 = vld [vmem:[#allocation373_spill] sm:$0xff]  ;;  %v15989_v15 = vadd.f32 %v18219_v57, %v3475_v19  ;;  %v18227_v19 = vld [vmem:[#allocation295_spill] sm:$0xff]  ;;  %8902 = vmatpush.msrb.mxu1 %v15514_v0  ;;  %v7720_v0 = vpop.f32.mrf.mxu0 }
 0x4ad   :  { %v4298_v40 = vadd.f32 %v18211_v62, %v4249_v49  ;;  %v18212_v46 = vld [vmem:[#allocation382_spill] sm:$0xff]  ;;  %8975 = vmatpush.msrb.mxu2 %v18214_v14  ;;  %v5841_v32 = vadd.f32 %v18217_v9, %v5774_v12  ;;  %v3483_v49 = vadd.f32 %v18218_v5, %v3426_v13  ;;  %v18225_v14 = vld [vmem:[#allocation376_spill] sm:$0xff]  ;;  %v18226_v13 = vld [vmem:[#allocation93_spill] sm:$0xff]  ;;  %9048 = vmatpush.msrb.mxu3 %v15594_v48 }
 0x4ae   :  { %v6026_v3 = vadd.f32 %v18212_v46, %v5977_v30  ;;  %v18213_v1 = vld [vmem:[#allocation14_spill] sm:$0xff]  ;;  %v18220_v30 = vld [vmem:[#allocation297_spill] sm:$0xff]  ;;  %v18224_v46 = vld [vmem:[#allocation371_spill] sm:$0xff]  ;;  %8904 = vmatpush.msrb.mxu1 %v15537_v18 }
 0x4af   :  { %8845 = vmatpush.msrb.mxu0 %v18213_v1  ;;  %v4302_v44 = vadd.f32 %v18220_v30, %v4253_v21  ;;  %v18221_v53 = vld [vmem:[#allocation50_spill] sm:$0xff]  ;;  %v5778_v52 = vadd.f32 %v18225_v14, %v18224_v46  ;;  %v4359_v36 = vadd.f32 %v18227_v19, %v4298_v40  ;;  %v18228_v9 = vld [vmem:[#allocation383_spill] sm:$0xff]  ;;  %v18229_v38 = vand.u32 4294901760, %v18213_v1  ;;  %v18230_v5 = vld [vmem:[#allocation292_spill] sm:$0xff]  ;;  %9050 = vmatpush.msrb.mxu3 %v15616_v51 }
 0x4b0   :  { %8814 = vmatmul.f32.gmra.mxu3 %v18221_v53  ;;  %v18222_v10 = vld [vmem:[#allocation246_spill] sm:$0xff]  ;;  %v6079_v21 = vadd.f32 %v18228_v9, %v6026_v3  ;;  %v18234_v40 = vld [vmem:[#allocation299_spill] sm:$0xff]  ;;  %v18235_v3 = vand.u32 4294901760, %v18226_v13  ;;  %v18236_v1 = vld [vmem:[#allocation301_spill] sm:$0xff]  ;;  %8906 = vmatpush.msrb.mxu1 %v15556_v31 }
 0x4b1   :  { %v15995_v62 = vadd.f32 %v18222_v10, %v3381_v20  ;;  %v18223_v42 = vld [vmem:[#allocation298_spill] sm:$0xff]  ;;  %8848 = vmatpush.msrb.mxu0 %v18226_v13  ;;  %8979 = vmatpush.msrb.mxu2 %v18229_v38  ;;  %v7632_v20 = vadd.f32 %v15786_v34, %v7577_v35  ;;  %v4367_v46 = vadd.f32 %v18234_v40, %v4302_v44  ;;  %v7765_v44 = vpop.f32.mrf.mxu1  ;;  %v18239_v9 = vld [vmem:[#allocation296_spill] sm:$0xff]  ;;  %v18252_v31 = vld [vmem:[#allocation305_spill] sm:$0xff] }
 0x4b2   :  { %v4534_v12 = vadd.f32 %v18223_v42, %v4468_v29  ;;  %v4472_v29 = vadd.f32 %v18230_v5, %v4351_v24  ;;  %v18231_v57 = vld [vmem:[#allocation302_spill] sm:$0xff]  ;;  %v7514_v34 = vadd.f32 %v15826_v28, %v15760_v59  ;;  %v4476_v38 = vadd.f32 %v18239_v9, %v4359_v36  ;;  %v18240_v13 = vld [vmem:[#allocation384_spill] sm:$0xff]  ;;  %9052 = vmatpush.msrb.mxu3 %v15634_v6 }
 0x4b3   :  { %v18232_v10 = vld [vmem:[#allocation374_spill] sm:$0xff]  ;;  %8851 = vmatpush.msrb.mxu0 %v15632_v25  ;;  %8983 = vmatpush.msrb.mxu2 %v18235_v3  ;;  %v7717_v35 = vadd.f32 %v7716_v27, %v7632_v20  ;;  %v6204_v5 = vadd.f32 %v18240_v13, %v6079_v21  ;;  %v18242_v59 = vand.u32 4294901760, %v15632_v25  ;;  %v7822_v27 = vpop.f32.mrf.mxu2 }
 0x4b4   :  { %v4588_v30 = vadd.f32 %v18231_v57, %v4534_v12  ;;  %v5896_v42 = vadd.f32 %v18232_v10, %v5841_v32  ;;  %v18233_v17 = vld [vmem:[#allocation94_spill] sm:$0xff]  ;;  %v4539_v24 = vadd.f32 %v18236_v1, %v4472_v29  ;;  %v18237_v12 = vld [vmem:[#allocation377_spill] sm:$0xff]  ;;  %v7582_v21 = vadd.f32 %v15834_v37, %v7514_v34  ;;  %v7943_v40 = vpop.f32.mrf.mxu3  ;;  %v18249_v1 = vld [vmem:[#allocation375_spill] sm:$0xff]  ;;  %8591 = vmatmul.f32.gmra.mxu0 %v18131_v50 }
 0x4b5   :  { %8697 = vmatmul.f32.gmra.mxu2 %v18233_v17  ;;  %v5846_v14 = vadd.f32 %v18237_v12, %v5778_v52  ;;  %v18238_v32 = vld [vmem:[#allocation381_spill] sm:$0xff]  ;;  %v18241_v57 = vld [vmem:[#allocation106_spill] sm:$0xff]  ;;  %v7766_v28 = vadd.f32 %v7765_v44, %v7717_v35  ;;  %v18243_v52 = vld [vmem:[#allocation303_spill] sm:$0xff]  ;;  %v4544_v37 = vadd.f32 %v18252_v31, %v4476_v38  ;;  %8636 = vmatmul.f32.gmra.mxu1 %v18098_v11 }
 0x4b6   :  { %v5981_v19 = vadd.f32 %v18238_v32, %v5896_v42  ;;  %8854 = vmatpush.msrb.mxu0 %v18241_v57  ;;  %8987 = vmatpush.msrb.mxu2 %v18242_v59  ;;  %v4675_v20 = vadd.f32 %v18243_v52, %v4588_v30  ;;  %v18244_v29 = vld [vmem:[#allocation306_spill] sm:$0xff]  ;;  %v18247_v25 = vand.u32 4294901760, %v18241_v57  ;;  %v18248_v30 = vld [vmem:[#allocation244_spill] sm:$0xff]  ;;  %v18257_v59 = vld [vmem:[#allocation385_spill] sm:$0xff]  ;;  %v7638_v11 = vadd.f32 %v15845_v43, %v7582_v21 }
 0x4b7   :  { %v4594_v10 = vadd.f32 %v18244_v29, %v4539_v24  ;;  %v18245_v42 = vld [vmem:[#allocation386_spill] sm:$0xff]  ;;  %v7823_v3 = vadd.f32 %v7822_v27, %v7766_v28  ;;  %v16040_v35 = vadd.f32 %v18248_v30, %v3483_v49  ;;  %v18250_v24 = vld [vmem:[#allocation379_spill] sm:$0xff]  ;;  %v18253_v34 = vld [vmem:[#allocation300_spill] sm:$0xff]  ;;  %8908 = vmatpush.msrb.mxu1 %v15577_v39  ;;  %9054 = vmatpush.msrb.mxu3 %v15659_v58 }
 0x4b8   :  { %v6030_v17 = vadd.f32 %v18245_v42, %v5981_v19  ;;  %v18246_v18 = vld [vmem:[#allocation394_spill] sm:$0xff]  ;;  %8857 = vmatpush.msrb.mxu0 %v15666_v22  ;;  %8991 = vmatpush.msrb.mxu2 %v18247_v25  ;;  %v5782_v12 = vadd.f32 %v18250_v24, %v18249_v1  ;;  %v4480_v44 = vadd.f32 %v18253_v34, %v4367_v46  ;;  %v18256_v49 = vld [vmem:[#allocation304_spill] sm:$0xff]  ;;  %v18258_v27 = vld [vmem:[#allocation387_spill] sm:$0xff] }
 0x4b9   :  { %v6270_v36 = vadd.f32 %v18246_v18, %v6204_v5  ;;  %v18251_v32 = vld [vmem:[#allocation378_spill] sm:$0xff]  ;;  %v18255_v5 = vld [vmem:[#allocation88_spill] sm:$0xff]  ;;  %v4724_v57 = vadd.f32 %v18256_v49, %v4675_v20  ;;  %v18259_v52 = vld [vmem:[#allocation307_spill] sm:$0xff]  ;;  %v18262_v18 = vand.u32 4294901760, %v15666_v22  ;;  %8910 = vmatpush.msrb.mxu1 %v15594_v48  ;;  %v7518_v39 = vadd.f32 %v15887_v41, %v15824_v2  ;;  %9056 = vmatpush.msrb.mxu3 %v15679_v16  ;;  %v7724_v48 = vpop.f32.mrf.mxu0  ;;  %v7769_v2 = vpop.f32.mrf.mxu1 }
 0x4ba   :  { %v5902_v19 = vadd.f32 %v18251_v32, %v5846_v14  ;;  %v18254_v9 = vld [vmem:[#allocation398_spill] sm:$0xff]  ;;  %8818 = vmatmul.f32.gmra.mxu3 %v18255_v5  ;;  %v6087_v14 = vadd.f32 %v18258_v27, %v6030_v17  ;;  %8860 = vmatpush.msrb.mxu0 %v15691_v60  ;;  %v4679_v38 = vadd.f32 %v18259_v52, %v4594_v10  ;;  %v18260_v29 = vld [vmem:[#allocation105_spill] sm:$0xff]  ;;  %v18261_v46 = vld [vmem:[#allocation107_spill] sm:$0xff]  ;;  %v18267_v22 = vand.u32 4294901760, %v15691_v60 }
 0x4bb   :  { %v6324_v13 = vadd.f32 %v18254_v9, %v6270_v36  ;;  %v7506_v42 = vadd.f32 %v18261_v46, %v18260_v29  ;;  %8995 = vmatpush.msrb.mxu2 %v18262_v18  ;;  %v18263_v20 = vld [vmem:[#allocation358_spill] sm:$0xff]  ;;  %v18265_v30 = vld [vmem:[#allocation100_spill] sm:$0xff]  ;;  %v18266_v10 = vld [vmem:[#allocation399_spill] sm:$0xff]  ;;  %v7721_v24 = vadd.f32 %v7720_v0, %v7638_v11  ;;  %v16074_v43 = vadd.f32 %v7943_v40, %v7823_v3  ;;  %v7830_v3 = vpop.f32.mrf.mxu2 }
 0x4bc   :  { %v5985_v28 = vadd.f32 %v18257_v59, %v5902_v19  ;;  %v5851_v36 = vadd.f32 %v18263_v20, %v5782_v12  ;;  %v18264_v25 = vld [vmem:[#allocation390_spill] sm:$0xff]  ;;  %8863 = vmatpush.msrb.mxu0 %v15717_v54  ;;  %v18268_v21 = vld [vmem:[#allocation311_spill] sm:$0xff]  ;;  %v18269_v32 = vld [vmem:[#allocation312_spill] sm:$0xff]  ;;  %8912 = vmatpush.msrb.mxu1 %v15616_v51  ;;  %v18273_v0 = vand.u32 4294901760, %v15717_v54  ;;  %v18278_v54 = vand.u32 4294901760, %v15735_v55  ;;  %v7947_v52 = vpop.f32.mrf.mxu3 }
 0x4bd   :  { %8705 = vmatmul.f32.gmra.mxu2 %v18265_v30  ;;  %v6411_v1 = vadd.f32 %v18266_v10, %v6324_v13  ;;  %v4549_v12 = vadd.f32 %v18268_v21, %v4480_v44  ;;  %v4600_v19 = vadd.f32 %v18269_v32, %v4544_v37  ;;  %v18270_v31 = vld [vmem:[#allocation388_spill] sm:$0xff]  ;;  %v18272_v13 = vld [vmem:[#allocation110_spill] sm:$0xff]  ;;  %v7770_v40 = vadd.f32 %v7769_v2, %v7721_v24  ;;  %v18275_v49 = vld [vmem:[#allocation397_spill] sm:$0xff] }
 0x4be   :  { %v6034_v17 = vadd.f32 %v18264_v25, %v5985_v28  ;;  %8999 = vmatpush.msrb.mxu2 %v18267_v22  ;;  %v6208_v34 = vadd.f32 %v18270_v31, %v6087_v14  ;;  %v18271_v41 = vld [vmem:[#allocation316_spill] sm:$0xff]  ;;  %v7572_v60 = vadd.f32 %v18272_v13, %v7506_v42  ;;  %8866 = vmatpush.msrb.mxu0 %v15735_v55  ;;  %v18276_v51 = vld [vmem:[#allocation391_spill] sm:$0xff]  ;;  %v18279_v46 = vld [vmem:[#allocation309_spill] sm:$0xff] }
 0x4bf   :  { %v4777_v9 = vadd.f32 %v18271_v41, %v4724_v57  ;;  %v18274_v37 = vld [vmem:[#allocation356_spill] sm:$0xff]  ;;  %v7587_v28 = vadd.f32 %v15899_v26, %v7518_v39  ;;  %9058 = vmatpush.msrb.mxu3 %v15701_v47  ;;  %8914 = vmatpush.msrb.mxu1 %v15634_v6  ;;  %v7831_v29 = vadd.f32 %v7830_v3, %v7770_v40  ;;  %v18280_v18 = vld [vmem:[#allocation389_spill] sm:$0xff]  ;;  %v18281_v26 = vld [vmem:[#allocation402_spill] sm:$0xff] }
 0x4c0   :  { %9003 = vmatpush.msrb.mxu2 %v18273_v0  ;;  %v5908_v44 = vadd.f32 %v18274_v37, %v5851_v36  ;;  %v6275_v59 = vadd.f32 %v18275_v49, %v6208_v34  ;;  %v6095_v57 = vadd.f32 %v18276_v51, %v6034_v17  ;;  %v18277_v27 = vld [vmem:[#allocation400_spill] sm:$0xff]  ;;  %8869 = vmatpush.msrb.mxu0 %v15746_v45  ;;  %v9113_v6 = vld [vmem:[#allocation7 + $0x78] sm:$0xff]  ;;  %v18285_v55 = vld [vmem:[#allocation109_spill] sm:$0xff] }
 0x4c1   :  { %v6460_v14 = vadd.f32 %v18277_v27, %v6411_v1  ;;  %v4728_v42 = vadd.f32 %v18279_v46, %v4679_v38  ;;  %v18282_v36 = vld [vmem:[#allocation104_spill] sm:$0xff]  ;;  %8640 = vmatmul.f32.gmra.mxu1 %v18131_v50  ;;  %v9161_v25 = vld [vmem:[#allocation7 + $0x1f8] sm:$0xff]  ;;  %v7626_v1 = vadd.f32 %v18285_v55, %v7572_v60  ;;  %v18286_v22 = vld [vmem:[#allocation77_spill] sm:$0xff]  ;;  %v18290_v50 = vand.u32 4294901760, %v15746_v45 }
 0x4c2   :  { %9007 = vmatpush.msrb.mxu2 %v18278_v54  ;;  %v5989_v11 = vadd.f32 %v18280_v18, %v5908_v44  ;;  %v6330_v20 = vadd.f32 %v18281_v26, %v6275_v59  ;;  %9060 = vmatpush.msrb.mxu3 %v18282_v36  ;;  %v18283_v17 = vld [vmem:[#allocation320_spill] sm:$0xff]  ;;  %v18287_v38 = vld [vmem:[#allocation313_spill] sm:$0xff]  ;;  %v9112_v34 = vld [vmem:[#allocation7 + $0x70] sm:$0xff]  ;;  %v7644_v41 = vadd.f32 %v15914_v4, %v7587_v28  ;;  %v7773_v54 = vpop.f32.mrf.mxu1  ;;  %v8005_v26 = vpop.f32.mrf.mxu0 }
 0x4c3   :  { %v4902_v30 = vadd.f32 %v18283_v17, %v4777_v9  ;;  %v18284_v39 = vld [vmem:[#allocation20_spill] sm:$0xff]  ;;  %8872 = vmatmul.f32.vlgmr.msrb.gmra.mxu0 %v18286_v22  ;;  %8916 = vmatpush.msrb.mxu1 %v15659_v58  ;;  %v4683_v24 = vadd.f32 %v18287_v38, %v4600_v19  ;;  %v18288_v21 = vld [vmem:[#allocation393_spill] sm:$0xff]  ;;  %v9145_v2 = vld [vmem:[#allocation7 + $0x178] sm:$0xff]  ;;  %v16118_v59 = vadd.f32 %v7947_v52, %v7831_v29 }
 0x4c4   :  { %v6513_v10 = vadd.f32 %v18284_v39, %v6460_v14  ;;  %v6038_v32 = vadd.f32 %v18288_v21, %v5989_v11  ;;  %v18289_v31 = vld [vmem:[#allocation72_spill] sm:$0xff]  ;;  %9011 = vmatpush.msrb.mxu2 %v18290_v50  ;;  %v18292_v60 = vld [vmem:[#allocation15_spill] sm:$0xff]  ;;  %v18293_v40 = vld [vmem:[#allocation113_spill] sm:$0xff]  ;;  %9178 = vmatpush.msra.mxu0 %v9113_v6  ;;  %v7725_v49 = vadd.f32 %v7724_v48, %v7644_v41  ;;  %v7838_v39 = vpop.f32.mrf.mxu2 }
 0x4c5   :  { %9062 = vmatmul.f32.vlgmr.msrb.gmra.mxu3 %v18289_v31  ;;  %v18291_v9 = vld [vmem:[#allocation392_spill] sm:$0xff]  ;;  %v7713_v3 = vadd.f32 %v18293_v40, %v7626_v1  ;;  %v9160_v58 = vld [vmem:[#allocation7 + $0x1f0] sm:$0xff]  ;;  %v18294_v19 = vld [vmem:[#allocation403_spill] sm:$0xff]  ;;  %8918 = vmatpush.msrb.mxu1 %v15679_v16 }
 0x4c6   :  { %v6212_v13 = vadd.f32 %v18291_v9, %v6095_v57  ;;  %v6638_v0 = vadd.f32 %v18292_v60, %v6513_v10  ;;  %9265 = vmatpush.msra.mxu3 %v9161_v25  ;;  %v6415_v37 = vadd.f32 %v18294_v19, %v6330_v20  ;;  %9013 = vmatmul.f32.vlgmr.msrb.gmra.mxu2 %v18289_v31  ;;  %v9111_v45 = vld [vmem:[#allocation7 + $0x68] sm:$0xff]  ;;  %v9144_v44 = vld [vmem:[#allocation7 + $0x170] sm:$0xff]  ;;  %v18295_v4 = vld [vmem:[#allocation315_spill] sm:$0xff] }
 0x4c7   :  { %v4606_v28 = vadd.f32 %v18295_v4, %v4549_v12  ;;  %v18296_v51 = vld [vmem:[#allocation321_spill] sm:$0xff]  ;;  %9179 = vmatpush.msra.mxu0 %v9112_v34  ;;  %9236 = vmatpush.msra.mxu2 %v9145_v2  ;;  %v7762_v27 = vadd.f32 %v15957_v63, %v7713_v3  ;;  %v18297_v46 = vld [vmem:[#allocation314_spill] sm:$0xff]  ;;  %v9110_v48 = vld [vmem:[#allocation7 + $0x60] sm:$0xff]  ;;  %v7774_v29 = vadd.f32 %v7773_v54, %v7725_v49  ;;  %v7951_v34 = vpop.f32.mrf.mxu3 }
 0x4c8   :  { %v4968_v57 = vadd.f32 %v18296_v51, %v4902_v30  ;;  %v9159_v14 = vld [vmem:[#allocation7 + $0x1e8] sm:$0xff]  ;;  %v4732_v18 = vadd.f32 %v18297_v46, %v4683_v24  ;;  %9266 = vmatpush.msra.mxu3 %v9160_v58  ;;  %8920 = vmatpush.msrb.mxu1 %v15701_v47  ;;  %v18299_v12 = vld [vmem:[#allocation319_spill] sm:$0xff]  ;;  %v18301_v17 = vld [vmem:[#allocation26_spill] sm:$0xff] }
 0x4c9   :  { %v18298_v16 = vld [vmem:[#allocation401_spill] sm:$0xff]  ;;  %v4785_v20 = vadd.f32 %v18299_v12, %v4728_v42  ;;  %v18300_v6 = vld [vmem:[#allocation395_spill] sm:$0xff]  ;;  %v6704_v30 = vadd.f32 %v18301_v17, %v6638_v0  ;;  %9180 = vmatpush.msra.mxu0 %v9111_v45  ;;  %9237 = vmatpush.msra.mxu2 %v9144_v44  ;;  %v9158_v63 = vld [vmem:[#allocation7 + $0x1e0] sm:$0xff]  ;;  %v7839_v47 = vadd.f32 %v7838_v39, %v7774_v29 }
 0x4ca   :  { %v6280_v11 = vadd.f32 %v18298_v16, %v6212_v13  ;;  %v9143_v52 = vld [vmem:[#allocation7 + $0x168] sm:$0xff]  ;;  %v6103_v25 = vadd.f32 %v18300_v6, %v6038_v32  ;;  %v18302_v10 = vld [vmem:[#allocation408_spill] sm:$0xff]  ;;  %9267 = vmatpush.msra.mxu3 %v9159_v14  ;;  %8922 = vmatpush.msrb.mxu1 %v18282_v36  ;;  %v18305_v21 = vld [vmem:[#allocation322_spill] sm:$0xff]  ;;  %v7815_v32 = vadd.f32 %v15965_v7, %v7762_v27 }
 0x4cb   :  { %v18303_v1 = vld [vmem:[#allocation405_spill] sm:$0xff]  ;;  %v5022_v42 = vadd.f32 %v18305_v21, %v4968_v57  ;;  %9181 = vmatpush.msra.mxu0 %v9110_v48  ;;  %9238 = vmatpush.msra.mxu2 %v9143_v52  ;;  %v9109_v31 = vld [vmem:[#allocation7 + $0x58] sm:$0xff]  ;;  %v18307_v9 = vld [vmem:[#allocation324_spill] sm:$0xff]  ;;  %v16146_v46 = vadd.f32 %v7951_v34, %v7839_v47 }
 0x4cc   :  { %v6336_v55 = vadd.f32 %v18302_v10, %v6280_v11  ;;  %v6464_v22 = vadd.f32 %v18303_v1, %v6415_v37  ;;  %v18304_v38 = vld [vmem:[#allocation317_spill] sm:$0xff]  ;;  %v9129_v50 = vld [vmem:[#allocation7 + $0xf8] sm:$0xff]  ;;  %v4906_v13 = vadd.f32 %v18307_v9, %v4785_v20  ;;  %9268 = vmatpush.msra.mxu3 %v9158_v63  ;;  %v18309_v36 = vld [vmem:[#allocation44_spill] sm:$0xff]  ;;  %v7940_v12 = vadd.f32 %v15980_v61, %v7815_v32 }
 0x4cd   :  { %v4687_v24 = vadd.f32 %v18304_v38, %v4606_v28  ;;  %v18306_v2 = vld [vmem:[#allocation323_spill] sm:$0xff]  ;;  %v18308_v60 = vld [vmem:[#allocation29_spill] sm:$0xff]  ;;  %8877 = vmatmul.f32.gmra.mxu0 %v18309_v36  ;;  %v9142_v40 = vld [vmem:[#allocation7 + $0x160] sm:$0xff]  ;;  %9066 = vmatmul.f32.gmra.mxu3 %v18183_v56 }
 0x4ce   :  { %v4793_v41 = vadd.f32 %v18306_v2, %v4732_v18  ;;  %v6521_v0 = vadd.f32 %v18308_v60, %v6464_v22  ;;  %v9157_v3 = vld [vmem:[#allocation7 + $0x1d8] sm:$0xff]  ;;  %v18310_v58 = vld [vmem:[#allocation332_spill] sm:$0xff]  ;;  %v9108_v4 = vld [vmem:[#allocation7 + $0x50] sm:$0xff]  ;;  %9182 = vmatpush.msra.mxu0 %v9109_v31  ;;  %9207 = vmatpush.msra.mxu1 %v9129_v50  ;;  %v8006_v61 = vadd.f32 %v8005_v26, %v7940_v12 }
 0x4cf   :  { %v5109_v19 = vadd.f32 %v18310_v58, %v5022_v42  ;;  %v18311_v37 = vld [vmem:[#allocation396_spill] sm:$0xff]  ;;  %v18313_v49 = vld [vmem:[#allocation79_spill] sm:$0xff]  ;;  %v18314_v28 = vld [vmem:[#allocation409_spill] sm:$0xff]  ;;  %9239 = vmatpush.msra.mxu2 %v9142_v40  ;;  %9269 = vmatpush.msra.mxu3 %v9157_v3  ;;  %v8010_v42 = vpop.f32.mrf.mxu0  ;;  %v8146_v3 = vpop.f32.mrf.mxu2 }
 0x4d0   :  { %v6216_v7 = vadd.f32 %v18311_v37, %v6103_v25  ;;  %v18312_v45 = vld [vmem:[#allocation24_spill] sm:$0xff]  ;;  %8926 = vmatmul.f32.vlgmr.msrb.gmra.mxu1 %v18313_v49  ;;  %v6419_v51 = vadd.f32 %v18314_v28, %v6336_v55  ;;  %v18315_v57 = vld [vmem:[#allocation22_spill] sm:$0xff]  ;;  %v9141_v54 = vld [vmem:[#allocation7 + $0x158] sm:$0xff]  ;;  %9017 = vmatmul.f32.gmra.mxu2 %v18183_v56  ;;  %v16160_v2 = vadd.f32 %v8010_v42, %v16074_v43 }
 0x4d1   :  { %v6758_v44 = vadd.f32 %v18312_v45, %v6704_v30  ;;  %v6642_v27 = vadd.f32 %v18315_v57, %v6521_v0  ;;  %v9128_v14 = vld [vmem:[#allocation7 + $0xf0] sm:$0xff]  ;;  %v18316_v18 = vld [vmem:[#allocation407_spill] sm:$0xff]  ;;  %v9107_v29 = vld [vmem:[#allocation7 + $0x48] sm:$0xff]  ;;  %9183 = vmatpush.msra.mxu0 %v9108_v4  ;;  %9240 = vmatpush.msra.mxu2 %v9141_v54 }
 0x4d2   :  { %v6285_v16 = vadd.f32 %v18316_v18, %v6216_v7  ;;  %v18317_v11 = vld [vmem:[#allocation35_spill] sm:$0xff]  ;;  %v9156_v52 = vld [vmem:[#allocation7 + $0x1d0] sm:$0xff]  ;;  %v18319_v25 = vld [vmem:[#allocation328_spill] sm:$0xff]  ;;  %9208 = vmatpush.msra.mxu1 %v9128_v14 }
 0x4d3   :  { %v6845_v48 = vadd.f32 %v18317_v11, %v6758_v44  ;;  %v18318_v20 = vld [vmem:[#allocation318_spill] sm:$0xff]  ;;  %v4910_v17 = vadd.f32 %v18319_v25, %v4793_v41  ;;  %v9127_v39 = vld [vmem:[#allocation7 + $0xe8] sm:$0xff]  ;;  %v18322_v22 = vld [vmem:[#allocation39_spill] sm:$0xff]  ;;  %9270 = vmatpush.msra.mxu3 %v9156_v52  ;;  %9184 = vmatpush.msra.mxu0 %v9107_v29  ;;  %v8059_v41 = vpop.f32.mrf.mxu1 }
 0x4d4   :  { %v4736_v6 = vadd.f32 %v18318_v20, %v4687_v24  ;;  %v18320_v30 = vld [vmem:[#allocation334_spill] sm:$0xff]  ;;  %v18321_v55 = vld [vmem:[#allocation25_spill] sm:$0xff]  ;;  %v9106_v21 = vld [vmem:[#allocation7 + $0x40] sm:$0xff]  ;;  %9209 = vmatpush.msra.mxu1 %v9127_v39  ;;  %v8060_v40 = vadd.f32 %v8059_v41, %v8006_v61 }
 0x4d5   :  { %v5158_v63 = vadd.f32 %v18320_v30, %v5109_v19  ;;  %v9140_v10 = vld [vmem:[#allocation7 + $0x150] sm:$0xff]  ;;  %v6342_v1 = vadd.f32 %v18321_v55, %v6285_v16  ;;  %v6894_v47 = vadd.f32 %v18322_v22, %v6845_v48  ;;  %v9155_v38 = vld [vmem:[#allocation7 + $0x1c8] sm:$0xff]  ;;  %v9126_v56 = vld [vmem:[#allocation7 + $0xe0] sm:$0xff]  ;;  %9185 = vmatpush.msra.mxu0 %v9106_v21  ;;  %9070 = vmatmul.f32.gmra.mxu3 %v18221_v53 }
 0x4d6   :  { %v18323_v24 = vld [vmem:[#allocation410_spill] sm:$0xff]  ;;  %v9139_v34 = vld [vmem:[#allocation7 + $0x148] sm:$0xff]  ;;  %v18325_v9 = vld [vmem:[#allocation247_spill] sm:$0xff]  ;;  %9241 = vmatpush.msra.mxu2 %v9140_v10  ;;  %9271 = vmatpush.msra.mxu3 %v9155_v38  ;;  %v8147_v57 = vadd.f32 %v8146_v3, %v8060_v40 }
 0x4d7   :  { %v6468_v32 = vadd.f32 %v18323_v24, %v6419_v51  ;;  %v18324_v31 = vld [vmem:[#allocation30_spill] sm:$0xff]  ;;  %v16164_v60 = vadd.f32 %v18325_v9, %v15995_v62  ;;  %v18326_v0 = vld [vmem:[#allocation325_spill] sm:$0xff]  ;;  %v9154_v26 = vld [vmem:[#allocation7 + $0x1c0] sm:$0xff]  ;;  %9210 = vmatpush.msra.mxu1 %v9126_v56  ;;  %v8195_v51 = vpop.f32.mrf.mxu3 }
 0x4d8   :  { %v6709_v50 = vadd.f32 %v18324_v31, %v6642_v27  ;;  %v4973_v36 = vadd.f32 %v18326_v0, %v4906_v13  ;;  %v18327_v58 = vld [vmem:[#allocation327_spill] sm:$0xff]  ;;  %v18328_v37 = vld [vmem:[#allocation329_spill] sm:$0xff]  ;;  %9242 = vmatpush.msra.mxu2 %v9139_v34  ;;  %v18334_v16 = vld [vmem:[#allocation28_spill] sm:$0xff]  ;;  %9272 = vmatpush.msra.mxu3 %v9154_v26 }
 0x4d9   :  { %v4801_v19 = vadd.f32 %v18327_v58, %v4736_v6  ;;  %v4978_v7 = vadd.f32 %v18328_v37, %v4910_v17  ;;  %v18329_v45 = vld [vmem:[#allocation33_spill] sm:$0xff]  ;;  %v9105_v13 = vld [vmem:[#allocation7 + $0x38] sm:$0xff]  ;;  %v9138_v52 = vld [vmem:[#allocation7 + $0x140] sm:$0xff]  ;;  %9021 = vmatmul.f32.gmra.mxu2 %v18221_v53 }
 0x4da   :  { %v6529_v44 = vadd.f32 %v18329_v45, %v6468_v32  ;;  %v18330_v43 = vld [vmem:[#allocation17_spill] sm:$0xff]  ;;  %v9125_v28 = vld [vmem:[#allocation7 + $0xd8] sm:$0xff]  ;;  %v6764_v11 = vadd.f32 %v18334_v16, %v6709_v50  ;;  %v18336_v12 = vld [vmem:[#allocation250_spill] sm:$0xff]  ;;  %9186 = vmatpush.msra.mxu0 %v9105_v13  ;;  %9243 = vmatpush.msra.mxu2 %v9138_v52 }
 0x4db   :  { %v6423_v49 = vadd.f32 %v18330_v43, %v6342_v1  ;;  %v18331_v4 = vld [vmem:[#allocation21_spill] sm:$0xff]  ;;  %v18332_v27 = vld [vmem:[#allocation335_spill] sm:$0xff]  ;;  %v16178_v20 = vadd.f32 %v18336_v12, %v15989_v15  ;;  %v18337_v6 = vld [vmem:[#allocation326_spill] sm:$0xff]  ;;  %9211 = vmatpush.msra.mxu1 %v9125_v28 }
 0x4dc   :  { %v6947_v62 = vadd.f32 %v18331_v4, %v6894_v47  ;;  %v5211_v14 = vadd.f32 %v18332_v27, %v5158_v63  ;;  %v18333_v54 = vld [vmem:[#allocation27_spill] sm:$0xff]  ;;  %v5028_v25 = vadd.f32 %v18337_v6, %v4973_v36  ;;  %v18338_v17 = vld [vmem:[#allocation45_spill] sm:$0xff]  ;;  %v9104_v30 = vld [vmem:[#allocation7 + $0x30] sm:$0xff]  ;;  %v16183_v63 = vadd.f32 %v8195_v51, %v8147_v57  ;;  %v8015_v4 = vpop.f32.mrf.mxu0 }
 0x4dd   :  { %v6646_v18 = vadd.f32 %v18333_v54, %v6529_v44  ;;  %v18335_v48 = vld [vmem:[#allocation55_spill] sm:$0xff]  ;;  %8932 = vmatmul.f32.gmra.mxu1 %v18338_v17  ;;  %v18340_v55 = vld [vmem:[#allocation330_spill] sm:$0xff]  ;;  %v18341_v22 = vld [vmem:[#allocation404_spill] sm:$0xff]  ;;  %9187 = vmatpush.msra.mxu0 %v9104_v30  ;;  %v16201_v27 = vadd.f32 %v8015_v4, %v16118_v59 }
 0x4de   :  { %8882 = vmatmul.f32.gmra.mxu0 %v18335_v48  ;;  %v9153_v29 = vld [vmem:[#allocation7 + $0x1b8] sm:$0xff]  ;;  %v5034_v1 = vadd.f32 %v18340_v55, %v4978_v7  ;;  %v6849_v47 = vadd.f32 %v18341_v22, %v6764_v11  ;;  %v9124_v38 = vld [vmem:[#allocation7 + $0xd0] sm:$0xff]  ;;  %v18342_v21 = vld [vmem:[#allocation333_spill] sm:$0xff]  ;;  %9074 = vmatmul.f32.gmra.mxu3 %v18255_v5 }
 0x4df   :  { %v18339_v39 = vld [vmem:[#allocation331_spill] sm:$0xff]  ;;  %v5113_v61 = vadd.f32 %v18342_v21, %v5028_v25  ;;  %v18344_v32 = vld [vmem:[#allocation412_spill] sm:$0xff]  ;;  %9273 = vmatpush.msra.mxu3 %v9153_v29  ;;  %v9152_v50 = vld [vmem:[#allocation7 + $0x1b0] sm:$0xff]  ;;  %9212 = vmatpush.msra.mxu1 %v9124_v38  ;;  %v8150_v29 = vpop.f32.mrf.mxu2 }
 0x4e0   :  { %v4914_v10 = vadd.f32 %v18339_v39, %v4801_v19  ;;  %v9137_v15 = vld [vmem:[#allocation7 + $0x138] sm:$0xff]  ;;  %v7072_v31 = vadd.f32 %v18344_v32, %v6947_v62  ;;  %v9103_v56 = vld [vmem:[#allocation7 + $0x28] sm:$0xff]  ;;  %v18345_v34 = vld [vmem:[#allocation336_spill] sm:$0xff] }
 0x4e1   :  { %v18343_v42 = vld [vmem:[#allocation411_spill] sm:$0xff]  ;;  %v5336_v41 = vadd.f32 %v18345_v34, %v5211_v14  ;;  %v18346_v9 = vld [vmem:[#allocation34_spill] sm:$0xff]  ;;  %v18347_v36 = vld [vmem:[#allocation41_spill] sm:$0xff]  ;;  %9244 = vmatpush.msra.mxu2 %v9137_v15  ;;  %9274 = vmatpush.msra.mxu3 %v9152_v50  ;;  %v8065_v14 = vpop.f32.mrf.mxu1  ;;  %v8199_v15 = vpop.f32.mrf.mxu3 }
 0x4e2   :  { %v6472_v24 = vadd.f32 %v18343_v42, %v6423_v49  ;;  %v6714_v0 = vadd.f32 %v18346_v9, %v6646_v18  ;;  %v6898_v26 = vadd.f32 %v18347_v36, %v6849_v47  ;;  %v9123_v40 = vld [vmem:[#allocation7 + $0xc8] sm:$0xff]  ;;  %v9136_v3 = vld [vmem:[#allocation7 + $0x130] sm:$0xff]  ;;  %v18349_v37 = vld [vmem:[#allocation36_spill] sm:$0xff]  ;;  %9188 = vmatpush.msra.mxu0 %v9103_v56  ;;  %v8066_v52 = vadd.f32 %v8065_v14, %v16160_v2 }
 0x4e3   :  { %v18348_v58 = vld [vmem:[#allocation338_spill] sm:$0xff]  ;;  %v18350_v45 = vld [vmem:[#allocation68_spill] sm:$0xff]  ;;  %v9151_v43 = vld [vmem:[#allocation7 + $0x1a8] sm:$0xff]  ;;  %9213 = vmatpush.msra.mxu1 %v9123_v40  ;;  %9245 = vmatpush.msra.mxu2 %v9136_v3 }
 0x4e4   :  { %v5162_v19 = vadd.f32 %v18348_v58, %v5113_v61  ;;  %v6537_v7 = vadd.f32 %v18349_v37, %v6472_v24  ;;  %v7138_v44 = vadd.f32 %v18350_v45, %v7072_v31  ;;  %v9102_v49 = vld [vmem:[#allocation7 + $0x20] sm:$0xff]  ;;  %v18351_v62 = vld [vmem:[#allocation310_spill] sm:$0xff]  ;;  %v9135_v57 = vld [vmem:[#allocation7 + $0x128] sm:$0xff]  ;;  %9275 = vmatpush.msra.mxu3 %v9151_v43  ;;  %v8151_v21 = vadd.f32 %v8150_v29, %v8066_v52 }
 0x4e5   :  { %v4983_v13 = vadd.f32 %v18351_v62, %v4914_v10  ;;  %v18352_v28 = vld [vmem:[#allocation346_spill] sm:$0xff]  ;;  %v9122_v53 = vld [vmem:[#allocation7 + $0xc0] sm:$0xff]  ;;  %v18353_v54 = vld [vmem:[#allocation31_spill] sm:$0xff]  ;;  %9189 = vmatpush.msra.mxu0 %v9102_v49  ;;  %9246 = vmatpush.msra.mxu2 %v9135_v57 }
 0x4e6   :  { %v5402_v51 = vadd.f32 %v18352_v28, %v5336_v41  ;;  %v6650_v18 = vadd.f32 %v18353_v54, %v6537_v7  ;;  %v18354_v16 = vld [vmem:[#allocation69_spill] sm:$0xff]  ;;  %v9150_v48 = vld [vmem:[#allocation7 + $0x1a0] sm:$0xff]  ;;  %v18358_v59 = vld [vmem:[#allocation339_spill] sm:$0xff]  ;;  %9214 = vmatpush.msra.mxu1 %v9122_v53  ;;  %9025 = vmatmul.f32.gmra.mxu2 %v18255_v5 }
 0x4e7   :  { %v7192_v11 = vadd.f32 %v18354_v16, %v7138_v44  ;;  %v18355_v12 = vld [vmem:[#allocation337_spill] sm:$0xff]  ;;  %v18356_v25 = vld [vmem:[#allocation32_spill] sm:$0xff]  ;;  %v5219_v10 = vadd.f32 %v18358_v59, %v5162_v19  ;;  %v18359_v55 = vld [vmem:[#allocation350_spill] sm:$0xff]  ;;  %9276 = vmatpush.msra.mxu3 %v9150_v48  ;;  %v8020_v59 = vpop.f32.mrf.mxu0 }
 0x4e8   :  { %v5117_v6 = vadd.f32 %v18355_v12, %v5034_v1  ;;  %v6770_v17 = vadd.f32 %v18356_v25, %v6714_v0  ;;  %v18357_v30 = vld [vmem:[#allocation413_spill] sm:$0xff]  ;;  %v5456_v22 = vadd.f32 %v18359_v55, %v5402_v51  ;;  %v9101_v47 = vld [vmem:[#allocation7 + $0x18] sm:$0xff]  ;;  %v18361_v1 = vld [vmem:[#allocation342_spill] sm:$0xff] }
 0x4e9   :  { %v6955_v39 = vadd.f32 %v18357_v30, %v6898_v26  ;;  %v9121_v38 = vld [vmem:[#allocation7 + $0xb8] sm:$0xff]  ;;  %v18360_v2 = vld [vmem:[#allocation253_spill] sm:$0xff]  ;;  %v18363_v31 = vld [vmem:[#allocation92_spill] sm:$0xff]  ;;  %9190 = vmatpush.msra.mxu0 %v9101_v47 }
 0x4ea   :  { %v16213_v61 = vadd.f32 %v18360_v2, %v16040_v35  ;;  %v5166_v42 = vadd.f32 %v18361_v1, %v5117_v6  ;;  %v18362_v24 = vld [vmem:[#allocation19_spill] sm:$0xff]  ;;  %8887 = vmatmul.f32.gmra.mxu0 %v18363_v31  ;;  %v9134_v50 = vld [vmem:[#allocation7 + $0x120] sm:$0xff]  ;;  %v9100_v26 = vld [vmem:[#allocation7 + $0x10] sm:$0xff]  ;;  %v16222_v35 = vadd.f32 %v8199_v15, %v8151_v21  ;;  %9215 = vmatpush.msra.mxu1 %v9121_v38  ;;  %v8071_v21 = vpop.f32.mrf.mxu1 }
 0x4eb   :  { %v6853_v32 = vadd.f32 %v18362_v24, %v6770_v17  ;;  %v9149_v56 = vld [vmem:[#allocation7 + $0x198] sm:$0xff]  ;;  %v18364_v34 = vld [vmem:[#allocation40_spill] sm:$0xff]  ;;  %v18369_v37 = vld [vmem:[#allocation414_spill] sm:$0xff]  ;;  %9247 = vmatpush.msra.mxu2 %v9134_v50  ;;  %9191 = vmatpush.msra.mxu0 %v9100_v26  ;;  %v8021_v15 = vadd.f32 %v8020_v59, %v16146_v46  ;;  %v8072_v31 = vadd.f32 %v8071_v21, %v16201_v27  ;;  %v8154_v50 = vpop.f32.mrf.mxu2 }
 0x4ec   :  { %v6719_v41 = vadd.f32 %v18364_v34, %v6650_v18  ;;  %v18365_v9 = vld [vmem:[#allocation76_spill] sm:$0xff]  ;;  %v18366_v36 = vld [vmem:[#allocation87_spill] sm:$0xff]  ;;  %v7076_v7 = vadd.f32 %v18369_v37, %v6955_v39  ;;  %v9120_v45 = vld [vmem:[#allocation7 + $0xb0] sm:$0xff]  ;;  %9277 = vmatpush.msra.mxu3 %v9149_v56 }
 0x4ed   :  { %v7279_v0 = vadd.f32 %v18365_v9, %v7192_v11  ;;  %8938 = vmatmul.f32.gmra.mxu1 %v18366_v36  ;;  %v18367_v40 = vld [vmem:[#allocation308_spill] sm:$0xff]  ;;  %v18368_v58 = vld [vmem:[#allocation43_spill] sm:$0xff]  ;;  %v18370_v43 = vld [vmem:[#allocation254_spill] sm:$0xff]  ;;  %v8155_v37 = vadd.f32 %v8154_v50, %v8072_v31 }
 0x4ee   :  { %v5040_v3 = vadd.f32 %v18367_v40, %v4983_v13  ;;  %v6902_v19 = vadd.f32 %v18368_v58, %v6853_v32  ;;  %v9133_v44 = vld [vmem:[#allocation7 + $0x118] sm:$0xff]  ;;  %v3720_v49 = vadd.f32 %v18370_v43, %v16178_v20  ;;  %v18371_v4 = vld [vmem:[#allocation340_spill] sm:$0xff]  ;;  %v9148_v53 = vld [vmem:[#allocation7 + $0x190] sm:$0xff]  ;;  %9216 = vmatpush.msra.mxu1 %v9120_v45 }
 0x4ef   :  { %v5340_v62 = vadd.f32 %v18371_v4, %v5219_v10  ;;  %v18372_v28 = vld [vmem:[#allocation351_spill] sm:$0xff]  ;;  %v9099_v57 = vld [vmem:[#allocation7 + $0x8] sm:$0xff]  ;;  %v9132_v52 = vld [vmem:[#allocation7 + $0x110] sm:$0xff]  ;;  %9248 = vmatpush.msra.mxu2 %v9133_v44  ;;  %9278 = vmatpush.msra.mxu3 %v9148_v53 }
 0x4f0   :  { %v5543_v51 = vadd.f32 %v18372_v28, %v5456_v22  ;;  %v18373_v13 = vld [vmem:[#allocation341_spill] sm:$0xff]  ;;  %v18374_v54 = vld [vmem:[#allocation343_spill] sm:$0xff]  ;;  %v18377_v12 = vld [vmem:[#allocation406_spill] sm:$0xff]  ;;  %9192 = vmatpush.msra.mxu0 %v9099_v57 }
 0x4f1   :  { %v5121_v14 = vadd.f32 %v18373_v13, %v5040_v3  ;;  %v5227_v18 = vadd.f32 %v18374_v54, %v5166_v42  ;;  %v18375_v16 = vld [vmem:[#allocation75_spill] sm:$0xff]  ;;  %v9119_v48 = vld [vmem:[#allocation7 + $0xa8] sm:$0xff]  ;;  %v6776_v6 = vadd.f32 %v18377_v12, %v6719_v41  ;;  %v18378_v25 = vld [vmem:[#allocation82_spill] sm:$0xff]  ;;  %9249 = vmatpush.msra.mxu2 %v9132_v52 }
 0x4f2   :  { %v7143_v11 = vadd.f32 %v18375_v16, %v7076_v7  ;;  %v18376_v20 = vld [vmem:[#allocation349_spill] sm:$0xff]  ;;  %v7328_v17 = vadd.f32 %v18378_v25, %v7279_v0  ;;  %v9098_v39 = vld [vmem:[#allocation7] sm:$0xff]  ;;  %v18379_v10 = vld [vmem:[#allocation415_spill] sm:$0xff]  ;;  %9217 = vmatpush.msra.mxu1 %v9119_v48 }
 0x4f3   :  { %v5407_v29 = vadd.f32 %v18376_v20, %v5340_v62  ;;  %v9147_v30 = vld [vmem:[#allocation7 + $0x188] sm:$0xff]  ;;  %v6963_v55 = vadd.f32 %v18379_v10, %v6902_v19  ;;  %v18380_v22 = vld [vmem:[#allocation83_spill] sm:$0xff]  ;;  %v9118_v5 = vld [vmem:[#allocation7 + $0xa0] sm:$0xff]  ;;  %9193 = vmatpush.msra.mxu0 %v9098_v39  ;;  %v8203_v19 = vpop.f32.mrf.mxu3 }
 0x4f4   :  { %v7198_v47 = vadd.f32 %v18380_v22, %v7143_v11  ;;  %v9131_v38 = vld [vmem:[#allocation7 + $0x108] sm:$0xff]  ;;  %v18381_v2 = vld [vmem:[#allocation352_spill] sm:$0xff]  ;;  %v18382_v42 = vld [vmem:[#allocation354_spill] sm:$0xff]  ;;  %9279 = vmatpush.msra.mxu3 %v9147_v30  ;;  %v9081_v40 = vmul.f32 %v7328_v17, %v7328_v17  ;;  %9218 = vmatpush.msra.mxu1 %v9118_v5  ;;  %v16254_v13 = vadd.f32 %v8203_v19, %v8155_v37 }
 0x4f5   :  { %v5592_v1 = vadd.f32 %v18381_v2, %v5543_v51  ;;  %v5462_v24 = vadd.f32 %v18382_v42, %v5407_v29  ;;  %v9146_v32 = vld [vmem:[#allocation7 + $0x180] sm:$0xff]  ;;  %v18383_v56 = vld [vmem:[#allocation255_spill] sm:$0xff]  ;;  %v18384_v41 = vld [vmem:[#allocation345_spill] sm:$0xff]  ;;  %9250 = vmatpush.msra.mxu2 %v9131_v38 }
 0x4f6   :  { %v3807_v34 = vadd.f32 %v18383_v56, %v3720_v49  ;;  %v5170_v9 = vadd.f32 %v18384_v41, %v5121_v14  ;;  %v18385_v0 = vld [vmem:[#allocation23_spill] sm:$0xff]  ;;  %v18386_v46 = vld [vmem:[#allocation344_spill] sm:$0xff]  ;;  %v18387_v7 = vld [vmem:[#allocation62_spill] sm:$0xff]  ;;  %9280 = vmatpush.msra.mxu3 %v9146_v32  ;;  %v8077_v56 = vpop.f32.mrf.mxu1 }
 0x4f7   :  { %v6857_v36 = vadd.f32 %v18385_v0, %v6776_v6  ;;  %v5344_v26 = vadd.f32 %v18386_v46, %v5227_v18  ;;  %v9117_v3 = vld [vmem:[#allocation7 + $0x98] sm:$0xff]  ;;  %v9130_v58 = vld [vmem:[#allocation7 + $0x100] sm:$0xff]  ;;  %v18389_v43 = vld [vmem:[#allocation78_spill] sm:$0xff]  ;;  %v9080_v62 = vmul.f32 %v5592_v1, %v5592_v1  ;;  %9281 = vmatmul.f32.vlgmr.msra.gmra.mxu3 %v9081_v40  ;;  %v9083_v46 = vmul.f32 %v15927_v23, %v15927_v23 }
 0x4f8   :  { %v18388_v45 = vld [vmem:[#allocation416_spill] sm:$0xff]  ;;  %v7283_v49 = vadd.f32 %v18389_v43, %v7198_v47  ;;  %v18390_v4 = vld [vmem:[#allocation95_spill] sm:$0xff]  ;;  %v9116_v57 = vld [vmem:[#allocation7 + $0x90] sm:$0xff]  ;;  %9219 = vmatpush.msra.mxu1 %v9117_v3  ;;  %9251 = vmatpush.msra.mxu2 %v9130_v58 }
 0x4f9   :  { %v6906_v27 = vadd.f32 %v18387_v7, %v6857_v36  ;;  %v7080_v44 = vadd.f32 %v18388_v45, %v6963_v55  ;;  %8944 = vmatmul.f32.gmra.mxu1 %v18390_v4  ;;  %v18391_v28 = vld [vmem:[#allocation355_spill] sm:$0xff]  ;;  %v18393_v14 = vld [vmem:[#allocation168_spill] sm:$0xff]  ;;  %v18396_v52 = vld [vmem:[#allocation18_spill] sm:$0xff]  ;;  %9252 = vmatmul.f32.vlgmr.msra.gmra.mxu2 %v9080_v62  ;;  %v8158_v7 = vpop.f32.mrf.mxu2 }
 0x4fa   :  { %v5547_v51 = vadd.f32 %v18391_v28, %v5462_v24  ;;  %v18392_v53 = vld [vmem:[#allocation111_spill] sm:$0xff]  ;;  %v1996_v54 = vadd.f32 %v18393_v14, %v15907_v33  ;;  %v18394_v18 = vld [vmem:[#allocation212_spill] sm:$0xff]  ;;  %v18399_v25 = vld [vmem:[#allocation258_spill] sm:$0xff]  ;;  %9220 = vmatpush.msra.mxu1 %v9116_v57 }
 0x4fb   :  { %9194 = vmatmul.f32.vlgmr.msra.gmra.mxu0 %v18392_v53  ;;  %v3304_v16 = vadd.f32 %v18394_v18, %v15968_v8  ;;  %v18395_v11 = vld [vmem:[#allocation12_spill] sm:$0xff]  ;;  %v3726_v17 = vadd.f32 %v18399_v25, %v16213_v61  ;;  %v18400_v30 = vld [vmem:[#allocation353_spill] sm:$0xff]  ;;  %v18404_v5 = vld [vmem:[#allocation51_spill] sm:$0xff]  ;;  %v8207_v53 = vpop.f32.mrf.mxu3 }
 0x4fc   :  { %v7148_v48 = vadd.f32 %v18395_v11, %v7080_v44  ;;  %v18397_v20 = vld [vmem:[#allocation156_spill] sm:$0xff]  ;;  %v5412_v39 = vadd.f32 %v18400_v30, %v5344_v26  ;;  %v9115_v59 = vld [vmem:[#allocation7 + $0x88] sm:$0xff]  ;;  %v18406_v1 = vld [vmem:[#allocation347_spill] sm:$0xff]  ;;  %v8078_v26 = vadd.f32 %v8077_v56, %v8021_v15 }
 0x4fd   :  { %v1876_v29 = vadd.f32 %v18397_v20, %v18396_v52  ;;  %v18398_v12 = vld [vmem:[#allocation256_spill] sm:$0xff]  ;;  %v18401_v33 = vld [vmem:[#allocation245_spill] sm:$0xff]  ;;  %v5235_v42 = vadd.f32 %v18406_v1, %v5170_v9  ;;  %9221 = vmatpush.msra.mxu1 %v9115_v59  ;;  %v18413_v19 = vld [vmem:[#allocation259_spill] sm:$0xff] }
 0x4fe   :  { %v3856_v6 = vadd.f32 %v18398_v12, %v3807_v34  ;;  %v3385_v10 = vadd.f32 %v18401_v33, %v3304_v16  ;;  %v18402_v55 = vld [vmem:[#allocation37_spill] sm:$0xff]  ;;  %v7204_v38 = vadd.f32 %v18404_v5, %v7148_v48  ;;  %v18405_v21 = vld [vmem:[#allocation248_spill] sm:$0xff]  ;;  %v18409_v34 = vld [vmem:[#allocation167_spill] sm:$0xff]  ;;  %v3811_v37 = vadd.f32 %v18413_v19, %v3726_v17 }
 0x4ff   :  { %v6971_v8 = vadd.f32 %v18402_v55, %v6906_v27  ;;  %v18403_v22 = vld [vmem:[#allocation49_spill] sm:$0xff]  ;;  %v3608_v2 = vadd.f32 %v18405_v21, %v16164_v60  ;;  %v18408_v32 = vld [vmem:[#allocation360_spill] sm:$0xff]  ;;  %v1945_v41 = vadd.f32 %v18409_v34, %v1876_v29  ;;  %v18414_v27 = vld [vmem:[#allocation67_spill] sm:$0xff]  ;;  %v8159_v4 = vadd.f32 %v8158_v7, %v8078_v26  ;;  %v16306_v34 = vpop.f32.mrf.mxu1 }
 0x500   :  { %v7332_v47 = vadd.f32 %v18403_v22, %v7283_v49  ;;  %v18407_v24 = vld [vmem:[#allocation357_spill] sm:$0xff]  ;;  %v5468_v31 = vadd.f32 %v18408_v32, %v5412_v39  ;;  %v9114_v50 = vld [vmem:[#allocation7 + $0x80] sm:$0xff]  ;;  %v9079_v60 = vmul.f32 %v3856_v6, %v3856_v6  ;;  %v18415_v44 = vld [vmem:[#allocation98_spill] sm:$0xff]  ;;  %v16296_v39 = vpop.f32.mrf.mxu0 }
 0x501   :  { %v5596_v61 = vadd.f32 %v18407_v24, %v5547_v51  ;;  %v18410_v0 = vld [vmem:[#allocation169_spill] sm:$0xff]  ;;  %v7084_v45 = vadd.f32 %v18414_v27, %v6971_v8  ;;  %v7287_v43 = vadd.f32 %v18415_v44, %v7204_v38  ;;  %9222 = vmatpush.msra.mxu1 %v9114_v50  ;;  %v18416_v62 = vld [vmem:[#allocation348_spill] sm:$0xff]  ;;  %v18418_v57 = vld [vmem:[#allocation170_spill] sm:$0xff]  ;;  %v16290_v48 = vadd.f32 %v8207_v53, %v8159_v4 }
 0x502   :  { %v2079_v36 = vadd.f32 %v18410_v0, %v1996_v54  ;;  %v18411_v40 = vld [vmem:[#allocation249_spill] sm:$0xff]  ;;  %v9086_v49 = vmul.f32 %v7332_v47, %v7332_v47  ;;  %v5348_v28 = vadd.f32 %v18416_v62, %v5235_v42  ;;  %9223 = vmatmul.f32.vlgmr.msra.gmra.mxu1 %v9079_v60  ;;  %v18419_v54 = vld [vmem:[#allocation171_spill] sm:$0xff]  ;;  %v18420_v16 = vld [vmem:[#allocation96_spill] sm:$0xff] }
 0x503   :  { %v3434_v3 = vadd.f32 %v18411_v40, %v3385_v10  ;;  %v18412_v58 = vld [vmem:[#allocation257_spill] sm:$0xff]  ;;  %9197 = vmatmul.f32.gmra.mxu0 %v9083_v46  ;;  %v9085_v15 = vmul.f32 %v5596_v61, %v5596_v61  ;;  %v2002_v18 = vadd.f32 %v18419_v54, %v1945_v41  ;;  %v7153_v11 = vadd.f32 %v18420_v16, %v7084_v45  ;;  %v18421_v52 = vld [vmem:[#allocation251_spill] sm:$0xff]  ;;  %v18423_v6 = vld [vmem:[#allocation264_spill] sm:$0xff]  ;;  %v16310_v40 = vpop.f32.mrf.mxu2  ;;  %v16315_v7 = vpop.f32.mrf.mxu3 }
 0x504   :  { %v3676_v9 = vadd.f32 %v18412_v58, %v3608_v2  ;;  %v18417_v51 = vld [vmem:[#allocation361_spill] sm:$0xff]  ;;  %v2128_v14 = vadd.f32 %v18418_v57, %v2079_v36  ;;  %9284 = vmatmul.f32.gmra.mxu3 %v9086_v49  ;;  %v18424_v17 = vld [vmem:[#allocation359_spill] sm:$0xff]  ;;  %v18427_v8 = vld [vmem:[#allocation362_spill] sm:$0xff] }
 0x505   :  { %v5551_v23 = vadd.f32 %v18417_v51, %v5468_v31  ;;  %v3499_v20 = vadd.f32 %v18421_v52, %v3434_v3  ;;  %v18422_v29 = vld [vmem:[#allocation261_spill] sm:$0xff]  ;;  %v5417_v30 = vadd.f32 %v18424_v17, %v5348_v28  ;;  %9255 = vmatmul.f32.gmra.mxu2 %v9085_v15  ;;  %v18428_v47 = vld [vmem:[#allocation363_spill] sm:$0xff]  ;;  %v18430_v2 = vld [vmem:[#allocation252_spill] sm:$0xff] }
 0x506   :  { %v3860_v12 = vadd.f32 %v18422_v29, %v3811_v37  ;;  %v3732_v25 = vadd.f32 %v18423_v6, %v3676_v9  ;;  %v18425_v59 = vld [vmem:[#allocation101_spill] sm:$0xff]  ;;  %v9088_v61 = vmul.f32 %v2128_v14, %v2128_v14  ;;  %v18432_v31 = vld [vmem:[#allocation99_spill] sm:$0xff]  ;;  %v18435_v3 = vld [vmem:[#allocation174_spill] sm:$0xff] }
 0x507   :  { %v7336_v33 = vadd.f32 %v18425_v59, %v7287_v43  ;;  %v18426_v10 = vld [vmem:[#allocation13_spill] sm:$0xff]  ;;  %v5600_v22 = vadd.f32 %v18427_v8, %v5551_v23  ;;  %v5474_v5 = vadd.f32 %v18428_v47, %v5417_v30  ;;  %v3612_v1 = vadd.f32 %v18430_v2, %v3499_v20  ;;  %v18433_v41 = vld [vmem:[#allocation263_spill] sm:$0xff]  ;;  %v18436_v58 = vld [vmem:[#allocation266_spill] sm:$0xff]  ;;  %v16322_v53 = vpop.f32.mrf.mxu1 }
 0x508   :  { %v7210_v55 = vadd.f32 %v18426_v10, %v7153_v11  ;;  %v18429_v38 = vld [vmem:[#allocation173_spill] sm:$0xff]  ;;  %v9084_v32 = vmul.f32 %v3860_v12, %v3860_v12  ;;  %v18437_v19 = vld [vmem:[#allocation267_spill] sm:$0xff]  ;;  %v18439_v44 = vld [vmem:[#allocation366_spill] sm:$0xff]  ;;  %v16319_v49 = vpop.f32.mrf.mxu0 }
 0x509   :  { %v2083_v21 = vadd.f32 %v18429_v38, %v2002_v18  ;;  %v18431_v42 = vld [vmem:[#allocation265_spill] sm:$0xff]  ;;  %v9091_v56 = vmul.f32 %v7336_v33, %v7336_v33  ;;  %v3681_v0 = vadd.f32 %v18433_v41, %v3612_v1  ;;  %v9090_v26 = vmul.f32 %v5600_v22, %v5600_v22  ;;  %v18438_v27 = vld [vmem:[#allocation103_spill] sm:$0xff]  ;;  %v18441_v57 = vld [vmem:[#allocation270_spill] sm:$0xff] }
 0x50a   :  { %v3815_v24 = vadd.f32 %v18431_v42, %v3732_v25  ;;  %v7291_v50 = vadd.f32 %v18432_v31, %v7210_v55  ;;  %v18434_v36 = vld [vmem:[#allocation365_spill] sm:$0xff]  ;;  %9226 = vmatmul.f32.gmra.mxu1 %v9084_v32  ;;  %v9177_v29 = vld [vmem:[#allocation7 + $0x278] sm:$0xff]  ;;  %v9176_v12 = vld [vmem:[#allocation7 + $0x270] sm:$0xff]  ;;  %v8249_v41 = vadd.f32 %v16296_v39, %v16183_v63 }
 0x50b   :  { %v5555_v46 = vadd.f32 %v18434_v36, %v5474_v5  ;;  %9200 = vmatmul.f32.gmra.mxu0 %v9088_v61  ;;  %v2132_v60 = vadd.f32 %v18435_v3, %v2083_v21  ;;  %v3738_v37 = vadd.f32 %v18437_v19, %v3681_v0  ;;  %v18440_v4 = vld [vmem:[#allocation269_spill] sm:$0xff]  ;;  %v16325_v54 = vpop.f32.mrf.mxu2  ;;  %v16327_v18 = vpop.f32.mrf.mxu3  ;;  %9359 = vmatpush.msrb.mxu1 %v9177_v29  ;;  %v9174_v33 = vld [vmem:[#allocation7 + $0x260] sm:$0xff]  ;;  %v9173_v10 = vld [vmem:[#allocation7 + $0x258] sm:$0xff] }
 0x50c   :  { %9287 = vmatmul.f32.gmra.mxu3 %v9091_v56  ;;  %v3864_v9 = vadd.f32 %v18436_v58, %v3815_v24  ;;  %v7340_v45 = vadd.f32 %v18438_v27, %v7291_v50  ;;  %9294 = vmatpush.msrb.mxu0 %v9177_v29  ;;  %v9175_v25 = vld [vmem:[#allocation7 + $0x268] sm:$0xff]  ;;  %v9172_v8 = vld [vmem:[#allocation7 + $0x250] sm:$0xff]  ;;  %v9170_v38 = vld [vmem:[#allocation7 + $0x240] sm:$0xff] }
 0x50d   :  { %9258 = vmatmul.f32.gmra.mxu2 %v9090_v26  ;;  %v5604_v43 = vadd.f32 %v18439_v44, %v5555_v46  ;;  %v3819_v62 = vadd.f32 %v18440_v4, %v3738_v37  ;;  %v9093_v28 = vmul.f32 %v2132_v60, %v2132_v60  ;;  %9361 = vmatpush.msrb.mxu3 %v9177_v29  ;;  %v9171_v47 = vld [vmem:[#allocation7 + $0x248] sm:$0xff]  ;;  %v9169_v21 = vld [vmem:[#allocation7 + $0x238] sm:$0xff]  ;;  %v9168_v1 = vld [vmem:[#allocation7 + $0x230] sm:$0xff] }
 0x50e   :  { %v9089_v51 = vmul.f32 %v3864_v9, %v3864_v9  ;;  %v9096_v23 = vmul.f32 %v7340_v45, %v7340_v45  ;;  %9360 = vmatpush.msrb.mxu2 %v9177_v29  ;;  %9295 = vmatpush.msrb.mxu0 %v9176_v12  ;;  %v9167_v61 = vld [vmem:[#allocation7 + $0x228] sm:$0xff]  ;;  %v9166_v56 = vld [vmem:[#allocation7 + $0x220] sm:$0xff]  ;;  %v9165_v36 = vld [vmem:[#allocation7 + $0x218] sm:$0xff]  ;;  %v8374_v26 = vadd.f32 %v16306_v34, %v8249_v41 }
 0x50f   :  { %v9095_v15 = vmul.f32 %v5604_v43, %v5604_v43  ;;  %v3868_v14 = vadd.f32 %v18441_v57, %v3819_v62  ;;  %v16331_v52 = vpop.f32.mrf.mxu1  ;;  %9362 = vmatpush.msrb.mxu1 %v9176_v12  ;;  %9364 = vmatpush.msrb.mxu3 %v9176_v12  ;;  %v9164_v46 = vld [vmem:[#allocation7 + $0x210] sm:$0xff]  ;;  %v9163_v3 = vld [vmem:[#allocation7 + $0x208] sm:$0xff]  ;;  %v9162_v58 = vld [vmem:[#allocation7 + $0x200] sm:$0xff]  ;;  %v8257_v34 = vadd.f32 %v16319_v49, %v16222_v35 }
 0x510   :  { %v16329_v11 = vpop.f32.mrf.mxu0  ;;  %9363 = vmatpush.msrb.mxu2 %v9176_v12  ;;  %9296 = vmatpush.msrb.mxu0 %v9175_v25  ;;  %v8440_v63 = vadd.f32 %v16310_v40, %v8374_v26 }
 0x511   :  { %v9094_v16 = vmul.f32 %v3868_v14, %v3868_v14  ;;  %9365 = vmatpush.msrb.mxu1 %v9175_v25  ;;  %9367 = vmatpush.msrb.mxu3 %v9175_v25  ;;  %v8378_v27 = vadd.f32 %v16322_v53, %v8257_v34 }
 0x512   :  { %9229 = vmatmul.f32.gmra.mxu1 %v9089_v51  ;;  %9366 = vmatpush.msrb.mxu2 %v9175_v25  ;;  %v8494_v19 = vadd.f32 %v16315_v7, %v8440_v63  ;;  %v8265_v51 = vadd.f32 %v16329_v11, %v16254_v13 }
 0x513   :  { %9203 = vmatmul.f32.gmra.mxu0 %v9093_v28  ;;  %v16333_v20 = vpop.f32.mrf.mxu2  ;;  %v16335_v6 = vpop.f32.mrf.mxu3  ;;  %9368 = vmatpush.msrb.mxu1 %v9174_v33  ;;  %v8445_v43 = vadd.f32 %v16325_v54, %v8378_v27 }
 0x514   :  { %9290 = vmatmul.f32.gmra.mxu3 %v9096_v23  ;;  %9297 = vmatpush.msrb.mxu0 %v9174_v33  ;;  %v8382_v49 = vadd.f32 %v16331_v52, %v8265_v51 }
 0x515   :  { %9261 = vmatmul.f32.gmra.mxu2 %v9095_v15  ;;  %9370 = vmatpush.msrb.mxu3 %v9174_v33  ;;  %v8500_v35 = vadd.f32 %v16327_v18, %v8445_v43 }
 0x516   :  { %9369 = vmatpush.msrb.mxu2 %v9174_v33  ;;  %9298 = vmatpush.msrb.mxu0 %v9173_v10  ;;  %v8450_v54 = vadd.f32 %v16333_v20, %v8382_v49 }
 0x517   :  { %v16339_v30 = vpop.f32.mrf.mxu1  ;;  %9371 = vmatpush.msrb.mxu1 %v9173_v10  ;;  %9373 = vmatpush.msrb.mxu3 %v9173_v10 }
 0x518   :  { %v16337_v17 = vpop.f32.mrf.mxu0  ;;  %9372 = vmatpush.msrb.mxu2 %v9173_v10  ;;  %9299 = vmatpush.msrb.mxu0 %v9172_v8  ;;  %v8506_v18 = vadd.f32 %v16335_v6, %v8450_v54 }
 0x519   :  { %9374 = vmatpush.msrb.mxu1 %v9172_v8  ;;  %9376 = vmatpush.msrb.mxu3 %v9172_v8  ;;  %v8273_v13 = vadd.f32 %v16337_v17, %v16290_v48 }
 0x51a   :  { %9232 = vmatmul.f32.gmra.mxu1 %v9094_v16  ;;  %9375 = vmatpush.msrb.mxu2 %v9172_v8 }
 0x51b   :  { %v16341_v59 = vpop.f32.mrf.mxu2  ;;  %v16343_v55 = vpop.f32.mrf.mxu3  ;;  %9300 = vmatpush.msrb.mxu0 %v9171_v47  ;;  %9377 = vmatpush.msrb.mxu1 %v9171_v47  ;;  %v8386_v10 = vadd.f32 %v16339_v30, %v8273_v13 }
 0x51c   :  { %9378 = vmatpush.msrb.mxu2 %v9171_v47  ;;  %9379 = vmatpush.msrb.mxu3 %v9171_v47 }
 0x51d   :  { %9301 = vmatpush.msrb.mxu0 %v9170_v38  ;;  %9380 = vmatpush.msrb.mxu1 %v9170_v38 }
 0x51e   :  { %9381 = vmatpush.msrb.mxu2 %v9170_v38  ;;  %9382 = vmatpush.msrb.mxu3 %v9170_v38  ;;  %v8455_v38 = vadd.f32 %v16341_v59, %v8386_v10 }
 0x51f   :  { %v16347_v5 = vpop.f32.mrf.mxu1  ;;  %9302 = vmatpush.msrb.mxu0 %v9169_v21  ;;  %9383 = vmatpush.msrb.mxu1 %v9169_v21 }
 0x520   :  { %v16345_v22 = vpop.f32.mrf.mxu0  ;;  %9384 = vmatpush.msrb.mxu2 %v9169_v21  ;;  %9385 = vmatpush.msrb.mxu3 %v9169_v21  ;;  %v8512_v6 = vadd.f32 %v16343_v55, %v8455_v38 }
 0x521   :  { %9303 = vmatpush.msrb.mxu0 %v9168_v1  ;;  %9386 = vmatpush.msrb.mxu1 %v9168_v1  ;;  %v8581_v40 = vadd.f32 %v16345_v22, %v8494_v19 }
 0x522   :  { %9387 = vmatpush.msrb.mxu2 %v9168_v1  ;;  %9388 = vmatpush.msrb.mxu3 %v9168_v1 }
 0x523   :  { %v16349_v2 = vpop.f32.mrf.mxu2  ;;  %v16351_v42 = vpop.f32.mrf.mxu3  ;;  %9304 = vmatpush.msrb.mxu0 %v9167_v61  ;;  %9389 = vmatpush.msrb.mxu1 %v9167_v61  ;;  %v8630_v45 = vadd.f32 %v16347_v5, %v8581_v40 }
 0x524   :  { %9390 = vmatpush.msrb.mxu2 %v9167_v61  ;;  %9391 = vmatpush.msrb.mxu3 %v9167_v61 }
 0x525   :  { %9305 = vmatpush.msrb.mxu0 %v9166_v56  ;;  %9392 = vmatpush.msrb.mxu1 %v9166_v56  ;;  %v8683_v62 = vadd.f32 %v16349_v2, %v8630_v45 }
 0x526   :  { %9393 = vmatpush.msrb.mxu2 %v9166_v56  ;;  %9394 = vmatpush.msrb.mxu3 %v9166_v56 }
 0x527   :  { %v8633_v32 = vpop.f32.mrf.mxu1  ;;  %9306 = vmatpush.msrb.mxu0 %v9165_v36  ;;  %9395 = vmatpush.msrb.mxu1 %v9165_v36  ;;  %v8808_v15 = vadd.f32 %v16351_v42, %v8683_v62 }
 0x528   :  { %v8584_v24 = vpop.f32.mrf.mxu0  ;;  %9396 = vmatpush.msrb.mxu2 %v9165_v36  ;;  %9397 = vmatpush.msrb.mxu3 %v9165_v36 }
 0x529   :  { %9307 = vmatpush.msrb.mxu0 %v9164_v46  ;;  %9398 = vmatpush.msrb.mxu1 %v9164_v46  ;;  %v8585_v23 = vadd.f32 %v8584_v24, %v8500_v35 }
 0x52a   :  { %9399 = vmatpush.msrb.mxu2 %v9164_v46  ;;  %9400 = vmatpush.msrb.mxu3 %v9164_v46 }
 0x52b   :  { %v8690_v31 = vpop.f32.mrf.mxu2  ;;  %v16353_v50 = vpop.f32.mrf.mxu3  ;;  %9308 = vmatpush.msrb.mxu0 %v9163_v3  ;;  %9401 = vmatpush.msrb.mxu1 %v9163_v3  ;;  %v8634_v53 = vadd.f32 %v8633_v32, %v8585_v23 }
 0x52c   :  { %9402 = vmatpush.msrb.mxu2 %v9163_v3  ;;  %9403 = vmatpush.msrb.mxu3 %v9163_v3 }
 0x52d   :  { %9309 = vmatpush.msrb.mxu0 %v9162_v58  ;;  %9404 = vmatpush.msrb.mxu1 %v9162_v58  ;;  %v8691_v12 = vadd.f32 %v8690_v31, %v8634_v53 }
 0x52e   :  { %9405 = vmatpush.msrb.mxu2 %v9162_v58  ;;  %9406 = vmatpush.msrb.mxu3 %v9162_v58 }
 0x52f   :  { %v8812_v22 = vadd.f32 %v16353_v50, %v8691_v12 }
 0x530   :  { %v8588_v0 = vpop.f32.mrf.mxu0 }
 0x531   :  { %v8589_v8 = vadd.f32 %v8588_v0, %v8506_v18 }
 0x532   :  { %v8637_v60 = vpop.f32.mrf.mxu1 }
 0x533   :  { %v8815_v9 = vpop.f32.mrf.mxu3  ;;  %v8638_v5 = vadd.f32 %v8637_v60, %v8589_v8 }
 0x538   :  { %v8698_v39 = vpop.f32.mrf.mxu2  ;;  %v8592_v37 = vpop.f32.mrf.mxu0 }
 0x539   :  { %v8699_v42 = vadd.f32 %v8698_v39, %v8638_v5  ;;  %v8593_v30 = vadd.f32 %v8592_v37, %v8512_v6 }
 0x53b   :  { %v8816_v32 = vadd.f32 %v8815_v9, %v8699_v42 }
 0x53d   :  { %v8819_v28 = vpop.f32.mrf.mxu3 }
 0x53e   :  { %v8641_v44 = vpop.f32.mrf.mxu1 }
 0x53f   :  { %v8642_v50 = vadd.f32 %v8641_v44, %v8593_v30 }
 0x540   :  { %v8706_v4 = vpop.f32.mrf.mxu2  ;;  %v8873_v7 = vpop.f32.mrf.mxu0 }
 0x541   :  { %v8874_v57 = vadd.f32 %v8873_v7, %v8808_v15  ;;  %v8707_v59 = vadd.f32 %v8706_v4, %v8642_v50 }
 0x543   :  { %v8820_v63 = vadd.f32 %v8819_v28, %v8707_v59 }
 0x548   :  { %v9063_v25 = vpop.f32.mrf.mxu3 }
 0x549   :  { %v9014_v29 = vpop.f32.mrf.mxu2 }
 0x54a   :  { %v8878_v11 = vpop.f32.mrf.mxu0 }
 0x54b   :  { %v8879_v20 = vadd.f32 %v8878_v11, %v8812_v22 }
 0x54d   :  { %v8927_v14 = vpop.f32.mrf.mxu1 }
 0x54e   :  { %v8928_v16 = vadd.f32 %v8927_v14, %v8874_v57 }
 0x550   :  { %v9015_v33 = vadd.f32 %v9014_v29, %v8928_v16  ;;  %v9067_v48 = vpop.f32.mrf.mxu3 }
 0x552   :  { %v9064_v52 = vadd.f32 %v9063_v25, %v9015_v33 }
 0x553   :  { %v9018_v1 = vpop.f32.mrf.mxu2 }
 0x554   :  { %v9082_v47 = vmul.f32 %v9064_v52, %v9064_v52 }
 0x556   :  { %9310 = vmatmul.f32.vlgmr.msrb.gmra.mxu0 %v9082_v47 }
 0x558   :  { %v9071_v46 = vpop.f32.mrf.mxu3 }
 0x55a   :  { %v8933_v21 = vpop.f32.mrf.mxu1 }
 0x55b   :  { %v8934_v2 = vadd.f32 %v8933_v21, %v8879_v20  ;;  %v8883_v24 = vpop.f32.mrf.mxu0 }
 0x55c   :  { %v8884_v56 = vadd.f32 %v8883_v24, %v8816_v32  ;;  %v9022_v36 = vpop.f32.mrf.mxu2 }
 0x55d   :  { %v9019_v17 = vadd.f32 %v9018_v1, %v8934_v2 }
 0x55f   :  { %v9068_v61 = vadd.f32 %v9067_v48, %v9019_v17 }
 0x561   :  { %v9087_v31 = vmul.f32 %v9068_v61, %v9068_v61  ;;  %v9075_v37 = vpop.f32.mrf.mxu3 }
 0x563   :  { %9313 = vmatmul.f32.vlgmr.msrb.gmra.mxu1 %v9087_v31 }
 0x567   :  { %v8888_v3 = vpop.f32.mrf.mxu0 }
 0x568   :  { %v8889_v58 = vadd.f32 %v8888_v3, %v8820_v63 }
 0x569   :  { %v9026_v19 = vpop.f32.mrf.mxu2 }
 0x56a   :  { %v8939_v41 = vpop.f32.mrf.mxu1 }
 0x56b   :  { %v8940_v0 = vadd.f32 %v8939_v41, %v8884_v56 }
 0x56d   :  { %v9023_v26 = vadd.f32 %v9022_v36, %v8940_v0 }
 0x56f   :  { %v9072_v60 = vadd.f32 %v9071_v46, %v9023_v26 }
 0x571   :  { %v9092_v39 = vmul.f32 %v9072_v60, %v9072_v60 }
 0x573   :  { %9316 = vmatmul.f32.vlgmr.msrb.gmra.mxu2 %v9092_v39 }
 0x576   :  { %v8945_v55 = vpop.f32.mrf.mxu1 }
 0x577   :  { %v8946_v34 = vadd.f32 %v8945_v55, %v8889_v58 }
 0x578   :  { %v9195_v45 = vpop.f32.mrf.mxu0 }
 0x579   :  { %v9027_v9 = vadd.f32 %v9026_v19, %v8946_v34 }
 0x57a   :  { %v9282_v23 = vpop.f32.mrf.mxu3 }
 0x57b   :  { %v9076_v27 = vadd.f32 %v9075_v37, %v9027_v9 }
 0x57c   :  { %v9253_v51 = vpop.f32.mrf.mxu2 }
 0x57d   :  { %v9097_v40 = vmul.f32 %v9076_v27, %v9076_v27 }
 0x57f   :  { %9319 = vmatmul.f32.vlgmr.msrb.gmra.mxu3 %v9097_v40  ;;  %v9224_v43 = vpop.f32.mrf.mxu1 }
 0x580   :  { %v9198_v44 = vpop.f32.mrf.mxu0  ;;  %v9225_v35 = vadd.f32 %v9224_v43, %v9195_v45 }
 0x582   :  { %v9254_v49 = vadd.f32 %v9253_v51, %v9225_v35 }
 0x584   :  { %v9283_v53 = vadd.f32 %v9282_v23, %v9254_v49 }
 0x587   :  { %v9227_v62 = vpop.f32.mrf.mxu1  ;;  %v9285_v25 = vpop.f32.mrf.mxu3 }
 0x588   :  { %v9201_v4 = vpop.f32.mrf.mxu0  ;;  %v9256_v15 = vpop.f32.mrf.mxu2  ;;  %v9228_v14 = vadd.f32 %v9227_v62, %v9198_v44 }
 0x58a   :  { %v9257_v12 = vadd.f32 %v9256_v15, %v9228_v14 }
 0x58c   :  { %v9286_v13 = vadd.f32 %v9285_v25, %v9257_v12 }
 0x58f   :  { %v9230_v28 = vpop.f32.mrf.mxu1  ;;  %v9288_v22 = vpop.f32.mrf.mxu3 }
 0x590   :  { %v9204_v7 = vpop.f32.mrf.mxu0  ;;  %v9259_v33 = vpop.f32.mrf.mxu2  ;;  %v9231_v47 = vadd.f32 %v9230_v28, %v9201_v4 }
 0x592   :  { %v9260_v38 = vadd.f32 %v9259_v33, %v9231_v47 }
 0x594   :  { %v9289_v2 = vadd.f32 %v9288_v22, %v9260_v38 }
 0x597   :  { %v9233_v16 = vpop.f32.mrf.mxu1  ;;  %v9291_v48 = vpop.f32.mrf.mxu3 }
 0x598   :  { %v9262_v5 = vpop.f32.mrf.mxu2  ;;  %v9234_v1 = vadd.f32 %v9233_v16, %v9204_v7 }
 0x59a   :  { %v9263_v24 = vadd.f32 %v9262_v5, %v9234_v1 }
 0x59c   :  { %v9292_v61 = vadd.f32 %v9291_v48, %v9263_v24 }
 0x5d3   :  { %v9311_v57 = vpop.f32.mrf.mxu0 }
 0x5d4   :  { %v9312_v54 = vadd.f32 %v9311_v57, %v9283_v53 }
 0x5d6   :  { %v9323_v29 = vmax.f32 %v9312_v54, 1e-09 }
 0x5d8   :  { %9417 = vlog2.f32 %v9323_v29 }
 0x5de   :  { %v9418_v11 = vpop.eup %9417 }
 0x5df   :  { %v9328_v10 = vmul.f32 0.6931472, %v9418_v11 }
 0x5e0   :  { %v9314_v18 = vpop.f32.mrf.mxu1 }
 0x5e1   :  { %v9315_v52 = vadd.f32 %v9314_v18, %v9286_v13  ;;  %9335 = vst [vmem:[#allocation8] sm:$0xff] %v9328_v10 }
 0x5e3   :  { %v9324_v8 = vmax.f32 %v9315_v52, 1e-09 }
 0x5e5   :  { %9419 = vlog2.f32 %v9324_v8 }
 0x5eb   :  { %v9420_v20 = vpop.eup %9419 }
 0x5ec   :  { %v9330_v21 = vmul.f32 0.6931472, %v9420_v20 }
 0x5ee   :  { %9336 = vst [vmem:[#allocation8 + $0x8] sm:$0xff] %v9330_v21 }
 0x5f6   :  { %v9317_v42 = vpop.f32.mrf.mxu2 }
 0x5f7   :  { %v9318_v17 = vadd.f32 %v9317_v42, %v9289_v2 }
 0x5f9   :  { %v9325_v6 = vmax.f32 %v9318_v17, 1e-09 }
 0x5fb   :  { %9421 = vlog2.f32 %v9325_v6 }
 0x601   :  { %v9422_v31 = vpop.eup %9421 }
 0x602   :  { %v9320_v30 = vpop.f32.mrf.mxu3  ;;  %v9332_v50 = vmul.f32 0.6931472, %v9422_v31 }
 0x603   :  { %v9321_v32 = vadd.f32 %v9320_v30, %v9292_v61 }
 0x604   :  { %9337 = vst [vmem:[#allocation8 + $0x10] sm:$0xff] %v9332_v50 }
 0x605   :  { %v9326_v56 = vmax.f32 %v9321_v32, 1e-09 }
 0x607   :  { %9423 = vlog2.f32 %v9326_v56 }
 0x60d   :  { %v9424_v41 = vpop.eup %9423 }
 0x60e   :  { %v9334_v0 = vmul.f32 0.6931472, %v9424_v41 }
 0x610   :  { %9338 = vst [vmem:[#allocation8 + $0x18] sm:$0xff] %v9334_v0 }
 0x611   :  { %9351 = dma.vmem_to_hbm [thread:$0]  %s9344_s4, 512, %s9346_s7, [#allocation4], %s9534_s30, %s9534_s30, %s9535_s0  }
 0x612   :  { %9525 = dma.done.wait [#allocation4], 512  }
 0x613   :  { %9526 = vsyncadd [#allocation4], 4294966784 }
 0x614   :  { %9356 = vsyncpa [#allocation3], 1 }
 0x615   :  { %9357 = vsyncpa [#allocation6], 1 }
 0x616   :  { %9358 = vsyncpa [#allocation4], 1 }

</bundles_post_ra>
